<compile_context>
chip_gen: v5e
topology: v5e:2x2
jax: 0.10.0
libtpu: 0.0.40
codegen_flags: <defaults>
</compile_context>

<pallas_src>
import math

import jax
import jax.numpy as jnp
from jax import lax
from jax.experimental import pallas as pl
from jax.experimental.pallas import tpu as pltpu

# ---- hyper-parameters (small shapes consistent with the module __init__) ----
B = 2            # batch
C = 32           # embed_dim
H = W = 16       # img_size
HW = H * W
K = 5            # kernel_size (module default is 7; any odd size works)
P = K // 2
HP, WP = H + 2 * P, W + 2 * P
CS = 16          # skip_dim
T = 8            # time_emb_dim
ZD = 8           # z_dim
MULT = 2
CM = C * MULT
EPS = 1e-5
SQRT_HALF = 0.7071067811865476


# ----------------------------- in-kernel math --------------------------------
def _erf(x):
    # Abramowitz & Stegun 7.1.26 rational approximation (|err| < 1.5e-7).
    a1, a2, a3, a4, a5 = (0.254829592, -0.284496736, 1.421413741,
                          -1.453152027, 1.061405429)
    p = 0.3275911
    s = jnp.where(x >= 0.0, 1.0, -1.0)
    ax = jnp.abs(x)
    # approx reciprocal lowers to the EUP (free slot next to the exp below)
    t = pl.reciprocal(1.0 + p * ax, approx=True)
    poly = ((((a5 * t + a4) * t + a3) * t + a2) * t + a1) * t
    return s * (1.0 - poly * jnp.exp(-ax * ax))


def _gelu(x):
    # exact (erf-based) GELU, matching torch.nn.GELU() default
    return 0.5 * x * (1.0 + _erf(x * SQRT_HALF))


def _layernorm(x, g, b):
    mu = jnp.mean(x, axis=-1, keepdims=True)
    var = jnp.mean(jnp.square(x - mu), axis=-1, keepdims=True)
    return (x - mu) * lax.rsqrt(var + EPS) * g + b


# ------------------------------ fused kernel ----------------------------------
def _fused_kernel(xcat_ref, norm_ref, tm1_ref, zm1_ref, tm2_ref, zm2_ref,
                  w_skip_ref, b_skip_ref, g1_ref, be1_ref, g2_ref, be2_ref,
                  kern_ref, w_m1_ref, b_m1_ref, w_m2_ref, b_m2_ref,
                  out_ref, xres_scr, hpad_scr):
    # 1) skip_linear(concat([x, skip])) — single matmul; keep xres in VMEM
    xr = (jnp.dot(xcat_ref[0], w_skip_ref[...],
                  preferred_element_type=jnp.float32) + b_skip_ref[...])
    xres_scr[...] = xr

    # 2) modulate(norm1) — t/z projections precomputed per batch in wrapper
    feats = _layernorm(xr, g1_ref[...], be1_ref[...])
    tm1 = tm1_ref[0]                               # (1, 2C)
    feats = feats * (1.0 + tm1[:, :C]) + tm1[:, C:]
    feats = feats * (1.0 + zm1_ref[0])             # (1, C) broadcast

    # 3) depthwise KxK conv; zero padding done in-kernel into VMEM scratch
    hpad_scr[...] = jnp.zeros_like(hpad_scr)
    hpad_scr[pl.ds(P, H), pl.ds(P, W), :] = feats.reshape(H, W, C)
    kern = kern_ref[...]                           # (K*K, C) loaded once
    acc = jnp.zeros((H, W, C), jnp.float32)
    for a in range(K):
        for b in range(K):
            tap = hpad_scr[pl.ds(a, H), pl.ds(b, W), :]      # (H, W, C)
            acc = acc + tap * kern[a * K + b:a * K + b + 1, :]

    # 4) ts_div(h, norm) + ts_add(x, h) — EUP approx reciprocal for the divide
    inv_norm = pl.reciprocal(norm_ref[0], approx=True)       # (HW, 1)
    x2 = xres_scr[...] + acc.reshape(HW, C) * inv_norm

    # 5) modulate(norm2) -> mlp(Linear, GELU, Linear) -> residual add
    feats2 = _layernorm(x2, g2_ref[...], be2_ref[...])
    tm2 = tm2_ref[0]
    feats2 = feats2 * (1.0 + tm2[:, :C]) + tm2[:, C:]
    feats2 = feats2 * (1.0 + zm2_ref[0])
    m = _gelu(jnp.dot(feats2, w_m1_ref[...],
                      preferred_element_type=jnp.float32) + b_m1_ref[...])
    m = (jnp.dot(m, w_m2_ref[...], preferred_element_type=jnp.float32)
         + b_m2_ref[...])
    out_ref[0] = x2 + m


# ------------------------------ spec helpers ----------------------------------
def _data_spec(shape):
    n = len(shape)
    return pl.BlockSpec((1,) + tuple(shape[1:]),
                        lambda b, n=n: (b,) + (0,) * (n - 1))


def _weight_spec(shape):
    n = len(shape)
    return pl.BlockSpec(tuple(shape), lambda b, n=n: (0,) * n)


# --------------------------------- wrapper -------------------------------------
def res_block_forward(params, x_nchw, skip_nchw, t, z, norm_nchw):
    # NCHW -> (B, HW, C) tokens (batch-major, matching 'b c h w -> (b h w) c')
    xf = jnp.transpose(x_nchw, (0, 2, 3, 1)).reshape(B, HW, C)
    skf = jnp.transpose(skip_nchw, (0, 2, 3, 1)).reshape(B, HW, CS)
    xcat = jnp.concatenate([xf, skf], axis=-1)                  # (B, HW, C+CS)
    normf = jnp.transpose(norm_nchw, (0, 2, 3, 1)).reshape(B, HW, 1)

    # Hoisted per-batch time/z modulation projections (tiny M=B matmuls).
    tg = jax.nn.gelu(t, approximate=False)
    tm1 = (tg @ params["w_t1"] + params["b_t1"]).reshape(B, 1, 2 * C)
    tm2 = (tg @ params["w_t2"] + params["b_t2"]).reshape(B, 1, 2 * C)
    zm1 = (jax.nn.gelu(z @ params["w_z1a"] + params["b_z1a"], approximate=False)
           @ params["w_z1b"] + params["b_z1b"]).reshape(B, 1, C)
    zm2 = (jax.nn.gelu(z @ params["w_z2a"] + params["b_z2a"], approximate=False)
           @ params["w_z2b"] + params["b_z2b"]).reshape(B, 1, C)

    inputs = (xcat, normf, tm1, zm1, tm2, zm2,
              params["w_skip"], params["b_skip"],
              params["g1"], params["be1"], params["g2"], params["be2"],
              params["kern"], params["w_m1"], params["b_m1"],
              params["w_m2"], params["b_m2"])
    in_specs = ([_data_spec(a.shape) for a in inputs[:6]]
                + [_weight_spec(a.shape) for a in inputs[6:]])

    outf = pl.pallas_call(
        _fused_kernel,
        out_shape=jax.ShapeDtypeStruct((B, HW, C), jnp.float32),
        grid=(B,),
        in_specs=in_specs,
        out_specs=_data_spec((B, HW, C)),
        scratch_shapes=[pltpu.VMEM((HW, C), jnp.float32),       # xres
                        pltpu.VMEM((HP, WP, C), jnp.float32)],  # padded feats
        compiler_params=pltpu.CompilerParams(
            dimension_semantics=("parallel",)),
    )(*inputs)

    # back to NCHW to match the PyTorch module's output convention
    return jnp.transpose(outf.reshape(B, H, W, C), (0, 3, 1, 2))


# ------------------------------ pure-JAX reference ------------------------------
def reference(params, x_nchw, skip_nchw, t, z, norm_nchw):
    xf = jnp.transpose(x_nchw, (0, 2, 3, 1)).reshape(B * HW, C)
    skf = jnp.transpose(skip_nchw, (0, 2, 3, 1)).reshape(B * HW, CS)
    x = jnp.concatenate([xf, skf], axis=-1) @ params["w_skip"] + params["b_skip"]

    def ln(f, g, b):
        mu = jnp.mean(f, -1, keepdims=True)
        var = jnp.mean(jnp.square(f - mu), -1, keepdims=True)
        return (f - mu) / jnp.sqrt(var + EPS) * g + b

    def modulate(f, g, be, wt, bt, wza, bza, wzb, bzb):
        f = ln(f, g, be)
        tp = jax.nn.gelu(t, approximate=False) @ wt + bt          # (B, 2C)
        tp = jnp.repeat(tp, HW, axis=0)                           # (B*HW, 2C)
        ts, tsh = tp[:, :C], tp[:, C:]
        f = f * (1.0 + ts) + tsh
        zs = jax.nn.gelu(z @ wza + bza, approximate=False) @ wzb + bzb
        zs = jnp.repeat(zs, HW, axis=0)
        return f * (1.0 + zs)

    hm = modulate(x, params["g1"], params["be1"], params["w_t1"], params["b_t1"],
                  params["w_z1a"], params["b_z1a"], params["w_z1b"], params["b_z1b"])
    kern = params["kern"].reshape(K, K, 1, C)
    conv = lax.conv_general_dilated(
        hm.reshape(B, H, W, C), kern, window_strides=(1, 1),
        padding=((P, P), (P, P)), dimension_numbers=("NHWC", "HWIO", "NHWC"),
        feature_group_count=C).reshape(B * HW, C)
    normf = jnp.transpose(norm_nchw, (0, 2, 3, 1)).reshape(B * HW, 1)
    x = x + conv / normf
    hm2 = modulate(x, params["g2"], params["be2"], params["w_t2"], params["b_t2"],
                   params["w_z2a"], params["b_z2a"], params["w_z2b"], params["b_z2b"])
    m = jax.nn.gelu(hm2 @ params["w_m1"] + params["b_m1"],
                    approximate=False) @ params["w_m2"] + params["b_m2"]
    x = x + m
    return jnp.transpose(x.reshape(B, H, W, C), (0, 3, 1, 2))


# --------------------------------- params ---------------------------------------
def init_params(key):
    keys = jax.random.split(key, 10)

    def linear(k, fi, fo):
        kw, kb = jax.random.split(k)
        bound = 1.0 / math.sqrt(fi)           # PyTorch nn.Linear default init
        w = jax.random.uniform(kw, (fi, fo), jnp.float32, -bound, bound)
        b = jax.random.uniform(kb, (1, fo), jnp.float32, -bound, bound)
        return w, b

    p = {}
    p["w_skip"], p["b_skip"] = linear(keys[0], C + CS, C)
    p["g1"], p["be1"] = jnp.ones((1, C), jnp.float32), jnp.zeros((1, C), jnp.float32)
    p["g2"], p["be2"] = jnp.ones((1, C), jnp.float32), jnp.zeros((1, C), jnp.float32)
    p["w_t1"], p["b_t1"] = linear(keys[1], T, 2 * C)
    p["w_t2"], p["b_t2"] = linear(keys[2], T, 2 * C)
    p["w_z1a"], p["b_z1a"] = linear(keys[3], ZD, C)
    p["w_z1b"], p["b_z1b"] = linear(keys[4], C, C)
    p["w_z2a"], p["b_z2a"] = linear(keys[5], ZD, C)
    p["w_z2b"], p["b_z2b"] = linear(keys[6], C, C)
    p["w_m1"], p["b_m1"] = linear(keys[7], C, CM)
    p["w_m2"], p["b_m2"] = linear(keys[8], CM, C)
    # depthwise conv kernel, _custom_kaiming_uniform_(a=sqrt(5))
    fan = C * K * K
    gain = math.sqrt(2.0 / (1.0 + 5.0))       # calculate_gain('leaky_relu', sqrt(5))
    bound = math.sqrt(3.0) * gain / math.sqrt(fan)
    p["kern"] = jax.random.uniform(keys[9], (K * K, C), jnp.float32, -bound, bound)
    return p


if __name__ == "__main__":
    key = jax.random.PRNGKey(0)
    kp, kx, ks, kt, kz = jax.random.split(key, 5)
    params = init_params(kp)

    x = jax.random.normal(kx, (B, C, H, W), jnp.float32)
    skip = jax.random.normal(ks, (B, CS, H, W), jnp.float32)
    t = jax.random.normal(kt, (B, T), jnp.float32)
    z = jax.random.normal(kz, (B, ZD), jnp.float32)
    # "norm" input: partial-conv style normaliser (#valid taps / K^2) per pixel
    rows = jnp.arange(H)
    cols = jnp.arange(W)
    rcnt = jnp.minimum(rows + P, H - 1) - jnp.maximum(rows - P, 0) + 1
    ccnt = jnp.minimum(cols + P, W - 1) - jnp.maximum(cols - P, 0) + 1
    counts = (rcnt[:, None] * ccnt[None, :]).astype(jnp.float32) / float(K * K)
    norm = jnp.broadcast_to(counts[None, None], (B, 1, H, W))

    fwd = jax.jit(res_block_forward)
    out = jax.block_until_ready(fwd(params, x, skip, t, z, norm))

    ref = reference(params, x, skip, t, z, norm)
    err = float(jnp.max(jnp.abs(out - ref)))
    assert jnp.all(jnp.isfinite(out)), "non-finite output"
    assert err < 5e-2, f"mismatch vs reference: {err}"
    print("KERNEL_OK")
</pallas_src>

<mosaic_0001>
module attributes {stable_mosaic.version = 11 : i64} {
  func.func @_fused_kernel(%arg0: i32, %arg1: memref<1x256x48xf32, #tpu.memory_space<vmem>>, %arg2: memref<1x256x1xf32, #tpu.memory_space<vmem>>, %arg3: memref<1x1x64xf32, #tpu.memory_space<vmem>>, %arg4: memref<1x1x32xf32, #tpu.memory_space<vmem>>, %arg5: memref<1x1x64xf32, #tpu.memory_space<vmem>>, %arg6: memref<1x1x32xf32, #tpu.memory_space<vmem>>, %arg7: memref<48x32xf32, #tpu.memory_space<vmem>>, %arg8: memref<1x32xf32, #tpu.memory_space<vmem>>, %arg9: memref<1x32xf32, #tpu.memory_space<vmem>>, %arg10: memref<1x32xf32, #tpu.memory_space<vmem>>, %arg11: memref<1x32xf32, #tpu.memory_space<vmem>>, %arg12: memref<1x32xf32, #tpu.memory_space<vmem>>, %arg13: memref<25x32xf32, #tpu.memory_space<vmem>>, %arg14: memref<32x64xf32, #tpu.memory_space<vmem>>, %arg15: memref<1x64xf32, #tpu.memory_space<vmem>>, %arg16: memref<64x32xf32, #tpu.memory_space<vmem>>, %arg17: memref<1x32xf32, #tpu.memory_space<vmem>>, %arg18: memref<1x256x32xf32, #tpu.memory_space<vmem>>, %arg19: memref<256x32xf32, #tpu.memory_space<vmem>>, %arg20: memref<20x20x32xf32, #tpu.memory_space<vmem>>) attributes {dimension_semantics = [#tpu.dimension_semantics<parallel>], iteration_bounds = array<i64: 2>, scalar_prefetch = 0 : i64, scratch_operands = 2 : i64, tpu.core_type = #tpu.core_type<tc>, window_params = [{transform_indices = @transform_0, window_bounds = array<i64: 1, 256, 48>}, {transform_indices = @transform_1, window_bounds = array<i64: 1, 256, 1>}, {transform_indices = @transform_2, window_bounds = array<i64: 1, 1, 64>}, {transform_indices = @transform_3, window_bounds = array<i64: 1, 1, 32>}, {transform_indices = @transform_4, window_bounds = array<i64: 1, 1, 64>}, {transform_indices = @transform_5, window_bounds = array<i64: 1, 1, 32>}, {pipeline_mode = #tpu.pipeline_mode<synchronous>, transform_indices = @transform_6, window_bounds = array<i64: 48, 32>}, {pipeline_mode = #tpu.pipeline_mode<synchronous>, transform_indices = @transform_7, window_bounds = array<i64: 1, 32>}, {pipeline_mode = #tpu.pipeline_mode<synchronous>, transform_indices = @transform_8, window_bounds = array<i64: 1, 32>}, {pipeline_mode = #tpu.pipeline_mode<synchronous>, transform_indices = @transform_9, window_bounds = array<i64: 1, 32>}, {pipeline_mode = #tpu.pipeline_mode<synchronous>, transform_indices = @transform_10, window_bounds = array<i64: 1, 32>}, {pipeline_mode = #tpu.pipeline_mode<synchronous>, transform_indices = @transform_11, window_bounds = array<i64: 1, 32>}, {pipeline_mode = #tpu.pipeline_mode<synchronous>, transform_indices = @transform_12, window_bounds = array<i64: 25, 32>}, {pipeline_mode = #tpu.pipeline_mode<synchronous>, transform_indices = @transform_13, window_bounds = array<i64: 32, 64>}, {pipeline_mode = #tpu.pipeline_mode<synchronous>, transform_indices = @transform_14, window_bounds = array<i64: 1, 64>}, {pipeline_mode = #tpu.pipeline_mode<synchronous>, transform_indices = @transform_15, window_bounds = array<i64: 64, 32>}, {pipeline_mode = #tpu.pipeline_mode<synchronous>, transform_indices = @transform_16, window_bounds = array<i64: 1, 32>}, {transform_indices = @transform_17, window_bounds = array<i64: 1, 256, 32>}]} {
    %c0 = arith.constant 0 : index
    %c0_0 = arith.constant 0 : index
    %c0_1 = arith.constant 0 : index
    %0 = vector.load %arg1[%c0, %c0_0, %c0_1] : memref<1x256x48xf32, #tpu.memory_space<vmem>>, vector<1x256x48xf32>
    %1 = vector.shape_cast %0 : vector<1x256x48xf32> to vector<256x48xf32>
    %c0_2 = arith.constant 0 : index
    %c0_3 = arith.constant 0 : index
    %2 = vector.load %arg7[%c0_2, %c0_3] : memref<48x32xf32, #tpu.memory_space<vmem>>, vector<48x32xf32>
    %cst = arith.constant dense<0.000000e+00> : vector<256x32xf32>
    %3 = tpu.matmul %1, %2, %cst {dimension_numbers = #tpu.dot_dimension_numbers<[1], [0], [0], [1], [0, 0, 1, 1], [], []>} : vector<256x48xf32>, vector<48x32xf32>, vector<256x32xf32> -> vector<256x32xf32>
    %c0_4 = arith.constant 0 : index
    %c0_5 = arith.constant 0 : index
    %4 = vector.load %arg8[%c0_4, %c0_5] : memref<1x32xf32, #tpu.memory_space<vmem>>, vector<1x32xf32>
    %5 = vector.broadcast %4 : vector<1x32xf32> to vector<256x32xf32>
    %6 = arith.addf %3, %5 : vector<256x32xf32>
    %c0_6 = arith.constant 0 : index
    %c0_7 = arith.constant 0 : index
    %7 = vector.load %arg19[%c0_6, %c0_7] : memref<256x32xf32, #tpu.memory_space<vmem>>, vector<256x32xf32>
    tpu.vector_store %arg19[%c0_6, %c0_7], %6 {strides = array<i32>} : memref<256x32xf32, #tpu.memory_space<vmem>>, vector<256x32xf32>,
    %c0_8 = arith.constant 0 : index
    %c0_9 = arith.constant 0 : index
    %8 = vector.load %arg9[%c0_8, %c0_9] : memref<1x32xf32, #tpu.memory_space<vmem>>, vector<1x32xf32>
    %c0_10 = arith.constant 0 : index
    %c0_11 = arith.constant 0 : index
    %9 = vector.load %arg10[%c0_10, %c0_11] : memref<1x32xf32, #tpu.memory_space<vmem>>, vector<1x32xf32>
    %cst_12 = arith.constant dense<0.000000e+00> : vector<256xf32>
    %10 = vector.multi_reduction <add>, %6, %cst_12 [1] : vector<256x32xf32> to vector<256xf32>
    %11 = vector.shape_cast %10 : vector<256xf32> to vector<256x1xf32>
    %cst_13 = arith.constant 3.200000e+01 : f32
    %12 = vector.broadcast %cst_13 : f32 to vector<256x1xf32>
    %13 = arith.divf %11, %12 : vector<256x1xf32>
    %14 = vector.broadcast %13 : vector<256x1xf32> to vector<256x32xf32>
    %15 = arith.subf %6, %14 : vector<256x32xf32>
    %16 = arith.mulf %15, %15 : vector<256x32xf32>
    %cst_14 = arith.constant dense<0.000000e+00> : vector<256xf32>
    %17 = vector.multi_reduction <add>, %16, %cst_14 [1] : vector<256x32xf32> to vector<256xf32>
    %18 = vector.shape_cast %17 : vector<256xf32> to vector<256x1xf32>
    %cst_15 = arith.constant 3.200000e+01 : f32
    %19 = vector.broadcast %cst_15 : f32 to vector<256x1xf32>
    %20 = arith.divf %18, %19 : vector<256x1xf32>
    %21 = vector.broadcast %13 : vector<256x1xf32> to vector<256x32xf32>
    %22 = arith.subf %6, %21 : vector<256x32xf32>
    %cst_16 = arith.constant 9.99999974E-6 : f32
    %23 = vector.broadcast %cst_16 : f32 to vector<256x1xf32>
    %24 = arith.addf %20, %23 : vector<256x1xf32>
    %25 = math.rsqrt %24 : vector<256x1xf32>
    %26 = vector.broadcast %25 : vector<256x1xf32> to vector<256x32xf32>
    %27 = arith.mulf %22, %26 : vector<256x32xf32>
    %28 = vector.broadcast %8 : vector<1x32xf32> to vector<256x32xf32>
    %29 = arith.mulf %27, %28 : vector<256x32xf32>
    %30 = vector.broadcast %9 : vector<1x32xf32> to vector<256x32xf32>
    %31 = arith.addf %29, %30 : vector<256x32xf32>
    %c0_17 = arith.constant 0 : index
    %c0_18 = arith.constant 0 : index
    %c0_19 = arith.constant 0 : index
    %32 = vector.load %arg3[%c0_17, %c0_18, %c0_19] : memref<1x1x64xf32, #tpu.memory_space<vmem>>, vector<1x1x64xf32>
    %33 = vector.shape_cast %32 : vector<1x1x64xf32> to vector<1x64xf32>
    %34 = vector.extract_strided_slice %33 {offsets = [0, 0], sizes = [1, 32], strides = [1, 1]} : vector<1x64xf32> to vector<1x32xf32>
    %cst_20 = arith.constant 1.000000e+00 : f32
    %35 = vector.broadcast %cst_20 : f32 to vector<1x32xf32>
    %36 = arith.addf %35, %34 : vector<1x32xf32>
    %37 = vector.broadcast %36 : vector<1x32xf32> to vector<256x32xf32>
    %38 = arith.mulf %31, %37 : vector<256x32xf32>
    %39 = vector.extract_strided_slice %33 {offsets = [0, 32], sizes = [1, 32], strides = [1, 1]} : vector<1x64xf32> to vector<1x32xf32>
    %40 = vector.broadcast %39 : vector<1x32xf32> to vector<256x32xf32>
    %41 = arith.addf %38, %40 : vector<256x32xf32>
    %c0_21 = arith.constant 0 : index
    %c0_22 = arith.constant 0 : index
    %c0_23 = arith.constant 0 : index
    %42 = vector.load %arg4[%c0_21, %c0_22, %c0_23] : memref<1x1x32xf32, #tpu.memory_space<vmem>>, vector<1x1x32xf32>
    %43 = vector.shape_cast %42 : vector<1x1x32xf32> to vector<1x32xf32>
    %cst_24 = arith.constant 1.000000e+00 : f32
    %44 = vector.broadcast %cst_24 : f32 to vector<1x32xf32>
    %45 = arith.addf %44, %43 : vector<1x32xf32>
    %46 = vector.broadcast %45 : vector<1x32xf32> to vector<256x32xf32>
    %47 = arith.mulf %41, %46 : vector<256x32xf32>
    %cst_25 = arith.constant 0.000000e+00 : f32
    %48 = vector.broadcast %cst_25 : f32 to vector<20x20x32xf32>
    %c0_26 = arith.constant 0 : index
    %c0_27 = arith.constant 0 : index
    %c0_28 = arith.constant 0 : index
    %49 = vector.load %arg20[%c0_26, %c0_27, %c0_28] : memref<20x20x32xf32, #tpu.memory_space<vmem>>, vector<20x20x32xf32>
    tpu.vector_store %arg20[%c0_26, %c0_27, %c0_28], %48 {strides = array<i32>} : memref<20x20x32xf32, #tpu.memory_space<vmem>>, vector<20x20x32xf32>,
    %50 = vector.shape_cast %47 : vector<256x32xf32> to vector<16x16x32xf32>
    %c2 = arith.constant 2 : index
    %c2_29 = arith.constant 2 : index
    %c0_30 = arith.constant 0 : index
    %51 = vector.load %arg20[%c2, %c2_29, %c0_30] : memref<20x20x32xf32, #tpu.memory_space<vmem>>, vector<16x16x32xf32>
    tpu.vector_store %arg20[%c2, %c2_29, %c0_30], %50 {strides = array<i32>} : memref<20x20x32xf32, #tpu.memory_space<vmem>>, vector<16x16x32xf32>,
    %c0_31 = arith.constant 0 : index
    %c0_32 = arith.constant 0 : index
    %52 = vector.load %arg13[%c0_31, %c0_32] : memref<25x32xf32, #tpu.memory_space<vmem>>, vector<25x32xf32>
    %cst_33 = arith.constant 0.000000e+00 : f32
    %53 = vector.broadcast %cst_33 : f32 to vector<16x16x32xf32>
    %c0_34 = arith.constant 0 : index
    %c0_35 = arith.constant 0 : index
    %c0_36 = arith.constant 0 : index
    %54 = vector.load %arg20[%c0_34, %c0_35, %c0_36] : memref<20x20x32xf32, #tpu.memory_space<vmem>>, vector<16x16x32xf32>
    %55 = vector.extract_strided_slice %52 {offsets = [0, 0], sizes = [1, 32], strides = [1, 1]} : vector<25x32xf32> to vector<1x32xf32>
    %56 = vector.shape_cast %55 : vector<1x32xf32> to vector<1x1x32xf32>
    %57 = vector.broadcast %56 : vector<1x1x32xf32> to vector<16x16x32xf32>
    %58 = arith.mulf %54, %57 : vector<16x16x32xf32>
    %59 = arith.addf %53, %58 : vector<16x16x32xf32>
    %c0_37 = arith.constant 0 : index
    %c1 = arith.constant 1 : index
    %c0_38 = arith.constant 0 : index
    %60 = vector.load %arg20[%c0_37, %c1, %c0_38] : memref<20x20x32xf32, #tpu.memory_space<vmem>>, vector<16x16x32xf32>
    %61 = vector.extract_strided_slice %52 {offsets = [1, 0], sizes = [1, 32], strides = [1, 1]} : vector<25x32xf32> to vector<1x32xf32>
    %62 = vector.shape_cast %61 : vector<1x32xf32> to vector<1x1x32xf32>
    %63 = vector.broadcast %62 : vector<1x1x32xf32> to vector<16x16x32xf32>
    %64 = arith.mulf %60, %63 : vector<16x16x32xf32>
    %65 = arith.addf %59, %64 : vector<16x16x32xf32>
    %c0_39 = arith.constant 0 : index
    %c2_40 = arith.constant 2 : index
    %c0_41 = arith.constant 0 : index
    %66 = vector.load %arg20[%c0_39, %c2_40, %c0_41] : memref<20x20x32xf32, #tpu.memory_space<vmem>>, vector<16x16x32xf32>
    %67 = vector.extract_strided_slice %52 {offsets = [2, 0], sizes = [1, 32], strides = [1, 1]} : vector<25x32xf32> to vector<1x32xf32>
    %68 = vector.shape_cast %67 : vector<1x32xf32> to vector<1x1x32xf32>
    %69 = vector.broadcast %68 : vector<1x1x32xf32> to vector<16x16x32xf32>
    %70 = arith.mulf %66, %69 : vector<16x16x32xf32>
    %71 = arith.addf %65, %70 : vector<16x16x32xf32>
    %c0_42 = arith.constant 0 : index
    %c3 = arith.constant 3 : index
    %c0_43 = arith.constant 0 : index
    %72 = vector.load %arg20[%c0_42, %c3, %c0_43] : memref<20x20x32xf32, #tpu.memory_space<vmem>>, vector<16x16x32xf32>
    %73 = vector.extract_strided_slice %52 {offsets = [3, 0], sizes = [1, 32], strides = [1, 1]} : vector<25x32xf32> to vector<1x32xf32>
    %74 = vector.shape_cast %73 : vector<1x32xf32> to vector<1x1x32xf32>
    %75 = vector.broadcast %74 : vector<1x1x32xf32> to vector<16x16x32xf32>
    %76 = arith.mulf %72, %75 : vector<16x16x32xf32>
    %77 = arith.addf %71, %76 : vector<16x16x32xf32>
    %c0_44 = arith.constant 0 : index
    %c4 = arith.constant 4 : index
    %c0_45 = arith.constant 0 : index
    %78 = vector.load %arg20[%c0_44, %c4, %c0_45] : memref<20x20x32xf32, #tpu.memory_space<vmem>>, vector<16x16x32xf32>
    %79 = vector.extract_strided_slice %52 {offsets = [4, 0], sizes = [1, 32], strides = [1, 1]} : vector<25x32xf32> to vector<1x32xf32>
    %80 = vector.shape_cast %79 : vector<1x32xf32> to vector<1x1x32xf32>
    %81 = vector.broadcast %80 : vector<1x1x32xf32> to vector<16x16x32xf32>
    %82 = arith.mulf %78, %81 : vector<16x16x32xf32>
    %83 = arith.addf %77, %82 : vector<16x16x32xf32>
    %c1_46 = arith.constant 1 : index
    %c0_47 = arith.constant 0 : index
    %c0_48 = arith.constant 0 : index
    %84 = vector.load %arg20[%c1_46, %c0_47, %c0_48] : memref<20x20x32xf32, #tpu.memory_space<vmem>>, vector<16x16x32xf32>
    %85 = vector.extract_strided_slice %52 {offsets = [5, 0], sizes = [1, 32], strides = [1, 1]} : vector<25x32xf32> to vector<1x32xf32>
    %86 = vector.shape_cast %85 : vector<1x32xf32> to vector<1x1x32xf32>
    %87 = vector.broadcast %86 : vector<1x1x32xf32> to vector<16x16x32xf32>
    %88 = arith.mulf %84, %87 : vector<16x16x32xf32>
    %89 = arith.addf %83, %88 : vector<16x16x32xf32>
    %c1_49 = arith.constant 1 : index
    %c1_50 = arith.constant 1 : index
    %c0_51 = arith.constant 0 : index
    %90 = vector.load %arg20[%c1_49, %c1_50, %c0_51] : memref<20x20x32xf32, #tpu.memory_space<vmem>>, vector<16x16x32xf32>
    %91 = vector.extract_strided_slice %52 {offsets = [6, 0], sizes = [1, 32], strides = [1, 1]} : vector<25x32xf32> to vector<1x32xf32>
    %92 = vector.shape_cast %91 : vector<1x32xf32> to vector<1x1x32xf32>
    %93 = vector.broadcast %92 : vector<1x1x32xf32> to vector<16x16x32xf32>
    %94 = arith.mulf %90, %93 : vector<16x16x32xf32>
    %95 = arith.addf %89, %94 : vector<16x16x32xf32>
    %c1_52 = arith.constant 1 : index
    %c2_53 = arith.constant 2 : index
    %c0_54 = arith.constant 0 : index
    %96 = vector.load %arg20[%c1_52, %c2_53, %c0_54] : memref<20x20x32xf32, #tpu.memory_space<vmem>>, vector<16x16x32xf32>
    %97 = vector.extract_strided_slice %52 {offsets = [7, 0], sizes = [1, 32], strides = [1, 1]} : vector<25x32xf32> to vector<1x32xf32>
    %98 = vector.shape_cast %97 : vector<1x32xf32> to vector<1x1x32xf32>
    %99 = vector.broadcast %98 : vector<1x1x32xf32> to vector<16x16x32xf32>
    %100 = arith.mulf %96, %99 : vector<16x16x32xf32>
    %101 = arith.addf %95, %100 : vector<16x16x32xf32>
    %c1_55 = arith.constant 1 : index
    %c3_56 = arith.constant 3 : index
    %c0_57 = arith.constant 0 : index
    %102 = vector.load %arg20[%c1_55, %c3_56, %c0_57] : memref<20x20x32xf32, #tpu.memory_space<vmem>>, vector<16x16x32xf32>
    %103 = vector.extract_strided_slice %52 {offsets = [8, 0], sizes = [1, 32], strides = [1, 1]} : vector<25x32xf32> to vector<1x32xf32>
    %104 = vector.shape_cast %103 : vector<1x32xf32> to vector<1x1x32xf32>
    %105 = vector.broadcast %104 : vector<1x1x32xf32> to vector<16x16x32xf32>
    %106 = arith.mulf %102, %105 : vector<16x16x32xf32>
    %107 = arith.addf %101, %106 : vector<16x16x32xf32>
    %c1_58 = arith.constant 1 : index
    %c4_59 = arith.constant 4 : index
    %c0_60 = arith.constant 0 : index
    %108 = vector.load %arg20[%c1_58, %c4_59, %c0_60] : memref<20x20x32xf32, #tpu.memory_space<vmem>>, vector<16x16x32xf32>
    %109 = vector.extract_strided_slice %52 {offsets = [9, 0], sizes = [1, 32], strides = [1, 1]} : vector<25x32xf32> to vector<1x32xf32>
    %110 = vector.shape_cast %109 : vector<1x32xf32> to vector<1x1x32xf32>
    %111 = vector.broadcast %110 : vector<1x1x32xf32> to vector<16x16x32xf32>
    %112 = arith.mulf %108, %111 : vector<16x16x32xf32>
    %113 = arith.addf %107, %112 : vector<16x16x32xf32>
    %c2_61 = arith.constant 2 : index
    %c0_62 = arith.constant 0 : index
    %c0_63 = arith.constant 0 : index
    %114 = vector.load %arg20[%c2_61, %c0_62, %c0_63] : memref<20x20x32xf32, #tpu.memory_space<vmem>>, vector<16x16x32xf32>
    %115 = vector.extract_strided_slice %52 {offsets = [10, 0], sizes = [1, 32], strides = [1, 1]} : vector<25x32xf32> to vector<1x32xf32>
    %116 = vector.shape_cast %115 : vector<1x32xf32> to vector<1x1x32xf32>
    %117 = vector.broadcast %116 : vector<1x1x32xf32> to vector<16x16x32xf32>
    %118 = arith.mulf %114, %117 : vector<16x16x32xf32>
    %119 = arith.addf %113, %118 : vector<16x16x32xf32>
    %c2_64 = arith.constant 2 : index
    %c1_65 = arith.constant 1 : index
    %c0_66 = arith.constant 0 : index
    %120 = vector.load %arg20[%c2_64, %c1_65, %c0_66] : memref<20x20x32xf32, #tpu.memory_space<vmem>>, vector<16x16x32xf32>
    %121 = vector.extract_strided_slice %52 {offsets = [11, 0], sizes = [1, 32], strides = [1, 1]} : vector<25x32xf32> to vector<1x32xf32>
    %122 = vector.shape_cast %121 : vector<1x32xf32> to vector<1x1x32xf32>
    %123 = vector.broadcast %122 : vector<1x1x32xf32> to vector<16x16x32xf32>
    %124 = arith.mulf %120, %123 : vector<16x16x32xf32>
    %125 = arith.addf %119, %124 : vector<16x16x32xf32>
    %c2_67 = arith.constant 2 : index
    %c2_68 = arith.constant 2 : index
    %c0_69 = arith.constant 0 : index
    %126 = vector.load %arg20[%c2_67, %c2_68, %c0_69] : memref<20x20x32xf32, #tpu.memory_space<vmem>>, vector<16x16x32xf32>
    %127 = vector.extract_strided_slice %52 {offsets = [12, 0], sizes = [1, 32], strides = [1, 1]} : vector<25x32xf32> to vector<1x32xf32>
    %128 = vector.shape_cast %127 : vector<1x32xf32> to vector<1x1x32xf32>
    %129 = vector.broadcast %128 : vector<1x1x32xf32> to vector<16x16x32xf32>
    %130 = arith.mulf %126, %129 : vector<16x16x32xf32>
    %131 = arith.addf %125, %130 : vector<16x16x32xf32>
    %c2_70 = arith.constant 2 : index
    %c3_71 = arith.constant 3 : index
    %c0_72 = arith.constant 0 : index
    %132 = vector.load %arg20[%c2_70, %c3_71, %c0_72] : memref<20x20x32xf32, #tpu.memory_space<vmem>>, vector<16x16x32xf32>
    %133 = vector.extract_strided_slice %52 {offsets = [13, 0], sizes = [1, 32], strides = [1, 1]} : vector<25x32xf32> to vector<1x32xf32>
    %134 = vector.shape_cast %133 : vector<1x32xf32> to vector<1x1x32xf32>
    %135 = vector.broadcast %134 : vector<1x1x32xf32> to vector<16x16x32xf32>
    %136 = arith.mulf %132, %135 : vector<16x16x32xf32>
    %137 = arith.addf %131, %136 : vector<16x16x32xf32>
    %c2_73 = arith.constant 2 : index
    %c4_74 = arith.constant 4 : index
    %c0_75 = arith.constant 0 : index
    %138 = vector.load %arg20[%c2_73, %c4_74, %c0_75] : memref<20x20x32xf32, #tpu.memory_space<vmem>>, vector<16x16x32xf32>
    %139 = vector.extract_strided_slice %52 {offsets = [14, 0], sizes = [1, 32], strides = [1, 1]} : vector<25x32xf32> to vector<1x32xf32>
    %140 = vector.shape_cast %139 : vector<1x32xf32> to vector<1x1x32xf32>
    %141 = vector.broadcast %140 : vector<1x1x32xf32> to vector<16x16x32xf32>
    %142 = arith.mulf %138, %141 : vector<16x16x32xf32>
    %143 = arith.addf %137, %142 : vector<16x16x32xf32>
    %c3_76 = arith.constant 3 : index
    %c0_77 = arith.constant 0 : index
    %c0_78 = arith.constant 0 : index
    %144 = vector.load %arg20[%c3_76, %c0_77, %c0_78] : memref<20x20x32xf32, #tpu.memory_space<vmem>>, vector<16x16x32xf32>
    %145 = vector.extract_strided_slice %52 {offsets = [15, 0], sizes = [1, 32], strides = [1, 1]} : vector<25x32xf32> to vector<1x32xf32>
    %146 = vector.shape_cast %145 : vector<1x32xf32> to vector<1x1x32xf32>
    %147 = vector.broadcast %146 : vector<1x1x32xf32> to vector<16x16x32xf32>
    %148 = arith.mulf %144, %147 : vector<16x16x32xf32>
    %149 = arith.addf %143, %148 : vector<16x16x32xf32>
    %c3_79 = arith.constant 3 : index
    %c1_80 = arith.constant 1 : index
    %c0_81 = arith.constant 0 : index
    %150 = vector.load %arg20[%c3_79, %c1_80, %c0_81] : memref<20x20x32xf32, #tpu.memory_space<vmem>>, vector<16x16x32xf32>
    %151 = vector.extract_strided_slice %52 {offsets = [16, 0], sizes = [1, 32], strides = [1, 1]} : vector<25x32xf32> to vector<1x32xf32>
    %152 = vector.shape_cast %151 : vector<1x32xf32> to vector<1x1x32xf32>
    %153 = vector.broadcast %152 : vector<1x1x32xf32> to vector<16x16x32xf32>
    %154 = arith.mulf %150, %153 : vector<16x16x32xf32>
    %155 = arith.addf %149, %154 : vector<16x16x32xf32>
    %c3_82 = arith.constant 3 : index
    %c2_83 = arith.constant 2 : index
    %c0_84 = arith.constant 0 : index
    %156 = vector.load %arg20[%c3_82, %c2_83, %c0_84] : memref<20x20x32xf32, #tpu.memory_space<vmem>>, vector<16x16x32xf32>
    %157 = vector.extract_strided_slice %52 {offsets = [17, 0], sizes = [1, 32], strides = [1, 1]} : vector<25x32xf32> to vector<1x32xf32>
    %158 = vector.shape_cast %157 : vector<1x32xf32> to vector<1x1x32xf32>
    %159 = vector.broadcast %158 : vector<1x1x32xf32> to vector<16x16x32xf32>
    %160 = arith.mulf %156, %159 : vector<16x16x32xf32>
    %161 = arith.addf %155, %160 : vector<16x16x32xf32>
    %c3_85 = arith.constant 3 : index
    %c3_86 = arith.constant 3 : index
    %c0_87 = arith.constant 0 : index
    %162 = vector.load %arg20[%c3_85, %c3_86, %c0_87] : memref<20x20x32xf32, #tpu.memory_space<vmem>>, vector<16x16x32xf32>
    %163 = vector.extract_strided_slice %52 {offsets = [18, 0], sizes = [1, 32], strides = [1, 1]} : vector<25x32xf32> to vector<1x32xf32>
    %164 = vector.shape_cast %163 : vector<1x32xf32> to vector<1x1x32xf32>
    %165 = vector.broadcast %164 : vector<1x1x32xf32> to vector<16x16x32xf32>
    %166 = arith.mulf %162, %165 : vector<16x16x32xf32>
    %167 = arith.addf %161, %166 : vector<16x16x32xf32>
    %c3_88 = arith.constant 3 : index
    %c4_89 = arith.constant 4 : index
    %c0_90 = arith.constant 0 : index
    %168 = vector.load %arg20[%c3_88, %c4_89, %c0_90] : memref<20x20x32xf32, #tpu.memory_space<vmem>>, vector<16x16x32xf32>
    %169 = vector.extract_strided_slice %52 {offsets = [19, 0], sizes = [1, 32], strides = [1, 1]} : vector<25x32xf32> to vector<1x32xf32>
    %170 = vector.shape_cast %169 : vector<1x32xf32> to vector<1x1x32xf32>
    %171 = vector.broadcast %170 : vector<1x1x32xf32> to vector<16x16x32xf32>
    %172 = arith.mulf %168, %171 : vector<16x16x32xf32>
    %173 = arith.addf %167, %172 : vector<16x16x32xf32>
    %c4_91 = arith.constant 4 : index
    %c0_92 = arith.constant 0 : index
    %c0_93 = arith.constant 0 : index
    %174 = vector.load %arg20[%c4_91, %c0_92, %c0_93] : memref<20x20x32xf32, #tpu.memory_space<vmem>>, vector<16x16x32xf32>
    %175 = vector.extract_strided_slice %52 {offsets = [20, 0], sizes = [1, 32], strides = [1, 1]} : vector<25x32xf32> to vector<1x32xf32>
    %176 = vector.shape_cast %175 : vector<1x32xf32> to vector<1x1x32xf32>
    %177 = vector.broadcast %176 : vector<1x1x32xf32> to vector<16x16x32xf32>
    %178 = arith.mulf %174, %177 : vector<16x16x32xf32>
    %179 = arith.addf %173, %178 : vector<16x16x32xf32>
    %c4_94 = arith.constant 4 : index
    %c1_95 = arith.constant 1 : index
    %c0_96 = arith.constant 0 : index
    %180 = vector.load %arg20[%c4_94, %c1_95, %c0_96] : memref<20x20x32xf32, #tpu.memory_space<vmem>>, vector<16x16x32xf32>
    %181 = vector.extract_strided_slice %52 {offsets = [21, 0], sizes = [1, 32], strides = [1, 1]} : vector<25x32xf32> to vector<1x32xf32>
    %182 = vector.shape_cast %181 : vector<1x32xf32> to vector<1x1x32xf32>
    %183 = vector.broadcast %182 : vector<1x1x32xf32> to vector<16x16x32xf32>
    %184 = arith.mulf %180, %183 : vector<16x16x32xf32>
    %185 = arith.addf %179, %184 : vector<16x16x32xf32>
    %c4_97 = arith.constant 4 : index
    %c2_98 = arith.constant 2 : index
    %c0_99 = arith.constant 0 : index
    %186 = vector.load %arg20[%c4_97, %c2_98, %c0_99] : memref<20x20x32xf32, #tpu.memory_space<vmem>>, vector<16x16x32xf32>
    %187 = vector.extract_strided_slice %52 {offsets = [22, 0], sizes = [1, 32], strides = [1, 1]} : vector<25x32xf32> to vector<1x32xf32>
    %188 = vector.shape_cast %187 : vector<1x32xf32> to vector<1x1x32xf32>
    %189 = vector.broadcast %188 : vector<1x1x32xf32> to vector<16x16x32xf32>
    %190 = arith.mulf %186, %189 : vector<16x16x32xf32>
    %191 = arith.addf %185, %190 : vector<16x16x32xf32>
    %c4_100 = arith.constant 4 : index
    %c3_101 = arith.constant 3 : index
    %c0_102 = arith.constant 0 : index
    %192 = vector.load %arg20[%c4_100, %c3_101, %c0_102] : memref<20x20x32xf32, #tpu.memory_space<vmem>>, vector<16x16x32xf32>
    %193 = vector.extract_strided_slice %52 {offsets = [23, 0], sizes = [1, 32], strides = [1, 1]} : vector<25x32xf32> to vector<1x32xf32>
    %194 = vector.shape_cast %193 : vector<1x32xf32> to vector<1x1x32xf32>
    %195 = vector.broadcast %194 : vector<1x1x32xf32> to vector<16x16x32xf32>
    %196 = arith.mulf %192, %195 : vector<16x16x32xf32>
    %197 = arith.addf %191, %196 : vector<16x16x32xf32>
    %c4_103 = arith.constant 4 : index
    %c4_104 = arith.constant 4 : index
    %c0_105 = arith.constant 0 : index
    %198 = vector.load %arg20[%c4_103, %c4_104, %c0_105] : memref<20x20x32xf32, #tpu.memory_space<vmem>>, vector<16x16x32xf32>
    %199 = vector.extract_strided_slice %52 {offsets = [24, 0], sizes = [1, 32], strides = [1, 1]} : vector<25x32xf32> to vector<1x32xf32>
    %200 = vector.shape_cast %199 : vector<1x32xf32> to vector<1x1x32xf32>
    %201 = vector.broadcast %200 : vector<1x1x32xf32> to vector<16x16x32xf32>
    %202 = arith.mulf %198, %201 : vector<16x16x32xf32>
    %203 = arith.addf %197, %202 : vector<16x16x32xf32>
    %c0_106 = arith.constant 0 : index
    %c0_107 = arith.constant 0 : index
    %c0_108 = arith.constant 0 : index
    %204 = vector.load %arg2[%c0_106, %c0_107, %c0_108] : memref<1x256x1xf32, #tpu.memory_space<vmem>>, vector<1x256x1xf32>
    %205 = vector.shape_cast %204 : vector<1x256x1xf32> to vector<256x1xf32>
    %206 = tpu.reciprocal %205 {approx = true} : vector<256x1xf32> -> vector<256x1xf32>
    %c0_109 = arith.constant 0 : index
    %c0_110 = arith.constant 0 : index
    %207 = vector.load %arg19[%c0_109, %c0_110] : memref<256x32xf32, #tpu.memory_space<vmem>>, vector<256x32xf32>
    %208 = vector.shape_cast %203 : vector<16x16x32xf32> to vector<256x32xf32>
    %209 = vector.broadcast %206 : vector<256x1xf32> to vector<256x32xf32>
    %210 = arith.mulf %208, %209 : vector<256x32xf32>
    %211 = arith.addf %207, %210 : vector<256x32xf32>
    %c0_111 = arith.constant 0 : index
    %c0_112 = arith.constant 0 : index
    %212 = vector.load %arg11[%c0_111, %c0_112] : memref<1x32xf32, #tpu.memory_space<vmem>>, vector<1x32xf32>
    %c0_113 = arith.constant 0 : index
    %c0_114 = arith.constant 0 : index
    %213 = vector.load %arg12[%c0_113, %c0_114] : memref<1x32xf32, #tpu.memory_space<vmem>>, vector<1x32xf32>
    %cst_115 = arith.constant dense<0.000000e+00> : vector<256xf32>
    %214 = vector.multi_reduction <add>, %211, %cst_115 [1] : vector<256x32xf32> to vector<256xf32>
    %215 = vector.shape_cast %214 : vector<256xf32> to vector<256x1xf32>
    %cst_116 = arith.constant 3.200000e+01 : f32
    %216 = vector.broadcast %cst_116 : f32 to vector<256x1xf32>
    %217 = arith.divf %215, %216 : vector<256x1xf32>
    %218 = vector.broadcast %217 : vector<256x1xf32> to vector<256x32xf32>
    %219 = arith.subf %211, %218 : vector<256x32xf32>
    %220 = arith.mulf %219, %219 : vector<256x32xf32>
    %cst_117 = arith.constant dense<0.000000e+00> : vector<256xf32>
    %221 = vector.multi_reduction <add>, %220, %cst_117 [1] : vector<256x32xf32> to vector<256xf32>
    %222 = vector.shape_cast %221 : vector<256xf32> to vector<256x1xf32>
    %cst_118 = arith.constant 3.200000e+01 : f32
    %223 = vector.broadcast %cst_118 : f32 to vector<256x1xf32>
    %224 = arith.divf %222, %223 : vector<256x1xf32>
    %225 = vector.broadcast %217 : vector<256x1xf32> to vector<256x32xf32>
    %226 = arith.subf %211, %225 : vector<256x32xf32>
    %cst_119 = arith.constant 9.99999974E-6 : f32
    %227 = vector.broadcast %cst_119 : f32 to vector<256x1xf32>
    %228 = arith.addf %224, %227 : vector<256x1xf32>
    %229 = math.rsqrt %228 : vector<256x1xf32>
    %230 = vector.broadcast %229 : vector<256x1xf32> to vector<256x32xf32>
    %231 = arith.mulf %226, %230 : vector<256x32xf32>
    %232 = vector.broadcast %212 : vector<1x32xf32> to vector<256x32xf32>
    %233 = arith.mulf %231, %232 : vector<256x32xf32>
    %234 = vector.broadcast %213 : vector<1x32xf32> to vector<256x32xf32>
    %235 = arith.addf %233, %234 : vector<256x32xf32>
    %c0_120 = arith.constant 0 : index
    %c0_121 = arith.constant 0 : index
    %c0_122 = arith.constant 0 : index
    %236 = vector.load %arg5[%c0_120, %c0_121, %c0_122] : memref<1x1x64xf32, #tpu.memory_space<vmem>>, vector<1x1x64xf32>
    %237 = vector.shape_cast %236 : vector<1x1x64xf32> to vector<1x64xf32>
    %238 = vector.extract_strided_slice %237 {offsets = [0, 0], sizes = [1, 32], strides = [1, 1]} : vector<1x64xf32> to vector<1x32xf32>
    %cst_123 = arith.constant 1.000000e+00 : f32
    %239 = vector.broadcast %cst_123 : f32 to vector<1x32xf32>
    %240 = arith.addf %239, %238 : vector<1x32xf32>
    %241 = vector.broadcast %240 : vector<1x32xf32> to vector<256x32xf32>
    %242 = arith.mulf %235, %241 : vector<256x32xf32>
    %243 = vector.extract_strided_slice %237 {offsets = [0, 32], sizes = [1, 32], strides = [1, 1]} : vector<1x64xf32> to vector<1x32xf32>
    %244 = vector.broadcast %243 : vector<1x32xf32> to vector<256x32xf32>
    %245 = arith.addf %242, %244 : vector<256x32xf32>
    %c0_124 = arith.constant 0 : index
    %c0_125 = arith.constant 0 : index
    %c0_126 = arith.constant 0 : index
    %246 = vector.load %arg6[%c0_124, %c0_125, %c0_126] : memref<1x1x32xf32, #tpu.memory_space<vmem>>, vector<1x1x32xf32>
    %247 = vector.shape_cast %246 : vector<1x1x32xf32> to vector<1x32xf32>
    %cst_127 = arith.constant 1.000000e+00 : f32
    %248 = vector.broadcast %cst_127 : f32 to vector<1x32xf32>
    %249 = arith.addf %248, %247 : vector<1x32xf32>
    %250 = vector.broadcast %249 : vector<1x32xf32> to vector<256x32xf32>
    %251 = arith.mulf %245, %250 : vector<256x32xf32>
    %c0_128 = arith.constant 0 : index
    %c0_129 = arith.constant 0 : index
    %252 = vector.load %arg14[%c0_128, %c0_129] : memref<32x64xf32, #tpu.memory_space<vmem>>, vector<32x64xf32>
    %cst_130 = arith.constant dense<0.000000e+00> : vector<256x64xf32>
    %253 = tpu.matmul %251, %252, %cst_130 {dimension_numbers = #tpu.dot_dimension_numbers<[1], [0], [0], [1], [0, 0, 1, 1], [], []>} : vector<256x32xf32>, vector<32x64xf32>, vector<256x64xf32> -> vector<256x64xf32>
    %c0_131 = arith.constant 0 : index
    %c0_132 = arith.constant 0 : index
    %254 = vector.load %arg15[%c0_131, %c0_132] : memref<1x64xf32, #tpu.memory_space<vmem>>, vector<1x64xf32>
    %255 = vector.broadcast %254 : vector<1x64xf32> to vector<256x64xf32>
    %256 = arith.addf %253, %255 : vector<256x64xf32>
    %cst_133 = arith.constant 5.000000e-01 : f32
    %257 = vector.broadcast %cst_133 : f32 to vector<256x64xf32>
    %258 = arith.mulf %257, %256 : vector<256x64xf32>
    %cst_134 = arith.constant 0.707106769 : f32
    %259 = vector.broadcast %cst_134 : f32 to vector<256x64xf32>
    %260 = arith.mulf %256, %259 : vector<256x64xf32>
    %cst_135 = arith.constant 0.000000e+00 : f32
    %261 = vector.broadcast %cst_135 : f32 to vector<256x64xf32>
    %262 = arith.cmpf oge, %260, %261 : vector<256x64xf32>
    %cst_136 = arith.constant 1.000000e+00 : f32
    %cst_137 = arith.constant -1.000000e+00 : f32
    %263 = vector.broadcast %cst_136 : f32 to vector<256x64xf32>
    %264 = vector.broadcast %cst_137 : f32 to vector<256x64xf32>
    %265 = arith.select %262, %263, %264 : vector<256x64xi1>, vector<256x64xf32>
    %266 = math.absf %260 : vector<256x64xf32>
    %cst_138 = arith.constant 0.327591091 : f32
    %267 = vector.broadcast %cst_138 : f32 to vector<256x64xf32>
    %268 = arith.mulf %267, %266 : vector<256x64xf32>
    %cst_139 = arith.constant 1.000000e+00 : f32
    %269 = vector.broadcast %cst_139 : f32 to vector<256x64xf32>
    %270 = arith.addf %269, %268 : vector<256x64xf32>
    %271 = tpu.reciprocal %270 {approx = true} : vector<256x64xf32> -> vector<256x64xf32>
    %cst_140 = arith.constant 1.06140542 : f32
    %272 = vector.broadcast %cst_140 : f32 to vector<256x64xf32>
    %273 = arith.mulf %272, %271 : vector<256x64xf32>
    %cst_141 = arith.constant -1.45315206 : f32
    %274 = vector.broadcast %cst_141 : f32 to vector<256x64xf32>
    %275 = arith.addf %273, %274 : vector<256x64xf32>
    %276 = arith.mulf %275, %271 : vector<256x64xf32>
    %cst_142 = arith.constant 1.42141378 : f32
    %277 = vector.broadcast %cst_142 : f32 to vector<256x64xf32>
    %278 = arith.addf %276, %277 : vector<256x64xf32>
    %279 = arith.mulf %278, %271 : vector<256x64xf32>
    %cst_143 = arith.constant -0.284496725 : f32
    %280 = vector.broadcast %cst_143 : f32 to vector<256x64xf32>
    %281 = arith.addf %279, %280 : vector<256x64xf32>
    %282 = arith.mulf %281, %271 : vector<256x64xf32>
    %cst_144 = arith.constant 0.254829586 : f32
    %283 = vector.broadcast %cst_144 : f32 to vector<256x64xf32>
    %284 = arith.addf %282, %283 : vector<256x64xf32>
    %285 = arith.mulf %284, %271 : vector<256x64xf32>
    %cst_145 = arith.constant 0.000000e+00 : f32
    %286 = vector.broadcast %cst_145 : f32 to vector<256x64xf32>
    %287 = arith.subf %286, %266 : vector<256x64xf32>
    %288 = arith.mulf %287, %266 : vector<256x64xf32>
    %289 = math.exp %288 : vector<256x64xf32>
    %290 = arith.mulf %285, %289 : vector<256x64xf32>
    %cst_146 = arith.constant 1.000000e+00 : f32
    %291 = vector.broadcast %cst_146 : f32 to vector<256x64xf32>
    %292 = arith.subf %291, %290 : vector<256x64xf32>
    %293 = arith.mulf %265, %292 : vector<256x64xf32>
    %cst_147 = arith.constant 1.000000e+00 : f32
    %294 = vector.broadcast %cst_147 : f32 to vector<256x64xf32>
    %295 = arith.addf %294, %293 : vector<256x64xf32>
    %296 = arith.mulf %258, %295 : vector<256x64xf32>
    %c0_148 = arith.constant 0 : index
    %c0_149 = arith.constant 0 : index
    %297 = vector.load %arg16[%c0_148, %c0_149] : memref<64x32xf32, #tpu.memory_space<vmem>>, vector<64x32xf32>
    %cst_150 = arith.constant dense<0.000000e+00> : vector<256x32xf32>
    %298 = tpu.matmul %296, %297, %cst_150 {dimension_numbers = #tpu.dot_dimension_numbers<[1], [0], [0], [1], [0, 0, 1, 1], [], []>} : vector<256x64xf32>, vector<64x32xf32>, vector<256x32xf32> -> vector<256x32xf32>
    %c0_151 = arith.constant 0 : index
    %c0_152 = arith.constant 0 : index
    %299 = vector.load %arg17[%c0_151, %c0_152] : memref<1x32xf32, #tpu.memory_space<vmem>>, vector<1x32xf32>
    %300 = vector.broadcast %299 : vector<1x32xf32> to vector<256x32xf32>
    %301 = arith.addf %298, %300 : vector<256x32xf32>
    %302 = arith.addf %211, %301 : vector<256x32xf32>
    %c0_153 = arith.constant 0 : index
    %c0_154 = arith.constant 0 : index
    %c0_155 = arith.constant 0 : index
    %303 = vector.load %arg18[%c0_153, %c0_154, %c0_155] : memref<1x256x32xf32, #tpu.memory_space<vmem>>, vector<1x256x32xf32>
    %304 = vector.shape_cast %303 : vector<1x256x32xf32> to vector<256x32xf32>
    %305 = vector.shape_cast %302 : vector<256x32xf32> to vector<1x256x32xf32>
    tpu.vector_store %arg18[%c0_153, %c0_154, %c0_155], %305 {strides = array<i32>} : memref<1x256x32xf32, #tpu.memory_space<vmem>>, vector<1x256x32xf32>,
    return
  }
  func.func @transform_0(%arg0: i32) -> (i32, i32, i32) {
    %c0_i32 = arith.constant 0 : i32
    %c0_i32_0 = arith.constant 0 : i32
    %c0_i32_1 = arith.constant 0 : i32
    return %arg0, %c0_i32, %c0_i32_0 : i32, i32, i32
  }
  func.func @transform_1(%arg0: i32) -> (i32, i32, i32) {
    %c0_i32 = arith.constant 0 : i32
    %c0_i32_0 = arith.constant 0 : i32
    %c0_i32_1 = arith.constant 0 : i32
    return %arg0, %c0_i32, %c0_i32_0 : i32, i32, i32
  }
  func.func @transform_2(%arg0: i32) -> (i32, i32, i32) {
    %c0_i32 = arith.constant 0 : i32
    %c0_i32_0 = arith.constant 0 : i32
    %c0_i32_1 = arith.constant 0 : i32
    return %arg0, %c0_i32, %c0_i32_0 : i32, i32, i32
  }
  func.func @transform_3(%arg0: i32) -> (i32, i32, i32) {
    %c0_i32 = arith.constant 0 : i32
    %c0_i32_0 = arith.constant 0 : i32
    %c0_i32_1 = arith.constant 0 : i32
    return %arg0, %c0_i32, %c0_i32_0 : i32, i32, i32
  }
  func.func @transform_4(%arg0: i32) -> (i32, i32, i32) {
    %c0_i32 = arith.constant 0 : i32
    %c0_i32_0 = arith.constant 0 : i32
    %c0_i32_1 = arith.constant 0 : i32
    return %arg0, %c0_i32, %c0_i32_0 : i32, i32, i32
  }
  func.func @transform_5(%arg0: i32) -> (i32, i32, i32) {
    %c0_i32 = arith.constant 0 : i32
    %c0_i32_0 = arith.constant 0 : i32
    %c0_i32_1 = arith.constant 0 : i32
    return %arg0, %c0_i32, %c0_i32_0 : i32, i32, i32
  }
  func.func @transform_6(%arg0: i32) -> (i32, i32) {
    %c0_i32 = arith.constant 0 : i32
    %c0_i32_0 = arith.constant 0 : i32
    %c0_i32_1 = arith.constant 0 : i32
    return %c0_i32, %c0_i32_0 : i32, i32
  }
  func.func @transform_7(%arg0: i32) -> (i32, i32) {
    %c0_i32 = arith.constant 0 : i32
    %c0_i32_0 = arith.constant 0 : i32
    %c0_i32_1 = arith.constant 0 : i32
    return %c0_i32, %c0_i32_0 : i32, i32
  }
  func.func @transform_8(%arg0: i32) -> (i32, i32) {
    %c0_i32 = arith.constant 0 : i32
    %c0_i32_0 = arith.constant 0 : i32
    %c0_i32_1 = arith.constant 0 : i32
    return %c0_i32, %c0_i32_0 : i32, i32
  }
  func.func @transform_9(%arg0: i32) -> (i32, i32) {
    %c0_i32 = arith.constant 0 : i32
    %c0_i32_0 = arith.constant 0 : i32
    %c0_i32_1 = arith.constant 0 : i32
    return %c0_i32, %c0_i32_0 : i32, i32
  }
  func.func @transform_10(%arg0: i32) -> (i32, i32) {
    %c0_i32 = arith.constant 0 : i32
    %c0_i32_0 = arith.constant 0 : i32
    %c0_i32_1 = arith.constant 0 : i32
    return %c0_i32, %c0_i32_0 : i32, i32
  }
  func.func @transform_11(%arg0: i32) -> (i32, i32) {
    %c0_i32 = arith.constant 0 : i32
    %c0_i32_0 = arith.constant 0 : i32
    %c0_i32_1 = arith.constant 0 : i32
    return %c0_i32, %c0_i32_0 : i32, i32
  }
  func.func @transform_12(%arg0: i32) -> (i32, i32) {
    %c0_i32 = arith.constant 0 : i32
    %c0_i32_0 = arith.constant 0 : i32
    %c0_i32_1 = arith.constant 0 : i32
    return %c0_i32, %c0_i32_0 : i32, i32
  }
  func.func @transform_13(%arg0: i32) -> (i32, i32) {
    %c0_i32 = arith.constant 0 : i32
    %c0_i32_0 = arith.constant 0 : i32
    %c0_i32_1 = arith.constant 0 : i32
    return %c0_i32, %c0_i32_0 : i32, i32
  }
  func.func @transform_14(%arg0: i32) -> (i32, i32) {
    %c0_i32 = arith.constant 0 : i32
    %c0_i32_0 = arith.constant 0 : i32
    %c0_i32_1 = arith.constant 0 : i32
    return %c0_i32, %c0_i32_0 : i32, i32
  }
  func.func @transform_15(%arg0: i32) -> (i32, i32) {
    %c0_i32 = arith.constant 0 : i32
    %c0_i32_0 = arith.constant 0 : i32
    %c0_i32_1 = arith.constant 0 : i32
    return %c0_i32, %c0_i32_0 : i32, i32
  }
  func.func @transform_16(%arg0: i32) -> (i32, i32) {
    %c0_i32 = arith.constant 0 : i32
    %c0_i32_0 = arith.constant 0 : i32
    %c0_i32_1 = arith.constant 0 : i32
    return %c0_i32, %c0_i32_0 : i32, i32
  }
  func.func @transform_17(%arg0: i32) -> (i32, i32, i32) {
    %c0_i32 = arith.constant 0 : i32
    %c0_i32_0 = arith.constant 0 : i32
    %c0_i32_1 = arith.constant 0 : i32
    return %arg0, %c0_i32, %c0_i32_0 : i32, i32, i32
  }
}

</mosaic_0001>

<bundles_post_ra>
// kernel: res_block_forward.1
= control target key start
LH: loop header
LB: loop body
LE: loop exit
PB: predicated region body
PF: predicated region fallthrough
CT: control target
= control target key end

     0   :  { %s13528_s0 = inlined_call_operand.vmem [shape: f32[2,256,48], index: 0, kind: input, shape index: {}]   ;;  %s13529_s1 = inlined_call_operand.vmem [shape: f32[2,256,1], index: 1, kind: input, shape index: {}]   ;;  %s13530_s2 = inlined_call_operand.vmem [shape: f32[2,1,64], index: 2, kind: input, shape index: {}]   ;;  %s13531_s3 = inlined_call_operand.vmem [shape: f32[2,1,32], index: 3, kind: input, shape index: {}]   ;;  %s13532_s4 = inlined_call_operand.vmem [shape: f32[2,1,64], index: 4, kind: input, shape index: {}]   ;;  %s13533_s5 = inlined_call_operand.vmem [shape: f32[2,1,32], index: 5, kind: input, shape index: {}]   ;;  %s13534_s6 = inlined_call_operand.vmem [shape: f32[48,32], index: 6, kind: input, shape index: {}]   ;;  %s13535_s7 = inlined_call_operand.vmem [shape: f32[1,32], index: 7, kind: input, shape index: {}]   ;;  %s13536_s8 = inlined_call_operand.vmem [shape: f32[1,32], index: 8, kind: input, shape index: {}]   ;;  %s13537_s9 = inlined_call_operand.vmem [shape: f32[1,32], index: 9, kind: input, shape index: {}]   ;;  %s13538_s10 = inlined_call_operand.vmem [shape: f32[1,32], index: 10, kind: input, shape index: {}]   ;;  %s13539_s11 = inlined_call_operand.vmem [shape: f32[1,32], index: 11, kind: input, shape index: {}]   ;;  %s13540_s12 = inlined_call_operand.vmem [shape: f32[25,32], index: 12, kind: input, shape index: {}]   ;;  %s13541_s13 = inlined_call_operand.vmem [shape: f32[32,64], index: 13, kind: input, shape index: {}]   ;;  %s13542_s14 = inlined_call_operand.vmem [shape: f32[1,64], index: 14, kind: input, shape index: {}]   ;;  %s13543_s15 = inlined_call_operand.vmem [shape: f32[64,32], index: 15, kind: input, shape index: {}]   ;;  %s13544_s16 = inlined_call_operand.vmem [shape: f32[1,32], index: 16, kind: input, shape index: {}]   ;;  %s13545_s17 = inlined_call_operand.hbm [shape: f32[2,256,32], index: 17, kind: output, shape index: {}]  }
   0x1   :  { %13894 = sst [smem:[#allocation115_spill]] %s13528_s0 }
   0x2   :  { %13895 = sst [smem:[#allocation116_spill]] %s13529_s1 }
   0x3   :  { %13896 = sst [smem:[#allocation117_spill]] %s13530_s2 }
   0x4   :  { %13897 = sst [smem:[#allocation118_spill]] %s13531_s3 }
   0x5   :  { %22 = vsyncpa [#allocation5], 0 }
   0x6   :  { %24 = vsyncpa [#allocation5 + $0x1], 0  ;;  %s7723_s24 = smov 0   ;;  %s7725_s25 = smov 0  }
   0x7   :  { %s7727_s26 = smov 0   ;;  %s7729_s27 = smov 0  }
   0x8 LB: > { %13898 = sst [smem:[#allocation7_spill]] %s7620_s26  ;;  %s7744_s28 = sadd.s32 4294967295, %s7624_s27   ;;  %s7624_s27 = sphi %s7729_s27, %s14593_s27   ;;  %s7620_s26 = sphi %s7727_s26, %s14595_s26   ;;  %s7616_s25 = sphi %s7725_s25, %s14597_s25   ;;  %s7612_s24 = sphi %s7723_s24, %s14596_s24  }
   0x9   : > { %s6996_s29 = sadd.s32 4294967294, %s7624_s27   ;;  %s7748_s0 = sadd.s32 1, %s7624_s27  }
   0xa   : > { %13899 = sst [smem:[#allocation8_spill]] %s7748_s0  ;;  %s424_s30 = sadd.s32 1, %s7620_s26 }
   0xb   : > { %s421_s18 = ssub.s32 %s7624_s27, %s7748_s0  ;;  %p434_p0 = scmp.ne.s32.totalorder %s7620_s26, %s7616_s25 }
   0xc   : > { %p422_p1 = scmp.eq.s32.totalorder %s421_s18, 0  ;;  %p435_p2 = scmp.eq.s32.totalorder %s7744_s28, 1 }
   0xd   : > { %p440_p3 = scmp.ne.s32.totalorder %s7616_s25, %s7612_s24  ;;  %p441_p4 = scmp.eq.s32.totalorder %s6996_s29, 1 }
   0xe   : > { %s7759_s19 = scalar_select %p422_p1, %s7620_s26, %s424_s30  }
   0xf   : > { %p7761_p5 = por %p435_p2, %p434_p0  ;;  %p7765_p6 = por %p441_p4, %p440_p3 }
  0x10   : > { %13900 = sst [smem:[#allocation9_spill]] %s7759_s19  ;;  %p6999_p7 = scmp.ge.s32.totalorder %s7624_s27, 1 }
  0x11   : > { %s13902_s20 = scalar_select %p7765_p6, 1, 0 }
  0x12   : > { %p532_p8 = scmp.lt.s32.totalorder %s7624_s27, 3 }
  0x13   : > { %13903 = sst [smem:[#allocation10_spill]] %s13902_s20 }
  0x14   : > { %p533_p9 = pnand %p6999_p7, %p532_p8 }
  0x16   : > { %536 = sbr.rel (%p533_p9) target bundleno = 1928 (0x788), region = 88 }
  0x1b   : > { %v660_v0 = vld [vmem:[%s13534_s6 + $0x28] sm:$0xff]  ;;  %v659_v1 = vld [vmem:[%s13534_s6 + $0x20] sm:$0xff]  ;;  %p601_p10 = scmp.lt.s32.totalorder %s7744_s28, 1  ;;  %v658_v2 = vld [vmem:[%s13534_s6 + $0x18] sm:$0xff]  ;;  %s13904_s30 = sld [smem:[#allocation115_spill]]  ;;  %vm665_vm0 = vcmask 392192  }
  0x1c   : > { %772 = vmatpush.msra.mxu0 %v660_v0  ;;  %7109 = vmatpush.msra.mxu3 %v660_v0  ;;  %v657_v3 = vld [vmem:[%s13534_s6 + $0x10] sm:$0xff]  ;;  %v656_v4 = vld [vmem:[%s13534_s6 + $0x8] sm:$0xff]  ;;  %v655_v5 = vld [vmem:[%s13534_s6] sm:$0xff]  ;;  %s13905_s23 = sld [smem:[#allocation116_spill]]  ;;  %v7626_v11 = vmov 0   ;;  %s7627_s22 = smov 96  }
  0x1d   : > { %s7782_s19 = scalar_select %p601_p10, %s7744_s28, 1  ;;  %7173 = vset.pattern.permute.xlu1 %v7626_v11  ;;  %7174 = vset.pattern.permute.xlu0 %v7626_v11  ;;  %v7863_v38 = vld [vmem:[%s13535_s7] ss:$0 sm:$0xff]  ;;  %vm875_vm1 = vcmask 261120   ;;  %v7628_v63 = vmov 0.0   ;;  %vm1804_vm3 = vcmask 257024  }
  0x1e   : > { %773 = vmatpush.msra.mxu0 %v659_v1  ;;  %7110 = vmatpush.msra.mxu3 %v659_v1  ;;  %s13906_s2 = sld [smem:[#allocation117_spill]]  ;;  %1815 = vst.msk [vmem:[#allocation3 + $0x60] sm:$0xff] %vm875_vm1, %v7628_v63  ;;  %s598_s20 = sand.u32 1, %s7616_s25  }
  0x1f   : > { %s7106_s26 = sshll.u32 %s7782_s19, 8  ;;  %7175 = vset.pattern.permute.xlu2 %v7626_v11  ;;  %1818 = vst.msk [vmem:[#allocation3 + $0x78] sm:$0xff] %vm875_vm1, %v7628_v63  ;;  %s13927_s3 = sld [smem:[#allocation118_spill]] }
  0x20   : > { %774 = vmatpush.msra.mxu0 %v658_v2  ;;  %7111 = vmatpush.msra.mxu3 %v658_v2  ;;  %1821 = vst.msk [vmem:[#allocation3 + $0x90] sm:$0xff] %vm875_vm1, %v7628_v63 }
  0x21   : > { %s7794_s18 = scalar_lea.vmem %s13904_s30, %s7106_s26  ;;  %1824 = vst.msk [vmem:[#allocation3 + $0xa8] sm:$0xff] %vm875_vm1, %v7628_v63  ;;  %s7108_s30 = sshll.u32 %s7744_s28, 8 }
  0x22   : > { %775 = vmatpush.msra.mxu0 %v657_v3  ;;  %7112 = vmatpush.msra.mxu3 %v657_v3  ;;  %v623_v6 = vld [vmem:[%s7794_s18] sm:$0xff]  ;;  %s7806_s29 = scalar_lea.vmem %s13905_s23, %s7106_s26  ;;  %v624_v8 = vld [vmem:[%s7794_s18 + $0x8] sm:$0xff]  ;;  %v625_v13 = vld [vmem:[%s7794_s18 + $0x10] sm:$0xff]  ;;  %1827 = vst.msk [vmem:[#allocation3 + $0xc0] sm:$0xff] %vm875_vm1, %v7628_v63  ;;  %s8718_s23 = scalar_lea.vmem %s13532_s4, %s7782_s19 }
  0x23   : > { %v647_v7 = vld [vmem:[%s7794_s18 + $0xc0] sm:$0xff]  ;;  %v648_v9 = vld [vmem:[%s7794_s18 + $0xc8] sm:$0xff]  ;;  %v649_v14 = vld [vmem:[%s7794_s18 + $0xd0] sm:$0xff]  ;;  %1802 = vst.msk [vmem:[#allocation3] sm:$0xff] %vm875_vm1, %v7628_v63 }
  0x24   : > { %776 = vmatpush.msra.mxu0 %v656_v4  ;;  %7113 = vmatpush.msra.mxu3 %v656_v4  ;;  %v4329_v10 = vld [vmem:[%s7806_s29 + $0x8] sm:$0xff]  ;;  %v4332_v15 = vld [vmem:[%s7806_s29 + $0x20] sm:$0xff]  ;;  %v626_v17 = vld [vmem:[%s7794_s18 + $0x18] sm:$0xff]  ;;  %s7837_s21 = scalar_lea.vmem %s13906_s2, %s7782_s19  ;;  %1803 = vst.msk [vmem:[#allocation3 + $0x8] sm:$0xff] %vm875_vm1, %v7628_v63 }
  0x25   : > { %7186 = vrcp.f32 %v4329_v10  ;;  %v650_v18 = vld [vmem:[%s7794_s18 + $0xd8] sm:$0xff]  ;;  %v4333_v19 = vld [vmem:[%s7806_s29 + $0x28] sm:$0xff]  ;;  %v627_v21 = vld [vmem:[%s7794_s18 + $0x20] sm:$0xff]  ;;  %1806 = vst.msk [vmem:[#allocation3 + $0x18] sm:$0xff] %vm875_vm1, %v7628_v63  ;;  %s616_s0 = scalar_lea.vmem %s13927_s3, %s7782_s19 }
  0x26   : > { %777 = vmatpush.msra.mxu0 %v655_v5  ;;  %7114 = vmatpush.msra.mxu3 %v655_v5  ;;  %7188 = vrcp.f32 %v4332_v15  ;;  %v651_v22 = vld [vmem:[%s7794_s18 + $0xe0] sm:$0xff]  ;;  %v628_v25 = vld [vmem:[%s7794_s18 + $0x28] sm:$0xff]  ;;  %v629_v27 = vld [vmem:[%s7794_s18 + $0x30] sm:$0xff]  ;;  %1807 = vst.msk [vmem:[#allocation3 + $0x20] sm:$0xff] %vm875_vm1, %v7628_v63 }
  0x27   : > { %7005 = vmatmul.msk.f32.vlgmr.msra.gmra.mxu0 %vm665_vm0, %v623_v6  ;;  %7029 = vmatmul.msk.f32.vlgmr.msra.gmra.mxu3 %vm665_vm0, %v647_v7  ;;  %7190 = vrcp.f32 %v4333_v19  ;;  %v4336_v23 = vld [vmem:[%s7806_s29 + $0x40] sm:$0xff]  ;;  %v652_v26 = vld [vmem:[%s7794_s18 + $0xe8] sm:$0xff]  ;;  %v630_v29 = vld [vmem:[%s7794_s18 + $0x38] sm:$0xff]  ;;  %1809 = vst.msk [vmem:[#allocation3 + $0x30] sm:$0xff] %vm875_vm1, %v7628_v63 }
  0x28   : > { %7192 = vrcp.f32 %v4336_v23  ;;  %v7176_v28 = vld [vmem:[%s7837_s21] ss:$0 sm:$0xff]  ;;  %v632_v31 = vld [vmem:[%s7794_s18 + $0x48] sm:$0xff]  ;;  %v633_v32 = vld [vmem:[%s7794_s18 + $0x50] sm:$0xff]  ;;  %1810 = vst.msk [vmem:[#allocation3 + $0x38] sm:$0xff] %vm875_vm1, %v7628_v63 }
  0x29   : > { %1730 = vrot.lane.b32.xlu0 %v7176_v28, %s7627_s22  ;;  %v631_v30 = vld [vmem:[%s7794_s18 + $0x40] sm:$0xff]  ;;  %v634_v33 = vld [vmem:[%s7794_s18 + $0x58] sm:$0xff]  ;;  %v636_v35 = vld [vmem:[%s7794_s18 + $0x68] sm:$0xff]  ;;  %1812 = vst.msk [vmem:[#allocation3 + $0x48] sm:$0xff] %vm875_vm1, %v7628_v63 }
  0x2a   : > { %v635_v34 = vld [vmem:[%s7794_s18 + $0x60] sm:$0xff]  ;;  %v637_v36 = vld [vmem:[%s7794_s18 + $0x70] sm:$0xff]  ;;  %v638_v37 = vld [vmem:[%s7794_s18 + $0x78] sm:$0xff]  ;;  %1813 = vst.msk [vmem:[#allocation3 + $0x50] sm:$0xff] %vm875_vm1, %v7628_v63 }
  0x2b   : > { %v7187_v12 = vpop.eup %7186  ;;  %v639_v40 = vld [vmem:[%s7794_s18 + $0x80] sm:$0xff]  ;;  %v640_v46 = vld [vmem:[%s7794_s18 + $0x88] sm:$0xff]  ;;  %v653_v50 = vld [vmem:[%s7794_s18 + $0xf0] sm:$0xff]  ;;  %1816 = vst.msk [vmem:[#allocation3 + $0x68] sm:$0xff] %vm875_vm1, %v7628_v63 }
  0x2c   : > { %4431 = vperm.xlu1 %7173, %v7187_v12   ;;  %v7189_v16 = vpop.eup %7188  ;;  %v641_v54 = vld [vmem:[%s7794_s18 + $0x90] sm:$0xff]  ;;  %v642_v60 = vld [vmem:[%s7794_s18 + $0x98] sm:$0xff]  ;;  %v643_v4 = vld [vmem:[%s7794_s18 + $0xa0] sm:$0xff]  ;;  %1819 = vst.msk [vmem:[#allocation3 + $0x80] sm:$0xff] %vm875_vm1, %v7628_v63 }
  0x2d   : > { %v7191_v20 = vpop.eup %7190  ;;  %v644_v10 = vld [vmem:[%s7794_s18 + $0xa8] sm:$0xff]  ;;  %1822 = vst.msk [vmem:[#allocation3 + $0x98] sm:$0xff] %vm875_vm1, %v7628_v63 }
  0x2e   : > { %v7193_v24 = vpop.eup %7192  ;;  %1825 = vst.msk [vmem:[#allocation3 + $0xb0] sm:$0xff] %vm875_vm1, %v7628_v63 }
  0x2f   : > { %7006 = vmatmul.msk.f32.gmra.mxu0 %vm665_vm0, %v624_v8  ;;  %7030 = vmatmul.msk.f32.gmra.mxu3 %vm665_vm0, %v648_v9  ;;  %1828 = vst.msk [vmem:[#allocation3 + $0xc8] sm:$0xff] %vm875_vm1, %v7628_v63 }
  0x30   : > { %1830 = vst.msk [vmem:[#allocation3 + $0xd8] sm:$0xff] %vm875_vm1, %v7628_v63 }
  0x31   : > { %1831 = vst.msk [vmem:[#allocation3 + $0xe0] sm:$0xff] %vm875_vm1, %v7628_v63 }
  0x32   : > { %1833 = vst.msk [vmem:[#allocation3 + $0xf0] sm:$0xff] %vm875_vm1, %v7628_v63 }
  0x33   : > { %1834 = vst.msk [vmem:[#allocation3 + $0xf8] sm:$0xff] %vm875_vm1, %v7628_v63 }
  0x34   : > { %4446 = vperm.xlu1 %7173, %v7189_v16   ;;  %1836 = vst.msk [vmem:[#allocation3 + $0x108] sm:$0xff] %vm875_vm1, %v7628_v63 }
  0x35   : > { %1837 = vst.msk [vmem:[#allocation3 + $0x110] sm:$0xff] %vm875_vm1, %v7628_v63 }
  0x36   : > { %1839 = vst.msk [vmem:[#allocation3 + $0x120] sm:$0xff] %vm875_vm1, %v7628_v63 }
  0x37   : > { %7007 = vmatmul.msk.f32.gmra.mxu0 %vm665_vm0, %v625_v13  ;;  %7031 = vmatmul.msk.f32.gmra.mxu3 %vm665_vm0, %v649_v14  ;;  %1840 = vst.msk [vmem:[#allocation3 + $0x128] sm:$0xff] %vm875_vm1, %v7628_v63 }
  0x38   : > { %1842 = vst.msk [vmem:[#allocation3 + $0x138] sm:$0xff] %vm875_vm1, %v7628_v63 }
  0x39   : > { %1843 = vst.msk [vmem:[#allocation3 + $0x140] sm:$0xff] %vm875_vm1, %v7628_v63 }
  0x3a   : > { %1845 = vst.msk [vmem:[#allocation3 + $0x150] sm:$0xff] %vm875_vm1, %v7628_v63 }
  0x3b   : > { %1846 = vst.msk [vmem:[#allocation3 + $0x158] sm:$0xff] %vm875_vm1, %v7628_v63 }
  0x3c   : > { %4451 = vperm.xlu1 %7173, %v7191_v20   ;;  %1848 = vst.msk [vmem:[#allocation3 + $0x168] sm:$0xff] %vm875_vm1, %v7628_v63 }
  0x3d   : > { %1849 = vst.msk [vmem:[#allocation3 + $0x170] sm:$0xff] %vm875_vm1, %v7628_v63 }
  0x3e   : > { %1851 = vst.msk [vmem:[#allocation3 + $0x180] sm:$0xff] %vm875_vm1, %v7628_v63 }
  0x3f   : > { %7008 = vmatmul.msk.f32.gmra.mxu0 %vm665_vm0, %v626_v17  ;;  %7032 = vmatmul.msk.f32.gmra.mxu3 %vm665_vm0, %v650_v18  ;;  %v645_v18 = vld [vmem:[%s7794_s18 + $0xb0] sm:$0xff]  ;;  %1852 = vst.msk [vmem:[#allocation3 + $0x188] sm:$0xff] %vm875_vm1, %v7628_v63 }
  0x40   : > { %1854 = vst.msk [vmem:[#allocation3 + $0x198] sm:$0xff] %vm875_vm1, %v7628_v63 }
  0x41   : > { %1855 = vst.msk [vmem:[#allocation3 + $0x1a0] sm:$0xff] %vm875_vm1, %v7628_v63 }
  0x42   : > { %1857 = vst.msk [vmem:[#allocation3 + $0x1b0] sm:$0xff] %vm875_vm1, %v7628_v63 }
  0x43   : > { %1858 = vst.msk [vmem:[#allocation3 + $0x1b8] sm:$0xff] %vm875_vm1, %v7628_v63 }
  0x44   : > { %4466 = vperm.xlu1 %7173, %v7193_v24   ;;  %v646_v24 = vld [vmem:[%s7794_s18 + $0xb8] sm:$0xff]  ;;  %1860 = vst.msk [vmem:[#allocation3 + $0x1c8] sm:$0xff] %vm875_vm1, %v7628_v63 }
  0x45   : > { %1861 = vst.msk [vmem:[#allocation3 + $0x1d0] sm:$0xff] %vm875_vm1, %v7628_v63 }
  0x46   : > { %1811 = vst.msk [vmem:[#allocation3 + $0x40] sm:$0xf] %vm1804_vm3, %v7628_v63 }
  0x47   : > { %7009 = vmatmul.msk.f32.gmra.mxu0 %vm665_vm0, %v627_v21  ;;  %7033 = vmatmul.msk.f32.gmra.mxu3 %vm665_vm0, %v651_v22  ;;  %1805 = vst.msk [vmem:[#allocation3 + $0x10] sm:$0xf] %vm1804_vm3, %v7628_v63 }
  0x48   : > { %1808 = vst.msk [vmem:[#allocation3 + $0x28] sm:$0xf] %vm1804_vm3, %v7628_v63 }
  0x49   : > { %1814 = vst.msk [vmem:[#allocation3 + $0x58] sm:$0xf] %vm1804_vm3, %v7628_v63 }
  0x4a   : > { %1817 = vst.msk [vmem:[#allocation3 + $0x70] sm:$0xf] %vm1804_vm3, %v7628_v63 }
  0x4b   : > { %1820 = vst.msk [vmem:[#allocation3 + $0x88] sm:$0xf] %vm1804_vm3, %v7628_v63 }
  0x4c   : > { %1823 = vst.msk [vmem:[#allocation3 + $0xa0] sm:$0xf] %vm1804_vm3, %v7628_v63 }
  0x4d   : > { %1826 = vst.msk [vmem:[#allocation3 + $0xb8] sm:$0xf] %vm1804_vm3, %v7628_v63 }
  0x4e   : > { %1829 = vst.msk [vmem:[#allocation3 + $0xd0] sm:$0xf] %vm1804_vm3, %v7628_v63 }
  0x4f   : > { %7010 = vmatmul.msk.f32.gmra.mxu0 %vm665_vm0, %v628_v25  ;;  %7034 = vmatmul.msk.f32.gmra.mxu3 %vm665_vm0, %v652_v26  ;;  %1832 = vst.msk [vmem:[#allocation3 + $0xe8] sm:$0xf] %vm1804_vm3, %v7628_v63 }
  0x50   : > { %1835 = vst.msk [vmem:[#allocation3 + $0x100] sm:$0xf] %vm1804_vm3, %v7628_v63 }
  0x51   : > { %1838 = vst.msk [vmem:[#allocation3 + $0x118] sm:$0xf] %vm1804_vm3, %v7628_v63 }
  0x52   : > { %1841 = vst.msk [vmem:[#allocation3 + $0x130] sm:$0xf] %vm1804_vm3, %v7628_v63 }
  0x53   : > { %1844 = vst.msk [vmem:[#allocation3 + $0x148] sm:$0xf] %vm1804_vm3, %v7628_v63 }
  0x54   : > { %1847 = vst.msk [vmem:[#allocation3 + $0x160] sm:$0xf] %vm1804_vm3, %v7628_v63 }
  0x55   : > { %1850 = vst.msk [vmem:[#allocation3 + $0x178] sm:$0xf] %vm1804_vm3, %v7628_v63 }
  0x56   : > { %1853 = vst.msk [vmem:[#allocation3 + $0x190] sm:$0xf] %vm1804_vm3, %v7628_v63 }
  0x57   : > { %7011 = vmatmul.msk.f32.gmra.mxu0 %vm665_vm0, %v629_v27  ;;  %7035 = vmatmul.msk.f32.gmra.mxu3 %vm665_vm0, %v653_v50  ;;  %1856 = vst.msk [vmem:[#allocation3 + $0x1a8] sm:$0xf] %vm1804_vm3, %v7628_v63 }
  0x58   : > { %1859 = vst.msk [vmem:[#allocation3 + $0x1c0] sm:$0xf] %vm1804_vm3, %v7628_v63 }
  0x59   : > { %1862 = vst.msk [vmem:[#allocation3 + $0x1d8] sm:$0xf] %vm1804_vm3, %v7628_v63 }
  0x5f   : > { %7012 = vmatmul.msk.f32.gmra.mxu0 %vm665_vm0, %v630_v29 }
  0x67   : > { %7013 = vmatmul.msk.f32.gmra.mxu0 %vm665_vm0, %v631_v30 }
  0x6f   : > { %7014 = vmatmul.msk.f32.gmra.mxu0 %vm665_vm0, %v632_v31 }
  0x77   : > { %7015 = vmatmul.msk.f32.gmra.mxu0 %vm665_vm0, %v633_v32 }
  0x7f   : > { %7016 = vmatmul.msk.f32.gmra.mxu0 %vm665_vm0, %v634_v33  ;;  %v654_v33 = vld [vmem:[%s7794_s18 + $0xf8] sm:$0xff]  ;;  %s622_s18 = scalar_lea.vmem %s13533_s5, %s7782_s19 }
  0x80   : > { %7036 = vmatmul.msk.f32.gmra.mxu3 %vm665_vm0, %v654_v33 }
  0x87   : > { %7017 = vmatmul.msk.f32.gmra.mxu0 %vm665_vm0, %v635_v34 }
  0x8f   : > { %7018 = vmatmul.msk.f32.gmra.mxu0 %vm665_vm0, %v636_v35 }
  0x97   : > { %7019 = vmatmul.msk.f32.gmra.mxu0 %vm665_vm0, %v637_v36 }
  0x9f   : > { %7020 = vmatmul.msk.f32.gmra.mxu0 %vm665_vm0, %v638_v37  ;;  %v8084_v37 = vpop.permute.xlu1 %4431 }
  0xa0   : > { %13909 = vst [vmem:[#allocation13_spill] sm:$0xff] %v8084_v37 }
  0xa4   : > { %v779_v39 = vpop.f32.mrf.mxu0 }
  0xa5   : > { %v7867_v41 = vadd.f32 %v7863_v38, %v779_v39 }
  0xa7   : > { %876 = vst.msk [vmem:[#allocation2] sm:$0xff] %vm875_vm1, %v7867_v41  ;;  %7021 = vmatmul.msk.f32.gmra.mxu0 %vm665_vm0, %v639_v40  ;;  %v910_v42 = vsel %vm875_vm1, %v7867_v41, 0.0 }
  0xa8   : > { %911 = vadd.xlane.f32.xlu0 %v910_v42 }
  0xaa   : > { %v851_v43 = vpop.f32.mrf.mxu3 }
  0xab   : > { %v7875_v44 = vadd.f32 %v7863_v38, %v851_v43  ;;  %v7629_v43 = vmov 32.0  }
  0xac   : > { %v782_v45 = vpop.f32.mrf.mxu0  ;;  %7194 = vrcp.f32 %v7629_v43 }
  0xad   : > { %900 = vst.msk [vmem:[#allocation2 + $0xc0] sm:$0xff] %vm875_vm1, %v7875_v44  ;;  %v7881_v47 = vadd.f32 %v7863_v38, %v782_v45  ;;  %v982_v48 = vsel %vm875_vm1, %v7875_v44, 0.0 }
  0xae   : > { %983 = vadd.xlane.f32.xlu1 %v982_v48 }
  0xaf   : > { %877 = vst.msk [vmem:[#allocation2 + $0x8] sm:$0xff] %vm875_vm1, %v7881_v47  ;;  %7022 = vmatmul.msk.f32.gmra.mxu0 %vm665_vm0, %v640_v46  ;;  %v913_v49 = vsel %vm875_vm1, %v7881_v47, 0.0  ;;  %v8093_v46 = vpop.permute.xlu1 %4446 }
  0xb0   : > { %914 = vadd.xlane.f32.xlu0 %v913_v49  ;;  %13910 = vst [vmem:[#allocation14_spill] sm:$0xff] %v8093_v46 }
  0xb2   : > { %v854_v51 = vpop.f32.mrf.mxu3  ;;  %v7195_v49 = vpop.eup %7194 }
  0xb3   : > { %v7893_v52 = vadd.f32 %v7863_v38, %v854_v51  ;;  %v1007_v51 = vmul.f32 32.0, %v7195_v49  ;;  %vm1011_vm2 = vweird.f32 %v7195_v49 }
  0xb4   : > { %v785_v53 = vpop.f32.mrf.mxu0 }
  0xb5   : > { %901 = vst.msk [vmem:[#allocation2 + $0xc8] sm:$0xff] %vm875_vm1, %v7893_v52  ;;  %v7899_v55 = vadd.f32 %v7863_v38, %v785_v53  ;;  %v985_v56 = vsel %vm875_vm1, %v7893_v52, 0.0 }
  0xb6   : > { %986 = vadd.xlane.f32.xlu1 %v985_v56  ;;  %v1008_v56 = vsub.f32 1.0, %v1007_v51 }
  0xb7   : > { %878 = vst.msk [vmem:[#allocation2 + $0x10] sm:$0xff] %vm875_vm1, %v7899_v55  ;;  %7023 = vmatmul.msk.f32.gmra.mxu0 %vm665_vm0, %v641_v54  ;;  %v916_v62 = vsel %vm875_vm1, %v7899_v55, 0.0 }
  0xba   : > { %v857_v57 = vpop.f32.mrf.mxu3 }
  0xbb   : > { %v7907_v58 = vadd.f32 %v7863_v38, %v857_v57  ;;  %v8105_v57 = vpop.permute.xlu1 %4451 }
  0xbc   : > { %v788_v59 = vpop.f32.mrf.mxu0  ;;  %13911 = vst [vmem:[#allocation15_spill] sm:$0xff] %v8105_v57 }
  0xbd   : > { %902 = vst.msk [vmem:[#allocation2 + $0xd0] sm:$0xff] %vm875_vm1, %v7907_v58  ;;  %v7913_v61 = vadd.f32 %v7863_v38, %v788_v59  ;;  %v988_v2 = vsel %vm875_vm1, %v7907_v58, 0.0 }
  0xbe   : > { %917 = vadd.xlane.f32.xlu1 %v916_v62  ;;  %v8111_v62 = vpop.permute.xlu0 %1730 }
  0xbf   : > { %879 = vst.msk [vmem:[#allocation2 + $0x18] sm:$0xff] %vm875_vm1, %v7913_v61  ;;  %7024 = vmatmul.msk.f32.gmra.mxu0 %vm665_vm0, %v642_v60  ;;  %v919_v13 = vsel %vm875_vm1, %v7913_v61, 0.0  ;;  %v1009_v60 = vmul.f32 %v7195_v49, %v1008_v56 }
  0xc0   : > { %13912 = vst [vmem:[#allocation16_spill] sm:$0xff] %v8111_v62 }
  0xc2   : > { %v860_v0 = vpop.f32.mrf.mxu3 }
  0xc3   : > { %v7927_v1 = vadd.f32 %v7863_v38, %v860_v0 }
  0xc4   : > { %v791_v3 = vpop.f32.mrf.mxu0 }
  0xc5   : > { %903 = vst.msk [vmem:[#allocation2 + $0xd8] sm:$0xff] %vm875_vm1, %v7927_v1  ;;  %v7939_v5 = vadd.f32 %v7863_v38, %v791_v3  ;;  %v991_v6 = vsel %vm875_vm1, %v7927_v1, 0.0  ;;  %v1010_v3 = vadd.f32 %v7195_v49, %v1009_v60 }
  0xc6   : > { %992 = vadd.xlane.f32.xlu2 %v991_v6  ;;  %989 = vadd.xlane.f32.xlu1 %v988_v2  ;;  %v8120_v6 = vpop.permute.xlu1 %4466 }
  0xc7   : > { %880 = vst.msk [vmem:[#allocation2 + $0x20] sm:$0xff] %vm875_vm1, %v7939_v5  ;;  %7025 = vmatmul.msk.f32.gmra.mxu0 %vm665_vm0, %v643_v4  ;;  %v922_v12 = vsel %vm875_vm1, %v7939_v5, 0.0 }
  0xc8   : > { %13913 = vst [vmem:[#allocation17_spill] sm:$0xff] %v8120_v6 }
  0xca   : > { %v863_v7 = vpop.f32.mrf.mxu3 }
  0xcb   : > { %v7955_v8 = vadd.f32 %v7863_v38, %v863_v7  ;;  %v8122_v7 = vsel %vm1011_vm2, %v7195_v49, %v1010_v3 }
  0xcc   : > { %v794_v9 = vpop.f32.mrf.mxu0  ;;  %13914 = vst [vmem:[#allocation18_spill] sm:$0xff] %v8122_v7 }
  0xcd   : > { %13907 = vst [vmem:[#allocation11_spill] sm:$0xff] %v7955_v8  ;;  %v7965_v11 = vadd.f32 %v7863_v38, %v794_v9  ;;  %v994_v14 = vsel %vm875_vm1, %v7955_v8, 0.0 }
  0xce   : > { %904 = vst.msk [vmem:[#allocation2 + $0xe0] sm:$0xff] %vm875_vm1, %v7955_v8  ;;  %923 = vadd.xlane.f32.xlu2 %v922_v12  ;;  %920 = vadd.xlane.f32.xlu1 %v919_v13 }
  0xcf   : > { %881 = vst.msk [vmem:[#allocation2 + $0x28] sm:$0xff] %vm875_vm1, %v7965_v11  ;;  %995 = vadd.xlane.f32.xlu0 %v994_v14  ;;  %7026 = vmatmul.msk.f32.gmra.mxu0 %vm665_vm0, %v644_v10  ;;  %v925_v20 = vsel %vm875_vm1, %v7965_v11, 0.0 }
  0xd2   : > { %v866_v15 = vpop.f32.mrf.mxu3 }
  0xd3   : > { %v7985_v16 = vadd.f32 %v7863_v38, %v866_v15 }
  0xd4   : > { %v797_v17 = vpop.f32.mrf.mxu0 }
  0xd5   : > { %13908 = vst [vmem:[#allocation12_spill] sm:$0xff] %v7985_v16  ;;  %v7993_v19 = vadd.f32 %v7863_v38, %v797_v17  ;;  %v997_v22 = vsel %vm875_vm1, %v7985_v16, 0.0 }
  0xd6   : > { %905 = vst.msk [vmem:[#allocation2 + $0xe8] sm:$0xff] %vm875_vm1, %v7985_v16  ;;  %926 = vadd.xlane.f32.xlu2 %v925_v20 }
  0xd7   : > { %882 = vst.msk [vmem:[#allocation2 + $0x30] sm:$0xff] %vm875_vm1, %v7993_v19  ;;  %7027 = vmatmul.msk.f32.gmra.mxu0 %vm665_vm0, %v645_v18  ;;  %v928_v21 = vsel %vm875_vm1, %v7993_v19, 0.0 }
  0xd8   : > { %929 = vadd.xlane.f32.xlu0 %v928_v21 }
  0xda   : > { %v869_v49 = vpop.f32.mrf.mxu3 }
  0xdc   : > { %v800_v23 = vpop.f32.mrf.mxu0 }
  0xdd   : > { %v8020_v25 = vadd.f32 %v7863_v38, %v800_v23 }
  0xde   : > { %998 = vadd.xlane.f32.xlu2 %v997_v22 }
  0xdf   : > { %883 = vst.msk [vmem:[#allocation2 + $0x38] sm:$0xff] %vm875_vm1, %v8020_v25  ;;  %7028 = vmatmul.msk.f32.gmra.mxu0 %vm665_vm0, %v646_v24  ;;  %v931_v26 = vsel %vm875_vm1, %v8020_v25, 0.0 }
  0xe0   : > { %932 = vadd.xlane.f32.xlu1 %v931_v26 }
  0xe4   : > { %v803_v27 = vpop.f32.mrf.mxu0 }
  0xe5   : > { %v8044_v28 = vadd.f32 %v7863_v38, %v803_v27 }
  0xe7   : > { %v934_v29 = vsel %vm875_vm1, %v8044_v28, 0.0  ;;  %884 = vst.msk [vmem:[#allocation2 + $0x40] sm:$0xff] %vm875_vm1, %v8044_v28 }
  0xe8   : > { %935 = vadd.xlane.f32.xlu0 %v934_v29 }
  0xec   : > { %v806_v30 = vpop.f32.mrf.mxu0 }
  0xed   : > { %v8065_v31 = vadd.f32 %v7863_v38, %v806_v30 }
  0xef   : > { %v937_v32 = vsel %vm875_vm1, %v8065_v31, 0.0  ;;  %885 = vst.msk [vmem:[#allocation2 + $0x48] sm:$0xff] %vm875_vm1, %v8065_v31 }
  0xf0   : > { %938 = vadd.xlane.f32.xlu0 %v937_v32 }
  0xf4   : > { %v809_v34 = vpop.f32.mrf.mxu0 }
  0xf5   : > { %v8078_v35 = vadd.f32 %v7863_v38, %v809_v34 }
  0xf7   : > { %886 = vst.msk [vmem:[#allocation2 + $0x50] sm:$0xff] %vm875_vm1, %v8078_v35  ;;  %v940_v36 = vsel %vm875_vm1, %v8078_v35, 0.0 }
  0xf8   : > { %941 = vadd.xlane.f32.xlu0 %v940_v36 }
  0xfc   : > { %v812_v39 = vpop.f32.mrf.mxu0 }
  0xfd   : > { %v8087_v40 = vadd.f32 %v7863_v38, %v812_v39 }
  0xff   : > { %887 = vst.msk [vmem:[#allocation2 + $0x58] sm:$0xff] %vm875_vm1, %v8087_v40  ;;  %v943_v42 = vsel %vm875_vm1, %v8087_v40, 0.0 }
 0x100   : > { %944 = vadd.xlane.f32.xlu2 %v943_v42 }
 0x104   : > { %v815_v45 = vpop.f32.mrf.mxu0 }
 0x105   : > { %v8096_v48 = vadd.f32 %v7863_v38, %v815_v45 }
 0x107   : > { %888 = vst.msk [vmem:[#allocation2 + $0x60] sm:$0xff] %vm875_vm1, %v8096_v48  ;;  %v946_v50 = vsel %vm875_vm1, %v8096_v48, 0.0 }
 0x108   : > { %947 = vadd.xlane.f32.xlu2 %v946_v50 }
 0x10c   : > { %v818_v53 = vpop.f32.mrf.mxu0 }
 0x10d   : > { %v8103_v54 = vadd.f32 %v7863_v38, %v818_v53 }
 0x10f   : > { %889 = vst.msk [vmem:[#allocation2 + $0x68] sm:$0xff] %vm875_vm1, %v8103_v54  ;;  %v949_v59 = vsel %vm875_vm1, %v8103_v54, 0.0 }
 0x110   : > { %950 = vadd.xlane.f32.xlu2 %v949_v59 }
 0x114   : > { %v821_v0 = vpop.f32.mrf.mxu0 }
 0x115   : > { %v8114_v2 = vadd.f32 %v7863_v38, %v821_v0 }
 0x117   : > { %890 = vst.msk [vmem:[#allocation2 + $0x70] sm:$0xff] %vm875_vm1, %v8114_v2  ;;  %v952_v4 = vsel %vm875_vm1, %v8114_v2, 0.0 }
 0x118   : > { %953 = vadd.xlane.f32.xlu2 %v952_v4 }
 0x11b   : > { %v912_v9 = vpop.xlane.xlu0 %911 }
 0x11c   : > { %v1013_v10 = vmul.f32 %v8122_v7, %v912_v9  ;;  %v824_v12 = vpop.f32.mrf.mxu0 }
 0x11d   : > { %v8126_v13 = vadd.f32 %v7863_v38, %v824_v12 }
 0x11e   : > { %v8129_v14 = vsub.f32 %v7867_v41, %v1013_v10 }
 0x11f   : > { %891 = vst.msk [vmem:[#allocation2 + $0x78] sm:$0xff] %vm875_vm1, %v8126_v13  ;;  %v955_v15 = vsel %vm875_vm1, %v8126_v13, 0.0 }
 0x120   : > { %956 = vadd.xlane.f32.xlu1 %v955_v15  ;;  %v1077_v17 = vmul.f32 %v8129_v14, %v8129_v14 }
 0x121   : > { %v8137_v18 = vpop.xlane.xlu1 %983 }
 0x122   : > { %v1109_v20 = vsel %vm875_vm1, %v1077_v17, 0.0 }
 0x123   : > { %1110 = vadd.xlane.f32.xlu2 %v1109_v20  ;;  %v915_v21 = vpop.xlane.xlu0 %914 }
 0x124   : > { %v1014_v22 = vmul.f32 %v8122_v7, %v915_v21  ;;  %v827_v41 = vpop.f32.mrf.mxu0 }
 0x125   : > { %v8142_v23 = vadd.f32 %v7863_v38, %v827_v41 }
 0x126   : > { %v8145_v24 = vsub.f32 %v7881_v47, %v1014_v22 }
 0x127   : > { %892 = vst.msk [vmem:[#allocation2 + $0x80] sm:$0xff] %vm875_vm1, %v8142_v23  ;;  %v958_v26 = vsel %vm875_vm1, %v8142_v23, 0.0 }
 0x128   : > { %959 = vadd.xlane.f32.xlu1 %v958_v26  ;;  %v1078_v29 = vmul.f32 %v8145_v24, %v8145_v24 }
 0x129   : > { %v8151_v27 = vpop.xlane.xlu1 %986 }
 0x12a   : > { %v1112_v47 = vsel %vm875_vm1, %v1078_v29, 0.0 }
 0x12c   : > { %v830_v30 = vpop.f32.mrf.mxu0 }
 0x12d   : > { %v8156_v32 = vadd.f32 %v7863_v38, %v830_v30 }
 0x12f   : > { %893 = vst.msk [vmem:[#allocation2 + $0x88] sm:$0xff] %vm875_vm1, %v8156_v32  ;;  %v961_v43 = vsel %vm875_vm1, %v8156_v32, 0.0 }
 0x130   : > { %1113 = vadd.xlane.f32.xlu1 %v1112_v47 }
 0x131   : > { %v918_v33 = vpop.xlane.xlu1 %917 }
 0x132   : > { %v1015_v34 = vmul.f32 %v8122_v7, %v918_v33 }
 0x134   : > { %v8163_v36 = vsub.f32 %v7899_v55, %v1015_v34  ;;  %v833_v39 = vpop.f32.mrf.mxu0  ;;  %v8176_v55 = vadd.f32 %v7863_v38, %v869_v49 }
 0x135   : > { %v8166_v42 = vadd.f32 %v7863_v38, %v833_v39 }
 0x136   : > { %v1079_v45 = vmul.f32 %v8163_v36, %v8163_v36  ;;  %13915 = vst [vmem:[#allocation19_spill] sm:$0xff] %v8176_v55 }
 0x137   : > { %894 = vst.msk [vmem:[#allocation2 + $0x90] sm:$0xff] %vm875_vm1, %v8166_v42  ;;  %v964_v60 = vsel %vm875_vm1, %v8166_v42, 0.0 }
 0x138   : > { %962 = vadd.xlane.f32.xlu1 %v961_v43  ;;  %v1115_v50 = vsel %vm875_vm1, %v1079_v45, 0.0  ;;  %906 = vst.msk [vmem:[#allocation2 + $0xf0] sm:$0xff] %vm875_vm1, %v8176_v55 }
 0x139   : > { %v8178_v51 = vpop.xlane.xlu2 %992  ;;  %v8180_v53 = vpop.xlane.xlu1 %989  ;;  %1116 = vadd.xlane.f32.xlu2 %v1115_v50 }
 0x13c   : > { %v836_v56 = vpop.f32.mrf.mxu0 }
 0x13d   : > { %v8185_v59 = vadd.f32 %v7863_v38, %v836_v56 }
 0x13f   : > { %895 = vst.msk [vmem:[#allocation2 + $0x98] sm:$0xff] %vm875_vm1, %v8185_v59  ;;  %v967_v33 = vsel %vm875_vm1, %v8185_v59, 0.0 }
 0x141   : > { %v924_v0 = vpop.xlane.xlu2 %923  ;;  %v921_v3 = vpop.xlane.xlu1 %920  ;;  %965 = vadd.xlane.f32.xlu2 %v964_v60  ;;  %v1000_v60 = vsel %vm875_vm1, %v8176_v55, 0.0 }
 0x142   : > { %v1017_v4 = vmul.f32 %v8122_v7, %v924_v0  ;;  %v1016_v9 = vmul.f32 %v8122_v7, %v921_v3  ;;  %v8212_v41 = vpop.xlane.xlu0 %995 }
 0x143   : > { %13916 = vst [vmem:[#allocation20_spill] sm:$0xff] %v8212_v41 }
 0x144   : > { %v8194_v10 = vsub.f32 %v7939_v5, %v1017_v4  ;;  %v8197_v12 = vsub.f32 %v7913_v61, %v1016_v9  ;;  %v839_v15 = vpop.f32.mrf.mxu0 }
 0x145   : > { %v8200_v17 = vadd.f32 %v7863_v38, %v839_v15 }
 0x146   : > { %v1081_v20 = vmul.f32 %v8194_v10, %v8194_v10  ;;  %v1080_v21 = vmul.f32 %v8197_v12, %v8197_v12 }
 0x147   : > { %896 = vst.msk [vmem:[#allocation2 + $0xa0] sm:$0xff] %vm875_vm1, %v8200_v17  ;;  %v970_v5 = vsel %vm875_vm1, %v8200_v17, 0.0 }
 0x148   : > { %971 = vadd.xlane.f32.xlu0 %v970_v5  ;;  %v1121_v61 = vsel %vm875_vm1, %v1081_v20, 0.0  ;;  %v1118_v22 = vsel %vm875_vm1, %v1080_v21, 0.0 }
 0x149   : > { %v927_v26 = vpop.xlane.xlu2 %926  ;;  %1122 = vadd.xlane.f32.xlu2 %v1121_v61  ;;  %1119 = vadd.xlane.f32.xlu1 %v1118_v22 }
 0x14a   : > { %v1018_v29 = vmul.f32 %v8122_v7, %v927_v26 }
 0x14b   : > { %v930_v43 = vpop.xlane.xlu0 %929 }
 0x14c   : > { %v842_v30 = vpop.f32.mrf.mxu0  ;;  %v8225_v39 = vsub.f32 %v7965_v11, %v1018_v29  ;;  %v1019_v45 = vmul.f32 %v8122_v7, %v930_v43 }
 0x14d   : > { %v8216_v47 = vadd.f32 %v7863_v38, %v842_v30 }
 0x14e   : > { %v1082_v50 = vmul.f32 %v8225_v39, %v8225_v39  ;;  %v8238_v11 = vsub.f32 %v7993_v19, %v1019_v45 }
 0x14f   : > { %897 = vst.msk [vmem:[#allocation2 + $0xa8] sm:$0xff] %vm875_vm1, %v8216_v47  ;;  %v973_v34 = vsel %vm875_vm1, %v8216_v47, 0.0 }
 0x150   : > { %v1124_v0 = vsel %vm875_vm1, %v1082_v50, 0.0  ;;  %v1083_v9 = vmul.f32 %v8238_v11, %v8238_v11 }
 0x151   : > { %974 = vadd.xlane.f32.xlu2 %v973_v34  ;;  %968 = vadd.xlane.f32.xlu1 %v967_v33  ;;  %v8264_v43 = vpop.xlane.xlu2 %998 }
 0x152   : > { %v1127_v19 = vsel %vm875_vm1, %v1083_v9, 0.0  ;;  %13919 = vst [vmem:[#allocation23_spill] sm:$0xff] %v8264_v43 }
 0x153   : > { %v933_v21 = vpop.xlane.xlu1 %932 }
 0x154   : > { %v845_v49 = vpop.f32.mrf.mxu0  ;;  %v1020_v61 = vmul.f32 %v8122_v7, %v933_v21 }
 0x155   : > { %v8231_v56 = vadd.f32 %v7863_v38, %v845_v49 }
 0x156   : > { %v8259_v30 = vsub.f32 %v8020_v25, %v1020_v61 }
 0x157   : > { %13917 = vst [vmem:[#allocation21_spill] sm:$0xff] %v8231_v56  ;;  %v976_v29 = vsel %vm875_vm1, %v8231_v56, 0.0 }
 0x158   : > { %898 = vst.msk [vmem:[#allocation2 + $0xb0] sm:$0xff] %vm875_vm1, %v8231_v56  ;;  %v1084_v50 = vmul.f32 %v8259_v30, %v8259_v30 }
 0x159   : > { %1001 = vadd.xlane.f32.xlu2 %v1000_v60  ;;  %1125 = vadd.xlane.f32.xlu1 %v1124_v0 }
 0x15a   : > { %v1130_v0 = vsel %vm875_vm1, %v1084_v50, 0.0 }
 0x15b   : > { %v936_v3 = vpop.xlane.xlu0 %935 }
 0x15c   : > { %v848_v4 = vpop.f32.mrf.mxu0  ;;  %v1021_v49 = vmul.f32 %v8122_v7, %v936_v3 }
 0x15d   : > { %v8244_v15 = vadd.f32 %v7863_v38, %v848_v4 }
 0x15e   : > { %v8274_v60 = vsub.f32 %v8044_v28, %v1021_v49  ;;  %v1038_v28 = vmul.f32 %v8122_v7, %v8151_v27 }
 0x15f   : > { %13918 = vst [vmem:[#allocation22_spill] sm:$0xff] %v8244_v15  ;;  %v979_v20 = vsel %vm875_vm1, %v8244_v15, 0.0 }
 0x160   : > { %899 = vst.msk [vmem:[#allocation2 + $0xb8] sm:$0xff] %vm875_vm1, %v8244_v15  ;;  %980 = vadd.xlane.f32.xlu0 %v979_v20  ;;  %v872_v20 = vpop.f32.mrf.mxu3 }
 0x161   : > { %1128 = vadd.xlane.f32.xlu1 %v1127_v19  ;;  %v8284_v21 = vadd.f32 %v7863_v38, %v872_v20 }
 0x163   : > { %v939_v5 = vpop.xlane.xlu0 %938  ;;  %13920 = vst [vmem:[#allocation24_spill] sm:$0xff] %v8284_v21 }
 0x164   : > { %v1022_v22 = vmul.f32 %v8122_v7, %v939_v5  ;;  %907 = vst.msk [vmem:[#allocation2 + $0xf8] sm:$0xff] %vm875_vm1, %v8284_v21 }
 0x166   : > { %v8254_v26 = vsub.f32 %v8065_v31, %v1022_v22 }
 0x168   : > { %v1086_v33 = vmul.f32 %v8254_v26, %v8254_v26 }
 0x169   : > { %977 = vadd.xlane.f32.xlu1 %v976_v29  ;;  %v8297_v29 = vsub.f32 %v7893_v52, %v1038_v28 }
 0x16a   : > { %v1136_v34 = vsel %vm875_vm1, %v1086_v33, 0.0 }
 0x16b   : > { %1137 = vadd.xlane.f32.xlu0 %v1136_v34  ;;  %v942_v45 = vpop.xlane.xlu0 %941  ;;  %13921 = vst [vmem:[#allocation25_spill] sm:$0xff] %v8297_v29  ;;  %v1102_v34 = vmul.f32 %v8297_v29, %v8297_v29 }
 0x16c   : > { %v1023_v31 = vmul.f32 %v8122_v7, %v942_v45 }
 0x16d   : > { %v1184_v52 = vsel %vm875_vm1, %v1102_v34, 0.0 }
 0x16e   : > { %v8271_v25 = vsub.f32 %v8078_v35, %v1023_v31  ;;  %v1085_v35 = vmul.f32 %v8274_v60, %v8274_v60 }
 0x170   : > { %v1087_v4 = vmul.f32 %v8271_v25, %v8271_v25  ;;  %v1133_v61 = vsel %vm875_vm1, %v1085_v35, 0.0 }
 0x171   : > { %1131 = vadd.xlane.f32.xlu1 %v1130_v0 }
 0x172   : > { %v1139_v9 = vsel %vm875_vm1, %v1087_v4, 0.0 }
 0x173   : > { %v945_v3 = vpop.xlane.xlu2 %944  ;;  %1140 = vadd.xlane.f32.xlu2 %v1139_v9 }
 0x174   : > { %v1024_v19 = vmul.f32 %v8122_v7, %v945_v3 }
 0x176   : > { %v8289_v5 = vsub.f32 %v8087_v40, %v1024_v19  ;;  %v1003_v19 = vsel %vm875_vm1, %v8284_v21, 0.0  ;;  %v8410_v21 = vld [vmem:[#allocation3 + $0x1c] sm:$0xff] }
 0x178   : > { %v1088_v22 = vmul.f32 %v8289_v5, %v8289_v5 }
 0x179   : > { %1134 = vadd.xlane.f32.xlu1 %v1133_v61 }
 0x17a   : > { %v1142_v38 = vsel %vm875_vm1, %v1088_v22, 0.0 }
 0x17b   : > { %v948_v33 = vpop.xlane.xlu2 %947  ;;  %1143 = vadd.xlane.f32.xlu2 %v1142_v38  ;;  %v4330_v38 = vld [vmem:[%s7806_s29 + $0x10] sm:$0xff] }
 0x17c   : > { %v1025_v40 = vmul.f32 %v8122_v7, %v948_v33  ;;  %v8344_v33 = vld [vmem:[%s13540_s12] sm:$0xff] }
 0x17d   : > { %v8353_v34 = vperm.slane %v8344_v33, 0  ;;  %v8393_v57 = vperm.slane %v8344_v33, 3 }
 0x17e   : > { %v8302_v27 = vsub.f32 %v8096_v48, %v1025_v40  ;;  %v4340_v48 = vld [vmem:[%s7806_s29 + $0x60] sm:$0xff] }
 0x17f   : > { %7196 = vrcp.f32 %v4340_v48  ;;  %13924 = vst [vmem:[#allocation28_spill] sm:$0xff] %v8353_v34  ;;  %v8367_v48 = vld [vmem:[#allocation3 + $0x18] sm:$0xff] }
 0x180   : > { %13922 = vst [vmem:[#allocation26_spill] sm:$0xff] %v8302_v27  ;;  %v1089_v45 = vmul.f32 %v8302_v27, %v8302_v27  ;;  %v8432_v27 = vld [vmem:[%s13537_s9] ss:$0 sm:$0xff] }
 0x181   : > { %13928 = vst [vmem:[#allocation31_spill] sm:$0xff] %v8393_v57 }
 0x182   : > { %v1145_v49 = vsel %vm875_vm1, %v1089_v45, 0.0  ;;  %v8356_v45 = vperm.slane %v8344_v33, 1 }
 0x183   : > { %v951_v31 = vpop.xlane.xlu2 %950  ;;  %1146 = vadd.xlane.f32.xlu0 %v1145_v49  ;;  %1185 = vadd.xlane.f32.xlu2 %v1184_v52  ;;  %v4335_v52 = vld [vmem:[%s7806_s29 + $0x38] sm:$0xff] }
 0x184   : > { %v1026_v50 = vmul.f32 %v8122_v7, %v951_v31  ;;  %13925 = vst [vmem:[#allocation29_spill] sm:$0xff] %v8356_v45  ;;  %v8363_v31 = vperm.slane %v8344_v33, 2 }
 0x185   : > { %v7197_v20 = vpop.eup %7196 }
 0x186   : > { %v8312_v0 = vsub.f32 %v8103_v54, %v1026_v50  ;;  %13926 = vst [vmem:[#allocation30_spill] sm:$0xff] %v8363_v31 }
 0x188   : > { %13923 = vst [vmem:[#allocation27_spill] sm:$0xff] %v8312_v0  ;;  %v1090_v4 = vmul.f32 %v8312_v0, %v8312_v0 }
 0x18a   : > { %v1148_v9 = vsel %vm875_vm1, %v1090_v4, 0.0  ;;  %v8369_v4 = vld [vmem:[#allocation3 + $0x19] sm:$0xff] }
 0x18b   : > { %1149 = vadd.xlane.f32.xlu0 %v1148_v9  ;;  %v8318_v3 = vpop.xlane.xlu2 %953 }
 0x192   : > { %4486 = vperm.xlu1 %7173, %v7197_v20  }
 0x193   : > { %v8322_v35 = vpop.xlane.xlu1 %956  ;;  %1004 = vadd.xlane.f32.xlu0 %v1003_v19 }
 0x196   : > { %v1111_v54 = vpop.xlane.xlu2 %1110 }
 0x197   : > { %v1205_v28 = vmul.f32 %v1111_v54, %v8122_v7  ;;  %v1935_v54 = vmul.f32 %v8353_v34, %v8367_v48 }
 0x199   : > { %v8325_v61 = vadd.f32 1e-05, %v1205_v28  ;;  %v2032_v28 = vmul.f32 %v8356_v45, %v8369_v4 }
 0x19b   : > { %7198 = vrsqrt.f32 %v8325_v61  ;;  %v8330_v22 = vpop.xlane.xlu1 %959  ;;  %vm1275_vm5 = vweird.f32 %v8325_v61 }
 0x19c   : > { %7200 = vrcp.f32 %v4330_v38  ;;  %v8380_v38 = vld [vmem:[#allocation3 + $0x1a] sm:$0xff] }
 0x19d   : > { %7202 = vrcp.f32 %v4335_v52  ;;  %v2129_v46 = vmul.f32 %v8363_v31, %v8380_v38  ;;  %v8396_v52 = vperm.slane %v8344_v33, 4 }
 0x19f   : > { %13929 = vst [vmem:[#allocation32_spill] sm:$0xff] %v8396_v52 }
 0x1a1   : > { %v7199_v40 = vpop.eup %7198 }
 0x1a2   : > { %v1270_v49 = vmul.f32 %v7199_v40, %v8325_v61  ;;  %v7201_v9 = vpop.eup %7200  ;;  %vm1276_vm4 = vweird.f32 %v7199_v40  ;;  %v4338_v61 = vld [vmem:[%s7806_s29 + $0x50] sm:$0xff] }
 0x1a3   : > { %v1114_v50 = vpop.xlane.xlu1 %1113  ;;  %v7203_v16 = vpop.eup %7202  ;;  %vm1277_vm6 = vmor %vm1275_vm5, %vm1276_vm4 }
 0x1a4   : > { %v1271_v20 = vmul.f32 %v7199_v40, %v1270_v49  ;;  %v1206_v19 = vmul.f32 %v1114_v50, %v8122_v7  ;;  %v2064_v50 = vadd.f32 %v2032_v28, %v1935_v54 }
 0x1a6   : > { %v1272_v6 = vmul.f32 0.5, %v1271_v20  ;;  %v8382_v49 = vadd.f32 1e-05, %v1206_v19  ;;  %v8400_v20 = vld [vmem:[#allocation3 + $0x1b] sm:$0xff]  ;;  %v2161_v28 = vadd.f32 %v2129_v46, %v2064_v50 }
 0x1a7   : > { %4436 = vperm.xlu0 %7174, %v7201_v9   ;;  %v1691_v19 = vld [vmem:[%s7837_s21] sm:$0x1]  ;;  %v2226_v37 = vmul.f32 %v8393_v57, %v8400_v20  ;;  %s7582_s21 = scalar_lea.hbm %s13545_s17, 512 }
 0x1a8   : > { %v1273_v54 = vsub.f32 1.5, %v1272_v6  ;;  %7204 = vrsqrt.f32 %v8382_v49  ;;  %v1765_v9 = vld [vmem:[%s616_s0] sm:$0x1]  ;;  %v2323_v6 = vmul.f32 %v8396_v52, %v8410_v21  ;;  %v1692_v46 = vadd.f32 1.0, %v1691_v19 }
 0x1a9   : > { %v8420_v50 = vld [vmem:[%s13536_s8] ss:$0 sm:$0xff]  ;;  %v2258_v8 = vadd.f32 %v2226_v37, %v2161_v28  ;;  %v1027_v28 = vmul.f32 %v8122_v7, %v8318_v3  ;;  %7206 = vrcp.f32 %v4338_v61  ;;  %v1039_v61 = vmul.f32 %v8122_v7, %v8180_v53 }
 0x1aa   : > { %v1274_v55 = vmul.f32 %v7199_v40, %v1273_v54  ;;  %v8445_v56 = vperm.slane %v1692_v46, 0  ;;  %vm1285_vm8 = vweird.f32 %v8382_v49 }
 0x1ab   : > { %v963_v54 = vpop.xlane.xlu1 %962  ;;  %v8438_v37 = vadd.f32 %v2323_v6, %v2258_v8 }
 0x1ac   : > { %v1278_v0 = vsel %vm1277_vm6, %v7199_v40, %v1274_v55  ;;  %v1030_v43 = vmul.f32 %v8122_v7, %v963_v54  ;;  %v1117_v19 = vpop.xlane.xlu2 %1116  ;;  %v1766_v40 = vadd.f32 1.0, %v1765_v9  ;;  %13931 = vst [vmem:[#allocation34_spill] sm:$0xff] %v8445_v56 }
 0x1ad   : > { %v1589_v15 = vmul.f32 %v1278_v0, %v8129_v14  ;;  %v1207_v29 = vmul.f32 %v1117_v19, %v8122_v7 }
 0x1ae   : > { %v7205_v55 = vpop.eup %7204  ;;  %v8443_v54 = vsub.f32 %v8156_v32, %v1030_v43  ;;  %v8456_v32 = vsub.f32 %v8114_v2, %v1027_v28  ;;  %v8459_v6 = vperm.slane %v1766_v40, 0  ;;  %v1028_v40 = vmul.f32 %v8122_v7, %v8322_v35 }
 0x1af   : > { %v1624_v14 = vmul.f32 %v8420_v50, %v1589_v15  ;;  %v1280_v63 = vmul.f32 %v7205_v55, %v8382_v49  ;;  %v8449_v0 = vadd.f32 1e-05, %v1207_v29  ;;  %4461 = vperm.xlu0 %7174, %v7203_v16   ;;  %v4339_v16 = vld [vmem:[%s7806_s29 + $0x58] sm:$0xff]  ;;  %v7207_v46 = vpop.eup %7206  ;;  %vm1286_vm7 = vweird.f32 %v7205_v55 }
 0x1b0   : > { %13930 = vst [vmem:[#allocation33_spill] sm:$0xff] %v8443_v54  ;;  %v1094_v8 = vmul.f32 %v8443_v54, %v8443_v54  ;;  %v1091_v28 = vmul.f32 %v8456_v32, %v8456_v32  ;;  %vm1287_vm9 = vmor %vm1285_vm8, %vm1286_vm7  ;;  %v8478_v35 = vsub.f32 %v7907_v58, %v1039_v61  ;;  %v8485_v49 = vsub.f32 %v8126_v13, %v1028_v40 }
 0x1b1   : > { %v1659_v9 = vadd.f32 %v8432_v27, %v1624_v14  ;;  %v1281_v3 = vmul.f32 %v7205_v55, %v1280_v63  ;;  %7208 = vrsqrt.f32 %v8449_v0  ;;  %13932 = vst [vmem:[#allocation35_spill] sm:$0xff] %v8456_v32  ;;  %vm1295_vm11 = vweird.f32 %v8449_v0 }
 0x1b2   : > { %v1160_v43 = vsel %vm875_vm1, %v1094_v8, 0.0  ;;  %13933 = vst [vmem:[#allocation36_spill] sm:$0xff] %v8459_v6  ;;  %7210 = vrcp.f32 %v4339_v16  ;;  %v1103_v40 = vmul.f32 %v8478_v35, %v8478_v35 }
 0x1b3   : > { %v1696_v15 = vmul.f32 %v8445_v56, %v1659_v9  ;;  %v1282_v29 = vmul.f32 0.5, %v1281_v3  ;;  %1161 = vadd.xlane.f32.xlu2 %v1160_v43  ;;  %13935 = vst [vmem:[#allocation38_spill] sm:$0xff] %v8478_v35 }
 0x1b4   : > { %v966_v19 = vpop.xlane.xlu2 %965  ;;  %13936 = vst [vmem:[#allocation39_spill] sm:$0xff] %v8485_v49 }
 0x1b5   : > { %v1733_v14 = vadd.f32 %v8111_v62, %v1696_v15  ;;  %v1283_v63 = vsub.f32 1.5, %v1282_v29  ;;  %v1031_v2 = vmul.f32 %v8122_v7, %v966_v19 }
 0x1b7   : > { %v7209_v8 = vpop.eup %7208  ;;  %v1770_v9 = vmul.f32 %v8459_v6, %v1733_v14  ;;  %v1284_v3 = vmul.f32 %v7205_v55, %v1283_v63  ;;  %v8474_v53 = vsub.f32 %v8166_v42, %v1031_v2  ;;  %4476 = vperm.xlu0 %7174, %v7207_v46   ;;  %v1151_v42 = vsel %vm875_vm1, %v1091_v28, 0.0  ;;  %v4342_v14 = vld [vmem:[%s7806_s29 + $0x70] sm:$0xff] }
 0x1b8   : > { %v1290_v43 = vmul.f32 %v7209_v8, %v8449_v0  ;;  %v7211_v63 = vpop.eup %7210  ;;  %vm1296_vm10 = vweird.f32 %v7209_v8  ;;  %7212 = vrcp.f32 %v4342_v14 }
 0x1b9   : > { %13934 = vst [vmem:[#allocation37_spill] sm:$0xff] %v8474_v53  ;;  %v1288_v15 = vsel %vm1287_vm9, %v7205_v55, %v1284_v3  ;;  %v1095_v29 = vmul.f32 %v8474_v53, %v8474_v53  ;;  %vm1297_vm12 = vmor %vm1295_vm11, %vm1296_vm10 }
 0x1ba   : > { %1864 = vst.msk [vmem:[#allocation3 + $0x32] sm:$0xff] %vm875_vm1, %v1770_v9  ;;  %v1590_v16 = vmul.f32 %v1288_v15, %v8145_v24  ;;  %v1291_v19 = vmul.f32 %v7209_v8, %v1290_v43  ;;  %v1037_v24 = vmul.f32 %v8122_v7, %v8137_v18  ;;  %v8499_v43 = vperm.slane %v8344_v33, 5 }
 0x1bb   : > { %v1163_v46 = vsel %vm875_vm1, %v1095_v29, 0.0  ;;  %v1092_v18 = vmul.f32 %v8485_v49, %v8485_v49 }
 0x1bc   : > { %v1625_v58 = vmul.f32 %v8420_v50, %v1590_v16  ;;  %v1292_v61 = vmul.f32 0.5, %v1291_v19  ;;  %v1123_v2 = vpop.xlane.xlu2 %1122  ;;  %v1120_v55 = vpop.xlane.xlu1 %1119  ;;  %1152 = vadd.xlane.f32.xlu1 %v1151_v42  ;;  %1164 = vadd.xlane.f32.xlu2 %v1163_v46  ;;  %13937 = vst [vmem:[#allocation40_spill] sm:$0xff] %v8499_v43  ;;  %v8508_v16 = vperm.slane %v8344_v33, 6 }
 0x1bd   : > { %v1209_v9 = vmul.f32 %v1123_v2, %v8122_v7  ;;  %v1208_v13 = vmul.f32 %v1120_v55, %v8122_v7  ;;  %v1187_v55 = vsel %vm875_vm1, %v1103_v40, 0.0 }
 0x1be   : > { %v1660_v28 = vadd.f32 %v8432_v27, %v1625_v58  ;;  %v1293_v3 = vsub.f32 1.5, %v1292_v61  ;;  %13938 = vst [vmem:[#allocation41_spill] sm:$0xff] %v8508_v16  ;;  %v8517_v58 = vperm.slane %v8344_v33, 7 }
 0x1bf   : > { %v8501_v15 = vadd.f32 1e-05, %v1209_v9  ;;  %v8503_v29 = vadd.f32 1e-05, %v1208_v13  ;;  %4481 = vperm.xlu0 %7174, %v7211_v63   ;;  %v8520_v63 = vsub.f32 %v7875_v44, %v1037_v24  ;;  %v1154_v44 = vsel %vm875_vm1, %v1092_v18, 0.0 }
 0x1c0   : > { %v1697_v19 = vmul.f32 %v8445_v56, %v1660_v28  ;;  %v1294_v42 = vmul.f32 %v7209_v8, %v1293_v3  ;;  %13940 = vst [vmem:[#allocation43_spill] sm:$0xff] %v8517_v58  ;;  %v7213_v28 = vpop.eup %7212 }
 0x1c1   : > { %v8512_v46 = vld [vmem:[#allocation3 + $0x30] sm:$0xff]  ;;  %13941 = vst [vmem:[#allocation44_spill] sm:$0xff] %v8520_v63  ;;  %7214 = vrsqrt.f32 %v8501_v15  ;;  %vm1315_vm15 = vweird.f32 %v8501_v15  ;;  %vm1305_vm2 = vweird.f32 %v8503_v29 }
 0x1c2   : > { %v8514_v14 = vld [vmem:[#allocation3 + $0x31] sm:$0xff]  ;;  %v2421_v61 = vmul.f32 %v8499_v43, %v8512_v46  ;;  %v1734_v2 = vadd.f32 %v8111_v62, %v1697_v19  ;;  %v1298_v0 = vsel %vm1297_vm12, %v7209_v8, %v1294_v42  ;;  %7216 = vrsqrt.f32 %v8503_v29 }
 0x1c3   : > { %13939 = vst [vmem:[#allocation42_spill] sm:$0xff] %v8514_v14  ;;  %v8529_v9 = vld [vmem:[#allocation3 + $0x32] sm:$0xff]  ;;  %v1591_v33 = vmul.f32 %v1298_v0, %v8163_v36  ;;  %v2518_v13 = vmul.f32 %v8508_v16, %v8514_v14  ;;  %v1997_v14 = vld [vmem:[#allocation3 + $0x1] sm:$0xff] }
 0x1c4   : > { %13942 = vst [vmem:[#allocation45_spill] sm:$0xff] %v8529_v9  ;;  %v2453_v24 = vadd.f32 %v2421_v61, %v8438_v37  ;;  %v1771_v3 = vmul.f32 %v8459_v6, %v1734_v2  ;;  %v969_v19 = vpop.xlane.xlu1 %968  ;;  %1155 = vadd.xlane.f32.xlu1 %v1154_v44  ;;  %1188 = vadd.xlane.f32.xlu2 %v1187_v55 }
 0x1c5   : > { %v1626_v8 = vmul.f32 %v8420_v50, %v1591_v33  ;;  %v2615_v42 = vmul.f32 %v8517_v58, %v8529_v9  ;;  %v1032_v18 = vmul.f32 %v8122_v7, %v969_v19  ;;  %v1101_v61 = vmul.f32 %v8520_v63, %v8520_v63  ;;  %v8549_v33 = vld [vmem:[%s13540_s12 + $0x8] sm:$0xff] }
 0x1c6   : > { %v2550_v40 = vadd.f32 %v2518_v13, %v2453_v24  ;;  %1865 = vst.msk [vmem:[#allocation3 + $0x3a] sm:$0xff] %vm875_vm1, %v1771_v3 }
 0x1c7   : > { %v7215_v36 = vpop.eup %7214  ;;  %v1661_v37 = vadd.f32 %v8432_v27, %v1626_v8  ;;  %4496 = vperm.xlu0 %7174, %v7213_v28   ;;  %v8555_v19 = vsub.f32 %v8185_v59, %v1032_v18  ;;  %v1181_v8 = vsel %vm875_vm1, %v1101_v61, 0.0  ;;  %v8568_v59 = vperm.slane %v8549_v33, 1  ;;  %v8570_v18 = vpop.xlane.xlu0 %971 }
 0x1c8   : > { %v2647_v2 = vadd.f32 %v2615_v42, %v2550_v40  ;;  %v7217_v0 = vpop.eup %7216  ;;  %v1310_v55 = vmul.f32 %v7215_v36, %v8501_v15  ;;  %v8559_v40 = vperm.slane %v8549_v33, 0  ;;  %vm1316_vm13 = vweird.f32 %v7215_v36 }
 0x1c9   : > { %v1698_v44 = vmul.f32 %v8445_v56, %v1661_v37  ;;  %v1300_v24 = vmul.f32 %v7217_v0, %v8503_v29  ;;  %13943 = vst [vmem:[#allocation46_spill] sm:$0xff] %v8555_v19  ;;  %vm1306_vm14 = vweird.f32 %v7217_v0  ;;  %vm1317_vm0 = vmor %vm1315_vm15, %vm1316_vm13  ;;  %v8591_v29 = vperm.slane %v8549_v33, 2 }
 0x1ca   : > { %v1311_v13 = vmul.f32 %v7215_v36, %v1310_v55  ;;  %13944 = vst [vmem:[#allocation47_spill] sm:$0xff] %v8559_v40  ;;  %vm1307_vm3 = vmor %vm1305_vm2, %vm1306_vm14 }
 0x1cb   : > { %v1735_v3 = vadd.f32 %v8111_v62, %v1698_v44  ;;  %v1301_v28 = vmul.f32 %v7217_v0, %v1300_v24  ;;  %13947 = vst [vmem:[#allocation50_spill] sm:$0xff] %v8568_v59 }
 0x1cc   : > { %v1312_v42 = vmul.f32 0.5, %v1311_v13  ;;  %v1126_v63 = vpop.xlane.xlu1 %1125  ;;  %1182 = vadd.xlane.f32.xlu1 %v1181_v8  ;;  %v4328_v8 = vld [vmem:[%s7806_s29] sm:$0xff]  ;;  %13948 = vst [vmem:[#allocation51_spill] sm:$0xff] %v8591_v29 }
 0x1cd   : > { %v1772_v35 = vmul.f32 %v8459_v6, %v1735_v3  ;;  %v1302_v37 = vmul.f32 0.5, %v1301_v28  ;;  %v1210_v55 = vmul.f32 %v1126_v63, %v8122_v7  ;;  %v8563_v49 = vld [vmem:[#allocation3 + $0x33] sm:$0xff]  ;;  %v1096_v63 = vmul.f32 %v8555_v19, %v8555_v19 }
 0x1ce   : > { %13945 = vst [vmem:[#allocation48_spill] sm:$0xff] %v8563_v49  ;;  %v8565_v44 = vld [vmem:[#allocation3 + $0x34] sm:$0xff]  ;;  %v1313_v61 = vsub.f32 1.5, %v1312_v42  ;;  %v2712_v24 = vmul.f32 %v8559_v40, %v8563_v49  ;;  %v1900_v49 = vld [vmem:[#allocation3] sm:$0xff] }
 0x1cf   : > { %13946 = vst [vmem:[#allocation49_spill] sm:$0xff] %v8565_v44  ;;  %v1303_v13 = vsub.f32 1.5, %v1302_v37  ;;  %v8575_v3 = vadd.f32 1e-05, %v1210_v55  ;;  %v2809_v42 = vmul.f32 %v8568_v59, %v8565_v44 }
 0x1d0   : > { %1866 = vst.msk [vmem:[#allocation3 + $0x4a] sm:$0xff] %vm875_vm1, %v1772_v35  ;;  %v1314_v28 = vmul.f32 %v7215_v36, %v1313_v61  ;;  %v2744_v53 = vadd.f32 %v2712_v24, %v2647_v2  ;;  %v1166_v61 = vsel %vm875_vm1, %v1096_v63, 0.0  ;;  %v8588_v2 = vpop.xlane.xlu2 %974 }
 0x1d1   : > { %v1304_v32 = vmul.f32 %v7217_v0, %v1303_v13  ;;  %7218 = vrsqrt.f32 %v8575_v3  ;;  %vm1325_vm5 = vweird.f32 %v8575_v3 }
 0x1d2   : > { %v1318_v35 = vsel %vm1317_vm0, %v7215_v36, %v1314_v28  ;;  %v2841_v37 = vadd.f32 %v2809_v42, %v2744_v53  ;;  %7220 = vrcp.f32 %v4328_v8  ;;  %v8611_v42 = vperm.slane %v8549_v33, 4 }
 0x1d3   : > { %v1593_v55 = vmul.f32 %v1318_v35, %v8194_v10  ;;  %v1308_v19 = vsel %vm1307_vm3, %v7217_v0, %v1304_v32  ;;  %v8596_v32 = vpop.xlane.xlu0 %980 }
 0x1d4   : > { %v1592_v15 = vmul.f32 %v1308_v19, %v8197_v12  ;;  %v1129_v24 = vpop.xlane.xlu1 %1128  ;;  %1167 = vadd.xlane.f32.xlu1 %v1166_v61  ;;  %13949 = vst [vmem:[#allocation52_spill] sm:$0xff] %v8596_v32  ;;  %v8603_v19 = vperm.slane %v8549_v33, 3  ;;  %v4331_v61 = vld [vmem:[%s7806_s29 + $0x18] sm:$0xff] }
 0x1d5   : > { %v1628_v36 = vmul.f32 %v8420_v50, %v1593_v55  ;;  %v1211_v53 = vmul.f32 %v1129_v24, %v8122_v7  ;;  %13953 = vst [vmem:[#allocation56_spill] sm:$0xff] %v8611_v42 }
 0x1d6   : > { %v1627_v10 = vmul.f32 %v8420_v50, %v1592_v15  ;;  %13952 = vst [vmem:[#allocation55_spill] sm:$0xff] %v8603_v19 }
 0x1d7   : > { %v8598_v0 = vld [vmem:[#allocation3 + $0x48] sm:$0xff]  ;;  %v7219_v12 = vpop.eup %7218  ;;  %v1663_v63 = vadd.f32 %v8432_v27, %v1628_v36  ;;  %v8606_v28 = vadd.f32 1e-05, %v1211_v53 }
 0x1d8   : > { %13950 = vst [vmem:[#allocation53_spill] sm:$0xff] %v8598_v0  ;;  %v8600_v13 = vld [vmem:[#allocation3 + $0x49] sm:$0xff]  ;;  %v2906_v8 = vmul.f32 %v8591_v29, %v8598_v0  ;;  %v1662_v35 = vadd.f32 %v8432_v27, %v1627_v10  ;;  %v1320_v55 = vmul.f32 %v7219_v12, %v8575_v3  ;;  %v7221_v24 = vpop.eup %7220  ;;  %vm1326_vm4 = vweird.f32 %v7219_v12 }
 0x1d9   : > { %13951 = vst [vmem:[#allocation54_spill] sm:$0xff] %v8600_v13  ;;  %v8616_v15 = vld [vmem:[#allocation3 + $0x4a] sm:$0xff]  ;;  %v1700_v54 = vmul.f32 %v8445_v56, %v1663_v63  ;;  %7222 = vrsqrt.f32 %v8606_v28  ;;  %v3003_v53 = vmul.f32 %v8603_v19, %v8600_v13  ;;  %vm1327_vm6 = vmor %vm1325_vm5, %vm1326_vm4  ;;  %vm1335_vm8 = vweird.f32 %v8606_v28 }
 0x1da   : > { %13954 = vst [vmem:[#allocation57_spill] sm:$0xff] %v8616_v15  ;;  %v2938_v36 = vadd.f32 %v2906_v8, %v2841_v37  ;;  %v1699_v0 = vmul.f32 %v8445_v56, %v1662_v35  ;;  %v1321_v44 = vmul.f32 %v7219_v12, %v1320_v55  ;;  %7224 = vrcp.f32 %v4331_v61  ;;  %v8634_v61 = vpop.xlane.xlu2 %1001  ;;  %v2191_v3 = vld [vmem:[#allocation3 + $0x3] sm:$0xff] }
 0x1db   : > { %v1737_v10 = vadd.f32 %v8111_v62, %v1700_v54  ;;  %v3100_v32 = vmul.f32 %v8611_v42, %v8616_v15  ;;  %v1933_v55 = vmul.f32 %v8353_v34, %v1900_v49  ;;  %13955 = vst [vmem:[#allocation58_spill] sm:$0xff] %v8634_v61 }
 0x1dc   : > { %v3035_v9 = vadd.f32 %v3003_v53, %v2938_v36  ;;  %v1736_v63 = vadd.f32 %v8111_v62, %v1699_v0  ;;  %v1322_v41 = vmul.f32 0.5, %v1321_v44  ;;  %v8627_v37 = vpop.xlane.xlu1 %977  ;;  %4426 = vperm.xlu2 %7175, %v7221_v24   ;;  %v2030_v44 = vmul.f32 %v8356_v45, %v1997_v14  ;;  %v2094_v0 = vld [vmem:[#allocation3 + $0x2] sm:$0xff] }
 0x1dd   : > { %v1774_v8 = vmul.f32 %v8459_v6, %v1737_v10  ;;  %v2127_v14 = vmul.f32 %v8363_v31, %v2094_v0 }
 0x1de   : > { %v8630_v35 = vadd.f32 %v3100_v32, %v3035_v9  ;;  %v1773_v54 = vmul.f32 %v8459_v6, %v1736_v63  ;;  %v1323_v36 = vsub.f32 1.5, %v1322_v41  ;;  %v1138_v53 = vpop.xlane.xlu0 %1137  ;;  %v4334_v9 = vld [vmem:[%s7806_s29 + $0x30] sm:$0xff]  ;;  %v4343_v63 = vld [vmem:[%s7806_s29 + $0x78] sm:$0xff] }
 0x1df   : > { %v7223_v15 = vpop.eup %7222  ;;  %1868 = vst.msk [vmem:[#allocation3 + $0x62] sm:$0xff] %vm875_vm1, %v1774_v8  ;;  %v1214_v24 = vmul.f32 %v1138_v53, %v8122_v7  ;;  %7226 = vrcp.f32 %v4334_v9  ;;  %v2062_v8 = vadd.f32 %v2030_v44, %v1933_v55  ;;  %v1029_v53 = vmul.f32 %v8122_v7, %v8330_v22 }
 0x1e0   : > { %1867 = vst.msk [vmem:[#allocation3 + $0x52] sm:$0xff] %vm875_vm1, %v1773_v54  ;;  %v1324_v49 = vmul.f32 %v7219_v12, %v1323_v36  ;;  %v1330_v32 = vmul.f32 %v7223_v15, %v8606_v28  ;;  %v7225_v41 = vpop.eup %7224  ;;  %v8652_v36 = vperm.slane %v8549_v33, 5  ;;  %v8658_v55 = vperm.slane %v8549_v33, 7 }
 0x1e1   : > { %v8643_v10 = vadd.f32 1e-05, %v1214_v24  ;;  %vm1336_vm7 = vweird.f32 %v7223_v15  ;;  %v2159_v0 = vadd.f32 %v2127_v14, %v2062_v8  ;;  %v2224_v9 = vmul.f32 %v8393_v57, %v2191_v3 }
 0x1e2   : > { %v1328_v61 = vsel %vm1327_vm6, %v7219_v12, %v1324_v49  ;;  %v1331_v13 = vmul.f32 %v7223_v15, %v1330_v32  ;;  %13956 = vst [vmem:[#allocation59_spill] sm:$0xff] %v8652_v36  ;;  %v8655_v12 = vperm.slane %v8549_v33, 6  ;;  %v2288_v49 = vld [vmem:[#allocation3 + $0x4] sm:$0xff]  ;;  %v8669_v32 = vsub.f32 %v8142_v23, %v1029_v53  ;;  %vm1337_vm9 = vmor %vm1335_vm8, %vm1336_vm7 }
 0x1e3   : > { %v1594_v54 = vmul.f32 %v1328_v61, %v8225_v39  ;;  %7228 = vrsqrt.f32 %v8643_v10  ;;  %13958 = vst [vmem:[#allocation61_spill] sm:$0xff] %v8658_v55  ;;  %v8665_v61 = vld [vmem:[%s13540_s12 + $0x10] sm:$0xff]  ;;  %v1033_v33 = vmul.f32 %v8122_v7, %v8570_v18  ;;  %vm1365_vm11 = vweird.f32 %v8643_v10 }
 0x1e4   : > { %v1332_v24 = vmul.f32 0.5, %v1331_v13  ;;  %v1132_v42 = vpop.xlane.xlu1 %1131  ;;  %4441 = vperm.xlu2 %7175, %v7225_v41   ;;  %7230 = vrcp.f32 %v4343_v63  ;;  %13957 = vst [vmem:[#allocation60_spill] sm:$0xff] %v8655_v12  ;;  %v8685_v53 = vperm.slane %v8665_v61, 0  ;;  %v8688_v18 = vperm.slane %v8665_v61, 1 }
 0x1e5   : > { %v1629_v22 = vmul.f32 %v8420_v50, %v1594_v54  ;;  %v1212_v39 = vmul.f32 %v1132_v42, %v8122_v7  ;;  %13959 = vst [vmem:[#allocation62_spill] sm:$0xff] %v8669_v32  ;;  %v7227_v63 = vpop.eup %7226 }
 0x1e6   : > { %v1333_v44 = vsub.f32 1.5, %v1332_v24  ;;  %v1141_v13 = vpop.xlane.xlu2 %1140  ;;  %13961 = vst [vmem:[#allocation64_spill] sm:$0xff] %v8685_v53  ;;  %v1093_v53 = vmul.f32 %v8669_v32, %v8669_v32 }
 0x1e7   : > { %v1664_v42 = vadd.f32 %v8432_v27, %v1629_v22  ;;  %v8675_v41 = vld [vmem:[#allocation3 + $0x4b] sm:$0xff]  ;;  %v8677_v24 = vadd.f32 1e-05, %v1212_v39  ;;  %v1215_v14 = vmul.f32 %v1141_v13, %v8122_v7  ;;  %13962 = vst [vmem:[#allocation65_spill] sm:$0xff] %v8688_v18  ;;  %v2321_v22 = vmul.f32 %v8396_v52, %v2288_v49 }
 0x1e8   : > { %13960 = vst [vmem:[#allocation63_spill] sm:$0xff] %v8675_v41  ;;  %v1334_v54 = vmul.f32 %v7223_v15, %v1333_v44  ;;  %v3197_v8 = vmul.f32 %v8652_v36, %v8675_v41  ;;  %v8692_v3 = vld [vmem:[#allocation3 + $0x4c] sm:$0xff]  ;;  %v2256_v41 = vadd.f32 %v2224_v9, %v2159_v0  ;;  %v8699_v36 = vsub.f32 %v8200_v17, %v1033_v33 }
 0x1e9   : > { %v8682_v23 = vpop.eup %7228  ;;  %v1701_v28 = vmul.f32 %v8445_v56, %v1664_v42  ;;  %7232 = vrsqrt.f32 %v8677_v24  ;;  %v3294_v0 = vmul.f32 %v8655_v12, %v8692_v3  ;;  %v2419_v33 = vmul.f32 %v8499_v43, %v8367_v48 }
 0x1ea   : > { %v7231_v39 = vpop.eup %7230  ;;  %v1338_v44 = vsel %vm1337_vm9, %v7223_v15, %v1334_v54  ;;  %v1360_v13 = vmul.f32 %v8682_v23, %v8643_v10  ;;  %13963 = vst [vmem:[#allocation66_spill] sm:$0xff] %v8699_v36  ;;  %v8706_v15 = vadd.f32 1e-05, %v1215_v14  ;;  %v3229_v52 = vadd.f32 %v3197_v8, %v8630_v35 }
 0x1eb   : > { %v1738_v42 = vadd.f32 %v8111_v62, %v1701_v28  ;;  %v1595_v18 = vmul.f32 %v1338_v44, %v8238_v11  ;;  %v2353_v8 = vadd.f32 %v2321_v22, %v2256_v41  ;;  %v1157_v44 = vsel %vm875_vm1, %v1093_v53, 0.0 }
 0x1ec   : > { %v1361_v49 = vmul.f32 %v8682_v23, %v1360_v13  ;;  %v1135_v54 = vpop.xlane.xlu1 %1134  ;;  %4456 = vperm.xlu2 %7175, %v7227_v63   ;;  %7234 = vrsqrt.f32 %v8706_v15  ;;  %v8723_v14 = vadd.f32 %v3294_v0, %v3229_v52  ;;  %v1034_v48 = vmul.f32 %v8122_v7, %v8588_v2  ;;  %v7181_v52 = vld [vmem:[%s8718_s23] ss:$0 sm:$0xff] }
 0x1ed   : > { %v1775_v17 = vmul.f32 %v8459_v6, %v1738_v42  ;;  %v1630_v9 = vmul.f32 %v8420_v50, %v1595_v18  ;;  %v1213_v11 = vmul.f32 %v1135_v54, %v8122_v7  ;;  %4501 = vperm.xlu1 %7173, %v7231_v39   ;;  %vm1366_vm10 = vweird.f32 %v8682_v23 }
 0x1ee   : > { %v1362_v35 = vmul.f32 0.5, %v1361_v49  ;;  %v1144_v63 = vpop.xlane.xlu2 %1143  ;;  %v1097_v41 = vmul.f32 %v8699_v36, %v8699_v36  ;;  %v2516_v53 = vmul.f32 %v8508_v16, %v8369_v4  ;;  %v2451_v0 = vadd.f32 %v2419_v33, %v2353_v8  ;;  %vm1367_vm12 = vmor %vm1365_vm11, %vm1366_vm10 }
 0x1ef   : > { %1869 = vst.msk [vmem:[#allocation3 + $0x6a] sm:$0xff] %vm875_vm1, %v1775_v17  ;;  %v1665_v18 = vadd.f32 %v8432_v27, %v1630_v9  ;;  %v8727_v28 = vadd.f32 1e-05, %v1213_v11  ;;  %v1216_v39 = vmul.f32 %v1144_v63, %v8122_v7  ;;  %v7233_v13 = vpop.eup %7232  ;;  %v8747_v17 = vperm.slane %v8665_v61, 2 }
 0x1f0   : > { %v1363_v42 = vsub.f32 1.5, %v1362_v35  ;;  %v1340_v49 = vmul.f32 %v7233_v13, %v8677_v24  ;;  %v8750_v9 = vperm.slane %v8665_v61, 3  ;;  %v8758_v63 = vperm.slane %v8665_v61, 4 }
 0x1f1   : > { %v1702_v22 = vmul.f32 %v8445_v56, %v1665_v18  ;;  %7236 = vrsqrt.f32 %v8727_v28  ;;  %1158 = vadd.xlane.f32.xlu0 %v1157_v44  ;;  %v8744_v2 = vadd.f32 1e-05, %v1216_v39  ;;  %13964 = vst [vmem:[#allocation67_spill] sm:$0xff] %v8747_v17  ;;  %v8761_v10 = vsub.f32 %v8216_v47, %v1034_v48 }
 0x1f2   : > { %v1364_v54 = vmul.f32 %v8682_v23, %v1363_v42  ;;  %13965 = vst [vmem:[#allocation68_spill] sm:$0xff] %v8750_v9  ;;  %v1341_v35 = vmul.f32 %v7233_v13, %v1340_v49  ;;  %v8755_v4 = vpop.eup %7234  ;;  %v8772_v42 = vmul.f32 %v8122_v7, %v8178_v51  ;;  %vm1346_vm13 = vweird.f32 %v7233_v13 }
 0x1f3   : > { %v1739_v11 = vadd.f32 %v8111_v62, %v1702_v22  ;;  %13966 = vst [vmem:[#allocation69_spill] sm:$0xff] %v8758_v63  ;;  %7238 = vrsqrt.f32 %v8744_v2  ;;  %v1370_v44 = vmul.f32 %v8755_v4, %v8706_v15  ;;  %v2548_v22 = vadd.f32 %v2516_v53, %v2451_v0 }
 0x1f4   : > { %13967 = vst [vmem:[#allocation70_spill] sm:$0xff] %v8761_v10  ;;  %v1368_v33 = vsel %vm1367_vm12, %v8682_v23, %v1364_v54  ;;  %5463 = vrot.lane.b32.xlu2 %v7181_v52, %s7627_s22  ;;  %v1342_v39 = vmul.f32 0.5, %v1341_v35  ;;  %v1169_v23 = vsel %vm875_vm1, %v1097_v41, 0.0  ;;  %v2613_v52 = vmul.f32 %v8517_v58, %v8380_v38  ;;  %s7000_s22 = sshll.u32 %s598_s20, 8 }
 0x1f5   : > { %v1776_v8 = vmul.f32 %v8459_v6, %v1739_v11  ;;  %v1598_v18 = vmul.f32 %v1368_v33, %v8254_v26  ;;  %v2710_v11 = vmul.f32 %v8559_v40, %v8400_v20  ;;  %v1371_v51 = vmul.f32 %v8755_v4, %v1370_v44  ;;  %s12379_s26 = scalar_lea.vmem [#allocation4], %s7000_s22 }
 0x1f6   : > { %v1186_v47 = vpop.xlane.xlu2 %1185  ;;  %v1147_v48 = vpop.xlane.xlu0 %1146  ;;  %v1343_v54 = vsub.f32 1.5, %v1342_v39  ;;  %v2807_v53 = vmul.f32 %v8568_v59, %v8410_v21  ;;  %vm1345_vm14 = vweird.f32 %v8677_v24  ;;  %v1098_v33 = vmul.f32 %v8761_v10, %v8761_v10  ;;  %v9070_v32 = vld [vmem:[#allocation3 + $0x69] sm:$0xff]  ;;  %s6883_s19 = sshll.u32 %s12379_s26, 4  ;;  %s6884_s19 = int_to_ptr.vmem [resolvable:$true] %s6883_s19 }
 0x1f7   : > { %v7237_v49 = vpop.eup %7236  ;;  %1870 = vst.msk [vmem:[#allocation3 + $0x7a] sm:$0xff] %vm875_vm1, %v1776_v8  ;;  %v1633_v26 = vmul.f32 %v8420_v50, %v1598_v18  ;;  %v1230_v41 = vmul.f32 %v1186_v47, %v8122_v7  ;;  %vm1347_vm15 = vmor %vm1345_vm14, %vm1346_vm13  ;;  %v1372_v20 = vmul.f32 0.5, %v1371_v51  ;;  %v2645_v44 = vadd.f32 %v2613_v52, %v2548_v22 }
 0x1f8   : > { %v1350_v35 = vmul.f32 %v7237_v49, %v8727_v28  ;;  %v1344_v0 = vmul.f32 %v7233_v13, %v1343_v54  ;;  %vm1375_vm0 = vweird.f32 %v8706_v15  ;;  %vm1376_vm2 = vweird.f32 %v8755_v4 }
 0x1f9   : > { %v1668_v38 = vadd.f32 %v8432_v27, %v1633_v26  ;;  %1170 = vadd.xlane.f32.xlu0 %v1169_v23  ;;  %v8790_v8 = vpop.eup %7238  ;;  %v8792_v39 = vadd.f32 1e-05, %v1230_v41  ;;  %v1373_v26 = vsub.f32 1.5, %v1372_v20  ;;  %v1217_v22 = vmul.f32 %v1147_v48, %v8122_v7  ;;  %vm1377_vm4 = vmor %vm1375_vm0, %vm1376_vm2 }
 0x1fa   : > { %v1351_v18 = vmul.f32 %v7237_v49, %v1350_v35  ;;  %v1348_v21 = vsel %vm1347_vm15, %v7233_v13, %v1344_v0  ;;  %v1380_v24 = vmul.f32 %v8790_v8, %v8744_v2  ;;  %vm1356_vm3 = vweird.f32 %v7237_v49 }
 0x1fb   : > { %v1705_v47 = vmul.f32 %v8445_v56, %v1668_v38  ;;  %v1596_v23 = vmul.f32 %v1348_v21, %v8259_v30  ;;  %7240 = vrsqrt.f32 %v8792_v39  ;;  %v1374_v52 = vmul.f32 %v8755_v4, %v1373_v26 }
 0x1fc   : > { %v1352_v54 = vmul.f32 0.5, %v1351_v18  ;;  %v1381_v35 = vmul.f32 %v8790_v8, %v1380_v24  ;;  %vm1355_vm5 = vweird.f32 %v8727_v28  ;;  %v1172_v0 = vsel %vm875_vm1, %v1098_v33, 0.0 }
 0x1fd   : > { %v1742_v51 = vadd.f32 %v8111_v62, %v1705_v47  ;;  %v1631_v13 = vmul.f32 %v8420_v50, %v1596_v23  ;;  %v2742_v20 = vadd.f32 %v2710_v11, %v2645_v44  ;;  %v1378_v48 = vsel %vm1377_vm4, %v8755_v4, %v1374_v52  ;;  %vm1357_vm6 = vmor %vm1355_vm5, %vm1356_vm3  ;;  %v8843_v52 = vld [vmem:[#allocation3 + $0x61] sm:$0xff] }
 0x1fe   : > { %v1353_v41 = vsub.f32 1.5, %v1352_v54  ;;  %v1150_v38 = vpop.xlane.xlu0 %1149  ;;  %v1382_v21 = vmul.f32 0.5, %v1381_v35  ;;  %v1599_v24 = vmul.f32 %v1378_v48, %v8271_v25  ;;  %vm1386_vm7 = vweird.f32 %v8790_v8 }
 0x1ff   : > { %v1779_v30 = vmul.f32 %v8459_v6, %v1742_v51  ;;  %v1666_v18 = vadd.f32 %v8432_v27, %v1631_v13  ;;  %v8816_v15 = vadd.f32 1e-05, %v1217_v22  ;;  %v2904_v28 = vmul.f32 %v8591_v29, %v8512_v46 }
 0x200   : > { %v1354_v47 = vmul.f32 %v7237_v49, %v1353_v41  ;;  %v1383_v44 = vsub.f32 1.5, %v1382_v21  ;;  %v1218_v4 = vmul.f32 %v1150_v38, %v8122_v7  ;;  %v1634_v26 = vmul.f32 %v8420_v50, %v1599_v24 }
 0x201   : > { %1873 = vst.msk [vmem:[#allocation3 + $0x9a] sm:$0xff] %vm875_vm1, %v1779_v30  ;;  %1173 = vadd.xlane.f32.xlu0 %v1172_v0  ;;  %v1703_v11 = vmul.f32 %v8445_v56, %v1666_v18  ;;  %v8822_v23 = vpop.eup %7240  ;;  %7242 = vrsqrt.f32 %v8816_v15  ;;  %v2839_v54 = vadd.f32 %v2807_v53, %v2742_v20  ;;  %vm1385_vm8 = vweird.f32 %v8744_v2 }
 0x202   : > { %v1358_v33 = vsel %vm1357_vm6, %v7237_v49, %v1354_v47  ;;  %v1384_v35 = vmul.f32 %v8790_v8, %v1383_v44  ;;  %v1520_v46 = vmul.f32 %v8822_v23, %v8792_v39  ;;  %v8833_v49 = vperm.slane %v8665_v61, 5  ;;  %vm1387_vm9 = vmor %vm1385_vm8, %vm1386_vm7 }
 0x203   : > { %v1597_v25 = vmul.f32 %v1358_v33, %v8274_v60  ;;  %v1740_v51 = vadd.f32 %v8111_v62, %v1703_v11  ;;  %v8837_v22 = vsub.f32 %v7927_v1, %v8772_v42  ;;  %v1908_v60 = vld [vmem:[#allocation3 + $0x60] sm:$0xff]  ;;  %v1669_v13 = vadd.f32 %v8432_v27, %v1634_v26  ;;  %v13970_v11 = vld [vmem:[#allocation20_spill] sm:$0xff] }
 0x204   : > { %13968 = vst [vmem:[#allocation71_spill] sm:$0xff] %v8833_v49  ;;  %v1388_v41 = vsel %vm1387_vm9, %v8790_v8, %v1384_v35  ;;  %v1521_v30 = vmul.f32 %v8822_v23, %v1520_v46  ;;  %v8848_v38 = vadd.f32 1e-05, %v1218_v4  ;;  %v2936_v20 = vadd.f32 %v2904_v28, %v2839_v54  ;;  %v2102_v4 = vld [vmem:[#allocation3 + $0x62] sm:$0xff] }
 0x205   : > { %13969 = vst [vmem:[#allocation72_spill] sm:$0xff] %v8837_v22  ;;  %v1632_v53 = vmul.f32 %v8420_v50, %v1597_v25  ;;  %v1777_v2 = vmul.f32 %v8459_v6, %v1740_v51  ;;  %v1706_v1 = vmul.f32 %v8445_v56, %v1669_v13  ;;  %v1600_v0 = vmul.f32 %v1388_v41, %v8289_v5  ;;  %v13971_v51 = vld [vmem:[#allocation42_spill] sm:$0xff]  ;;  %v2199_v46 = vld [vmem:[#allocation3 + $0x63] sm:$0xff]  ;;  %v13972_v13 = vld [vmem:[#allocation21_spill] sm:$0xff] }
 0x206   : > { %v1941_v18 = vmul.f32 %v8353_v34, %v1908_v60  ;;  %v1035_v48 = vmul.f32 %v8122_v7, %v8627_v37  ;;  %v1522_v47 = vmul.f32 0.5, %v1521_v30  ;;  %7244 = vrsqrt.f32 %v8848_v38 }
 0x207   : > { %v1667_v42 = vadd.f32 %v8432_v27, %v1632_v53  ;;  %1871 = vst.msk [vmem:[#allocation3 + $0x82] sm:$0xff] %vm875_vm1, %v1777_v2  ;;  %v8858_v8 = vpop.eup %7242  ;;  %v2038_v21 = vmul.f32 %v8356_v45, %v8843_v52  ;;  %v1743_v24 = vadd.f32 %v8111_v62, %v1706_v1  ;;  %v1635_v28 = vmul.f32 %v8420_v50, %v1600_v0 }
 0x208   : > { %v8867_v33 = vmul.f32 %v8122_v7, %v13970_v11  ;;  %v1523_v37 = vsub.f32 1.5, %v1522_v47  ;;  %vm1526_vm10 = vweird.f32 %v8822_v23  ;;  %v1390_v44 = vmul.f32 %v8858_v8, %v8816_v15  ;;  %v13975_v11 = vld [vmem:[#allocation25_spill] sm:$0xff] }
 0x209   : > { %v1704_v5 = vmul.f32 %v8445_v56, %v1667_v42  ;;  %v1780_v26 = vmul.f32 %v8459_v6, %v1743_v24  ;;  %v1670_v54 = vadd.f32 %v8432_v27, %v1635_v28  ;;  %v3001_v35 = vmul.f32 %v8603_v19, %v13971_v51  ;;  %v13974_v24 = vld [vmem:[#allocation52_spill] sm:$0xff] }
 0x20a   : > { %v8878_v53 = vsub.f32 %v13972_v13, %v1035_v48  ;;  %v1524_v2 = vmul.f32 %v8822_v23, %v1523_v37  ;;  %vm1525_vm11 = vweird.f32 %v8792_v39  ;;  %v1391_v41 = vmul.f32 %v8858_v8, %v1390_v44  ;;  %v8907_v13 = vld [vmem:[#allocation3 + $0x64] sm:$0xff] }
 0x20b   : > { %v1741_v25 = vadd.f32 %v8111_v62, %v1704_v5  ;;  %v2070_v30 = vadd.f32 %v2038_v21, %v1941_v18  ;;  %1874 = vst.msk [vmem:[#allocation3 + $0xaa] sm:$0xff] %vm875_vm1, %v1780_v26  ;;  %v1707_v42 = vmul.f32 %v8445_v56, %v1670_v54  ;;  %vm1527_vm12 = vmor %vm1525_vm11, %vm1526_vm10  ;;  %v3033_v0 = vadd.f32 %v3001_v35, %v2936_v20 }
 0x20c   : > { %13973 = vst [vmem:[#allocation20_spill] sm:$0xff] %v8878_v53  ;;  %v8888_v47 = vpop.eup %7244  ;;  %v2135_v48 = vmul.f32 %v8363_v31, %v2102_v4  ;;  %v1036_v39 = vmul.f32 %v8122_v7, %v13974_v24  ;;  %v1528_v5 = vsel %vm1527_vm12, %v8822_v23, %v1524_v2  ;;  %v1392_v18 = vmul.f32 0.5, %v1391_v41  ;;  %v8909_v2 = vld [vmem:[#allocation3 + $0x78] sm:$0xff]  ;;  %v13977_v24 = vld [vmem:[#allocation56_spill] sm:$0xff] }
 0x20d   : > { %v1778_v1 = vmul.f32 %v8459_v6, %v1741_v25  ;;  %v2232_v21 = vmul.f32 %v8393_v57, %v2199_v46  ;;  %v1744_v28 = vadd.f32 %v8111_v62, %v1707_v42  ;;  %v1614_v37 = vmul.f32 %v1528_v5, %v13975_v11  ;;  %v13976_v42 = vld [vmem:[#allocation45_spill] sm:$0xff] }
 0x20e   : > { %v1400_v20 = vmul.f32 %v8888_v47, %v8848_v38  ;;  %v1393_v44 = vsub.f32 1.5, %v1392_v18  ;;  %vm1396_vm13 = vweird.f32 %v8858_v8  ;;  %v1099_v26 = vmul.f32 %v8878_v53, %v8878_v53  ;;  %v8940_v53 = vld [vmem:[#allocation3 + $0x79] sm:$0xff] }
 0x20f   : > { %1872 = vst.msk [vmem:[#allocation3 + $0x92] sm:$0xff] %vm875_vm1, %v1778_v1  ;;  %v3392_v23 = vmul.f32 %v8658_v55, %v1908_v60  ;;  %v2167_v25 = vadd.f32 %v2135_v48, %v2070_v30  ;;  %v1781_v54 = vmul.f32 %v8459_v6, %v1744_v28  ;;  %v1649_v51 = vmul.f32 %v8420_v50, %v1614_v37  ;;  %v13978_v30 = vld [vmem:[#allocation22_spill] sm:$0xff] }
 0x210   : > { %v1401_v35 = vmul.f32 %v8888_v47, %v1400_v20  ;;  %v1394_v41 = vmul.f32 %v8858_v8, %v1393_v44  ;;  %vm1395_vm14 = vweird.f32 %v8816_v15  ;;  %v3098_v60 = vmul.f32 %v13977_v24, %v13976_v42  ;;  %v13980_v15 = vld [vmem:[#allocation64_spill] sm:$0xff]  ;;  %v13982_v44 = vld [vmem:[#allocation59_spill] sm:$0xff] }
 0x211   : > { %v3424_v1 = vadd.f32 %v3392_v23, %v8723_v14  ;;  %v8917_v48 = vsub.f32 %v13978_v30, %v1036_v39  ;;  %v2264_v5 = vadd.f32 %v2232_v21, %v2167_v25  ;;  %1875 = vst.msk [vmem:[#allocation3 + $0xb2] sm:$0xff] %vm875_vm1, %v1781_v54  ;;  %v1684_v18 = vadd.f32 %v8432_v27, %v1649_v51  ;;  %vm1397_vm15 = vmor %vm1395_vm14, %vm1396_vm13  ;;  %v13981_v20 = vld [vmem:[#allocation48_spill] sm:$0xff]  ;;  %v2782_v10 = vld [vmem:[#allocation3 + $0x7c] sm:$0xff] }
 0x212   : > { %v1402_v28 = vmul.f32 0.5, %v1401_v35  ;;  %v1398_v11 = vsel %vm1397_vm15, %v8858_v8, %v1394_v41  ;;  %v3489_v14 = vmul.f32 %v13980_v15, %v8843_v52  ;;  %v3130_v37 = vadd.f32 %v3098_v60, %v3033_v0  ;;  %v13983_v39 = vld [vmem:[#allocation32_spill] sm:$0xff]  ;;  %v13984_v35 = vld [vmem:[#allocation26_spill] sm:$0xff]  ;;  %v13985_v60 = vld [vmem:[#allocation65_spill] sm:$0xff] }
 0x213   : > { %13979 = vst [vmem:[#allocation42_spill] sm:$0xff] %v8917_v48  ;;  %v3195_v23 = vmul.f32 %v13982_v44, %v13981_v20  ;;  %v2329_v21 = vmul.f32 %v13983_v39, %v8907_v13  ;;  %v2427_v25 = vmul.f32 %v8499_v43, %v8909_v2  ;;  %v1721_v54 = vmul.f32 %v8445_v56, %v1684_v18 }
 0x214   : > { %v1175_v51 = vsel %vm875_vm1, %v1099_v26, 0.0  ;;  %v1601_v42 = vmul.f32 %v1398_v11, %v13984_v35  ;;  %v1403_v8 = vsub.f32 1.5, %v1402_v28  ;;  %vm1406_vm0 = vweird.f32 %v8888_v47  ;;  %v13988_v11 = vld [vmem:[#allocation23_spill] sm:$0xff] }
 0x215   : > { %v3521_v52 = vadd.f32 %v3489_v14, %v3424_v1  ;;  %v2361_v0 = vadd.f32 %v2329_v21, %v2264_v5  ;;  %v1758_v41 = vadd.f32 %v8111_v62, %v1721_v54  ;;  %v3586_v30 = vmul.f32 %v13985_v60, %v2102_v4  ;;  %v8946_v1 = vld [vmem:[#allocation3 + $0x50] sm:$0xff] }
 0x216   : > { %v1100_v20 = vmul.f32 %v8917_v48, %v8917_v48  ;;  %v1636_v18 = vmul.f32 %v8420_v50, %v1601_v42  ;;  %v1404_v26 = vmul.f32 %v8888_v47, %v1403_v8  ;;  %vm1405_vm2 = vweird.f32 %v8848_v38  ;;  %13986 = vst [vmem:[#allocation21_spill] sm:$0xff] %v8946_v1  ;;  %v8948_v5 = vld [vmem:[#allocation3 + $0x51] sm:$0xff] }
 0x217   : > { %1176 = vadd.xlane.f32.xlu1 %v1175_v51  ;;  %v3683_v28 = vmul.f32 %v8747_v17, %v2199_v46  ;;  %13987 = vst [vmem:[#allocation52_spill] sm:$0xff] %v8948_v5  ;;  %v1042_v4 = vmul.f32 %v8122_v7, %v13988_v11  ;;  %v2459_v14 = vadd.f32 %v2427_v25, %v2361_v0  ;;  %vm1407_vm3 = vmor %vm1405_vm2, %vm1406_vm0  ;;  %v13989_v50 = vld [vmem:[#allocation49_spill] sm:$0xff]  ;;  %v13990_v25 = vld [vmem:[#allocation27_spill] sm:$0xff] }
 0x218   : > { %v1795_v21 = vmul.f32 %v8459_v6, %v1758_v41  ;;  %v3292_v54 = vmul.f32 %v8655_v12, %v13989_v50  ;;  %v1671_v38 = vadd.f32 %v8432_v27, %v1636_v18  ;;  %v1408_v46 = vsel %vm1407_vm3, %v8888_v47, %v1404_v26  ;;  %v8967_v11 = vld [vmem:[#allocation3 + $0x7a] sm:$0xff]  ;;  %v2879_v36 = vld [vmem:[#allocation3 + $0x90] sm:$0xff] }
 0x219   : > { %v3618_v51 = vadd.f32 %v3586_v30, %v3521_v52  ;;  %v3227_v35 = vadd.f32 %v3195_v23, %v3130_v37  ;;  %v2524_v42 = vmul.f32 %v8508_v16, %v8940_v53  ;;  %v1602_v8 = vmul.f32 %v1408_v46, %v13990_v25  ;;  %v8969_v27 = vld [vmem:[#allocation3 + $0x7b] sm:$0xff]  ;;  %v13991_v52 = vld [vmem:[#allocation53_spill] sm:$0xff] }
 0x21a   : > { %1889 = vst.msk [vmem:[#allocation3 + $0x15a] sm:$0xff] %vm875_vm1, %v1795_v21  ;;  %v1940_v0 = vmul.f32 %v8353_v34, %v8946_v1  ;;  %v2037_v41 = vmul.f32 %v8356_v45, %v8948_v5  ;;  %v1708_v47 = vmul.f32 %v8445_v56, %v1671_v38  ;;  %v1178_v23 = vsel %vm875_vm1, %v1100_v20, 0.0  ;;  %v13992_v18 = vld [vmem:[#allocation11_spill] sm:$0xff]  ;;  %v13994_v21 = vld [vmem:[#allocation12_spill] sm:$0xff]  ;;  %v3073_v5 = vld [vmem:[#allocation3 + $0x92] sm:$0xff] }
 0x21b   : > { %v3715_v37 = vadd.f32 %v3683_v28, %v3618_v51  ;;  %v3390_v30 = vmul.f32 %v8658_v55, %v13991_v52  ;;  %v8977_v26 = vsub.f32 %v13992_v18, %v8867_v33  ;;  %v8980_v50 = vsub.f32 %v13994_v21, %v1042_v4  ;;  %v8985_v25 = vld [vmem:[%s13536_s8] ss:$0 sm:$0xff]  ;;  %v8993_v51 = vld [vmem:[#allocation3 + $0x52] sm:$0xff] }
 0x21c   : > { %v2556_v46 = vadd.f32 %v2524_v42, %v2459_v14  ;;  %v1637_v28 = vmul.f32 %v8985_v25, %v1602_v8  ;;  %v1745_v20 = vadd.f32 %v8111_v62, %v1708_v47  ;;  %v3780_v38 = vmul.f32 %v8750_v9, %v8907_v13  ;;  %13996 = vst [vmem:[#allocation22_spill] sm:$0xff] %v8993_v51  ;;  %v9002_v8 = vld [vmem:[%s13537_s9] ss:$0 sm:$0xff] }
 0x21d   : > { %13993 = vst [vmem:[#allocation25_spill] sm:$0xff] %v8977_v26  ;;  %1179 = vadd.xlane.f32.xlu2 %v1178_v23  ;;  %v3878_v33 = vmul.f32 %v8758_v63, %v8909_v2  ;;  %v3324_v4 = vadd.f32 %v3292_v54, %v3227_v35  ;;  %v2621_v14 = vmul.f32 %v8517_v58, %v8967_v11  ;;  %v9009_v52 = vperm.slane %v8665_v61, 6 }
 0x21e   : > { %13995 = vst [vmem:[#allocation45_spill] sm:$0xff] %v8980_v50  ;;  %v2718_v42 = vmul.f32 %v8559_v40, %v8969_v27  ;;  %v1672_v47 = vadd.f32 %v9002_v8, %v1637_v28  ;;  %v2069_v13 = vadd.f32 %v2037_v41, %v1940_v0  ;;  %v1782_v23 = vmul.f32 %v8459_v6, %v1745_v20  ;;  %v13999_v28 = vld [vmem:[#allocation54_spill] sm:$0xff] }
 0x21f   : > { %v3812_v2 = vadd.f32 %v3780_v38, %v3715_v37  ;;  %v1104_v54 = vmul.f32 %v8837_v22, %v8837_v22  ;;  %v3422_v35 = vadd.f32 %v3390_v30, %v3324_v4  ;;  %13997 = vst [vmem:[#allocation48_spill] sm:$0xff] %v9009_v52  ;;  %v2653_v18 = vadd.f32 %v2621_v14, %v2556_v46  ;;  %v9017_v37 = vld [vmem:[#allocation3 + $0x53] sm:$0xff]  ;;  %v1005_v14 = vpop.xlane.xlu0 %1004 }
 0x220   : > { %v1709_v21 = vmul.f32 %v8445_v56, %v1672_v47  ;;  %v2134_v48 = vmul.f32 %v8363_v31, %v8993_v51  ;;  %1876 = vst.msk [vmem:[#allocation3 + $0xc2] sm:$0xff] %vm875_vm1, %v1782_v23  ;;  %v1105_v41 = vmul.f32 %v8977_v26, %v8977_v26  ;;  %v1106_v30 = vmul.f32 %v8980_v50, %v8980_v50 }
 0x221   : > { %v3910_v0 = vadd.f32 %v3878_v33, %v3812_v2  ;;  %13998 = vst [vmem:[#allocation26_spill] sm:$0xff] %v9017_v37  ;;  %v3487_v46 = vmul.f32 %v13980_v15, %v13999_v28  ;;  %v9024_v20 = vperm.slane %v8665_v61, 7  ;;  %v2750_v38 = vadd.f32 %v2718_v42, %v2653_v18  ;;  %v14001_v33 = vld [vmem:[#allocation58_spill] sm:$0xff] }
 0x222   : > { %v1746_v4 = vadd.f32 %v8111_v62, %v1709_v21  ;;  %v2166_v47 = vadd.f32 %v2134_v48, %v2069_v13  ;;  %v1043_v23 = vmul.f32 %v8122_v7, %v14001_v33  ;;  %v3975_v2 = vmul.f32 %v8833_v49, %v8940_v53  ;;  %v9039_v53 = vld [vmem:[#allocation3 + $0x54] sm:$0xff]  ;;  %v9048_v33 = vld [vmem:[#allocation3 + $0x68] sm:$0xff]  ;;  %14010 = vst [vmem:[#allocation54_spill] sm:$0xff] %v9070_v32 }
 0x223   : > { %14000 = vst [vmem:[#allocation23_spill] sm:$0xff] %v9024_v20  ;;  %v1190_v26 = vsel %vm875_vm1, %v1104_v54, 0.0  ;;  %v3519_v50 = vadd.f32 %v3487_v46, %v3422_v35  ;;  %v2815_v22 = vmul.f32 %v8568_v59, %v2782_v10  ;;  %v2912_v28 = vmul.f32 %v8591_v29, %v2879_v36  ;;  %v9045_v46 = vpop.permute.xlu1 %4486 }
 0x224   : > { %v1783_v61 = vmul.f32 %v8459_v6, %v1746_v4  ;;  %v2231_v42 = vmul.f32 %v8393_v57, %v9017_v37  ;;  %v1044_v48 = vmul.f32 %v8122_v7, %v1005_v14  ;;  %v4007_v13 = vadd.f32 %v3975_v2, %v3910_v0  ;;  %14002 = vst [vmem:[#allocation49_spill] sm:$0xff] %v9039_v53  ;;  %v14005_v14 = vld [vmem:[#allocation57_spill] sm:$0xff]  ;;  %v14011_v37 = vld [vmem:[#allocation24_spill] sm:$0xff] }
 0x225   : > { %1191 = vadd.xlane.f32.xlu2 %v1190_v26  ;;  %v1193_v21 = vsel %vm875_vm1, %v1105_v41, 0.0  ;;  %v9042_v54 = vsel %vm875_vm1, %v1106_v30, 0.0  ;;  %v2847_v35 = vadd.f32 %v2815_v22, %v2750_v38  ;;  %14003 = vst [vmem:[#allocation27_spill] sm:$0xff] %v9045_v46  ;;  %v3584_v0 = vmul.f32 %v13985_v60, %v14005_v14  ;;  %v9055_v41 = vld [vmem:[%s13540_s12 + $0x18] ss:$0 sm:$0xff]  ;;  %v14007_v30 = vld [vmem:[#allocation19_spill] sm:$0xff] }
 0x226   : > { %v1162_v18 = vpop.xlane.xlu2 %1161  ;;  %1877 = vst.msk [vmem:[#allocation3 + $0xca] sm:$0xff] %vm875_vm1, %v1783_v61  ;;  %v2263_v4 = vadd.f32 %v2231_v42, %v2166_v47  ;;  %v9058_v2 = vsub.f32 %v14007_v30, %v1043_v23  ;;  %v2976_v22 = vld [vmem:[#allocation3 + $0x91] sm:$0xff]  ;;  %v4072_v38 = vmul.f32 %v9009_v52, %v8967_v11  ;;  %v4169_v47 = vmul.f32 %v9024_v20, %v8969_v27  ;;  %v14009_v61 = vld [vmem:[#allocation63_spill] sm:$0xff]  ;;  %v3365_v30 = vld [vmem:[#allocation3 + $0xa8] sm:$0xff] }
 0x227   : > { %v1222_v26 = vmul.f32 %v1162_v18, %v8122_v7  ;;  %14004 = vst [vmem:[#allocation53_spill] sm:$0xff] %v9048_v33  ;;  %v3681_v42 = vmul.f32 %v8747_v17, %v14009_v61  ;;  %v2944_v18 = vadd.f32 %v2912_v28, %v2847_v35  ;;  %v2328_v46 = vmul.f32 %v13983_v39, %v9039_v53  ;;  %v9080_v35 = vld [vmem:[#allocation3 + $0x6a] sm:$0xff] }
 0x228   : > { %14006 = vst [vmem:[#allocation11_spill] sm:$0xff] %v9055_v41  ;;  %v3616_v23 = vadd.f32 %v3584_v0, %v3519_v50  ;;  %v9073_v51 = vsub.f32 %v14011_v37, %v1044_v48  ;;  %v4104_v11 = vadd.f32 %v4072_v38, %v4007_v13  ;;  %v9076_v27 = vmul.f32 %v9055_v41, %v2782_v10  ;;  %v3170_v37 = vld [vmem:[#allocation3 + $0x93] sm:$0xff] }
 0x229   : > { %14008 = vst [vmem:[#allocation12_spill] sm:$0xff] %v9058_v2  ;;  %v9066_v14 = vadd.f32 1e-05, %v1222_v26  ;;  %v3462_v2 = vld [vmem:[#allocation3 + $0xa9] sm:$0xff]  ;;  %v2426_v28 = vmul.f32 %v8499_v43, %v9048_v33  ;;  %v3009_v61 = vmul.f32 %v8603_v19, %v2976_v22  ;;  %v1945_v53 = vmul.f32 %v2879_v36, %v8353_v34  ;;  %v3267_v48 = vld [vmem:[#allocation3 + $0x94] sm:$0xff] }
 0x22a   : > { %14012 = vst [vmem:[#allocation58_spill] sm:$0xff] %v9073_v51  ;;  %v3559_v26 = vld [vmem:[#allocation3 + $0xaa] sm:$0xff]  ;;  %v2042_v50 = vmul.f32 %v2976_v22, %v8356_v45  ;;  %v2360_v0 = vadd.f32 %v2328_v46, %v2263_v4  ;;  %v4201_v13 = vadd.f32 %v4169_v47, %v4104_v11  ;;  %v9088_v10 = vmul.f32 %v8508_v16, %v9070_v32 }
 0x22b   : > { %14013 = vst [vmem:[#allocation57_spill] sm:$0xff] %v9080_v35  ;;  %7246 = vrsqrt.f32 %v9066_v14  ;;  %v3713_v38 = vadd.f32 %v3681_v42, %v3616_v23  ;;  %v9091_v51 = vmul.f32 %v8658_v55, %v3365_v30  ;;  %v9094_v33 = vmul.f32 %v13980_v15, %v3462_v2  ;;  %v3656_v22 = vld [vmem:[#allocation3 + $0xab] sm:$0xff] }
 0x22c   : > { %v3041_v36 = vadd.f32 %v3009_v61, %v2944_v18  ;;  %v9098_v46 = vmul.f32 %v8517_v58, %v9080_v35  ;;  %v9101_v4 = vmul.f32 %v13985_v60, %v3559_v26  ;;  %v9104_v47 = vmul.f32 %v3365_v30, %v8499_v43  ;;  %v9111_v18 = vld [vmem:[#allocation3 + $0x78] sm:$0xff]  ;;  %v3753_v35 = vld [vmem:[#allocation3 + $0xac] sm:$0xff] }
 0x22d   : > { %14014 = vst [vmem:[#allocation19_spill] sm:$0xff] %v9091_v51  ;;  %1194 = vadd.xlane.f32.xlu2 %v1193_v21  ;;  %v9107_v42 = vmul.f32 %v3462_v2, %v8508_v16  ;;  %v3778_v23 = vmul.f32 %v8750_v9, %v8692_v3  ;;  %v3106_v21 = vmul.f32 %v13977_v24, %v3073_v5  ;;  %v4345_v3 = vld [vmem:[%s7806_s29 + $0x88] sm:$0xff]  ;;  %vm1445_vm5 = vweird.f32 %v9066_v14 }
 0x22e   : > { %14015 = vst [vmem:[#allocation63_spill] sm:$0xff] %v9094_v33  ;;  %v3203_v11 = vmul.f32 %v13982_v44, %v3170_v37  ;;  %v3300_v61 = vmul.f32 %v8655_v12, %v3267_v48  ;;  %v2074_v32 = vadd.f32 %v2042_v50, %v1945_v53  ;;  %v9116_v33 = vld [vmem:[#allocation3 + $0x60] sm:$0xff]  ;;  %v2139_v30 = vmul.f32 %v3073_v5, %v8363_v31 }
 0x22f   : > { %14016 = vst [vmem:[#allocation24_spill] sm:$0xff] %v9101_v4  ;;  %v1153_v4 = vpop.xlane.xlu1 %1152  ;;  %v2236_v2 = vmul.f32 %v3170_v37, %v8393_v57  ;;  %v3810_v1 = vadd.f32 %v3778_v23, %v3713_v38  ;;  %v3138_v51 = vadd.f32 %v3106_v21, %v3041_v36  ;;  %v9123_v60 = vmul.f32 %v8747_v17, %v3656_v22  ;;  %v9142_v21 = vld [vmem:[#allocation3 + $0x6b] sm:$0xff] }
 0x230   : > { %14017 = vst [vmem:[#allocation73_spill] sm:$0xff] %v9104_v47  ;;  %v2007_v47 = vld [vmem:[#allocation3 + $0x79] sm:$0xff]  ;;  %7248 = vrcp.f32 %v4345_v3  ;;  %v1943_v53 = vmul.f32 %v8353_v34, %v9111_v18  ;;  %v9130_v15 = vmul.f32 %v8750_v9, %v3753_v35  ;;  %v2333_v5 = vmul.f32 %v3267_v48, %v13983_v39  ;;  %v9144_v3 = vld [vmem:[#allocation3 + $0x61] sm:$0xff] }
 0x231   : > { %14018 = vst [vmem:[#allocation74_spill] sm:$0xff] %v9107_v42  ;;  %v1219_v42 = vmul.f32 %v1153_v4, %v8122_v7  ;;  %v9127_v50 = vpop.eup %7246  ;;  %v3876_v38 = vmul.f32 %v8758_v63, %v9116_v33  ;;  %v2171_v36 = vadd.f32 %v2139_v30, %v2074_v32  ;;  %v9138_v4 = vmul.f32 %v3559_v26, %v8517_v58  ;;  %v9153_v32 = vld [vmem:[#allocation3 + $0x6c] sm:$0xff]  ;;  %v9158_v63 = vld [vmem:[#allocation3 + $0x7b] sm:$0xff] }
 0x232   : > { %14019 = vst [vmem:[#allocation75_spill] sm:$0xff] %v9111_v18  ;;  %v1440_v23 = vmul.f32 %v9127_v50, %v9066_v14  ;;  %v2040_v18 = vmul.f32 %v8356_v45, %v2007_v47  ;;  %v9148_v48 = vmul.f32 %v3656_v22, %v8559_v40  ;;  %v3235_v30 = vadd.f32 %v3203_v11, %v3138_v51 }
 0x233   : > { %14020 = vst [vmem:[#allocation76_spill] sm:$0xff] %v9116_v33  ;;  %v9133_v37 = vadd.f32 1e-05, %v1219_v42  ;;  %v9151_v42 = vmul.f32 %v3753_v35, %v8568_v59  ;;  %v3908_v26 = vadd.f32 %v3876_v38, %v3810_v1  ;;  %v4437_v33 = vpop.permute.xlu0 %4436  ;;  %v4298_v22 = vadd.f32 %v9076_v27, %v4201_v13  ;;  %v9174_v27 = vld [vmem:[#allocation3 + $0x63] sm:$0xff] }
 0x234   : > { %14021 = vst [vmem:[#allocation77_spill] sm:$0xff] %v9123_v60  ;;  %v1441_v60 = vmul.f32 %v9127_v50, %v1440_v23  ;;  %v2072_v47 = vadd.f32 %v2040_v18, %v1943_v53  ;;  %v9163_v35 = vmul.f32 %v8559_v40, %v9142_v21  ;;  %v2268_v11 = vadd.f32 %v2236_v2, %v2171_v36  ;;  %v9178_v53 = vld [vmem:[#allocation3 + $0x80] sm:$0xff] }
 0x235   : > { %14022 = vst [vmem:[#allocation78_spill] sm:$0xff] %v9130_v15  ;;  %v2104_v15 = vld [vmem:[#allocation3 + $0x7a] sm:$0xff]  ;;  %7250 = vrsqrt.f32 %v9133_v37  ;;  %1197 = vadd.xlane.f32.xlu2 %v9042_v54  ;;  %v9170_v54 = vmul.f32 %v8568_v59, %v9153_v32  ;;  %v2234_v13 = vmul.f32 %v8393_v57, %v9158_v63  ;;  %v4586_v18 = vmul.f32 %v4437_v33, %v4298_v22 }
 0x236   : > { %14023 = vst [vmem:[#allocation79_spill] sm:$0xff] %v9138_v4  ;;  %v2458_v4 = vadd.f32 %v2426_v28, %v2360_v0  ;;  %v2137_v1 = vmul.f32 %v8363_v31, %v2104_v15  ;;  %v7249_v51 = vpop.eup %7248  ;;  %v1442_v38 = vmul.f32 0.5, %v1441_v60  ;;  %v1165_v28 = vpop.xlane.xlu2 %1164  ;;  %v9172_v0 = vld [vmem:[#allocation3 + $0x62] sm:$0xff]  ;;  %v9181_v36 = vadd.f32 %v3300_v61, %v3235_v30  ;;  %v4394_v30 = vld [vmem:[#allocation2 + $0x10] sm:$0xff] }
 0x237   : > { %14024 = vst [vmem:[#allocation80_spill] sm:$0xff] %v9142_v21  ;;  %v1223_v15 = vmul.f32 %v1165_v28, %v8122_v7  ;;  %4511 = vperm.xlu1 %7173, %v7249_v51   ;;  %vm1446_vm4 = vweird.f32 %v9127_v50  ;;  %v2298_v21 = vld [vmem:[#allocation3 + $0x7c] sm:$0xff]  ;;  %v4070_v22 = vmul.f32 %v9009_v52, %v9172_v0  ;;  %v9208_v51 = vld [vmem:[#allocation3 + $0x64] sm:$0xff]  ;;  %v9213_v28 = vadd.f32 %v4586_v18, %v4394_v30 }
 0x238   : > { %14025 = vst [vmem:[#allocation81_spill] sm:$0xff] %v9144_v3  ;;  %v2169_v60 = vadd.f32 %v2137_v1, %v2072_v47  ;;  %v1443_v23 = vsub.f32 1.5, %v1442_v38  ;;  %vm1447_vm6 = vmor %vm1445_vm5, %vm1446_vm4  ;;  %v2331_v14 = vmul.f32 %v13983_v39, %v2298_v21  ;;  %v9211_v38 = vadd.f32 %v2333_v5, %v2268_v11 }
 0x239   : > { %14026 = vst [vmem:[#allocation82_spill] sm:$0xff] %v9148_v48  ;;  %v9189_v33 = vadd.f32 1e-05, %v1223_v15  ;;  %v4264_v18 = vmul.f32 %v9055_v41, %v9208_v51  ;;  %vm1415_vm7 = vweird.f32 %v9133_v37 }
 0x23a   : > { %14027 = vst [vmem:[#allocation83_spill] sm:$0xff] %v9151_v42  ;;  %v3973_v42 = vmul.f32 %v8833_v49, %v9144_v3  ;;  %v2555_v3 = vadd.f32 %v9088_v10, %v2458_v4  ;;  %v2266_v61 = vadd.f32 %v2234_v13, %v2169_v60  ;;  %v9199_v10 = vmul.f32 %v8591_v29, %v9178_v53  ;;  %v9217_v60 = vld [vmem:[#allocation3 + $0x90] sm:$0xff] }
 0x23b   : > { %14028 = vst [vmem:[#allocation84_spill] sm:$0xff] %v9153_v32  ;;  %v9185_v32 = vld [vmem:[#allocation3 + $0x81] sm:$0xff]  ;;  %v9187_v48 = vpop.eup %7250  ;;  %7252 = vrsqrt.f32 %v9189_v33  ;;  %vm1455_vm10 = vweird.f32 %v9189_v33 }
 0x23c   : > { %14029 = vst [vmem:[#allocation85_spill] sm:$0xff] %v9158_v63  ;;  %v4005_v2 = vadd.f32 %v3973_v42, %v3908_v26  ;;  %v4167_v42 = vmul.f32 %v9024_v20, %v9174_v27  ;;  %v1444_v26 = vmul.f32 %v9127_v50, %v1443_v23  ;;  %v1410_v4 = vmul.f32 %v9187_v48, %v9133_v37  ;;  %v2493_v23 = vld [vmem:[#allocation3 + $0x91] sm:$0xff]  ;;  %v9271_v37 = vld [vmem:[#allocation3 + $0x21] sm:$0xff] }
 0x23d   : > { %14030 = vst [vmem:[#allocation86_spill] sm:$0xff] %v9172_v0  ;;  %v9205_v47 = vmul.f32 %v8603_v19, %v9185_v32  ;;  %v14038_v63 = vld [vmem:[#allocation33_spill] sm:$0xff]  ;;  %v1156_v0 = vpop.xlane.xlu1 %1155  ;;  %v9223_v5 = vadd.f32 %v9098_v46, %v2555_v3  ;;  %vm1416_vm8 = vweird.f32 %v9187_v48  ;;  %v9237_v3 = vld [vmem:[#allocation3 + $0xa8] sm:$0xff] }
 0x23e   : > { %14031 = vst [vmem:[#allocation87_spill] sm:$0xff] %v9174_v27  ;;  %v4102_v1 = vadd.f32 %v4070_v22, %v4005_v2  ;;  %v1448_v13 = vsel %vm1447_vm6, %v9127_v50, %v1444_v26  ;;  %v1411_v15 = vmul.f32 %v9187_v48, %v1410_v4  ;;  %v2363_v2 = vadd.f32 %v2331_v14, %v2266_v61  ;;  %v1189_v50 = vpop.xlane.xlu2 %1188  ;;  %v9231_v61 = vld [vmem:[#allocation3 + $0x92] sm:$0xff]  ;;  %vm1417_vm9 = vmor %vm1415_vm7, %vm1416_vm8 }
 0x23f   : > { %14032 = vst [vmem:[#allocation88_spill] sm:$0xff] %v9178_v53  ;;  %v1606_v27 = vmul.f32 %v1448_v13, %v14038_v63  ;;  %v2429_v22 = vmul.f32 %v8499_v43, %v9217_v60  ;;  %v1220_v11 = vmul.f32 %v1156_v0, %v8122_v7  ;;  %v1231_v63 = vmul.f32 %v1189_v50, %v8122_v7  ;;  %v9239_v0 = vld [vmem:[#allocation3 + $0xa9] sm:$0xff] }
 0x240   : > { %14033 = vst [vmem:[#allocation89_spill] sm:$0xff] %v9185_v32  ;;  %v1412_v21 = vmul.f32 0.5, %v1411_v15 }
 0x241   : > { %14034 = vst [vmem:[#allocation90_spill] sm:$0xff] %v9205_v47  ;;  %v4199_v47 = vadd.f32 %v4167_v42, %v4102_v1  ;;  %v1641_v26 = vmul.f32 %v8985_v25, %v1606_v27  ;;  %v2461_v4 = vadd.f32 %v2429_v22, %v2363_v2  ;;  %v2526_v42 = vmul.f32 %v8508_v16, %v2493_v23  ;;  %v9241_v1 = vpop.eup %7252  ;;  %v2687_v23 = vld [vmem:[#allocation3 + $0x93] sm:$0xff] }
 0x242   : > { %14035 = vst [vmem:[#allocation91_spill] sm:$0xff] %v9208_v51  ;;  %v1413_v30 = vsub.f32 1.5, %v1412_v21  ;;  %v9235_v46 = vadd.f32 1e-05, %v1220_v11  ;;  %v9244_v14 = vadd.f32 1e-05, %v1231_v63  ;;  %v1450_v22 = vmul.f32 %v9241_v1, %v9189_v33 }
 0x243   : > { %14036 = vst [vmem:[#allocation92_spill] sm:$0xff] %v9213_v28  ;;  %v1676_v27 = vadd.f32 %v9002_v8, %v1641_v26  ;;  %v9246_v13 = vadd.f32 %v4264_v18, %v4199_v47  ;;  %v2558_v15 = vadd.f32 %v2526_v42, %v2461_v4  ;;  %v2623_v21 = vmul.f32 %v8517_v58, %v9231_v61  ;;  %v9254_v11 = vld [vmem:[#allocation3 + $0xaa] sm:$0xff]  ;;  %v2784_v47 = vld [vmem:[#allocation3 + $0x94] sm:$0xff] }
 0x244   : > { %14037 = vst [vmem:[#allocation93_spill] sm:$0xff] %v9217_v60  ;;  %v1414_v2 = vmul.f32 %v9187_v48, %v1413_v30  ;;  %7254 = vrsqrt.f32 %v9235_v46  ;;  %v2914_v18 = vmul.f32 %v8591_v29, %v9237_v3  ;;  %v3011_v26 = vmul.f32 %v8603_v19, %v9239_v0 }
 0x245   : > { %14039 = vst [vmem:[#allocation33_spill] sm:$0xff] %v9231_v61  ;;  %v1713_v50 = vmul.f32 %v8445_v56, %v1676_v27  ;;  %7256 = vrsqrt.f32 %v9244_v14  ;;  %v1451_v4 = vmul.f32 %v9241_v1, %v1450_v22  ;;  %v2655_v42 = vadd.f32 %v2623_v21, %v2558_v15  ;;  %v9269_v27 = vld [vmem:[#allocation3 + $0x20] sm:$0xff]  ;;  %v1183_v15 = vpop.xlane.xlu1 %1182  ;;  %v9283_v21 = vld [vmem:[#allocation3 + $0xab] sm:$0xff] }
 0x246   : > { %14040 = vst [vmem:[#allocation94_spill] sm:$0xff] %v9237_v3  ;;  %v1418_v63 = vsel %vm1417_vm9, %v9187_v48, %v1414_v2  ;;  %v2720_v30 = vmul.f32 %v8559_v40, %v2687_v23  ;;  %v14045_v61 = vld [vmem:[#allocation35_spill] sm:$0xff]  ;;  %v3108_v3 = vmul.f32 %v13977_v24, %v9254_v11  ;;  %v2817_v22 = vmul.f32 %v8568_v59, %v2784_v47 }
 0x247   : > { %14041 = vst [vmem:[#allocation95_spill] sm:$0xff] %v9239_v0  ;;  %v1750_v28 = vadd.f32 %v8111_v62, %v1713_v50  ;;  %v1603_v60 = vmul.f32 %v1418_v63, %v14045_v61  ;;  %v1936_v0 = vmul.f32 %v8353_v34, %v9269_v27  ;;  %v9279_v48 = vld [vmem:[#allocation3 + $0x22] sm:$0xff]  ;;  %v1452_v2 = vmul.f32 0.5, %v1451_v4 }
 0x248   : > { %14042 = vst [vmem:[#allocation96_spill] sm:$0xff] %v9254_v11  ;;  %v2752_v23 = vadd.f32 %v2720_v30, %v2655_v42  ;;  %v1229_v63 = vmul.f32 %v1183_v15, %v8122_v7  ;;  %v9288_v11 = vld [vmem:[#allocation3 + $0xac] sm:$0xff]  ;;  %v2033_v51 = vmul.f32 %v8356_v45, %v9271_v37  ;;  %vm1456_vm11 = vweird.f32 %v9241_v1  ;;  %v9306_v15 = vld [vmem:[#allocation3 + $0x23] sm:$0xff] }
 0x249   : > { %14043 = vst [vmem:[#allocation97_spill] sm:$0xff] %v9269_v27  ;;  %v1787_v50 = vmul.f32 %v8459_v6, %v1750_v28  ;;  %v1638_v61 = vmul.f32 %v8985_v25, %v1603_v60  ;;  %v1453_v27 = vsub.f32 1.5, %v1452_v2  ;;  %v2130_v47 = vmul.f32 %v8363_v31, %v9279_v48  ;;  %vm1457_vm14 = vmor %vm1455_vm10, %vm1456_vm11  ;;  %v14050_v45 = vld [vmem:[#allocation37_spill] sm:$0xff] }
 0x24a   : > { %14044 = vst [vmem:[#allocation98_spill] sm:$0xff] %v9271_v37  ;;  %v9292_v4 = vpop.eup %7254  ;;  %v2849_v42 = vadd.f32 %v2817_v22, %v2752_v23  ;;  %vm1425_vm12 = vweird.f32 %v9235_v46  ;;  %v3205_v2 = vmul.f32 %v13982_v44, %v9283_v21  ;;  %vm1535_vm13 = vweird.f32 %v9244_v14 }
 0x24b   : > { %14046 = vst [vmem:[#allocation35_spill] sm:$0xff] %v9279_v48  ;;  %v9297_v30 = vpop.eup %7256  ;;  %v1673_v28 = vadd.f32 %v9002_v8, %v1638_v61  ;;  %v1420_v60 = vmul.f32 %v9292_v4, %v9235_v46  ;;  %v1454_v23 = vmul.f32 %v9241_v1, %v1453_v27  ;;  %v3302_v61 = vmul.f32 %v8655_v12, %v9288_v11  ;;  %v4427_v27 = vpop.permute.xlu2 %4426 }
 0x24c   : > { %14047 = vst [vmem:[#allocation99_spill] sm:$0xff] %v9283_v21  ;;  %v1530_v22 = vmul.f32 %v9297_v30, %v9244_v14  ;;  %v2946_v37 = vadd.f32 %v2914_v18, %v2849_v42  ;;  %v2065_v31 = vadd.f32 %v2033_v51, %v1936_v0  ;;  %v4584_v34 = vmul.f32 %v4427_v27, %v9246_v13  ;;  %v4392_v0 = vld [vmem:[#allocation2] sm:$0xff] }
 0x24d   : > { %14048 = vst [vmem:[#allocation100_spill] sm:$0xff] %v9288_v11  ;;  %v1710_v48 = vmul.f32 %v8445_v56, %v1673_v28  ;;  %v1421_v21 = vmul.f32 %v9292_v4, %v1420_v60  ;;  %v1458_v32 = vsel %vm1457_vm14, %v9241_v1, %v1454_v23  ;;  %v2227_v11 = vmul.f32 %v8393_v57, %v9306_v15  ;;  %v9330_v60 = vld [vmem:[#allocation3 + $0x24] sm:$0xff] }
 0x24e   : > { %1881 = vst.msk [vmem:[#allocation3 + $0xfa] sm:$0xff] %vm875_vm1, %v1787_v50  ;;  %v9312_v50 = vadd.f32 1e-05, %v1229_v63  ;;  %v1531_v63 = vmul.f32 %v9297_v30, %v1530_v22  ;;  %v1607_v53 = vmul.f32 %v1458_v32, %v14050_v45  ;;  %vm1426_vm15 = vweird.f32 %v9292_v4  ;;  %v9338_v45 = vld [vmem:[#allocation3 + $0xc0] sm:$0xff] }
 0x24f   : > { %14049 = vst [vmem:[#allocation101_spill] sm:$0xff] %v9306_v15  ;;  %v1747_v28 = vadd.f32 %v8111_v62, %v1710_v48  ;;  %v1422_v33 = vmul.f32 0.5, %v1421_v21  ;;  %vm1536_vm0 = vweird.f32 %v9297_v30  ;;  %v3043_v1 = vadd.f32 %v3011_v26, %v2946_v37  ;;  %v1168_v21 = vpop.xlane.xlu1 %1167  ;;  %vm1427_vm2 = vmor %vm1425_vm12, %vm1426_vm15  ;;  %v14073_v15 = vld [vmem:[#allocation73_spill] sm:$0xff] }
 0x250   : > { %7258 = vrsqrt.f32 %v9312_v50  ;;  %14051 = vst [vmem:[#allocation37_spill] sm:$0xff] %v9330_v60  ;;  %v1532_v51 = vmul.f32 0.5, %v1531_v63  ;;  %v1642_v42 = vmul.f32 %v8985_v25, %v1607_v53  ;;  %v9336_v48 = vadd.f32 %v4584_v34, %v4392_v0  ;;  %v9342_v63 = vld [vmem:[#allocation3 + $0x38] sm:$0xff]  ;;  %vm1537_vm3 = vmor %vm1535_vm13, %vm1536_vm0 }
 0x251   : > { %v1784_v18 = vmul.f32 %v8459_v6, %v1747_v28  ;;  %v1423_v23 = vsub.f32 1.5, %v1422_v33  ;;  %14053 = vst [vmem:[#allocation103_spill] sm:$0xff] %v9338_v45  ;;  %v3140_v13 = vadd.f32 %v3108_v3, %v3043_v1  ;;  %v2162_v22 = vadd.f32 %v2130_v47, %v2065_v31  ;;  %v9367_v1 = vld [vmem:[#allocation3 + $0xc1] sm:$0xff] }
 0x252   : > { %14052 = vst [vmem:[#allocation102_spill] sm:$0xff] %v9336_v48  ;;  %v1533_v32 = vsub.f32 1.5, %v1532_v51  ;;  %v2324_v27 = vmul.f32 %v13983_v39, %v9330_v60  ;;  %v1677_v26 = vadd.f32 %v9002_v8, %v1642_v42  ;;  %v4650_v34 = vsel %vm875_vm1, %v9336_v48, 0.0  ;;  %v9457_v60 = vld [vmem:[#allocation3 + $0x3c] sm:$0xff] }
 0x253   : > { %14054 = vst [vmem:[#allocation104_spill] sm:$0xff] %v9342_v63  ;;  %v1424_v53 = vmul.f32 %v9292_v4, %v1423_v23  ;;  %v1224_v37 = vmul.f32 %v1168_v21, %v8122_v7  ;;  %v3237_v3 = vadd.f32 %v3205_v2, %v3140_v13  ;;  %v3400_v47 = vmul.f32 %v8658_v55, %v9338_v45  ;;  %v14057_v13 = vld [vmem:[#allocation38_spill] sm:$0xff]  ;;  %v9425_v45 = vld [vmem:[#allocation3 + $0x84] sm:$0xff] }
 0x254   : > { %1878 = vst.msk [vmem:[#allocation3 + $0xda] sm:$0xff] %vm875_vm1, %v1784_v18  ;;  %v1534_v31 = vmul.f32 %v9297_v30, %v1533_v32  ;;  %4651 = vadd.xlane.f32.xlu0 %v4650_v34  ;;  %v2259_v33 = vadd.f32 %v2227_v11, %v2162_v22  ;;  %v1714_v51 = vmul.f32 %v8445_v56, %v1677_v26  ;;  %v9371_v18 = vld [vmem:[#allocation3 + $0x82] sm:$0xff]  ;;  %vm1515_vm4 = vweird.f32 %v9312_v50 }
 0x255   : > { %v1428_v0 = vsel %vm1427_vm2, %v9292_v4, %v1424_v53  ;;  %14055 = vst [vmem:[#allocation105_spill] sm:$0xff] %v9367_v1  ;;  %v2422_v2 = vmul.f32 %v8499_v43, %v9342_v63  ;;  %v14056_v11 = vld [vmem:[#allocation39_spill] sm:$0xff]  ;;  %v3334_v4 = vadd.f32 %v3302_v61, %v3237_v3  ;;  %v9375_v32 = vadd.f32 1e-05, %v1224_v37 }
 0x256   : > { %v9350_v28 = vpop.eup %7258  ;;  %v1604_v42 = vmul.f32 %v1428_v0, %v14056_v11  ;;  %v1538_v23 = vsel %vm1537_vm3, %v9297_v30, %v1534_v31  ;;  %v1751_v14 = vadd.f32 %v8111_v62, %v1714_v51  ;;  %v9380_v26 = vld [vmem:[#allocation3 + $0xc2] sm:$0xff]  ;;  %v2356_v53 = vadd.f32 %v2324_v27, %v2259_v33  ;;  %v9394_v27 = vld [vmem:[#allocation3 + $0x39] sm:$0xff]  ;;  %v14064_v11 = vld [vmem:[#allocation65_spill] sm:$0xff] }
 0x257   : > { %v1510_v46 = vmul.f32 %v9350_v28, %v9312_v50  ;;  %v1615_v21 = vmul.f32 %v1538_v23, %v14057_v13  ;;  %14058 = vst [vmem:[#allocation39_spill] sm:$0xff] %v9380_v26  ;;  %v9382_v34 = vld [vmem:[#allocation3 + $0xc3] sm:$0xff]  ;;  %v3432_v7 = vadd.f32 %v3400_v47, %v3334_v4  ;;  %7260 = vrsqrt.f32 %v9375_v32  ;;  %v9403_v4 = vld [vmem:[#allocation3 + $0x3a] sm:$0xff] }
 0x258   : > { %14059 = vst [vmem:[#allocation38_spill] sm:$0xff] %v9382_v34  ;;  %v1639_v48 = vmul.f32 %v8985_v25, %v1604_v42  ;;  %v14060_v0 = vld [vmem:[#allocation64_spill] sm:$0xff]  ;;  %v9390_v61 = vmul.f32 %v13977_v24, %v9371_v18  ;;  %v1788_v37 = vmul.f32 %v8459_v6, %v1751_v14  ;;  %v3594_v42 = vmul.f32 %v14064_v11, %v9380_v26 }
 0x259   : > { %v1511_v22 = vmul.f32 %v9350_v28, %v1510_v46  ;;  %v3497_v30 = vmul.f32 %v14060_v0, %v9367_v1  ;;  %v1650_v31 = vmul.f32 %v8985_v25, %v1615_v21  ;;  %14061 = vst [vmem:[#allocation106_spill] sm:$0xff] %v9394_v27  ;;  %v9396_v33 = vld [vmem:[#allocation3 + $0xc4] sm:$0xff]  ;;  %v2454_v23 = vadd.f32 %v2422_v2, %v2356_v53 }
 0x25a   : > { %14062 = vst [vmem:[#allocation107_spill] sm:$0xff] %v9396_v33  ;;  %v1674_v47 = vadd.f32 %v9002_v8, %v1639_v48  ;;  %vm1516_vm5 = vweird.f32 %v9350_v28  ;;  %v3691_v13 = vmul.f32 %v9382_v34, %v8747_v17  ;;  %v9411_v21 = vld [vmem:[#allocation3 + $0x83] sm:$0xff]  ;;  %v2519_v2 = vmul.f32 %v8508_v16, %v9394_v27 }
 0x25b   : > { %v1512_v3 = vmul.f32 0.5, %v1511_v22  ;;  %v9398_v51 = vld [vmem:[#allocation3 + $0xd8] sm:$0xff]  ;;  %v3529_v46 = vadd.f32 %v3497_v30, %v3432_v7  ;;  %14065 = vst [vmem:[#allocation109_spill] sm:$0xff] %v9403_v4  ;;  %v1685_v14 = vadd.f32 %v9002_v8, %v1650_v31  ;;  %v3788_v30 = vmul.f32 %v9396_v33, %v8750_v9  ;;  %vm1517_vm6 = vmor %vm1515_vm4, %vm1516_vm5 }
 0x25c   : > { %14063 = vst [vmem:[#allocation108_spill] sm:$0xff] %v9398_v51  ;;  %v1711_v7 = vmul.f32 %v8445_v56, %v1674_v47  ;;  %v2616_v26 = vmul.f32 %v8517_v58, %v9403_v4  ;;  %v9433_v33 = vmul.f32 %v13982_v44, %v9411_v21  ;;  %v2463_v58 = vadd.f32 %v14073_v15, %v9211_v38 }
 0x25d   : > { %1882 = vst.msk [vmem:[#allocation3 + $0x10a] sm:$0xff] %vm875_vm1, %v1788_v37  ;;  %v1513_v48 = vsub.f32 1.5, %v1512_v3  ;;  %v3626_v22 = vadd.f32 %v3594_v42, %v3529_v46  ;;  %v1722_v53 = vmul.f32 %v8445_v56, %v1685_v14  ;;  %v14066_v37 = vld [vmem:[#allocation69_spill] sm:$0xff]  ;;  %v9423_v1 = vpop.eup %7260  ;;  %v2551_v42 = vadd.f32 %v2519_v2, %v2454_v23  ;;  %v14067_v14 = vld [vmem:[#allocation19_spill] sm:$0xff] }
 0x25e   : > { %v3886_v31 = vmul.f32 %v14066_v37, %v9398_v51  ;;  %v1748_v3 = vadd.f32 %v8111_v62, %v1711_v7  ;;  %v3430_v27 = vadd.f32 %v14067_v14, %v9181_v36  ;;  %v9435_v51 = vld [vmem:[#allocation3 + $0xd9] sm:$0xff]  ;;  %v14071_v14 = vld [vmem:[#allocation44_spill] sm:$0xff]  ;;  %vm1466_vm7 = vweird.f32 %v9423_v1 }
 0x25f   : > { %v1514_v47 = vmul.f32 %v9350_v28, %v1513_v48  ;;  %v3723_v46 = vadd.f32 %v3691_v13, %v3626_v22  ;;  %14068 = vst [vmem:[#allocation19_spill] sm:$0xff] %v9435_v51  ;;  %v1759_v4 = vadd.f32 %v8111_v62, %v1722_v53  ;;  %v1460_v13 = vmul.f32 %v9423_v1, %v9375_v32  ;;  %v9444_v23 = vld [vmem:[#allocation3 + $0x3b] sm:$0xff] }
 0x260   : > { %14069 = vst [vmem:[#allocation110_spill] sm:$0xff] %v9444_v23  ;;  %v9446_v7 = vld [vmem:[#allocation3 + $0xda] sm:$0xff]  ;;  %v1785_v36 = vmul.f32 %v8459_v6, %v1748_v3  ;;  %v2648_v2 = vadd.f32 %v2616_v26, %v2551_v42  ;;  %v9452_v53 = vmul.f32 %v8655_v12, %v9425_v45  ;;  %v3983_v26 = vmul.f32 %v8833_v49, %v9435_v51  ;;  %v9500_v51 = vpop.permute.xlu0 %4461 }
 0x261   : > { %14070 = vst [vmem:[#allocation111_spill] sm:$0xff] %v9446_v7  ;;  %v1518_v48 = vsel %vm1517_vm6, %v9350_v28, %v1514_v47  ;;  %v3820_v22 = vadd.f32 %v3788_v30, %v3723_v46  ;;  %v1796_v50 = vmul.f32 %v8459_v6, %v1759_v4  ;;  %v1461_v63 = vmul.f32 %v9423_v1, %v1460_v13  ;;  %v9461_v3 = vld [vmem:[#allocation3 + $0x98] sm:$0xff] }
 0x262   : > { %v1613_v34 = vmul.f32 %v1518_v48, %v14071_v14  ;;  %14072 = vst [vmem:[#allocation44_spill] sm:$0xff] %v9457_v60  ;;  %v2713_v4 = vmul.f32 %v8559_v40, %v9444_v23  ;;  %v2749_v30 = vadd.f32 %v9163_v35, %v9223_v5  ;;  %v9470_v47 = vld [vmem:[#allocation3 + $0x99] sm:$0xff]  ;;  %v4080_v15 = vmul.f32 %v9009_v52, %v9446_v7  ;;  %v9498_v7 = vld [vmem:[#allocation3 + $0xb0] sm:$0xff]  ;;  %v14090_v23 = vld [vmem:[#allocation28_spill] sm:$0xff] }
 0x263   : > { %1879 = vst.msk [vmem:[#allocation3 + $0xe2] sm:$0xff] %vm875_vm1, %v1785_v36  ;;  %v3918_v28 = vadd.f32 %v3886_v31, %v3820_v22  ;;  %v1462_v46 = vmul.f32 0.5, %v1461_v63  ;;  %v2810_v13 = vmul.f32 %v8568_v59, %v9457_v60  ;;  %v14074_v36 = vld [vmem:[#allocation21_spill] sm:$0xff]  ;;  %v9482_v35 = vmul.f32 %v8658_v55, %v9461_v3  ;;  %v9484_v5 = vld [vmem:[#allocation3 + $0x9a] sm:$0xff] }
 0x264   : > { %1890 = vst.msk [vmem:[#allocation3 + $0x16a] sm:$0xff] %vm875_vm1, %v1796_v50  ;;  %v1648_v38 = vmul.f32 %v8985_v25, %v1613_v34  ;;  %v2745_v42 = vadd.f32 %v2713_v4, %v2648_v2  ;;  %v2907_v48 = vmul.f32 %v8591_v29, %v14074_v36  ;;  %v9486_v22 = vld [vmem:[#allocation3 + $0x9b] sm:$0xff]  ;;  %v9493_v14 = vmul.f32 %v14060_v0, %v9470_v47 }
 0x265   : > { %v4015_v31 = vadd.f32 %v3983_v26, %v3918_v28  ;;  %14075 = vst [vmem:[#allocation73_spill] sm:$0xff] %v9482_v35  ;;  %v1463_v50 = vsub.f32 1.5, %v1462_v46  ;;  %v14076_v63 = vld [vmem:[#allocation63_spill] sm:$0xff]  ;;  %v2846_v4 = vadd.f32 %v9170_v54, %v2749_v30  ;;  %vm1465_vm8 = vweird.f32 %v9375_v32 }
 0x266   : > { %v1683_v34 = vadd.f32 %v9002_v8, %v1648_v38  ;;  %v3527_v2 = vadd.f32 %v14076_v63, %v3430_v27  ;;  %14077 = vst [vmem:[#allocation21_spill] sm:$0xff] %v9493_v14  ;;  %v2842_v26 = vadd.f32 %v2810_v13, %v2745_v42  ;;  %v9496_v36 = vld [vmem:[#allocation3 + $0x9c] sm:$0xff]  ;;  %v9512_v54 = vmul.f32 %v8747_v17, %v9486_v22  ;;  %vm1467_vm9 = vmor %vm1465_vm8, %vm1466_vm7  ;;  %v14093_v14 = vld [vmem:[#allocation89_spill] sm:$0xff] }
 0x267   : > { %v4112_v28 = vadd.f32 %v4080_v15, %v4015_v31  ;;  %14078 = vst [vmem:[#allocation63_spill] sm:$0xff] %v9498_v7  ;;  %v1464_v46 = vmul.f32 %v9423_v1, %v1463_v50  ;;  %v14080_v27 = vld [vmem:[#allocation74_spill] sm:$0xff]  ;;  %v9508_v15 = vmul.f32 %v14064_v11, %v9484_v5  ;;  %v2943_v31 = vadd.f32 %v9199_v10, %v2846_v4 }
 0x268   : > { %14079 = vst [vmem:[#allocation112_spill] sm:$0xff] %v9500_v51  ;;  %v1720_v38 = vmul.f32 %v8445_v56, %v1683_v34  ;;  %v2560_v63 = vadd.f32 %v14080_v27, %v2463_v58  ;;  %v2939_v30 = vadd.f32 %v2907_v48, %v2842_v26  ;;  %v14084_v34 = vld [vmem:[#allocation52_spill] sm:$0xff]  ;;  %v9526_v60 = vmul.f32 %v8750_v9, %v9496_v36  ;;  %v9534_v26 = vld [vmem:[#allocation3 + $0xb1] sm:$0xff] }
 0x269   : > { %14081 = vst [vmem:[#allocation74_spill] sm:$0xff] %v9508_v15  ;;  %v1468_v58 = vsel %vm1467_vm9, %v9423_v1, %v1464_v46  ;;  %v3004_v50 = vmul.f32 %v8603_v19, %v14084_v34  ;;  %v14085_v27 = vld [vmem:[#allocation24_spill] sm:$0xff]  ;;  %v9530_v48 = vmul.f32 %v14066_v37, %v9498_v7  ;;  %v14088_v4 = vld [vmem:[#allocation46_spill] sm:$0xff] }
 0x26a   : > { %14082 = vst [vmem:[#allocation113_spill] sm:$0xff] %v9512_v54  ;;  %v9517_v42 = vld [vmem:[#allocation3 + $0xdb] sm:$0xff]  ;;  %v1757_v32 = vadd.f32 %v8111_v62, %v1720_v38  ;;  %v3624_v51 = vadd.f32 %v14085_v27, %v3527_v2  ;;  %v1608_v38 = vmul.f32 %v1468_v58, %v14088_v4  ;;  %v14091_v54 = vld [vmem:[#allocation88_spill] sm:$0xff] }
 0x26b   : > { %14083 = vst [vmem:[#allocation114_spill] sm:$0xff] %v9517_v42  ;;  %v3757_v13 = vld [vmem:[#allocation3 + $0xdc] sm:$0xff]  ;;  %v4177_v10 = vmul.f32 %v9024_v20, %v9517_v42  ;;  %v3036_v46 = vadd.f32 %v3004_v50, %v2939_v30  ;;  %v1944_v15 = vmul.f32 %v14091_v54, %v14090_v23 }
 0x26c   : > { %14086 = vst [vmem:[#allocation52_spill] sm:$0xff] %v9526_v60  ;;  %v1794_v1 = vmul.f32 %v8459_v6, %v1757_v32  ;;  %v14089_v34 = vld [vmem:[#allocation22_spill] sm:$0xff]  ;;  %v4274_v60 = vmul.f32 %v9055_v41, %v3757_v13  ;;  %v1643_v32 = vmul.f32 %v8985_v25, %v1608_v38  ;;  %v1901_v41 = vld [vmem:[#allocation3 + $0x8] sm:$0xff]  ;;  %v14099_v38 = vld [vmem:[#allocation53_spill] sm:$0xff] }
 0x26d   : > { %14087 = vst [vmem:[#allocation24_spill] sm:$0xff] %v9530_v48  ;;  %v3101_v2 = vmul.f32 %v13977_v24, %v14089_v34  ;;  %v4209_v27 = vadd.f32 %v4177_v10, %v4112_v28  ;;  %v14092_v48 = vld [vmem:[#allocation29_spill] sm:$0xff]  ;;  %v14094_v42 = vld [vmem:[#allocation90_spill] sm:$0xff]  ;;  %v9552_v28 = vmul.f32 %v8833_v49, %v9534_v26  ;;  %v4477_v24 = vpop.permute.xlu0 %4476 }
 0x26e   : > { %v2041_v7 = vmul.f32 %v14093_v14, %v14092_v48  ;;  %v3040_v35 = vadd.f32 %v14094_v42, %v2943_v31  ;;  %1888 = vst.msk [vmem:[#allocation3 + $0x152] sm:$0xff] %vm875_vm1, %v1794_v1  ;;  %v14095_v30 = vld [vmem:[#allocation26_spill] sm:$0xff]  ;;  %v1678_v31 = vadd.f32 %v9002_v8, %v1643_v32  ;;  %v14098_v1 = vld [vmem:[#allocation49_spill] sm:$0xff] }
 0x26f   : > { %v3133_v58 = vadd.f32 %v3101_v2, %v3036_v46  ;;  %v3198_v50 = vmul.f32 %v13982_v44, %v14095_v30  ;;  %14096 = vst [vmem:[#allocation46_spill] sm:$0xff] %v9552_v28  ;;  %v4306_v13 = vadd.f32 %v4274_v60, %v4209_v27  ;;  %v14097_v4 = vld [vmem:[#allocation30_spill] sm:$0xff]  ;;  %v3295_v25 = vmul.f32 %v8655_v12, %v14098_v1  ;;  %v1998_v2 = vld [vmem:[#allocation3 + $0x9] sm:$0xff]  ;;  %v14100_v30 = vld [vmem:[#allocation79_spill] sm:$0xff] }
 0x270   : > { %v2073_v10 = vadd.f32 %v2041_v7, %v1944_v15  ;;  %v2138_v34 = vmul.f32 %v9371_v18, %v14097_v4  ;;  %v3393_v46 = vmul.f32 %v8658_v55, %v14099_v38  ;;  %v2657_v44 = vadd.f32 %v14100_v30, %v2560_v63  ;;  %v9562_v28 = vld [vmem:[#allocation3 + $0xb2] sm:$0xff]  ;;  %v3851_v27 = vld [vmem:[#allocation3 + $0xc0] sm:$0xff]  ;;  %v2095_v30 = vld [vmem:[#allocation3 + $0xa] sm:$0xff] }
 0x271   : > { %v3230_v42 = vadd.f32 %v3198_v50, %v3133_v58  ;;  %v9564_v60 = vmul.f32 %v4477_v24, %v4306_v13  ;;  %v2235_v15 = vmul.f32 %v9411_v21, %v8393_v57  ;;  %v3137_v8 = vadd.f32 %v9390_v61, %v3040_v35  ;;  %v9569_v32 = vld [vmem:[#allocation3 + $0xb3] sm:$0xff] }
 0x272   : > { %v2170_v7 = vadd.f32 %v2138_v34, %v2073_v10  ;;  %v1715_v58 = vmul.f32 %v8445_v56, %v1678_v31  ;;  %v1934_v1 = vmul.f32 %v14090_v23, %v1901_v41  ;;  %v2332_v63 = vmul.f32 %v9425_v45, %v13983_v39  ;;  %v14103_v34 = vld [vmem:[#allocation54_spill] sm:$0xff] }
 0x273   : > { %14101 = vst [vmem:[#allocation22_spill] sm:$0xff] %v9564_v60  ;;  %v3327_v50 = vadd.f32 %v3295_v25, %v3230_v42  ;;  %v2430_v24 = vmul.f32 %v9461_v3, %v8499_v43  ;;  %v2031_v13 = vmul.f32 %v14092_v48, %v1998_v2  ;;  %v9580_v10 = vmul.f32 %v9009_v52, %v9562_v28  ;;  %v14104_v42 = vld [vmem:[#allocation77_spill] sm:$0xff] }
 0x274   : > { %v2267_v38 = vadd.f32 %v2235_v15, %v2170_v7  ;;  %v1752_v61 = vadd.f32 %v8111_v62, %v1715_v58  ;;  %v3490_v31 = vmul.f32 %v14060_v0, %v14103_v34  ;;  %v9586_v41 = vmul.f32 %v14066_v37, %v3851_v27  ;;  %v2192_v7 = vld [vmem:[#allocation3 + $0xb] sm:$0xff]  ;;  %v14106_v15 = vld [vmem:[#allocation82_spill] sm:$0xff] }
 0x275   : > { %14102 = vst [vmem:[#allocation88_spill] sm:$0xff] %v9580_v10  ;;  %v3425_v35 = vadd.f32 %v3393_v46, %v3327_v50  ;;  %v3721_v25 = vadd.f32 %v14104_v42, %v3624_v51  ;;  %v9591_v3 = vmul.f32 %v9024_v20, %v9569_v32  ;;  %v2754_v60 = vadd.f32 %v14106_v15, %v2657_v44  ;;  %v14107_v50 = vld [vmem:[#allocation57_spill] sm:$0xff]  ;;  %v14108_v44 = vld [vmem:[#allocation80_spill] sm:$0xff] }
 0x276   : > { %v2364_v2 = vadd.f32 %v2332_v63, %v2267_v38  ;;  %v1789_v58 = vmul.f32 %v8459_v6, %v1752_v61  ;;  %v3587_v34 = vmul.f32 %v14064_v11, %v14107_v50  ;;  %v3234_v62 = vadd.f32 %v9433_v33, %v3137_v8  ;;  %v2289_v10 = vld [vmem:[#allocation3 + $0xc] sm:$0xff] }
 0x277   : > { %14105 = vst [vmem:[#allocation89_spill] sm:$0xff] %v9591_v3  ;;  %v3522_v46 = vadd.f32 %v3490_v31, %v3425_v35  ;;  %v2527_v51 = vmul.f32 %v9470_v47, %v8508_v16  ;;  %v2063_v42 = vadd.f32 %v2031_v13, %v1934_v1  ;;  %v9600_v3 = vld [vmem:[#allocation3 + $0xc1] sm:$0xff]  ;;  %v3684_v63 = vmul.f32 %v8747_v17, %v14108_v44  ;;  %v9622_v50 = vld [vmem:[#allocation3 + $0x49] sm:$0xff] }
 0x278   : > { %v2462_v56 = vadd.f32 %v2430_v24, %v2364_v2  ;;  %1883 = vst.msk [vmem:[#allocation3 + $0x112] sm:$0xff] %vm875_vm1, %v1789_v58  ;;  %v2128_v61 = vmul.f32 %v14097_v4, %v2095_v30  ;;  %v2225_v35 = vmul.f32 %v8393_v57, %v2192_v7  ;;  %v2916_v33 = vmul.f32 %v3851_v27, %v8591_v29  ;;  %v14109_v8 = vld [vmem:[#allocation84_spill] sm:$0xff]  ;;  %v14110_v1 = vld [vmem:[#allocation43_spill] sm:$0xff] }
 0x279   : > { %v3619_v38 = vadd.f32 %v3587_v34, %v3522_v46  ;;  %v3781_v24 = vmul.f32 %v8750_v9, %v14109_v8  ;;  %v2624_v13 = vmul.f32 %v9484_v5, %v14110_v1  ;;  %v3879_v2 = vmul.f32 %v14066_v37, %v14091_v54  ;;  %14111 = vst [vmem:[#allocation90_spill] sm:$0xff] %v9622_v50  ;;  %v14112_v5 = vld [vmem:[#allocation83_spill] sm:$0xff]  ;;  %v14115_v8 = vld [vmem:[#allocation78_spill] sm:$0xff] }
 0x27a   : > { %v2559_v47 = vadd.f32 %v2527_v51, %v2462_v56  ;;  %v2160_v15 = vadd.f32 %v2128_v61, %v2063_v42  ;;  %v2322_v58 = vmul.f32 %v13983_v39, %v2289_v10  ;;  %v3013_v30 = vmul.f32 %v9600_v3, %v8603_v19  ;;  %v9620_v56 = vld [vmem:[#allocation3 + $0x48] sm:$0xff]  ;;  %v14113_v42 = vld [vmem:[#allocation97_spill] sm:$0xff] }
 0x27b   : > { %v3716_v31 = vadd.f32 %v3684_v63, %v3619_v38  ;;  %v3331_v7 = vadd.f32 %v9452_v53, %v3234_v62  ;;  %v2721_v46 = vmul.f32 %v9486_v22, %v8559_v40  ;;  %v2851_v34 = vadd.f32 %v14112_v5, %v2754_v60  ;;  %v14114_v53 = vld [vmem:[#allocation98_spill] sm:$0xff]  ;;  %v9645_v5 = vld [vmem:[#allocation3 + $0x4a] sm:$0xff] }
 0x27c   : > { %v2656_v27 = vadd.f32 %v2624_v13, %v2559_v47  ;;  %v2257_v54 = vadd.f32 %v2225_v35, %v2160_v15  ;;  %v2420_v10 = vmul.f32 %v8499_v43, %v14113_v42  ;;  %v3976_v38 = vmul.f32 %v8833_v49, %v14093_v14  ;;  %v14116_v47 = vld [vmem:[#allocation73_spill] sm:$0xff]  ;;  %14119 = vst [vmem:[#allocation26_spill] sm:$0xff] %v9645_v5 }
 0x27d   : > { %v3813_v51 = vadd.f32 %v3781_v24, %v3716_v31  ;;  %v2818_v62 = vmul.f32 %v9496_v36, %v8568_v59  ;;  %v2517_v22 = vmul.f32 %v8508_v16, %v14114_v53  ;;  %v1939_v60 = vmul.f32 %v14090_v23, %v9620_v56  ;;  %v14117_v31 = vld [vmem:[#allocation63_spill] sm:$0xff] }
 0x27e   : > { %v2753_v44 = vadd.f32 %v2721_v46, %v2656_v27  ;;  %v2354_v61 = vadd.f32 %v2322_v58, %v2257_v54  ;;  %v2036_v35 = vmul.f32 %v14092_v48, %v9622_v50  ;;  %v3818_v24 = vadd.f32 %v14115_v8, %v3721_v25  ;;  %v14118_v58 = vld [vmem:[#allocation35_spill] sm:$0xff]  ;;  %v9806_v50 = vld [vmem:[#allocation3 + $0x6a] sm:$0xff] }
 0x27f   : > { %v3911_v63 = vadd.f32 %v3879_v2, %v3813_v51  ;;  %v3429_v13 = vadd.f32 %v14116_v47, %v3331_v7  ;;  %v2915_v15 = vmul.f32 %v14117_v31, %v8591_v29  ;;  %v4073_v27 = vmul.f32 %v9009_v52, %v9371_v18  ;;  %v14125_v47 = vld [vmem:[#allocation37_spill] sm:$0xff] }
 0x280   : > { %v2850_v14 = vadd.f32 %v2818_v62, %v2753_v44  ;;  %v2452_v2 = vadd.f32 %v2420_v10, %v2354_v61  ;;  %v2614_v46 = vmul.f32 %v14110_v1, %v14118_v58  ;;  %v2948_v51 = vadd.f32 %v2916_v33, %v2851_v34  ;;  %v14120_v62 = vld [vmem:[#allocation101_spill] sm:$0xff]  ;;  %v14122_v61 = vld [vmem:[#allocation56_spill] sm:$0xff]  ;;  %v14127_v58 = vld [vmem:[#allocation59_spill] sm:$0xff] }
 0x281   : > { %v4008_v36 = vadd.f32 %v3976_v38, %v3911_v63  ;;  %v3012_v25 = vmul.f32 %v9534_v26, %v8603_v19  ;;  %v2068_v7 = vadd.f32 %v2036_v35, %v1939_v60  ;;  %v4170_v44 = vmul.f32 %v9024_v20, %v9411_v21  ;;  %v14121_v10 = vld [vmem:[#allocation21_spill] sm:$0xff]  ;;  %v9660_v26 = vld [vmem:[#allocation3 + $0xc2] sm:$0xff] }
 0x282   : > { %v2947_v54 = vadd.f32 %v2915_v15, %v2850_v14  ;;  %v2549_v38 = vadd.f32 %v2517_v22, %v2452_v2  ;;  %v2711_v18 = vmul.f32 %v8559_v40, %v14120_v62  ;;  %v3526_v53 = vadd.f32 %v14121_v10, %v3429_v13  ;;  %v9658_v34 = vld [vmem:[#allocation3 + $0x4b] sm:$0xff]  ;;  %v14124_v21 = vld [vmem:[#allocation11_spill] sm:$0xff]  ;;  %v4442_v15 = vpop.permute.xlu2 %4441 }
 0x283   : > { %v4105_v42 = vadd.f32 %v4073_v27, %v4008_v36  ;;  %v3109_v8 = vmul.f32 %v9562_v28, %v14122_v61  ;;  %v2133_v33 = vmul.f32 %v14097_v4, %v9645_v5  ;;  %14123 = vst [vmem:[#allocation49_spill] sm:$0xff] %v9658_v34  ;;  %v4267_v22 = vmul.f32 %v14124_v21, %v9425_v45  ;;  %v9666_v13 = vld [vmem:[#allocation3 + $0x4c] sm:$0xff] }
 0x284   : > { %v3044_v63 = vadd.f32 %v3012_v25, %v2947_v54  ;;  %v2646_v35 = vadd.f32 %v2614_v46, %v2549_v38  ;;  %v2808_v14 = vmul.f32 %v8568_v59, %v14125_v47  ;;  %14126 = vst [vmem:[#allocation53_spill] sm:$0xff] %v9666_v13  ;;  %v3045_v31 = vadd.f32 %v3013_v30, %v2948_v51  ;;  %v4238_v30 = vld [vmem:[#allocation3 + $0xb4] sm:$0xff] }
 0x285   : > { %v4202_v60 = vadd.f32 %v4170_v44, %v4105_v42  ;;  %v2165_v36 = vadd.f32 %v2133_v33, %v2068_v7  ;;  %v2230_v27 = vmul.f32 %v8393_v57, %v9658_v34  ;;  %v3206_v54 = vmul.f32 %v9569_v32, %v14127_v58  ;;  %v14128_v42 = vld [vmem:[#allocation104_spill] sm:$0xff]  ;;  %v14129_v44 = vld [vmem:[#allocation74_spill] sm:$0xff] }
 0x286   : > { %v3141_v28 = vadd.f32 %v3109_v8, %v3044_v63  ;;  %v2743_v25 = vadd.f32 %v2711_v18, %v2646_v35  ;;  %v2905_v45 = vmul.f32 %v8591_v29, %v14128_v42  ;;  %v3110_v46 = vmul.f32 %v9660_v26, %v14122_v61  ;;  %v14130_v18 = vld [vmem:[#allocation38_spill] sm:$0xff] }
 0x287   : > { %v4299_v2 = vadd.f32 %v4267_v22, %v4202_v60  ;;  %v3623_v38 = vadd.f32 %v14129_v44, %v3526_v53  ;;  %v2262_v51 = vadd.f32 %v2230_v27, %v2165_v36  ;;  %v2327_v7 = vmul.f32 %v13983_v39, %v9666_v13  ;;  %v4395_v60 = vld [vmem:[#allocation2 + $0x18] sm:$0xff]  ;;  %v14131_v22 = vld [vmem:[#allocation76_spill] sm:$0xff] }
 0x288   : > { %v3916_v62 = vadd.f32 %v9586_v41, %v3818_v24  ;;  %v3238_v63 = vadd.f32 %v3206_v54, %v3141_v28  ;;  %v2840_v8 = vadd.f32 %v2808_v14, %v2743_v25  ;;  %v3142_v32 = vadd.f32 %v3110_v46, %v3045_v31  ;;  %v14133_v27 = vld [vmem:[#allocation106_spill] sm:$0xff]  ;;  %v14134_v24 = vld [vmem:[#allocation113_spill] sm:$0xff]  ;;  %v9690_v14 = vld [vmem:[#allocation3 + $0xc8] sm:$0xff] }
 0x289   : > { %v4587_v10 = vmul.f32 %v4442_v15, %v4299_v2  ;;  %v3207_v33 = vmul.f32 %v14130_v18, %v14127_v58  ;;  %v2359_v21 = vadd.f32 %v2327_v7, %v2262_v51  ;;  %v2425_v35 = vmul.f32 %v14131_v22, %v8499_v43  ;;  %v14135_v31 = vld [vmem:[#allocation109_spill] sm:$0xff]  ;;  %v14138_v18 = vld [vmem:[#allocation87_spill] sm:$0xff] }
 0x28a   : > { %v3303_v47 = vmul.f32 %v4238_v30, %v8655_v12  ;;  %v2937_v36 = vadd.f32 %v2905_v45, %v2840_v8  ;;  %v3002_v41 = vmul.f32 %v8603_v19, %v14133_v27  ;;  %v3720_v15 = vadd.f32 %v14134_v24, %v3623_v38  ;;  %v14136_v54 = vld [vmem:[#allocation81_spill] sm:$0xff]  ;;  %v14141_v24 = vld [vmem:[#allocation52_spill] sm:$0xff] }
 0x28b   : > { %v9684_v53 = vadd.f32 %v4587_v10, %v4395_v60  ;;  %v3099_v28 = vmul.f32 %v14122_v61, %v14135_v31  ;;  %v2457_v2 = vadd.f32 %v2425_v35, %v2359_v21  ;;  %v2522_v25 = vmul.f32 %v14136_v54, %v8508_v16  ;;  %v9700_v7 = vld [vmem:[#allocation3 + $0x50] sm:$0xff]  ;;  %v14137_v10 = vld [vmem:[#allocation86_spill] sm:$0xff]  ;;  %v14142_v54 = vld [vmem:[#allocation108_spill] sm:$0xff] }
 0x28c   : > { %v3335_v44 = vadd.f32 %v3303_v47, %v3238_v63  ;;  %v3034_v51 = vadd.f32 %v3002_v41, %v2937_v36  ;;  %v1938_v45 = vmul.f32 %v14128_v42, %v14090_v23  ;;  %v2619_v8 = vmul.f32 %v14137_v10, %v14110_v1  ;;  %v14139_v47 = vld [vmem:[#allocation110_spill] sm:$0xff]  ;;  %v14140_v36 = vld [vmem:[#allocation107_spill] sm:$0xff] }
 0x28d   : > { %14132 = vst [vmem:[#allocation79_spill] sm:$0xff] %v9684_v53  ;;  %v4659_v46 = vsel %vm875_vm1, %v9684_v53, 0.0  ;;  %v2554_v38 = vadd.f32 %v2522_v25, %v2457_v2  ;;  %v2716_v60 = vmul.f32 %v14138_v18, %v8559_v40  ;;  %v2035_v21 = vmul.f32 %v14133_v27, %v14092_v48 }
 0x28e   : > { %4660 = vadd.xlane.f32.xlu2 %v4659_v46  ;;  %v3239_v22 = vadd.f32 %v3207_v33, %v3142_v32  ;;  %v3401_v63 = vmul.f32 %v8658_v55, %v9690_v14  ;;  %v3131_v35 = vadd.f32 %v3099_v28, %v3034_v51  ;;  %v3196_v42 = vmul.f32 %v14127_v58, %v14139_v47  ;;  %v9717_v46 = vld [vmem:[#allocation3 + $0xc9] sm:$0xff]  ;;  %v9723_v51 = vld [vmem:[#allocation3 + $0x51] sm:$0xff] }
 0x28f   : > { %v3304_v41 = vmul.f32 %v14140_v36, %v8655_v12  ;;  %v3817_v2 = vadd.f32 %v14141_v24, %v3720_v15  ;;  %v3402_v25 = vmul.f32 %v8658_v55, %v14142_v54  ;;  %14143 = vst [vmem:[#allocation54_spill] sm:$0xff] %v9717_v46  ;;  %v2651_v10 = vadd.f32 %v2619_v8, %v2554_v38  ;;  %v14144_v33 = vld [vmem:[#allocation44_spill] sm:$0xff]  ;;  %v14145_v36 = vld [vmem:[#allocation91_spill] sm:$0xff] }
 0x290   : > { %v3433_v27 = vadd.f32 %v3401_v63, %v3335_v44  ;;  %v3228_v32 = vadd.f32 %v3196_v42, %v3131_v35  ;;  %v3293_v18 = vmul.f32 %v8655_v12, %v14144_v33  ;;  %v3391_v28 = vmul.f32 %v8658_v55, %v9700_v7  ;;  %v14146_v24 = vld [vmem:[#allocation75_spill] sm:$0xff]  ;;  %v9732_v44 = vld [vmem:[%s13540_s12 + $0x18] ss:$0 sm:$0xff]  ;;  %v14148_v35 = vld [vmem:[#allocation24_spill] sm:$0xff] }
 0x291   : > { %v2748_v53 = vadd.f32 %v2716_v60, %v2651_v10  ;;  %v2813_v15 = vmul.f32 %v14145_v36, %v8568_v59  ;;  %v2910_v54 = vmul.f32 %v8591_v29, %v14146_v24  ;;  %v2067_v6 = vadd.f32 %v2035_v21, %v1938_v45  ;;  %v9742_v10 = vld [vmem:[#allocation3 + $0xca] sm:$0xff]  ;;  %v9744_v45 = vld [vmem:[#allocation3 + $0x52] sm:$0xff] }
 0x292   : > { %v3336_v13 = vadd.f32 %v3304_v41, %v3239_v22  ;;  %v9735_v38 = vmul.f32 %v9732_v44, %v4238_v30  ;;  %v3498_v8 = vmul.f32 %v14060_v0, %v9717_v46  ;;  %v3325_v60 = vadd.f32 %v3293_v18, %v3228_v32  ;;  %14149 = vst [vmem:[#allocation82_spill] sm:$0xff] %v9742_v10 }
 0x293   : > { %v3981_v63 = vmul.f32 %v8833_v49, %v9600_v3  ;;  %v3915_v42 = vadd.f32 %v14148_v35, %v3817_v2  ;;  %v2845_v21 = vadd.f32 %v2813_v15, %v2748_v53  ;;  %v2132_v22 = vmul.f32 %v14135_v31, %v14097_v4  ;;  %v9756_v2 = vld [vmem:[#allocation3 + $0x53] sm:$0xff]  ;;  %v14152_v53 = vld [vmem:[#allocation19_spill] sm:$0xff]  ;;  %v9762_v31 = vld [vmem:[#allocation3 + $0xcb] sm:$0xff] }
 0x294   : > { %14147 = vst [vmem:[#allocation77_spill] sm:$0xff] %v9735_v38  ;;  %v3434_v41 = vadd.f32 %v3402_v25, %v3336_v13  ;;  %v3530_v30 = vadd.f32 %v3498_v8, %v3433_v27  ;;  %v3423_v36 = vadd.f32 %v3391_v28, %v3325_v60  ;;  %v3488_v24 = vmul.f32 %v14060_v0, %v9723_v51  ;;  %v14155_v8 = vld [vmem:[#allocation111_spill] sm:$0xff] }
 0x295   : > { %v9752_v32 = vmul.f32 %v9009_v52, %v9660_v26  ;;  %v9754_v3 = vadd.f32 %v3981_v63, %v3916_v62  ;;  %v2942_v18 = vadd.f32 %v2910_v54, %v2845_v21  ;;  %v2164_v35 = vadd.f32 %v2132_v22, %v2067_v6  ;;  %14153 = vst [vmem:[#allocation84_spill] sm:$0xff] %v9762_v31  ;;  %v9766_v26 = vld [vmem:[#allocation3 + $0x54] sm:$0xff]  ;;  %v9771_v6 = vld [vmem:[#allocation3 + $0x68] sm:$0xff] }
 0x296   : > { %v3499_v15 = vmul.f32 %v14060_v0, %v14152_v53  ;;  %v3595_v13 = vmul.f32 %v14064_v11, %v9742_v10  ;;  %v3520_v25 = vadd.f32 %v3488_v24, %v3423_v36  ;;  %v3585_v27 = vmul.f32 %v14064_v11, %v9744_v45  ;;  %v14154_v62 = vld [vmem:[#allocation46_spill] sm:$0xff] }
 0x297   : > { %14150 = vst [vmem:[#allocation57_spill] sm:$0xff] %v9752_v32  ;;  %v4012_v28 = vadd.f32 %v14154_v62, %v3915_v42  ;;  %v3596_v54 = vmul.f32 %v14064_v11, %v14155_v8  ;;  %v7511_v60 = vld [vmem:[#allocation3 + $0x79] sm:$0xff]  ;;  %v2229_v21 = vmul.f32 %v14139_v47, %v8393_v57  ;;  %v3682_v53 = vmul.f32 %v8747_v17, %v9756_v2  ;;  %v9782_v32 = vld [vmem:[#allocation3 + $0xcc] sm:$0xff] }
 0x298   : > { %14151 = vst [vmem:[#allocation80_spill] sm:$0xff] %v9754_v3  ;;  %v3007_v63 = vmul.f32 %v7511_v60, %v8603_v19  ;;  %v3531_v22 = vadd.f32 %v3499_v15, %v3434_v41  ;;  %v3627_v36 = vadd.f32 %v3595_v13, %v3530_v30  ;;  %v3617_v24 = vadd.f32 %v3585_v27, %v3520_v25  ;;  %v14157_v41 = vld [vmem:[#allocation94_spill] sm:$0xff]  ;;  %v14158_v15 = vld [vmem:[#allocation95_spill] sm:$0xff]  ;;  %v9792_v27 = vld [vmem:[#allocation3 + $0x69] sm:$0xff] }
 0x299   : > { %v3692_v42 = vmul.f32 %v8747_v17, %v9762_v31  ;;  %v3779_v62 = vmul.f32 %v8750_v9, %v9766_v26  ;;  %v2261_v38 = vadd.f32 %v2229_v21, %v2164_v35  ;;  %14156 = vst [vmem:[#allocation83_spill] sm:$0xff] %v9782_v32  ;;  %v3877_v47 = vmul.f32 %v14066_v37, %v9771_v6  ;;  %v9790_v25 = vld [vmem:[#allocation3 + $0xe0] sm:$0xff]  ;;  %v14159_v35 = vld [vmem:[#allocation85_spill] sm:$0xff]  ;;  %v14163_v10 = vld [vmem:[#allocation114_spill] sm:$0xff] }
 0x29a   : > { %v3039_v8 = vadd.f32 %v3007_v63, %v2942_v18  ;;  %v3714_v60 = vadd.f32 %v3682_v53, %v3617_v24  ;;  %v1947_v30 = vmul.f32 %v14157_v41, %v14090_v23  ;;  %v2044_v13 = vmul.f32 %v14158_v15, %v14092_v48  ;;  %v7512_v3 = vld [vmem:[#allocation3 + $0x7a] sm:$0xff]  ;;  %v14160_v53 = vld [vmem:[#allocation88_spill] sm:$0xff] }
 0x29b   : > { %v3104_v18 = vmul.f32 %v7512_v3, %v14122_v61  ;;  %v3201_v63 = vmul.f32 %v14127_v58, %v14159_v35  ;;  %v2326_v21 = vmul.f32 %v14144_v33, %v13983_v39  ;;  %v2424_v24 = vmul.f32 %v9700_v7, %v8499_v43 }
 0x29c   : > { %v9802_v34 = vadd.f32 %v14160_v53, %v4012_v28  ;;  %v9804_v15 = vadd.f32 %v3596_v54, %v3531_v22  ;;  %v3724_v31 = vadd.f32 %v3692_v42, %v3627_v36  ;;  %v3811_v5 = vadd.f32 %v3779_v62, %v3714_v60  ;;  %v9820_v42 = vld [vmem:[#allocation3 + $0x6b] sm:$0xff] }
 0x29d   : > { %v9810_v3 = vmul.f32 %v8747_v17, %v14163_v10  ;;  %v3789_v35 = vmul.f32 %v8750_v9, %v9782_v32  ;;  %v3136_v33 = vadd.f32 %v3104_v18, %v3039_v8  ;;  %v2358_v46 = vadd.f32 %v2326_v21, %v2261_v38  ;;  %v9824_v38 = vld [vmem:[#allocation3 + $0xe1] sm:$0xff]  ;;  %v9832_v53 = vld [vmem:[#allocation3 + $0x6c] sm:$0xff] }
 0x29e   : > { %14161 = vst [vmem:[#allocation97_spill] sm:$0xff] %v9802_v34  ;;  %v3887_v7 = vmul.f32 %v14066_v37, %v9790_v25  ;;  %v3909_v28 = vadd.f32 %v3877_v47, %v3811_v5  ;;  %v3974_v54 = vmul.f32 %v8833_v49, %v9792_v27  ;;  %v2076_v22 = vadd.f32 %v2044_v13, %v1947_v30  ;;  %v14165_v5 = vld [vmem:[#allocation96_spill] sm:$0xff]  ;;  %v14166_v21 = vld [vmem:[#allocation99_spill] sm:$0xff] }
 0x29f   : > { %14162 = vst [vmem:[#allocation98_spill] sm:$0xff] %v9804_v15  ;;  %v4071_v36 = vmul.f32 %v9009_v52, %v9806_v50  ;;  %v3233_v10 = vadd.f32 %v3201_v63, %v3136_v33  ;;  %v2456_v62 = vadd.f32 %v2424_v24, %v2358_v46  ;;  %v2521_v60 = vmul.f32 %v9723_v51, %v8508_v16  ;;  %v9830_v13 = vld [vmem:[#allocation3 + $0xe2] sm:$0xff]  ;;  %v14167_v63 = vld [vmem:[#allocation93_spill] sm:$0xff]  ;;  %v9839_v33 = vpop.permute.xlu0 %4481 }
 0x2a0   : > { %14164 = vst [vmem:[#allocation78_spill] sm:$0xff] %v9810_v3  ;;  %v3821_v8 = vadd.f32 %v3789_v35, %v3724_v31  ;;  %v4006_v18 = vadd.f32 %v3974_v54, %v3909_v28  ;;  %v2141_v47 = vmul.f32 %v14165_v5, %v14097_v4  ;;  %v2238_v30 = vmul.f32 %v14166_v21, %v8393_v57  ;;  %v7513_v3 = vld [vmem:[#allocation3 + $0x7c] sm:$0xff] }
 0x2a1   : > { %v3298_v46 = vmul.f32 %v7513_v3, %v8655_v12  ;;  %v3396_v51 = vmul.f32 %v8658_v55, %v14167_v63  ;;  %v2553_v31 = vadd.f32 %v2521_v60, %v2456_v62  ;;  %v2618_v24 = vmul.f32 %v9744_v45, %v14110_v1  ;;  %14168 = vst [vmem:[#allocation73_spill] sm:$0xff] %v9839_v33  ;;  %v9849_v45 = vld [vmem:[#allocation3 + $0xe3] sm:$0xff] }
 0x2a2   : > { %v3919_v35 = vadd.f32 %v3887_v7, %v3821_v8  ;;  %v4103_v28 = vadd.f32 %v4071_v36, %v4006_v18  ;;  %v4168_v54 = vmul.f32 %v9024_v20, %v9820_v42  ;;  %v2173_v15 = vadd.f32 %v2141_v47, %v2076_v22  ;;  %14169 = vst [vmem:[#allocation63_spill] sm:$0xff] %v9849_v45  ;;  %v9851_v7 = vld [vmem:[#allocation3 + $0xe4] sm:$0xff] }
 0x2a3   : > { %v3984_v34 = vmul.f32 %v8833_v49, %v9824_v38  ;;  %v3330_v32 = vadd.f32 %v3298_v46, %v3233_v10  ;;  %v2650_v3 = vadd.f32 %v2618_v24, %v2553_v31  ;;  %v2715_v63 = vmul.f32 %v9756_v2, %v8559_v40  ;;  %14170 = vst [vmem:[#allocation35_spill] sm:$0xff] %v9851_v7  ;;  %v14171_v31 = vld [vmem:[#allocation100_spill] sm:$0xff]  ;;  %v14172_v33 = vld [vmem:[#allocation103_spill] sm:$0xff] }
 0x2a4   : > { %v4081_v62 = vmul.f32 %v9009_v52, %v9830_v13  ;;  %v4200_v36 = vadd.f32 %v4168_v54, %v4103_v28  ;;  %v4265_v60 = vmul.f32 %v9732_v44, %v9832_v53  ;;  %v2270_v22 = vadd.f32 %v2238_v30, %v2173_v15  ;;  %v7514_v15 = vld [vmem:[#allocation3 + $0x91] sm:$0xff] }
 0x2a5   : > { %v3428_v8 = vadd.f32 %v3396_v51, %v3330_v32  ;;  %v2747_v18 = vadd.f32 %v2715_v63, %v2650_v3  ;;  %v2812_v10 = vmul.f32 %v9766_v26, %v8568_v59  ;;  %v2909_v2 = vmul.f32 %v9771_v6, %v8591_v29  ;;  %v14173_v6 = vld [vmem:[#allocation13_spill] sm:$0xff]  ;;  %v14175_v63 = vld [vmem:[#allocation12_spill] sm:$0xff] }
 0x2a6   : > { %v4016_v47 = vadd.f32 %v3984_v34, %v3919_v35  ;;  %v4297_v46 = vadd.f32 %v4265_v60, %v4200_v36  ;;  %v2335_v24 = vmul.f32 %v14171_v31, %v13983_v39  ;;  %v2433_v28 = vmul.f32 %v14172_v33, %v8499_v43  ;;  %v14174_v51 = vld [vmem:[#allocation33_spill] sm:$0xff]  ;;  %v4393_v36 = vld [vmem:[#allocation2 + $0x8] sm:$0xff] }
 0x2a7   : > { %v4178_v54 = vmul.f32 %v9024_v20, %v9849_v45  ;;  %v9867_v32 = vmul.f32 %v9732_v44, %v9851_v7  ;;  %v3493_v26 = vmul.f32 %v7514_v15, %v14060_v0  ;;  %v2844_v30 = vadd.f32 %v2812_v10, %v2747_v18 }
 0x2a8   : > { %v4585_v34 = vmul.f32 %v14173_v6, %v4297_v46  ;;  %v3590_v35 = vmul.f32 %v14064_v11, %v14174_v51  ;;  %v2367_v3 = vadd.f32 %v2335_v24, %v2270_v22  ;;  %v1107_v33 = vmul.f32 %v14175_v63, %v14175_v63  ;;  %v7515_v46 = vld [vmem:[#allocation3 + $0xa9] sm:$0xff]  ;;  %v7517_v51 = vld [vmem:[#allocation3 + $0x94] sm:$0xff] }
 0x2a9   : > { %v3525_v60 = vadd.f32 %v3493_v26, %v3428_v8  ;;  %v9877_v45 = vmul.f32 %v14066_v37, %v14157_v41  ;;  %v2941_v7 = vadd.f32 %v2909_v2, %v2844_v30  ;;  %v3006_v15 = vmul.f32 %v9792_v27, %v8603_v19  ;;  %v2001_v2 = vld [vmem:[#allocation3 + $0x31] sm:$0xff] }
 0x2aa   : > { %v4113_v18 = vadd.f32 %v4081_v62, %v4016_v47  ;;  %v9881_v10 = vadd.f32 %v4585_v34, %v4393_v36  ;;  %v9884_v6 = vmul.f32 %v7515_v46, %v8833_v49  ;;  %v2465_v22 = vadd.f32 %v2433_v28, %v2367_v3  ;;  %v1904_v62 = vld [vmem:[#allocation3 + $0x30] sm:$0xff]  ;;  %v9905_v34 = vpop.permute.xlu0 %4496  ;;  %v2691_v36 = vld [vmem:[#allocation3 + $0xc3] sm:$0xff] }
 0x2ab   : > { %v9888_v24 = vmul.f32 %v9009_v52, %v14165_v5  ;;  %v9892_v41 = vmul.f32 %v9024_v20, %v14166_v21  ;;  %v3038_v8 = vadd.f32 %v3006_v15, %v2941_v7  ;;  %v3103_v27 = vmul.f32 %v9806_v50, %v14122_v61  ;;  %v7516_v26 = vld [vmem:[#allocation3 + $0x93] sm:$0xff]  ;;  %14179 = vst [vmem:[#allocation11_spill] sm:$0xff] %v9905_v34  ;;  %v3362_v7 = vld [vmem:[#allocation3 + $0x80] sm:$0xff] }
 0x2ac   : > { %14176 = vst [vmem:[#allocation101_spill] sm:$0xff] %v9881_v10  ;;  %v4653_v47 = vsel %vm875_vm1, %v9881_v10, 0.0  ;;  %v9900_v28 = vmul.f32 %v9732_v44, %v14171_v31  ;;  %v3687_v5 = vmul.f32 %v7516_v26, %v8747_v17  ;;  %v14178_v30 = vld [vmem:[#allocation105_spill] sm:$0xff]  ;;  %v3622_v50 = vadd.f32 %v3590_v35, %v3525_v60 }
 0x2ad   : > { %v2530_v21 = vmul.f32 %v14178_v30, %v8508_v16  ;;  %4654 = vadd.xlane.f32.xlu0 %v4653_v47  ;;  %v3784_v3 = vmul.f32 %v7517_v51, %v8750_v9  ;;  %v3135_v15 = vadd.f32 %v3103_v27, %v3038_v8  ;;  %v3200_v31 = vmul.f32 %v9820_v42, %v14127_v58  ;;  %v9910_v46 = vld [vmem:[#allocation3 + $0xb0] sm:$0xff]  ;;  %v2788_v30 = vld [vmem:[#allocation3 + $0xc4] sm:$0xff] }
 0x2ae   : > { %14177 = vst [vmem:[#allocation21_spill] sm:$0xff] %v9900_v28  ;;  %v9912_v10 = vld [vmem:[#allocation3 + $0xb1] sm:$0xff]  ;;  %v4210_v26 = vadd.f32 %v4178_v54, %v4113_v18  ;;  %v1937_v34 = vmul.f32 %v14090_v23, %v1904_v62  ;;  %v2034_v35 = vmul.f32 %v14092_v48, %v2001_v2  ;;  %v3297_v47 = vmul.f32 %v9832_v53, %v8655_v12  ;;  %v14183_v54 = vld [vmem:[#allocation39_spill] sm:$0xff] }
 0x2af   : > { %14180 = vst [vmem:[#allocation37_spill] sm:$0xff] %v9910_v46  ;;  %v2562_v63 = vadd.f32 %v2530_v21, %v2465_v22  ;;  %v2885_v28 = vld [vmem:[#allocation3 + $0xd8] sm:$0xff]  ;;  %v3232_v60 = vadd.f32 %v3200_v31, %v3135_v15  ;;  %v3395_v8 = vmul.f32 %v8658_v55, %v3362_v7  ;;  %v1948_v42 = vmul.f32 %v14090_v23, %v9910_v46  ;;  %v3459_v21 = vld [vmem:[#allocation3 + $0x81] sm:$0xff] }
 0x2b0   : > { %14181 = vst [vmem:[#allocation104_spill] sm:$0xff] %v9912_v10  ;;  %v9921_v27 = vld [vmem:[#allocation3 + $0xb2] sm:$0xff]  ;;  %v2627_v18 = vmul.f32 %v14183_v54, %v14110_v1  ;;  %v2724_v22 = vmul.f32 %v8559_v40, %v2691_v36  ;;  %v9927_v62 = vsel %vm875_vm1, %v1107_v33, 0.0  ;;  %v2045_v2 = vmul.f32 %v14092_v48, %v9912_v10  ;;  %v3556_v33 = vld [vmem:[#allocation3 + $0x82] sm:$0xff] }
 0x2b1   : > { %14182 = vst [vmem:[#allocation74_spill] sm:$0xff] %v9921_v27  ;;  %v3719_v53 = vadd.f32 %v3687_v5, %v3622_v50  ;;  %v9932_v7 = vmul.f32 %v8568_v59, %v2788_v30  ;;  %v9935_v51 = vmul.f32 %v8591_v29, %v2885_v28  ;;  %v3329_v15 = vadd.f32 %v3297_v47, %v3232_v60  ;;  %v9937_v31 = vld [vmem:[#allocation3 + $0xb3] sm:$0xff]  ;;  %v14186_v30 = vld [vmem:[#allocation92_spill] sm:$0xff] }
 0x2b2   : > { %14185 = vst [vmem:[#allocation76_spill] sm:$0xff] %v9937_v31  ;;  %v2098_v54 = vld [vmem:[#allocation3 + $0x32] sm:$0xff]  ;;  %v9940_v36 = vadd.f32 %v9867_v32, %v4210_v26  ;;  %v2077_v23 = vadd.f32 %v2045_v2, %v1948_v42  ;;  %v2142_v10 = vmul.f32 %v14097_v4, %v9921_v27  ;;  %v2066_v5 = vadd.f32 %v2034_v35, %v1937_v34  ;;  %v3653_v55 = vld [vmem:[#allocation3 + $0x83] sm:$0xff]  ;;  %v1159_v26 = vpop.xlane.xlu0 %1158 }
 0x2b3   : > { %14184 = vst [vmem:[#allocation38_spill] sm:$0xff] %v9935_v51  ;;  %v2195_v46 = vld [vmem:[#allocation3 + $0x33] sm:$0xff]  ;;  %v2659_v50 = vadd.f32 %v2627_v18, %v2562_v63  ;;  %v4656_v48 = vsel %vm875_vm1, %v14186_v30, 0.0  ;;  %v3427_v28 = vadd.f32 %v3395_v8, %v3329_v15  ;;  %v3492_v60 = vmul.f32 %v14060_v0, %v3459_v21  ;;  %v3750_v51 = vld [vmem:[#allocation3 + $0x84] sm:$0xff] }
 0x2b4   : > { %v9947_v47 = vld [vmem:[#allocation3 + $0xb4] sm:$0xff]  ;;  %v2174_v12 = vadd.f32 %v2142_v10, %v2077_v23  ;;  %v2239_v32 = vmul.f32 %v8393_v57, %v9937_v31  ;;  %v2131_v42 = vmul.f32 %v14097_v4, %v2098_v54  ;;  %v2228_v34 = vmul.f32 %v8393_v57, %v2195_v46 }
 0x2b5   : > { %14187 = vst [vmem:[#allocation106_spill] sm:$0xff] %v9947_v47  ;;  %v3816_v63 = vadd.f32 %v3784_v3, %v3719_v53  ;;  %4657 = vadd.xlane.f32.xlu0 %v4656_v48  ;;  %v3524_v35 = vadd.f32 %v3492_v60, %v3427_v28  ;;  %v3589_v8 = vmul.f32 %v14064_v11, %v3556_v33  ;;  %v14188_v18 = vld [vmem:[#allocation18_spill] sm:$0xff] }
 0x2b6   : > { %v1221_v21 = vmul.f32 %v1159_v26, %v14188_v18  ;;  %v2292_v2 = vld [vmem:[#allocation3 + $0x34] sm:$0xff]  ;;  %v2271_v15 = vadd.f32 %v2239_v32, %v2174_v12  ;;  %v2336_v23 = vmul.f32 %v13983_v39, %v9947_v47  ;;  %v2434_v10 = vmul.f32 %v9690_v14, %v8499_v43 }
 0x2b7   : > { %v2163_v30 = vadd.f32 %v2131_v42, %v2066_v5  ;;  %v3621_v31 = vadd.f32 %v3589_v8, %v3524_v35  ;;  %v3686_v54 = vmul.f32 %v8747_v17, %v3653_v55  ;;  %v3783_v3 = vmul.f32 %v8750_v9, %v3750_v51  ;;  %v3848_v48 = vld [vmem:[#allocation3 + $0x98] sm:$0xff] }
 0x2b8   : > { %v9961_v46 = vadd.f32 1e-05, %v1221_v21  ;;  %v3945_v53 = vld [vmem:[#allocation3 + $0x99] sm:$0xff]  ;;  %v2368_v60 = vadd.f32 %v2336_v23, %v2271_v15  ;;  %v2325_v32 = vmul.f32 %v13983_v39, %v2292_v2  ;;  %v2423_v26 = vmul.f32 %v8499_v43, %v9620_v56 }
 0x2b9   : > { %v4042_v33 = vld [vmem:[#allocation3 + $0x9a] sm:$0xff]  ;;  %v2260_v12 = vadd.f32 %v2228_v34, %v2163_v30  ;;  %v3914_v14 = vadd.f32 %v9877_v45, %v3816_v63  ;;  %v9967_v5 = vadd.f32 %v2724_v22, %v2659_v50  ;;  %v3718_v55 = vadd.f32 %v3686_v54, %v3621_v31 }
 0x2ba   : > { %v4139_v28 = vld [vmem:[#allocation3 + $0x9b] sm:$0xff]  ;;  %7262 = vrsqrt.f32 %v9961_v46  ;;  %v3881_v51 = vmul.f32 %v14066_v37, %v3848_v48  ;;  %v2466_v35 = vadd.f32 %v2434_v10, %v2368_v60  ;;  %v3978_v2 = vmul.f32 %v8833_v49, %v3945_v53 }
 0x2bb   : > { %v4236_v42 = vld [vmem:[#allocation3 + $0x9c] sm:$0xff]  ;;  %v2357_v30 = vadd.f32 %v2325_v32, %v2260_v12  ;;  %v3815_v34 = vadd.f32 %v3783_v3, %v3718_v55  ;;  %v4075_v56 = vmul.f32 %v9009_v52, %v4042_v33  ;;  %v4172_v45 = vmul.f32 %v9024_v20, %v4139_v28  ;;  %v14193_v28 = vld [vmem:[#allocation84_spill] sm:$0xff]  ;;  %v14194_v32 = vld [vmem:[#allocation49_spill] sm:$0xff] }
 0x2bc   : > { %v14189_v8 = vld [vmem:[#allocation54_spill] sm:$0xff]  ;;  %v4011_v10 = vadd.f32 %v9884_v6, %v3914_v14  ;;  %v4269_v3 = vmul.f32 %v9732_v44, %v4236_v42  ;;  %v2725_v60 = vmul.f32 %v14193_v28, %v8559_v40  ;;  %v2919_v14 = vmul.f32 %v9790_v25, %v8591_v29 }
 0x2bd   : > { %v2531_v21 = vmul.f32 %v14189_v8, %v8508_v16  ;;  %v14190_v31 = vld [vmem:[#allocation82_spill] sm:$0xff]  ;;  %v2455_v63 = vadd.f32 %v2423_v26, %v2357_v30  ;;  %v3913_v54 = vadd.f32 %v3881_v51, %v3815_v34  ;;  %1200 = vadd.xlane.f32.xlu0 %v9927_v62  ;;  %v2714_v26 = vmul.f32 %v8559_v40, %v14194_v32  ;;  %v14196_v8 = vld [vmem:[#allocation83_spill] sm:$0xff]  ;;  %v4337_v34 = vld [vmem:[%s7806_s29 + $0x48] sm:$0xff] }
 0x2be   : > { %v2628_v50 = vmul.f32 %v14190_v31, %v14110_v1  ;;  %v14191_v15 = vld [vmem:[#allocation90_spill] sm:$0xff]  ;;  %v3016_v62 = vmul.f32 %v9824_v38, %v8603_v19  ;;  %v3113_v25 = vmul.f32 %v9830_v13, %v14122_v61  ;;  %7264 = vrcp.f32 %v4337_v34  ;;  %v2875_v38 = vld [vmem:[#allocation3 + $0x60] sm:$0xff] }
 0x2bf   : > { %v2563_v22 = vadd.f32 %v2531_v21, %v2466_v35  ;;  %v2520_v23 = vmul.f32 %v8508_v16, %v14191_v15  ;;  %v14192_v48 = vld [vmem:[#allocation26_spill] sm:$0xff]  ;;  %v4010_v6 = vadd.f32 %v3978_v2, %v3913_v54  ;;  %v2822_v21 = vmul.f32 %v14196_v8, %v8568_v59  ;;  %v1171_v15 = vpop.xlane.xlu0 %1170  ;;  %v14197_v54 = vld [vmem:[#allocation53_spill] sm:$0xff]  ;;  %v14199_v34 = vld [vmem:[#allocation15_spill] sm:$0xff] }
 0x2c0   : > { %v2617_v53 = vmul.f32 %v14110_v1, %v14192_v48  ;;  %v9989_v55 = vpop.eup %7262  ;;  %v14195_v51 = vld [vmem:[#allocation58_spill] sm:$0xff]  ;;  %v4108_v2 = vadd.f32 %v9888_v24, %v4011_v10  ;;  %v2811_v48 = vmul.f32 %v8568_v59, %v14197_v54  ;;  %v2908_v32 = vmul.f32 %v8591_v29, %v2875_v38 }
 0x2c1   : > { %v2660_v33 = vadd.f32 %v2628_v50, %v2563_v22  ;;  %v2552_v12 = vadd.f32 %v2520_v23, %v2455_v63  ;;  %v1108_v42 = vmul.f32 %v14195_v51, %v14195_v51  ;;  %v1430_v30 = vmul.f32 %v9989_v55, %v9961_v46  ;;  %v10127_v51 = vld [vmem:[#allocation3 + $0xfb] sm:$0xff] }
 0x2c2   : > { %v4107_v31 = vadd.f32 %v4075_v56, %v4010_v6  ;;  %v1225_v56 = vmul.f32 %v1171_v15, %v14188_v18  ;;  %v3069_v6 = vld [vmem:[#allocation3 + $0x62] sm:$0xff]  ;;  %vm1436_vm10 = vweird.f32 %v9989_v55  ;;  %vm1435_vm11 = vweird.f32 %v9961_v46  ;;  %14224 = vst [vmem:[#allocation110_spill] sm:$0xff] %v10127_v51  ;;  %v14225_v47 = vld [vmem:[#allocation66_spill] sm:$0xff] }
 0x2c3   : > { %v2757_v35 = vadd.f32 %v2725_v60, %v2660_v33  ;;  %v2649_v22 = vadd.f32 %v2617_v53, %v2552_v12  ;;  %v1431_v63 = vmul.f32 %v9989_v55, %v1430_v30  ;;  %v2972_v33 = vld [vmem:[#allocation3 + $0x61] sm:$0xff]  ;;  %v1202_v24 = vsel %vm875_vm1, %v1108_v42, 0.0  ;;  %vm1437_vm12 = vmor %vm1435_vm11, %vm1436_vm10 }
 0x2c4   : > { %v4204_v28 = vadd.f32 %v4172_v45, %v4107_v31  ;;  %v14198_v53 = vld [vmem:[#allocation63_spill] sm:$0xff]  ;;  %v10014_v8 = vadd.f32 1e-05, %v1225_v56  ;;  %v3005_v45 = vmul.f32 %v8603_v19, %v2972_v33  ;;  %v4397_v31 = vld [vmem:[#allocation2 + $0x28] sm:$0xff] }
 0x2c5   : > { %v2854_v50 = vadd.f32 %v2822_v21, %v2757_v35  ;;  %v2746_v23 = vadd.f32 %v2714_v26, %v2649_v22  ;;  %v3210_v60 = vmul.f32 %v14198_v53, %v14127_v58  ;;  %v1432_v10 = vmul.f32 0.5, %v1431_v63  ;;  %1203 = vadd.xlane.f32.xlu0 %v1202_v24  ;;  %v2982_v53 = vld [vmem:[#allocation3 + $0xd9] sm:$0xff]  ;;  %v14202_v24 = vld [vmem:[#allocation60_spill] sm:$0xff] }
 0x2c6   : > { %v4205_v26 = vadd.f32 %v9892_v41, %v4108_v2  ;;  %v4301_v35 = vadd.f32 %v4269_v3, %v4204_v28  ;;  %7266 = vrsqrt.f32 %v10014_v8  ;;  %v3102_v41 = vmul.f32 %v14122_v61, %v3069_v6  ;;  %v3166_v3 = vld [vmem:[#allocation3 + $0x63] sm:$0xff]  ;;  %v4457_v2 = vpop.permute.xlu2 %4456  ;;  %v3361_v28 = vld [vmem:[#allocation3 + $0x78] sm:$0xff] }
 0x2c7   : > { %v2951_v13 = vadd.f32 %v2919_v14, %v2854_v50  ;;  %v2843_v12 = vadd.f32 %v2811_v48, %v2746_v23  ;;  %v1433_v30 = vsub.f32 1.5, %v1432_v10  ;;  %v7265_v14 = vpop.eup %7264  ;;  %v3199_v15 = vmul.f32 %v14127_v58, %v3166_v3  ;;  %v14200_v23 = vld [vmem:[#allocation21_spill] sm:$0xff]  ;;  %v14203_v56 = vld [vmem:[#allocation35_spill] sm:$0xff] }
 0x2c8   : > { %v4589_v22 = vmul.f32 %v14199_v34, %v4301_v35  ;;  %4471 = vperm.xlu2 %7175, %v7265_v14   ;;  %v4302_v54 = vadd.f32 %v14200_v23, %v4205_v26  ;;  %v2853_v48 = vadd.f32 %v9932_v7, %v9967_v5  ;;  %v14204_v7 = vld [vmem:[#allocation38_spill] sm:$0xff]  ;;  %v14208_v3 = vld [vmem:[#allocation57_spill] sm:$0xff]  ;;  %vm1475_vm14 = vweird.f32 %v10014_v8 }
 0x2c9   : > { %v3048_v21 = vadd.f32 %v3016_v62, %v2951_v13  ;;  %v2940_v42 = vadd.f32 %v2908_v32, %v2843_v12  ;;  %v1434_v50 = vmul.f32 %v9989_v55, %v1433_v30  ;;  %v4341_v62 = vld [vmem:[%s7806_s29 + $0x68] sm:$0xff]  ;;  %v3307_v13 = vmul.f32 %v14203_v56, %v14202_v24  ;;  %v14205_v35 = vld [vmem:[#allocation62_spill] sm:$0xff] }
 0x2ca   : > { %v10028_v33 = vadd.f32 %v4589_v22, %v4397_v31  ;;  %7268 = vrcp.f32 %v4341_v62  ;;  %v4590_v6 = vmul.f32 %v4457_v2, %v4302_v54  ;;  %v2950_v5 = vadd.f32 %v14204_v7, %v2853_v48  ;;  %v3458_v62 = vld [vmem:[#allocation3 + $0x79] sm:$0xff] }
 0x2cb   : > { %v3145_v38 = vadd.f32 %v3113_v25, %v3048_v21  ;;  %v3037_v63 = vadd.f32 %v3005_v45, %v2940_v42  ;;  %v3263_v25 = vld [vmem:[#allocation3 + $0x64] sm:$0xff]  ;;  %v1438_v12 = vsel %vm1437_vm12, %v9989_v55, %v1434_v50  ;;  %v14206_v42 = vld [vmem:[#allocation61_spill] sm:$0xff]  ;;  %v3015_v31 = vmul.f32 %v8603_v19, %v2982_v53  ;;  %v14211_v54 = vld [vmem:[#allocation98_spill] sm:$0xff] }
 0x2cc   : > { %14201 = vst [vmem:[#allocation113_spill] sm:$0xff] %v10028_v33  ;;  %v4665_v26 = vsel %vm875_vm1, %v10028_v33, 0.0  ;;  %v1605_v46 = vmul.f32 %v1438_v12, %v14205_v35  ;;  %v3296_v30 = vmul.f32 %v14202_v24, %v3263_v25  ;;  %v3394_v14 = vmul.f32 %v14206_v42, %v3361_v28  ;;  %v10045_v34 = vpop.eup %7266  ;;  %v7518_v55 = vld [vmem:[#allocation3 + $0xc3] sm:$0xff]  ;;  %v14212_v48 = vld [vmem:[#allocation78_spill] sm:$0xff]  ;;  %v4398_v28 = vld [vmem:[#allocation2 + $0x30] sm:$0xff] }
 0x2cd   : > { %v3242_v10 = vadd.f32 %v3210_v60, %v3145_v38  ;;  %v3134_v32 = vadd.f32 %v3102_v41, %v3037_v63  ;;  %4666 = vadd.xlane.f32.xlu1 %v4665_v26  ;;  %v1174_v60 = vpop.xlane.xlu0 %1173  ;;  %v4175_v22 = vmul.f32 %v7518_v55, %v9024_v20  ;;  %v14207_v41 = vld [vmem:[#allocation80_spill] sm:$0xff]  ;;  %v10054_v38 = vld [vmem:[%s13536_s8] ss:$0 sm:$0xff]  ;;  %v14209_v63 = vld [vmem:[#allocation97_spill] sm:$0xff]  ;;  %v10063_v25 = vadd.f32 %v14212_v48, %v14211_v54 }
 0x2ce   : > { %v4110_v2 = vadd.f32 %v14208_v3, %v14207_v41  ;;  %v1640_v50 = vmul.f32 %v10054_v38, %v1605_v46  ;;  %v3079_v56 = vld [vmem:[#allocation3 + $0xda] sm:$0xff]  ;;  %v1470_v53 = vmul.f32 %v10045_v34, %v10014_v8  ;;  %v3047_v7 = vadd.f32 %v3015_v31, %v2950_v5  ;;  %v14215_v3 = vld [vmem:[#allocation73_spill] sm:$0xff] }
 0x2cf   : > { %v10041_v45 = vadd.f32 %v3307_v13, %v3242_v10  ;;  %v3231_v21 = vadd.f32 %v3199_v15, %v3134_v32  ;;  %v14210_v15 = vld [vmem:[#allocation89_spill] sm:$0xff]  ;;  %v3176_v13 = vld [vmem:[#allocation3 + $0xdb] sm:$0xff]  ;;  %v10067_v32 = vadd.f32 %v4590_v6, %v4398_v28  ;;  %v1226_v41 = vmul.f32 %v1174_v60, %v14188_v18 }
 0x2d0   : > { %v10059_v23 = vadd.f32 %v14210_v15, %v14209_v63  ;;  %v7269_v12 = vpop.eup %7268  ;;  %v10072_v26 = vld [vmem:[%s13537_s9] ss:$0 sm:$0xff]  ;;  %v4595_v63 = vmul.f32 %v14215_v3, %v9940_v36  ;;  %v3491_v5 = vmul.f32 %v14060_v0, %v3458_v62  ;;  %v3209_v31 = vmul.f32 %v14127_v58, %v3176_v13  ;;  %v14216_v15 = vld [vmem:[#allocation34_spill] sm:$0xff]  ;;  %v14217_v62 = vld [vmem:[#allocation16_spill] sm:$0xff]  ;;  %v10093_v3 = vpop.permute.xlu1 %4501 }
 0x2d1   : > { %v3328_v10 = vadd.f32 %v3296_v30, %v3231_v21  ;;  %14213 = vst [vmem:[#allocation109_spill] sm:$0xff] %v10067_v32  ;;  %v1675_v35 = vadd.f32 %v10072_v26, %v1640_v50  ;;  %v3555_v46 = vld [vmem:[#allocation3 + $0x7a] sm:$0xff]  ;;  %v1471_v21 = vmul.f32 %v10045_v34, %v1470_v53  ;;  %4491 = vperm.xlu2 %7175, %v7269_v12   ;;  %v10083_v50 = vadd.f32 1e-05, %v1226_v41  ;;  %v3847_v13 = vld [vmem:[#allocation3 + $0x90] sm:$0xff] }
 0x2d2   : > { %14214 = vst [vmem:[#allocation81_spill] sm:$0xff] %v10072_v26  ;;  %v3652_v55 = vld [vmem:[#allocation3 + $0x7b] sm:$0xff]  ;;  %v3112_v30 = vmul.f32 %v14122_v61, %v3079_v56  ;;  %v3588_v60 = vmul.f32 %v14064_v11, %v3555_v46  ;;  %vm1476_vm13 = vweird.f32 %v10045_v34 }
 0x2d3   : > { %v3426_v6 = vadd.f32 %v3394_v14, %v3328_v10  ;;  %v1712_v54 = vmul.f32 %v14216_v15, %v1675_v35  ;;  %v1472_v48 = vmul.f32 0.5, %v1471_v21  ;;  %v3685_v36 = vmul.f32 %v8747_v17, %v3652_v55  ;;  %v4403_v53 = vld [vmem:[#allocation2 + $0x58] sm:$0xff]  ;;  %vm1477_vm15 = vmor %vm1475_vm14, %vm1476_vm13 }
 0x2d4   : > { %v3144_v12 = vadd.f32 %v3112_v30, %v3047_v7  ;;  %v4668_v14 = vsel %vm875_vm1, %v10067_v32, 0.0  ;;  %v3749_v10 = vld [vmem:[#allocation3 + $0x7c] sm:$0xff]  ;;  %7270 = vrsqrt.f32 %v10083_v50  ;;  %v10091_v35 = vadd.f32 %v4595_v63, %v4403_v53  ;;  %v4346_v7 = vld [vmem:[%s7806_s29 + $0x90] sm:$0xff]  ;;  %v1909_v30 = vld [vmem:[#allocation3 + $0x68] sm:$0xff] }
 0x2d5   : > { %v3523_v28 = vadd.f32 %v3491_v5, %v3426_v6  ;;  %v1749_v56 = vadd.f32 %v14217_v62, %v1712_v54  ;;  %v3273_v41 = vld [vmem:[#allocation3 + $0xdc] sm:$0xff]  ;;  %4669 = vadd.xlane.f32.xlu1 %v4668_v14  ;;  %v1473_v46 = vsub.f32 1.5, %v1472_v48  ;;  %v14219_v6 = vld [vmem:[#allocation36_spill] sm:$0xff]  ;;  %7272 = vrcp.f32 %v4346_v7 }
 0x2d6   : > { %14218 = vst [vmem:[#allocation86_spill] sm:$0xff] %v10091_v35  ;;  %v3241_v21 = vadd.f32 %v3209_v31, %v3144_v12  ;;  %v2006_v54 = vld [vmem:[#allocation3 + $0x69] sm:$0xff]  ;;  %v3782_v32 = vmul.f32 %v8750_v9, %v3749_v10  ;;  %v3880_v48 = vmul.f32 %v14066_v37, %v3847_v13  ;;  %v10105_v31 = vadd.f32 %v4175_v22, %v4110_v2  ;;  %v10114_v10 = vld [vmem:[#allocation3 + $0xfa] sm:$0xff]  ;;  %v4041_v22 = vld [vmem:[#allocation3 + $0x92] sm:$0xff] }
 0x2d7   : > { %v3620_v55 = vadd.f32 %v3588_v60, %v3523_v28  ;;  %v1786_v5 = vmul.f32 %v14219_v6, %v1749_v56  ;;  %v1474_v63 = vmul.f32 %v10045_v34, %v1473_v46  ;;  %v7521_v14 = vld [vmem:[#allocation3 + $0xc4] sm:$0xff]  ;;  %v7522_v60 = vld [vmem:[#allocation3 + $0xdc] sm:$0xff]  ;;  %v3306_v56 = vmul.f32 %v14202_v24, %v3273_v41  ;;  %14220 = vst [vmem:[#allocation87_spill] sm:$0xff] %v10114_v10  ;;  %v4235_v24 = vld [vmem:[#allocation3 + $0x94] sm:$0xff] }
 0x2d8   : > { %v10103_v28 = vmul.f32 %v7521_v14, %v9732_v44  ;;  %v3790_v12 = vmul.f32 %v7522_v60, %v8750_v9  ;;  %v4347_v2 = vld [vmem:[%s7806_s29 + $0x98] sm:$0xff]  ;;  %v14222_v14 = vld [vmem:[#allocation29_spill] sm:$0xff]  ;;  %vm1485_vm0 = vweird.f32 %v10083_v50 }
 0x2d9   : > { %v3717_v53 = vadd.f32 %v3685_v36, %v3620_v55  ;;  %1880 = vst.msk [vmem:[#allocation3 + $0xf2] sm:$0xff] %vm875_vm1, %v1786_v5  ;;  %v3944_v36 = vld [vmem:[#allocation3 + $0x91] sm:$0xff]  ;;  %v1478_v13 = vsel %vm1477_vm15, %v10045_v34, %v1474_v63  ;;  %v14221_v55 = vld [vmem:[#allocation28_spill] sm:$0xff]  ;;  %v2039_v60 = vmul.f32 %v14222_v14, %v2006_v54  ;;  %v4683_v34 = vsel %vm875_vm1, %v10091_v35, 0.0  ;;  %v10132_v63 = vld [vmem:[#allocation3 + $0xfc] sm:$0xff] }
 0x2da   : > { %v1942_v7 = vmul.f32 %v14221_v55, %v1909_v30  ;;  %v10120_v41 = vpop.eup %7270  ;;  %v14223_v5 = vld [vmem:[#allocation77_spill] sm:$0xff]  ;;  %v3822_v8 = vadd.f32 %v3790_v12, %v10063_v25  ;;  %v1609_v27 = vmul.f32 %v1478_v13, %v14225_v47  ;;  %14226 = vst [vmem:[#allocation107_spill] sm:$0xff] %v10132_v63  ;;  %v3977_v54 = vmul.f32 %v8833_v49, %v3944_v36  ;;  %v1177_v13 = vpop.xlane.xlu1 %1176 }
 0x2db   : > { %v3814_v46 = vadd.f32 %v3782_v32, %v3717_v53  ;;  %v10124_v33 = vadd.f32 %v14223_v5, %v10059_v23  ;;  %v3338_v32 = vadd.f32 %v3306_v56, %v3241_v21  ;;  %v4138_v53 = vld [vmem:[#allocation3 + $0x93] sm:$0xff]  ;;  %v1480_v23 = vmul.f32 %v10120_v41, %v10083_v50  ;;  %v7273_v5 = vpop.eup %7272  ;;  %v2103_v21 = vld [vmem:[#allocation3 + $0x6a] sm:$0xff]  ;;  %v10141_v56 = vpop.permute.xlu2 %5463 }
 0x2dc   : > { %v3599_v25 = vmul.f32 %v14064_v11, %v10114_v10  ;;  %v1644_v47 = vmul.f32 %v10054_v38, %v1609_v27  ;;  %v4074_v12 = vmul.f32 %v9009_v52, %v4041_v22  ;;  %7274 = vrcp.f32 %v4347_v2  ;;  %14227 = vst [vmem:[#allocation52_spill] sm:$0xff] %v10141_v56  ;;  %4516 = vperm.xlu2 %7175, %v7273_v5  }
 0x2dd   : > { %v3912_v30 = vadd.f32 %v3880_v48, %v3814_v46  ;;  %4684 = vadd.xlane.f32.xlu1 %v4683_v34  ;;  %v1481_v36 = vmul.f32 %v10120_v41, %v1480_v23  ;;  %v2071_v46 = vadd.f32 %v2039_v60, %v1942_v7  ;;  %v3696_v35 = vmul.f32 %v8747_v17, %v10127_v51 }
 0x2de   : > { %v10148_v10 = vmul.f32 %v8750_v9, %v10132_v63  ;;  %v4171_v27 = vmul.f32 %v9024_v20, %v4138_v53  ;;  %v4268_v22 = vmul.f32 %v9732_v44, %v4235_v24  ;;  %v1227_v7 = vmul.f32 %v1177_v13, %v14188_v18 }
 0x2df   : > { %v4009_v48 = vadd.f32 %v3977_v54, %v3912_v30  ;;  %v1679_v30 = vadd.f32 %v10072_v26, %v1644_v47  ;;  %v2136_v60 = vmul.f32 %v14097_v4, %v2103_v21  ;;  %v1482_v58 = vmul.f32 0.5, %v1481_v36 }
 0x2e0   : > { %v3371_v2 = vld [vmem:[#allocation3 + $0xf0] sm:$0xff]  ;;  %v10152_v56 = vld [vmem:[#allocation3 + $0xf8] sm:$0xff]  ;;  %vm1486_vm2 = vweird.f32 %v10120_v41  ;;  %v10176_v59 = vadd.f32 1e-05, %v1227_v7  ;;  %v4396_v7 = vld [vmem:[#allocation2 + $0x20] sm:$0xff] }
 0x2e1   : > { %14228 = vst [vmem:[#allocation108_spill] sm:$0xff] %v10152_v56  ;;  %v3468_v34 = vld [vmem:[#allocation3 + $0xf1] sm:$0xff]  ;;  %v4106_v54 = vadd.f32 %v4074_v12, %v4009_v48  ;;  %v10157_v23 = vld [vmem:[#allocation3 + $0xf9] sm:$0xff]  ;;  %v3404_v51 = vmul.f32 %v14206_v42, %v3371_v2  ;;  %v3405_v24 = vmul.f32 %v14206_v42, %v10152_v56  ;;  %v3888_v53 = vmul.f32 %v14066_v37, %v3371_v2  ;;  %vm1487_vm3 = vmor %vm1485_vm0, %vm1486_vm2 }
 0x2e2   : > { %14229 = vst [vmem:[#allocation44_spill] sm:$0xff] %v10157_v23  ;;  %v3565_v5 = vld [vmem:[#allocation3 + $0xf2] sm:$0xff]  ;;  %v3501_v61 = vmul.f32 %v14060_v0, %v3468_v34  ;;  %v10166_v47 = vadd.f32 %v2136_v60, %v2071_v46  ;;  %v7275_v12 = vpop.eup %7274  ;;  %v3502_v21 = vmul.f32 %v14060_v0, %v10157_v23  ;;  %v3985_v42 = vmul.f32 %v8833_v49, %v3468_v34 }
 0x2e3   : > { %v3662_v63 = vld [vmem:[#allocation3 + $0xf3] sm:$0xff]  ;;  %v3598_v48 = vmul.f32 %v14064_v11, %v3565_v5  ;;  %v3436_v2 = vadd.f32 %v3404_v51, %v3338_v32  ;;  %v3437_v36 = vadd.f32 %v3405_v24, %v10041_v45  ;;  %v3920_v56 = vadd.f32 %v3888_v53, %v3822_v8  ;;  %v1180_v34 = vpop.xlane.xlu2 %1179 }
 0x2e4   : > { %v3695_v13 = vmul.f32 %v8747_v17, %v3662_v63  ;;  %v1716_v19 = vmul.f32 %v14216_v15, %v1679_v30  ;;  %v4082_v29 = vmul.f32 %v9009_v52, %v3565_v5  ;;  %v4203_v46 = vadd.f32 %v4171_v27, %v4106_v54  ;;  %v3759_v4 = vld [vmem:[#allocation3 + $0xf4] sm:$0xff]  ;;  %4521 = vperm.xlu2 %7175, %v7275_v12  }
 0x2e5   : > { %v1483_v60 = vsub.f32 1.5, %v1482_v58  ;;  %v3533_v11 = vadd.f32 %v3501_v61, %v3436_v2  ;;  %v3534_v0 = vadd.f32 %v3502_v21, %v3437_v36  ;;  %v4017_v17 = vadd.f32 %v3985_v42, %v3920_v56  ;;  %v10182_v32 = vld [vmem:[#allocation3 + $0x110] sm:$0xff]  ;;  %v14230_v61 = vld [vmem:[#allocation14_spill] sm:$0xff]  ;;  %v14234_v2 = vld [vmem:[#allocation112_spill] sm:$0xff] }
 0x2e6   : > { %v1753_v23 = vadd.f32 %v14217_v62, %v1716_v19  ;;  %v4179_v51 = vmul.f32 %v9024_v20, %v3662_v63  ;;  %v4300_v45 = vadd.f32 %v4268_v22, %v4203_v46  ;;  %7276 = vrsqrt.f32 %v10176_v59  ;;  %v2200_v22 = vld [vmem:[#allocation3 + $0x6b] sm:$0xff] }
 0x2e7   : > { %v1484_v8 = vmul.f32 %v10120_v41, %v1483_v60  ;;  %v3630_v27 = vadd.f32 %v3598_v48, %v3533_v11  ;;  %v3631_v30 = vadd.f32 %v3599_v25, %v3534_v0  ;;  %v4114_v54 = vadd.f32 %v4082_v29, %v4017_v17  ;;  %v14231_v17 = vld [vmem:[#allocation70_spill] sm:$0xff]  ;;  %v2297_v60 = vld [vmem:[#allocation3 + $0x6c] sm:$0xff] }
 0x2e8   : > { %v1790_v58 = vmul.f32 %v14219_v6, %v1753_v23  ;;  %v3792_v19 = vmul.f32 %v8750_v9, %v3759_v4  ;;  %v4588_v42 = vmul.f32 %v14230_v61, %v4300_v45  ;;  %v1228_v56 = vmul.f32 %v1180_v34, %v14188_v18  ;;  %v10197_v23 = vld [vmem:[#allocation3 + $0x111] sm:$0xff]  ;;  %v2395_v34 = vld [vmem:[#allocation3 + $0x80] sm:$0xff] }
 0x2e9   : > { %v1488_v63 = vsel %vm1487_vm3, %v10120_v41, %v1484_v8  ;;  %v3727_v11 = vadd.f32 %v3695_v13, %v3630_v27  ;;  %v3728_v0 = vadd.f32 %v3696_v35, %v3631_v30  ;;  %v4211_v29 = vadd.f32 %v4179_v51, %v4114_v54  ;;  %v10204_v53 = vld [vmem:[#allocation3 + $0x112] sm:$0xff] }
 0x2ea   : > { %1884 = vst.msk [vmem:[#allocation3 + $0x122] sm:$0xff] %vm875_vm1, %v1790_v58  ;;  %v1610_v25 = vmul.f32 %v1488_v63, %v14231_v17  ;;  %v3891_v50 = vmul.f32 %v14066_v37, %v10182_v32  ;;  %v4276_v5 = vmul.f32 %v9732_v44, %v3759_v4  ;;  %v10200_v24 = vadd.f32 %v4588_v42, %v4396_v7  ;;  %v10226_v30 = vld [vmem:[#allocation3 + $0x113] sm:$0xff] }
 0x2eb   : > { %v10202_v41 = vadd.f32 1e-05, %v1228_v56  ;;  %v10206_v12 = vadd.f32 %v3792_v19, %v3727_v11  ;;  %v3825_v35 = vadd.f32 %v10148_v10, %v3728_v0  ;;  %v2233_v48 = vmul.f32 %v8393_v57, %v2200_v22  ;;  %v1192_v8 = vpop.xlane.xlu2 %1191  ;;  %v4399_v61 = vld [vmem:[#allocation2 + $0x38] sm:$0xff]  ;;  %v14236_v22 = vld [vmem:[#allocation27_spill] sm:$0xff] }
 0x2ec   : > { %14232 = vst [vmem:[#allocation91_spill] sm:$0xff] %v10200_v24  ;;  %v1645_v21 = vmul.f32 %v10054_v38, %v1610_v25  ;;  %v10211_v13 = vpop.eup %7276  ;;  %v4591_v36 = vmul.f32 %v14234_v2, %v10124_v33  ;;  %v4662_v4 = vsel %vm875_vm1, %v10200_v24, 0.0  ;;  %v4308_v46 = vadd.f32 %v4276_v5, %v4211_v29  ;;  %v10231_v42 = vld [vmem:[#allocation3 + $0x114] sm:$0xff] }
 0x2ed   : > { %14233 = vst [vmem:[#allocation75_spill] sm:$0xff] %v10206_v12  ;;  %7278 = vrsqrt.f32 %v10202_v41  ;;  %v3988_v10 = vmul.f32 %v8833_v49, %v10197_v23  ;;  %4663 = vadd.xlane.f32.xlu0 %v4662_v4  ;;  %v3923_v45 = vadd.f32 %v3891_v50, %v3825_v35  ;;  %v2265_v58 = vadd.f32 %v2233_v48, %v10166_v47  ;;  %v14237_v35 = vld [vmem:[#allocation17_spill] sm:$0xff]  ;;  %v4404_v4 = vld [vmem:[#allocation2 + $0x60] sm:$0xff] }
 0x2ee   : > { %v1680_v51 = vadd.f32 %v10072_v26, %v1645_v21  ;;  %v4304_v33 = vadd.f32 %v10103_v28, %v10105_v31  ;;  %v4085_v27 = vmul.f32 %v9009_v52, %v10204_v53  ;;  %v1490_v54 = vmul.f32 %v10211_v13, %v10176_v59 }
 0x2ef   : > { %v1232_v19 = vmul.f32 %v1192_v8, %v14188_v18  ;;  %v4020_v56 = vadd.f32 %v3988_v10, %v3923_v45  ;;  %v2330_v47 = vmul.f32 %v13983_v39, %v2297_v60  ;;  %v2428_v28 = vmul.f32 %v8499_v43, %v2395_v34 }
 0x2f0   : > { %v1717_v63 = vmul.f32 %v14216_v15, %v1680_v51  ;;  %v10236_v31 = vadd.f32 %v4591_v36, %v4399_v61  ;;  %v4596_v7 = vmul.f32 %v14236_v22, %v4308_v46  ;;  %v1491_v11 = vmul.f32 %v10211_v13, %v1490_v54  ;;  %v2492_v36 = vld [vmem:[#allocation3 + $0x81] sm:$0xff] }
 0x2f1   : > { %v10240_v0 = vadd.f32 1e-05, %v1232_v19  ;;  %v4182_v29 = vmul.f32 %v9024_v20, %v10226_v30  ;;  %v4117_v25 = vadd.f32 %v4085_v27, %v4020_v56  ;;  %v2362_v50 = vadd.f32 %v2330_v47, %v2265_v58  ;;  %v2589_v61 = vld [vmem:[#allocation3 + $0x82] sm:$0xff] }
 0x2f2   : > { %14235 = vst [vmem:[#allocation24_spill] sm:$0xff] %v10236_v31  ;;  %v1754_v17 = vadd.f32 %v14217_v62, %v1717_v63  ;;  %v4592_v21 = vmul.f32 %v14237_v35, %v4304_v33  ;;  %v4279_v48 = vmul.f32 %v9732_v44, %v10231_v42  ;;  %v1492_v2 = vmul.f32 0.5, %v1491_v11  ;;  %v4400_v63 = vld [vmem:[#allocation2 + $0x40] sm:$0xff] }
 0x2f3   : > { %v7279_v5 = vpop.eup %7278  ;;  %7280 = vrsqrt.f32 %v10240_v0  ;;  %v4214_v60 = vadd.f32 %v4182_v29, %v4117_v25  ;;  %v2460_v10 = vadd.f32 %v2428_v28, %v2362_v50  ;;  %v10251_v51 = vadd.f32 %v4596_v7, %v4404_v4  ;;  %v1195_v33 = vpop.xlane.xlu2 %1194 }
 0x2f4   : > { %v1791_v46 = vmul.f32 %v14219_v6, %v1754_v17  ;;  %v1500_v34 = vmul.f32 %v7279_v5, %v10202_v41  ;;  %v4671_v45 = vsel %vm875_vm1, %v10236_v31, 0.0  ;;  %v1493_v8 = vsub.f32 1.5, %v1492_v2  ;;  %v14241_v17 = vld [vmem:[#allocation20_spill] sm:$0xff]  ;;  %v14253_v31 = vld [vmem:[#allocation59_spill] sm:$0xff] }
 0x2f5   : > { %14238 = vst [vmem:[#allocation19_spill] sm:$0xff] %v10251_v51  ;;  %vm1496_vm4 = vweird.f32 %v10211_v13  ;;  %4672 = vadd.xlane.f32.xlu0 %v4671_v45  ;;  %v4311_v44 = vadd.f32 %v4279_v48, %v4214_v60  ;;  %v2525_v27 = vmul.f32 %v8508_v16, %v2492_v36  ;;  %vm1495_vm5 = vweird.f32 %v10176_v59  ;;  %v10280_v2 = vld [vmem:[#allocation3 + $0xc8] sm:$0xff] }
 0x2f6   : > { %1885 = vst.msk [vmem:[#allocation3 + $0x12a] sm:$0xff] %vm875_vm1, %v1791_v46  ;;  %v1501_v58 = vmul.f32 %v7279_v5, %v1500_v34  ;;  %v1494_v54 = vmul.f32 %v10211_v13, %v1493_v8  ;;  %v1233_v19 = vmul.f32 %v1195_v33, %v14188_v18  ;;  %vm1497_vm6 = vmor %vm1495_vm5, %vm1496_vm4  ;;  %v10266_v7 = vadd.f32 %v4592_v21, %v4400_v63  ;;  %v2686_v21 = vld [vmem:[#allocation3 + $0x83] sm:$0xff] }
 0x2f7   : > { %v10262_v56 = vmul.f32 %v10093_v3, %v4311_v44  ;;  %v2557_v28 = vadd.f32 %v2525_v27, %v2460_v10  ;;  %v4686_v59 = vsel %vm875_vm1, %v10251_v51, 0.0  ;;  %vm1506_vm7 = vweird.f32 %v7279_v5  ;;  %v10282_v36 = vld [vmem:[#allocation3 + $0xc9] sm:$0xff] }
 0x2f8   : > { %v1502_v47 = vmul.f32 0.5, %v1501_v58  ;;  %14240 = vst [vmem:[#allocation111_spill] sm:$0xff] %v10266_v7  ;;  %v1498_v11 = vsel %vm1497_vm6, %v10211_v13, %v1494_v54  ;;  %v10269_v29 = vadd.f32 1e-05, %v1233_v19  ;;  %4687 = vadd.xlane.f32.xlu1 %v4686_v59  ;;  %v2622_v3 = vmul.f32 %v14110_v1, %v2589_v61  ;;  %v10288_v45 = vld [vmem:[#allocation3 + $0xca] sm:$0xff] }
 0x2f9   : > { %14239 = vst [vmem:[#allocation46_spill] sm:$0xff] %v10262_v56  ;;  %v10264_v22 = vpop.eup %7280  ;;  %v1611_v25 = vmul.f32 %v1498_v11, %v14241_v17  ;;  %vm1505_vm8 = vweird.f32 %v10202_v41  ;;  %v4674_v46 = vsel %vm875_vm1, %v10266_v7, 0.0  ;;  %v2719_v8 = vmul.f32 %v8559_v40, %v2686_v21  ;;  %v14242_v41 = vld [vmem:[#allocation42_spill] sm:$0xff]  ;;  %v2783_v54 = vld [vmem:[#allocation3 + $0x84] sm:$0xff]  ;;  %v14254_v51 = vld [vmem:[#allocation25_spill] sm:$0xff] }
 0x2fa   : > { %v1503_v50 = vsub.f32 1.5, %v1502_v47  ;;  %v1540_v35 = vmul.f32 %v10264_v22, %v10240_v0  ;;  %7282 = vrsqrt.f32 %v10269_v29  ;;  %v2654_v4 = vadd.f32 %v2622_v3, %v2557_v28  ;;  %vm1507_vm9 = vmor %vm1505_vm8, %vm1506_vm7  ;;  %v10298_v61 = vld [vmem:[#allocation3 + $0xcb] sm:$0xff]  ;;  %v10301_v11 = vld [vmem:[#allocation3 + $0xe0] sm:$0xff] }
 0x2fb   : > { %v1646_v13 = vmul.f32 %v10054_v38, %v1611_v25  ;;  %v1950_v33 = vmul.f32 %v14221_v55, %v10280_v2  ;;  %v2047_v27 = vmul.f32 %v14222_v14, %v10282_v36  ;;  %vm1546_vm10 = vweird.f32 %v10264_v22  ;;  %v14243_v17 = vld [vmem:[#allocation30_spill] sm:$0xff]  ;;  %v10344_v7 = vld [vmem:[#allocation3 + $0xe4] sm:$0xff] }
 0x2fc   : > { %v1504_v48 = vmul.f32 %v7279_v5, %v1503_v50  ;;  %v1541_v60 = vmul.f32 %v10264_v22, %v1540_v35  ;;  %v2144_v25 = vmul.f32 %v14243_v17, %v10288_v45  ;;  %vm1545_vm11 = vweird.f32 %v10240_v0  ;;  %v10308_v35 = vld [vmem:[#allocation3 + $0xcc] sm:$0xff]  ;;  %v14244_v21 = vld [vmem:[#allocation50_spill] sm:$0xff]  ;;  %14251 = vst [vmem:[#allocation88_spill] sm:$0xff] %v10344_v7 }
 0x2fd   : > { %4675 = vadd.xlane.f32.xlu0 %v4674_v46  ;;  %v1681_v34 = vadd.f32 %v10072_v26, %v1646_v13  ;;  %v2079_v59 = vadd.f32 %v2047_v27, %v1950_v33  ;;  %v2816_v13 = vmul.f32 %v14244_v21, %v2783_v54  ;;  %vm1547_vm12 = vmor %vm1545_vm11, %vm1546_vm10  ;;  %v10322_v33 = vld [vmem:[#allocation3 + $0xe1] sm:$0xff]  ;;  %v2338_v54 = vmul.f32 %v13983_v39, %v10308_v35 }
 0x2fe   : > { %v1508_v10 = vsel %vm1507_vm9, %v7279_v5, %v1504_v48  ;;  %v1542_v58 = vmul.f32 0.5, %v1541_v60  ;;  %v2751_v5 = vadd.f32 %v2719_v8, %v2654_v4  ;;  %v2241_v60 = vmul.f32 %v8393_v57, %v10298_v61  ;;  %14245 = vst [vmem:[#allocation94_spill] sm:$0xff] %v10322_v33 }
 0x2ff   : > { %v1612_v44 = vmul.f32 %v1508_v10, %v14242_v41  ;;  %v1718_v19 = vmul.f32 %v14216_v15, %v1681_v34  ;;  %v2176_v46 = vadd.f32 %v2144_v25, %v2079_v59  ;;  %v2436_v10 = vmul.f32 %v8499_v43, %v10301_v11  ;;  %v2880_v41 = vld [vmem:[#allocation3 + $0x98] sm:$0xff] }
 0x300   : > { %v7283_v63 = vpop.eup %7282  ;;  %v1543_v28 = vsub.f32 1.5, %v1542_v58  ;;  %v2848_v8 = vadd.f32 %v2816_v13, %v2751_v5  ;;  %v2977_v59 = vld [vmem:[#allocation3 + $0x99] sm:$0xff]  ;;  %vm1555_vm14 = vweird.f32 %v10269_v29 }
 0x301   : > { %v1647_v47 = vmul.f32 %v10054_v38, %v1612_v44  ;;  %v1755_v50 = vadd.f32 %v14217_v62, %v1718_v19  ;;  %v1550_v3 = vmul.f32 %v7283_v63, %v10269_v29  ;;  %v2273_v27 = vadd.f32 %v2241_v60, %v2176_v46  ;;  %v14246_v19 = vld [vmem:[#allocation72_spill] sm:$0xff]  ;;  %v3074_v46 = vld [vmem:[#allocation3 + $0x9a] sm:$0xff] }
 0x302   : > { %v1544_v4 = vmul.f32 %v10264_v22, %v1543_v28  ;;  %vm1556_vm13 = vweird.f32 %v7283_v63 }
 0x303   : > { %v1682_v48 = vadd.f32 %v10072_v26, %v1647_v47  ;;  %v1792_v34 = vmul.f32 %v14219_v6, %v1755_v50  ;;  %v1551_v0 = vmul.f32 %v7283_v63, %v1550_v3  ;;  %v2370_v5 = vadd.f32 %v2338_v54, %v2273_v27  ;;  %v14247_v50 = vld [vmem:[#allocation51_spill] sm:$0xff]  ;;  %vm1557_vm15 = vmor %vm1555_vm14, %vm1556_vm13 }
 0x304   : > { %v1548_v58 = vsel %vm1547_vm12, %v10264_v22, %v1544_v4  ;;  %v2913_v3 = vmul.f32 %v14247_v50, %v2880_v41  ;;  %v10333_v4 = vld [vmem:[#allocation3 + $0xe2] sm:$0xff] }
 0x305   : > { %v1719_v44 = vmul.f32 %v14216_v15, %v1682_v48  ;;  %1886 = vst.msk [vmem:[#allocation3 + $0x13a] sm:$0xff] %vm875_vm1, %v1792_v34  ;;  %v1616_v47 = vmul.f32 %v1548_v58, %v14246_v19  ;;  %v1552_v28 = vmul.f32 0.5, %v1551_v0  ;;  %v2533_v48 = vmul.f32 %v8508_v16, %v10322_v33  ;;  %v14249_v58 = vld [vmem:[#allocation55_spill] sm:$0xff] }
 0x306   : > { %14248 = vst [vmem:[#allocation95_spill] sm:$0xff] %v10333_v4  ;;  %v2468_v34 = vadd.f32 %v2436_v10, %v2370_v5  ;;  %v2945_v0 = vadd.f32 %v2913_v3, %v2848_v8  ;;  %v3010_v19 = vmul.f32 %v14249_v58, %v2977_v59  ;;  %v3268_v3 = vld [vmem:[#allocation3 + $0x9c] sm:$0xff] }
 0x307   : > { %v1756_v25 = vadd.f32 %v14217_v62, %v1719_v44  ;;  %v1651_v13 = vmul.f32 %v10054_v38, %v1616_v47  ;;  %v1553_v22 = vsub.f32 1.5, %v1552_v28  ;;  %v3171_v44 = vld [vmem:[#allocation3 + $0x9b] sm:$0xff]  ;;  %v10339_v47 = vld [vmem:[#allocation3 + $0xe3] sm:$0xff]  ;;  %v2630_v28 = vmul.f32 %v14110_v1, %v10333_v4 }
 0x308   : > { %14250 = vst [vmem:[#allocation85_spill] sm:$0xff] %v10339_v47  ;;  %v2565_v10 = vadd.f32 %v2533_v48, %v2468_v34  ;;  %v3042_v8 = vadd.f32 %v3010_v19, %v2945_v0  ;;  %v3204_v29 = vmul.f32 %v14253_v31, %v3171_v44  ;;  %v2824_v48 = vmul.f32 %v14244_v21, %v10344_v7  ;;  %v14255_v34 = vld [vmem:[#allocation60_spill] sm:$0xff] }
 0x309   : > { %v1793_v60 = vmul.f32 %v14219_v6, %v1756_v25  ;;  %v1686_v27 = vadd.f32 %v10072_v26, %v1651_v13  ;;  %v1554_v54 = vmul.f32 %v7283_v63, %v1553_v22  ;;  %v14252_v25 = vld [vmem:[#allocation56_spill] sm:$0xff]  ;;  %v3301_v0 = vmul.f32 %v14255_v34, %v3268_v3 }
 0x30a   : > { %v3107_v5 = vmul.f32 %v14252_v25, %v3074_v46  ;;  %v2662_v56 = vadd.f32 %v2630_v28, %v2565_v10  ;;  %v2043_v28 = vmul.f32 %v2977_v59, %v14222_v14 }
 0x30b   : > { %1887 = vst.msk [vmem:[#allocation3 + $0x142] sm:$0xff] %vm875_vm1, %v1793_v60  ;;  %v1723_v13 = vmul.f32 %v14216_v15, %v1686_v27  ;;  %v1558_v22 = vsel %vm1557_vm15, %v7283_v63, %v1554_v54  ;;  %v2727_v60 = vmul.f32 %v8559_v40, %v10339_v47  ;;  %v14256_v63 = vld [vmem:[#allocation108_spill] sm:$0xff] }
 0x30c   : > { %v1617_v24 = vmul.f32 %v1558_v22, %v14254_v51  ;;  %v3139_v12 = vadd.f32 %v3107_v5, %v3042_v8  ;;  %v2921_v54 = vmul.f32 %v14256_v63, %v14247_v50  ;;  %v1946_v22 = vmul.f32 %v2880_v41, %v14221_v55  ;;  %v14257_v5 = vld [vmem:[#allocation37_spill] sm:$0xff]  ;;  %v14261_v63 = vld [vmem:[#allocation74_spill] sm:$0xff] }
 0x30d   : > { %v1760_v4 = vadd.f32 %v14217_v62, %v1723_v13  ;;  %v2759_v27 = vadd.f32 %v2727_v60, %v2662_v56  ;;  %v14258_v13 = vld [vmem:[#allocation61_spill] sm:$0xff]  ;;  %v14260_v56 = vld [vmem:[#allocation64_spill] sm:$0xff]  ;;  %v2140_v41 = vmul.f32 %v3074_v46, %v14243_v17  ;;  %v14266_v46 = vld [vmem:[#allocation87_spill] sm:$0xff] }
 0x30e   : > { %v1652_v19 = vmul.f32 %v10054_v38, %v1617_v24  ;;  %v3236_v33 = vadd.f32 %v3204_v29, %v3139_v12  ;;  %v3399_v7 = vmul.f32 %v14258_v13, %v14257_v5  ;;  %v14259_v24 = vld [vmem:[#allocation104_spill] sm:$0xff]  ;;  %v14262_v12 = vld [vmem:[#allocation65_spill] sm:$0xff] }
 0x30f   : > { %v1797_v51 = vmul.f32 %v14219_v6, %v1760_v4  ;;  %v2856_v8 = vadd.f32 %v2824_v48, %v2759_v27  ;;  %v3496_v60 = vmul.f32 %v14260_v56, %v14259_v24  ;;  %v3593_v29 = vmul.f32 %v14262_v12, %v14261_v63  ;;  %v14263_v48 = vld [vmem:[#allocation44_spill] sm:$0xff]  ;;  %v1198_v27 = vpop.xlane.xlu2 %1197  ;;  %v14267_v63 = vld [vmem:[#allocation110_spill] sm:$0xff] }
 0x310   : > { %v1687_v10 = vadd.f32 %v10072_v26, %v1652_v19  ;;  %v3333_v47 = vadd.f32 %v3301_v0, %v3236_v33  ;;  %v2075_v4 = vadd.f32 %v2043_v28, %v1946_v22  ;;  %v3018_v19 = vmul.f32 %v14263_v48, %v14249_v58  ;;  %v14264_v0 = vld [vmem:[#allocation76_spill] sm:$0xff] }
 0x311   : > { %1891 = vst.msk [vmem:[#allocation3 + $0x172] sm:$0xff] %vm875_vm1, %v1797_v51  ;;  %v2953_v14 = vadd.f32 %v2921_v54, %v2856_v8  ;;  %v1234_v33 = vmul.f32 %v1198_v27, %v14188_v18  ;;  %v14265_v51 = vld [vmem:[#allocation67_spill] sm:$0xff]  ;;  %v2237_v26 = vmul.f32 %v3171_v44, %v8393_v57  ;;  %v2399_v8 = vld [vmem:[#allocation3 + $0xb0] sm:$0xff]  ;;  %v3212_v48 = vmul.f32 %v14267_v63, %v14253_v31 }
 0x312   : > { %v1724_v59 = vmul.f32 %v14216_v15, %v1687_v10  ;;  %v3431_v5 = vadd.f32 %v3399_v7, %v3333_v47  ;;  %v3690_v55 = vmul.f32 %v14265_v51, %v14264_v0  ;;  %v2172_v24 = vadd.f32 %v2140_v41, %v2075_v4  ;;  %v4652_v47 = vpop.xlane.xlu0 %4651 }
 0x313   : > { %v3050_v28 = vadd.f32 %v3018_v19, %v2953_v14  ;;  %v3115_v10 = vmul.f32 %v14266_v46, %v14252_v25  ;;  %v10383_v7 = vadd.f32 1e-05, %v1234_v33  ;;  %v2334_v0 = vmul.f32 %v3268_v3, %v13983_v39  ;;  %v14269_v3 = vld [vmem:[#allocation107_spill] sm:$0xff] }
 0x314   : > { %v1761_v22 = vadd.f32 %v14217_v62, %v1724_v59  ;;  %v3528_v54 = vadd.f32 %v3496_v60, %v3431_v5  ;;  %v2269_v27 = vadd.f32 %v2237_v26, %v2172_v24  ;;  %v4746_v41 = vmul.f32 %v4652_v47, %v14188_v18  ;;  %v2496_v59 = vld [vmem:[#allocation3 + $0xb1] sm:$0xff] }
 0x315   : > { %v3147_v44 = vadd.f32 %v3115_v10, %v3050_v28  ;;  %7284 = vrsqrt.f32 %v10383_v7  ;;  %v14268_v60 = vld [vmem:[#allocation106_spill] sm:$0xff]  ;;  %v2432_v5 = vmul.f32 %v8499_v43, %v2399_v8  ;;  %v3309_v24 = vmul.f32 %v14269_v3, %v14255_v34 }
 0x316   : > { %v1798_v4 = vmul.f32 %v14219_v6, %v1761_v22  ;;  %v3625_v14 = vadd.f32 %v3593_v29, %v3528_v54  ;;  %v3787_v19 = vmul.f32 %v8750_v9, %v14268_v60  ;;  %v2366_v33 = vadd.f32 %v2334_v0, %v2269_v27  ;;  %v14270_v22 = vld [vmem:[#allocation102_spill] sm:$0xff] }
 0x317   : > { %v3244_v26 = vadd.f32 %v3212_v48, %v3147_v44  ;;  %v10396_v28 = vsub.f32 %v14270_v22, %v4746_v41  ;;  %v2593_v29 = vld [vmem:[#allocation3 + $0xb2] sm:$0xff]  ;;  %v3407_v10 = vmul.f32 %v10182_v32, %v14258_v13  ;;  %v2529_v54 = vmul.f32 %v8508_v16, %v2496_v59  ;;  %v10401_v8 = vpop.xlane.xlu2 %4660  ;;  %v10509_v22 = vld [vmem:[#allocation3 + $0xdc] sm:$0xff] }
 0x318   : > { %1892 = vst.msk [vmem:[#allocation3 + $0x182] sm:$0xff] %vm875_vm1, %v1798_v4  ;;  %v3722_v46 = vadd.f32 %v3690_v55, %v3625_v14  ;;  %v2464_v63 = vadd.f32 %v2432_v5, %v2366_v33  ;;  %v3885_v0 = vmul.f32 %v14066_v37, %v10280_v2  ;;  %v2690_v4 = vld [vmem:[#allocation3 + $0xb3] sm:$0xff]  ;;  %v3504_v55 = vmul.f32 %v10197_v23, %v14260_v56 }
 0x319   : > { %14271 = vst [vmem:[#allocation114_spill] sm:$0xff] %v10396_v28  ;;  %v3341_v47 = vadd.f32 %v3309_v24, %v3244_v26  ;;  %v4810_v48 = vmul.f32 %v10396_v28, %v10396_v28  ;;  %v2626_v44 = vmul.f32 %v14110_v1, %v2593_v29  ;;  %v3982_v60 = vmul.f32 %v8833_v49, %v10282_v36  ;;  %v2787_v26 = vld [vmem:[#allocation3 + $0xb4] sm:$0xff] }
 0x31a   : > { %14272 = vst [vmem:[#allocation96_spill] sm:$0xff] %v10401_v8  ;;  %v3819_v27 = vadd.f32 %v3787_v19, %v3722_v46  ;;  %v2561_v32 = vadd.f32 %v2529_v54, %v2464_v63  ;;  %v3601_v19 = vmul.f32 %v10204_v53, %v14262_v12  ;;  %v2723_v33 = vmul.f32 %v8559_v40, %v2690_v4  ;;  %v10519_v28 = vld [vmem:[#allocation3 + $0xfb] sm:$0xff] }
 0x31b   : > { %v3439_v41 = vadd.f32 %v3407_v10, %v3341_v47  ;;  %v4842_v14 = vsel %vm875_vm1, %v4810_v48, 0.0  ;;  %v7285_v5 = vpop.eup %7284  ;;  %v4079_v29 = vmul.f32 %v9009_v52, %v10288_v45  ;;  %v3698_v10 = vmul.f32 %v10226_v30, %v14265_v51  ;;  %v3860_v47 = vld [vmem:[#allocation3 + $0x128] sm:$0xff] }
 0x31c   : > { %v3917_v59 = vadd.f32 %v3885_v0, %v3819_v27  ;;  %4843 = vadd.xlane.f32.xlu1 %v4842_v14  ;;  %v2658_v3 = vadd.f32 %v2626_v44, %v2561_v32  ;;  %v1560_v24 = vmul.f32 %v7285_v5, %v10383_v7  ;;  %v4176_v54 = vmul.f32 %v9024_v20, %v10298_v61  ;;  %v10431_v44 = vld [vmem:[%s13540_s12 + $0x18] ss:$0 sm:$0xff]  ;;  %v3957_v14 = vld [vmem:[#allocation3 + $0x129] sm:$0xff] }
 0x31d   : > { %v3536_v23 = vadd.f32 %v3504_v55, %v3439_v41  ;;  %v2820_v0 = vmul.f32 %v14244_v21, %v2787_v26  ;;  %v3795_v4 = vmul.f32 %v10231_v42, %v8750_v9  ;;  %v4273_v30 = vmul.f32 %v10431_v44, %v10308_v35 }
 0x31e   : > { %v4014_v46 = vadd.f32 %v3982_v60, %v3917_v59  ;;  %v2755_v63 = vadd.f32 %v2723_v33, %v2658_v3  ;;  %v1561_v48 = vmul.f32 %v7285_v5, %v1560_v24  ;;  %v2917_v32 = vmul.f32 %v14247_v50, %v10280_v2  ;;  %v4054_v3 = vld [vmem:[#allocation3 + $0x12a] sm:$0xff] }
 0x31f   : > { %v3633_v53 = vadd.f32 %v3601_v19, %v3536_v23  ;;  %v3893_v42 = vmul.f32 %v14066_v37, %v3860_v47  ;;  %vm1566_vm0 = vweird.f32 %v7285_v5  ;;  %vm1565_vm2 = vweird.f32 %v10383_v7 }
 0x320   : > { %v4111_v27 = vadd.f32 %v4079_v29, %v4014_v46  ;;  %v10426_v55 = vpop.xlane.xlu0 %4654  ;;  %v1562_v59 = vmul.f32 0.5, %v1561_v48  ;;  %v2852_v19 = vadd.f32 %v2820_v0, %v2755_v63  ;;  %v3990_v46 = vmul.f32 %v8833_v49, %v3957_v14  ;;  %vm1567_vm3 = vmor %vm1565_vm2, %vm1566_vm0  ;;  %v4401_v48 = vld [vmem:[#allocation2 + $0x48] sm:$0xff]  ;;  %v14275_v14 = vld [vmem:[#allocation45_spill] sm:$0xff] }
 0x321   : > { %14273 = vst [vmem:[#allocation99_spill] sm:$0xff] %v10426_v55  ;;  %v3730_v41 = vadd.f32 %v3698_v10, %v3633_v53  ;;  %v3014_v2 = vmul.f32 %v14249_v58, %v10282_v36  ;;  %v4151_v10 = vld [vmem:[#allocation3 + $0x12b] sm:$0xff]  ;;  %v4087_v47 = vmul.f32 %v9009_v52, %v4054_v3  ;;  %v3403_v3 = vmul.f32 %v14258_v13, %v10301_v11  ;;  %v14289_v13 = vld [vmem:[#allocation75_spill] sm:$0xff] }
 0x322   : > { %v4208_v60 = vadd.f32 %v4176_v54, %v4111_v27  ;;  %v4472_v33 = vpop.permute.xlu2 %4471  ;;  %v1563_v23 = vsub.f32 1.5, %v1562_v59  ;;  %v2949_v63 = vadd.f32 %v2917_v32, %v2852_v19  ;;  %v3111_v27 = vmul.f32 %v14252_v25, %v10288_v45 }
 0x323   : > { %v3827_v26 = vadd.f32 %v3795_v4, %v3730_v41  ;;  %v4248_v4 = vld [vmem:[#allocation3 + $0x12c] sm:$0xff]  ;;  %v4184_v36 = vmul.f32 %v9024_v20, %v4151_v10  ;;  %v3208_v45 = vmul.f32 %v14253_v31, %v10298_v61  ;;  %v4180_v8 = vmul.f32 %v9024_v20, %v10519_v28 }
 0x324   : > { %v4305_v24 = vadd.f32 %v4273_v30, %v4208_v60  ;;  %v1564_v53 = vmul.f32 %v7285_v5, %v1563_v23  ;;  %v3046_v7 = vadd.f32 %v3014_v2, %v2949_v63  ;;  %v14278_v63 = vld [vmem:[#allocation22_spill] sm:$0xff] }
 0x325   : > { %v3925_v29 = vadd.f32 %v3893_v42, %v3827_v26 }
 0x326   : > { %v4593_v54 = vmul.f32 %v4472_v33, %v4305_v24  ;;  %v1568_v30 = vsel %vm1567_vm3, %v7285_v5, %v1564_v53  ;;  %v3143_v42 = vadd.f32 %v3111_v27, %v3046_v7  ;;  %v4281_v33 = vmul.f32 %v10431_v44, %v4248_v4  ;;  %v4402_v53 = vld [vmem:[#allocation2 + $0x50] sm:$0xff]  ;;  %v1916_v4 = vld [vmem:[#allocation3 + $0xc0] sm:$0xff] }
 0x327   : > { %v4022_v0 = vadd.f32 %v3990_v46, %v3925_v29  ;;  %v1618_v59 = vmul.f32 %v1568_v30, %v14275_v14  ;;  %v3305_v24 = vmul.f32 %v14255_v34, %v10308_v35  ;;  %v14277_v46 = vld [vmem:[#allocation81_spill] sm:$0xff]  ;;  %v2013_v30 = vld [vmem:[#allocation3 + $0xc1] sm:$0xff] }
 0x328   : > { %v10445_v41 = vadd.f32 %v4593_v54, %v4401_v48  ;;  %v10449_v60 = vpop.xlane.xlu0 %4657  ;;  %v3240_v23 = vadd.f32 %v3208_v45, %v3143_v42  ;;  %v4512_v54 = vpop.permute.xlu1 %4511  ;;  %v14281_v48 = vld [vmem:[#allocation94_spill] sm:$0xff]  ;;  %v14283_v45 = vld [vmem:[#allocation28_spill] sm:$0xff] }
 0x329   : > { %14276 = vst [vmem:[#allocation100_spill] sm:$0xff] %v10449_v60  ;;  %v4119_v32 = vadd.f32 %v4087_v47, %v4022_v0  ;;  %v1653_v5 = vmul.f32 %v10054_v38, %v1618_v59  ;;  %v10464_v47 = vadd.f32 %v14278_v63, %v4402_v53  ;;  %v3500_v27 = vmul.f32 %v14260_v56, %v14281_v48  ;;  %v10475_v42 = vld [vmem:[#allocation3 + $0xf8] sm:$0xff]  ;;  %v3857_v60 = vld [vmem:[#allocation3 + $0x108] sm:$0xff] }
 0x32a   : > { %14274 = vst [vmem:[#allocation93_spill] sm:$0xff] %v10445_v41  ;;  %v4677_v19 = vsel %vm875_vm1, %v10445_v41, 0.0  ;;  %v3337_v10 = vadd.f32 %v3305_v24, %v3240_v23  ;;  %v10489_v53 = vld [vmem:[#allocation3 + $0xda] sm:$0xff]  ;;  %v3954_v56 = vld [vmem:[#allocation3 + $0x109] sm:$0xff] }
 0x32b   : > { %4678 = vadd.xlane.f32.xlu0 %v4677_v19  ;;  %v4216_v26 = vadd.f32 %v4184_v36, %v4119_v32  ;;  %v1688_v2 = vadd.f32 %v14277_v46, %v1653_v5  ;;  %14279 = vst [vmem:[#allocation103_spill] sm:$0xff] %v10464_v47  ;;  %v14282_v36 = vld [vmem:[#allocation95_spill] sm:$0xff]  ;;  %v14284_v5 = vld [vmem:[#allocation29_spill] sm:$0xff] }
 0x32c   : > { %v3435_v0 = vadd.f32 %v3403_v3, %v3337_v10  ;;  %v3597_v14 = vmul.f32 %v14262_v12, %v14282_v36  ;;  %v14285_v3 = vld [vmem:[#allocation85_spill] sm:$0xff]  ;;  %v10487_v10 = vld [vmem:[#allocation3 + $0xd9] sm:$0xff] }
 0x32d   : > { %v4313_v29 = vadd.f32 %v4281_v33, %v4216_v26  ;;  %v1725_v61 = vmul.f32 %v14216_v15, %v1688_v2  ;;  %v1949_v33 = vmul.f32 %v14283_v45, %v1916_v4  ;;  %v2046_v26 = vmul.f32 %v14284_v5, %v2013_v30  ;;  %v10496_v63 = vld [vmem:[#allocation3 + $0xdb] sm:$0xff] }
 0x32e   : > { %v3532_v59 = vadd.f32 %v3500_v27, %v3435_v0  ;;  %v3694_v23 = vmul.f32 %v14265_v51, %v14285_v3  ;;  %v4680_v2 = vsel %vm875_vm1, %v10464_v47, 0.0  ;;  %v14286_v27 = vld [vmem:[#allocation88_spill] sm:$0xff]  ;;  %v3889_v30 = vmul.f32 %v14066_v37, %v10475_v42  ;;  %v10535_v51 = vld [vmem:[#allocation3 + $0xf2] sm:$0xff] }
 0x32f   : > { %v10466_v38 = vmul.f32 %v4512_v54, %v4313_v29  ;;  %v1762_v35 = vadd.f32 %v14217_v62, %v1725_v61  ;;  %v10485_v29 = vld [vmem:[#allocation3 + $0xd8] sm:$0xff]  ;;  %v2048_v61 = vmul.f32 %v14284_v5, %v10487_v10  ;;  %v3791_v0 = vmul.f32 %v8750_v9, %v14286_v27 }
 0x330   : > { %v1201_v7 = vpop.xlane.xlu0 %1200  ;;  %v3629_v24 = vadd.f32 %v3597_v14, %v3532_v59  ;;  %v1951_v54 = vmul.f32 %v14283_v45, %v10485_v29  ;;  %v2145_v14 = vmul.f32 %v14243_v17, %v10489_v53  ;;  %v2242_v59 = vmul.f32 %v8393_v57, %v10496_v63 }
 0x331   : > { %14280 = vst [vmem:[#allocation13_spill] sm:$0xff] %v10466_v38  ;;  %v1235_v32 = vmul.f32 %v1201_v7, %v14188_v18  ;;  %v1799_v19 = vmul.f32 %v14219_v6, %v1762_v35  ;;  %v10503_v35 = vld [vmem:[#allocation3 + $0xf9] sm:$0xff]  ;;  %v10513_v38 = vld [vmem:[#allocation3 + $0xf0] sm:$0xff] }
 0x332   : > { %v3726_v4 = vadd.f32 %v3694_v23, %v3629_v24  ;;  %v2080_v7 = vadd.f32 %v2048_v61, %v1951_v54  ;;  %v2078_v23 = vadd.f32 %v2046_v26, %v1949_v33  ;;  %v10511_v24 = vld [vmem:[#allocation3 + $0xfa] sm:$0xff]  ;;  %14287 = vst [vmem:[#allocation33_spill] sm:$0xff] %v10513_v38  ;;  %v3986_v54 = vmul.f32 %v8833_v49, %v10503_v35 }
 0x333   : > { %v10481_v46 = vadd.f32 1e-05, %v1235_v32  ;;  %1893 = vst.msk [vmem:[#allocation3 + $0x18a] sm:$0xff] %vm875_vm1, %v1799_v19  ;;  %4681 = vadd.xlane.f32.xlu0 %v4680_v2  ;;  %v2110_v32 = vld [vmem:[#allocation3 + $0xc2] sm:$0xff]  ;;  %v2339_v33 = vmul.f32 %v13983_v39, %v10509_v22  ;;  %v2437_v26 = vmul.f32 %v8499_v43, %v10513_v38 }
 0x334   : > { %v2207_v19 = vld [vmem:[#allocation3 + $0xc3] sm:$0xff]  ;;  %v3823_v2 = vadd.f32 %v3791_v0, %v3726_v4  ;;  %v2177_v55 = vadd.f32 %v2145_v14, %v2080_v7  ;;  %v2143_v61 = vmul.f32 %v14243_v17, %v2110_v32  ;;  %v10527_v14 = vld [vmem:[#allocation3 + $0xf1] sm:$0xff] }
 0x335   : > { %7286 = vrsqrt.f32 %v10481_v46  ;;  %v2240_v47 = vmul.f32 %v8393_v57, %v2207_v19  ;;  %14288 = vst [vmem:[#allocation105_spill] sm:$0xff] %v10527_v14  ;;  %vm1575_vm5 = vweird.f32 %v10481_v46 }
 0x336   : > { %v3921_v41 = vadd.f32 %v3889_v30, %v3823_v2  ;;  %v2274_v0 = vadd.f32 %v2242_v59, %v2177_v55  ;;  %v4083_v30 = vmul.f32 %v9009_v52, %v10511_v24  ;;  %v2175_v32 = vadd.f32 %v2143_v61, %v2078_v23  ;;  %v10529_v2 = vld [vmem:[#allocation3 + $0xfc] sm:$0xff]  ;;  %v2304_v55 = vld [vmem:[#allocation3 + $0xc4] sm:$0xff]  ;;  %v10539_v61 = vld [vmem:[#allocation3 + $0xf3] sm:$0xff] }
 0x337   : > { %v3890_v59 = vmul.f32 %v14066_v37, %v3857_v60  ;;  %v2534_v23 = vmul.f32 %v8508_v16, %v10527_v14  ;;  %v4277_v60 = vmul.f32 %v10431_v44, %v10529_v2  ;;  %v2337_v37 = vmul.f32 %v13983_v39, %v2304_v55 }
 0x338   : > { %v4018_v7 = vadd.f32 %v3986_v54, %v3921_v41  ;;  %v2371_v9 = vadd.f32 %v2339_v33, %v2274_v0  ;;  %v2272_v12 = vadd.f32 %v2240_v47, %v2175_v32  ;;  %v2631_v47 = vmul.f32 %v14110_v1, %v10535_v51 }
 0x339   : > { %v3922_v0 = vadd.f32 %v3890_v59, %v14289_v13  ;;  %v2728_v32 = vmul.f32 %v8559_v40, %v10539_v61  ;;  %v4051_v13 = vld [vmem:[#allocation3 + $0x10a] sm:$0xff] }
 0x33a   : > { %v4115_v38 = vadd.f32 %v4083_v30, %v4018_v7  ;;  %v2469_v54 = vadd.f32 %v2437_v26, %v2371_v9  ;;  %v4492_v30 = vpop.permute.xlu2 %4491  ;;  %v3987_v9 = vmul.f32 %v8833_v49, %v3954_v56 }
 0x33b   : > { %v7287_v4 = vpop.eup %7286 }
 0x33c   : > { %v1570_v19 = vmul.f32 %v7287_v4, %v10481_v46  ;;  %v4212_v33 = vadd.f32 %v4180_v8, %v4115_v38  ;;  %v2566_v34 = vadd.f32 %v2534_v23, %v2469_v54  ;;  %vm1576_vm4 = vweird.f32 %v7287_v4 }
 0x33d   : > { %v2435_v8 = vmul.f32 %v8499_v43, %v10485_v29  ;;  %v4019_v38 = vadd.f32 %v3987_v9, %v3922_v0  ;;  %vm1577_vm6 = vmor %vm1575_vm5, %vm1576_vm4  ;;  %v2629_v46 = vmul.f32 %v14110_v1, %v10489_v53 }
 0x33e   : > { %v1571_v41 = vmul.f32 %v7287_v4, %v1570_v19  ;;  %v4309_v26 = vadd.f32 %v4277_v60, %v4212_v33  ;;  %v2369_v19 = vadd.f32 %v2337_v37, %v2272_v12  ;;  %v2663_v14 = vadd.f32 %v2631_v47, %v2566_v34  ;;  %v4405_v12 = vld [vmem:[#allocation2 + $0x68] sm:$0xff] }
 0x33f   : > { %v2532_v60 = vmul.f32 %v8508_v16, %v10487_v10  ;;  %v4084_v37 = vmul.f32 %v9009_v52, %v4051_v13  ;;  %v4148_v33 = vld [vmem:[#allocation3 + $0x10b] sm:$0xff]  ;;  %v1952_v13 = vmul.f32 %v10301_v11, %v14283_v45 }
 0x340   : > { %v1572_v7 = vmul.f32 0.5, %v1571_v41  ;;  %v4597_v55 = vmul.f32 %v4492_v30, %v4309_v26  ;;  %v10553_v41 = vld [vmem:[#allocation3 + $0xf4] sm:$0xff]  ;;  %v2760_v56 = vadd.f32 %v2728_v32, %v2663_v14  ;;  %v2467_v23 = vadd.f32 %v2435_v8, %v2369_v19  ;;  %v14291_v14 = vld [vmem:[#allocation12_spill] sm:$0xff]  ;;  %v1204_v26 = vpop.xlane.xlu0 %1203 }
 0x341   : > { %v2825_v29 = vmul.f32 %v14244_v21, %v10553_v41  ;;  %v10565_v47 = vld [vmem:[#allocation3 + $0x108] sm:$0xff]  ;;  %v4116_v10 = vadd.f32 %v4084_v37, %v4019_v38  ;;  %v1236_v53 = vmul.f32 %v1204_v26, %v14188_v18  ;;  %v4181_v8 = vmul.f32 %v9024_v20, %v4148_v33 }
 0x342   : > { %v1573_v59 = vsub.f32 1.5, %v1572_v7  ;;  %v2564_v0 = vadd.f32 %v2532_v60, %v2467_v23  ;;  %v10562_v30 = vadd.f32 %v4597_v55, %v4405_v12  ;;  %v2922_v38 = vmul.f32 %v14247_v50, %v10565_v47  ;;  %v10589_v11 = vld [vmem:[#allocation3 + $0x109] sm:$0xff] }
 0x343   : > { %v2857_v9 = vadd.f32 %v2825_v29, %v2760_v56  ;;  %v2146_v55 = vmul.f32 %v14282_v36, %v14243_v17  ;;  %v10586_v56 = vld [vmem:[%s13537_s9] ss:$0 sm:$0xff]  ;;  %v1268_v60 = vadd.f32 1e-05, %v1236_v53  ;;  %v10601_v26 = vld [vmem:[#allocation3 + $0x10a] sm:$0xff] }
 0x344   : > { %v1574_v54 = vmul.f32 %v7287_v4, %v1573_v59  ;;  %14290 = vst [vmem:[#allocation39_spill] sm:$0xff] %v10562_v30  ;;  %v2661_v32 = vadd.f32 %v2629_v46, %v2564_v0  ;;  %v2049_v59 = vmul.f32 %v14281_v48, %v14284_v5  ;;  %v4348_v48 = vld [vmem:[%s7806_s29 + $0xa0] sm:$0xff]  ;;  %v4689_v37 = vsel %vm875_vm1, %v10562_v30, 0.0 }
 0x345   : > { %v2954_v29 = vadd.f32 %v2922_v38, %v2857_v9  ;;  %7288 = vrcp.f32 %v4348_v48  ;;  %4690 = vadd.xlane.f32.xlu0 %v4689_v37  ;;  %v2243_v46 = vmul.f32 %v14285_v3, %v8393_v57  ;;  %v2340_v9 = vmul.f32 %v14286_v27, %v13983_v39  ;;  %v14292_v48 = vld [vmem:[#allocation11_spill] sm:$0xff] }
 0x346   : > { %v1578_v34 = vsel %vm1577_vm6, %v7287_v4, %v1574_v54  ;;  %v10570_v4 = vld [vmem:[%s13536_s8] ss:$0 sm:$0xff]  ;;  %v4245_v54 = vld [vmem:[#allocation3 + $0x10c] sm:$0xff]  ;;  %v2081_v12 = vadd.f32 %v2049_v59, %v1952_v13  ;;  %7290 = vrsqrt.f32 %v1268_v60  ;;  %v2438_v3 = vmul.f32 %v10475_v42, %v8499_v43 }
 0x347   : > { %v1619_v7 = vmul.f32 %v1578_v34, %v14291_v14  ;;  %v4213_v34 = vadd.f32 %v4181_v8, %v4116_v10  ;;  %v4278_v33 = vmul.f32 %v10431_v44, %v4245_v54  ;;  %v3019_v14 = vmul.f32 %v14249_v58, %v10589_v11  ;;  %v10611_v54 = vld [vmem:[#allocation3 + $0x10b] sm:$0xff] }
 0x348   : > { %v2178_v0 = vadd.f32 %v2146_v55, %v2081_v12  ;;  %v3116_v38 = vmul.f32 %v14252_v25, %v10601_v26  ;;  %v2535_v27 = vmul.f32 %v10503_v35, %v8508_v16  ;;  %vm1585_vm8 = vweird.f32 %v1268_v60 }
 0x349   : > { %v1654_v19 = vmul.f32 %v10570_v4, %v1619_v7  ;;  %v3051_v53 = vadd.f32 %v3019_v14, %v2954_v29  ;;  %v2632_v29 = vmul.f32 %v10511_v24, %v14110_v1  ;;  %v10620_v14 = vld [vmem:[#allocation3 + $0x10c] sm:$0xff]  ;;  %v2826_v24 = vmul.f32 %v10529_v2, %v14244_v21 }
 0x34a   : > { %v2275_v10 = vadd.f32 %v2243_v46, %v2178_v0  ;;  %v3213_v0 = vmul.f32 %v14253_v31, %v10611_v54 }
 0x34b   : > { %v1689_v23 = vadd.f32 %v10586_v56, %v1654_v19  ;;  %v4310_v19 = vadd.f32 %v4278_v33, %v4213_v34  ;;  %v7289_v8 = vpop.eup %7288  ;;  %v3148_v12 = vadd.f32 %v3116_v38, %v3051_v53  ;;  %v4406_v33 = vld [vmem:[#allocation2 + $0x70] sm:$0xff]  ;;  %v14294_v38 = vld [vmem:[#allocation60_spill] sm:$0xff] }
 0x34c   : > { %v2372_v59 = vadd.f32 %v2340_v9, %v2275_v10  ;;  %v7291_v55 = vpop.eup %7290  ;;  %4526 = vperm.xlu1 %7173, %v7289_v8   ;;  %v2726_v9 = vmul.f32 %v8559_v40, %v10496_v63  ;;  %v2823_v8 = vmul.f32 %v14244_v21, %v10509_v22  ;;  %v14296_v22 = vld [vmem:[#allocation61_spill] sm:$0xff] }
 0x34d   : > { %v1726_v36 = vmul.f32 %v14216_v15, %v1689_v23  ;;  %v4598_v37 = vmul.f32 %v14292_v48, %v4310_v19  ;;  %v1580_v34 = vmul.f32 %v7291_v55, %v1268_v60  ;;  %v3245_v53 = vadd.f32 %v3213_v0, %v3148_v12 }
 0x34e   : > { %v2470_v23 = vadd.f32 %v2438_v3, %v2372_v59  ;;  %v2758_v3 = vadd.f32 %v2726_v9, %v2661_v32  ;;  %vm1586_vm7 = vweird.f32 %v7291_v55  ;;  %v14301_v9 = vld [vmem:[#allocation64_spill] sm:$0xff] }
 0x34f   : > { %v1763_v7 = vadd.f32 %v14217_v62, %v1726_v36  ;;  %v1581_v46 = vmul.f32 %v7291_v55, %v1580_v34  ;;  %v10626_v19 = vadd.f32 %v4598_v37, %v4406_v33  ;;  %vm1587_vm9 = vmor %vm1585_vm8, %vm1586_vm7  ;;  %vm6596_vm8 = vcmask 523264  }
 0x350   : > { %v2567_v36 = vadd.f32 %v2535_v27, %v2470_v23  ;;  %v3310_v23 = vmul.f32 %v14294_v38, %v10620_v14  ;;  %v10634_v27 = vld [vmem:[#allocation3 + $0x120] sm:$0xff]  ;;  %v10638_v48 = vadd.f32 %v2823_v8, %v2758_v3  ;;  %v1928_v8 = vld [vmem:[#allocation3 + $0x150] sm:$0xff] }
 0x351   : > { %v1800_v13 = vmul.f32 %v14219_v6, %v1763_v7  ;;  %v2729_v7 = vmul.f32 %v10519_v28, %v8559_v40  ;;  %14293 = vst [vmem:[#allocation18_spill] sm:$0xff] %v10626_v19  ;;  %v4692_v2 = vsel %vm875_vm1, %v10626_v19, 0.0  ;;  %v3408_v32 = vmul.f32 %v14296_v22, %v10634_v27  ;;  %v2115_v19 = vld [vmem:[#allocation3 + $0xfa] sm:$0xff] }
 0x352   : > { %v2664_v10 = vadd.f32 %v2632_v29, %v2567_v36  ;;  %14295 = vst [vmem:[#allocation54_spill] sm:$0xff] %v10634_v27  ;;  %v3342_v37 = vadd.f32 %v3310_v23, %v3245_v53  ;;  %4693 = vadd.xlane.f32.xlu0 %v4692_v2  ;;  %v10644_v29 = vld [vmem:[#allocation3 + $0x121] sm:$0xff]  ;;  %v14298_v36 = vld [vmem:[#allocation58_spill] sm:$0xff]  ;;  %v14303_v23 = vld [vmem:[#allocation65_spill] sm:$0xff] }
 0x353   : > { %1894 = vst.msk [vmem:[#allocation3 + $0x19a] sm:$0xff] %vm875_vm1, %v1800_v13  ;;  %v1582_v13 = vmul.f32 0.5, %v1581_v46  ;;  %v4407_v46 = vld [vmem:[#allocation2 + $0x78] sm:$0xff]  ;;  %v3505_v53 = vmul.f32 %v14301_v9, %v10644_v29  ;;  %v14325_v27 = vld [vmem:[#allocation91_spill] sm:$0xff] }
 0x354   : > { %v2761_v59 = vadd.f32 %v2729_v7, %v2664_v10  ;;  %14297 = vst [vmem:[#allocation82_spill] sm:$0xff] %v10644_v29  ;;  %v3440_v33 = vadd.f32 %v3408_v32, %v3342_v37  ;;  %v14299_v7 = vld [vmem:[#allocation46_spill] sm:$0xff]  ;;  %v1961_v32 = vmul.f32 %v14283_v45, %v1928_v8  ;;  %v2147_v29 = vmul.f32 %v10535_v51, %v14243_v17 }
 0x355   : > { %v1583_v28 = vsub.f32 1.5, %v1582_v13  ;;  %v10648_v10 = vadd.f32 %v14299_v7, %v4407_v46  ;;  %v10653_v13 = vld [vmem:[#allocation3 + $0x122] sm:$0xff]  ;;  %v2025_v37 = vld [vmem:[#allocation3 + $0x151] sm:$0xff] }
 0x356   : > { %v10636_v63 = vadd.f32 %v2826_v24, %v2761_v59  ;;  %14302 = vst [vmem:[#allocation26_spill] sm:$0xff] %v10653_v13  ;;  %v2219_v46 = vld [vmem:[#allocation3 + $0x153] sm:$0xff]  ;;  %v10671_v7 = vld [vmem:[#allocation3 + $0x124] sm:$0xff] }
 0x357   : > { %v1584_v12 = vmul.f32 %v7291_v55, %v1583_v28  ;;  %14300 = vst [vmem:[#allocation90_spill] sm:$0xff] %v10648_v10  ;;  %v4695_v3 = vsel %vm875_vm1, %v10648_v10, 0.0  ;;  %v3602_v28 = vmul.f32 %v14303_v23, %v10653_v13  ;;  %v10698_v10 = vld [vmem:[#allocation3 + $0x169] sm:$0xff] }
 0x358   : > { %14307 = vst [vmem:[#allocation83_spill] sm:$0xff] %v10671_v7 }
 0x359   : > { %v1588_v34 = vsel %vm1587_vm9, %v7291_v55, %v1584_v12  ;;  %v3537_v55 = vadd.f32 %v3505_v53, %v3440_v33  ;;  %v10669_v33 = vld [vmem:[#allocation3 + $0x138] sm:$0xff]  ;;  %14318 = vst [vmem:[#allocation80_spill] sm:$0xff] %v10698_v10 }
 0x35a   : > { %v1620_v0 = vmul.f32 %v1588_v34, %v14298_v36  ;;  %4696 = vadd.xlane.f32.xlu0 %v4695_v3  ;;  %v14305_v36 = vld [vmem:[#allocation67_spill] sm:$0xff]  ;;  %14306 = vst [vmem:[#allocation49_spill] sm:$0xff] %v10669_v33  ;;  %v14309_v3 = vld [vmem:[#allocation96_spill] sm:$0xff] }
 0x35b   : > { %v3634_v2 = vadd.f32 %v3602_v28, %v3537_v55  ;;  %v10675_v55 = vpop.xlane.xlu1 %4666  ;;  %v4749_v8 = vmul.f32 %v14309_v3, %v14188_v18  ;;  %v14310_v28 = vld [vmem:[#allocation69_spill] sm:$0xff] }
 0x35c   : > { %v1655_v60 = vmul.f32 %v10570_v4, %v1620_v0  ;;  %v10661_v4 = vld [vmem:[#allocation3 + $0x123] sm:$0xff]  ;;  %14308 = vst [vmem:[#allocation53_spill] sm:$0xff] %v10675_v55 }
 0x35d   : > { %14304 = vst [vmem:[#allocation84_spill] sm:$0xff] %v10661_v4  ;;  %v3699_v0 = vmul.f32 %v14305_v36, %v10661_v4 }
 0x35e   : > { %v1690_v24 = vadd.f32 %v10586_v56, %v1655_v60  ;;  %v2122_v56 = vld [vmem:[#allocation3 + $0x152] sm:$0xff] }
 0x35f   : > { %v2155_v60 = vmul.f32 %v14243_v17, %v2122_v56  ;;  %v3731_v53 = vadd.f32 %v3699_v0, %v3634_v2  ;;  %v10687_v56 = vld [vmem:[#allocation3 + $0x139] sm:$0xff] }
 0x360   : > { %v1727_v59 = vmul.f32 %v14216_v15, %v1690_v24  ;;  %v2058_v15 = vmul.f32 %v14284_v5, %v2025_v37  ;;  %v2316_v24 = vld [vmem:[#allocation3 + $0x154] sm:$0xff]  ;;  %v3894_v37 = vmul.f32 %v14310_v28, %v10669_v33  ;;  %14313 = vst [vmem:[#allocation15_spill] sm:$0xff] %v10687_v56  ;;  %v2309_v33 = vld [vmem:[#allocation3 + $0xfc] sm:$0xff]  ;;  %v3991_v4 = vmul.f32 %v8833_v49, %v10687_v56 }
 0x361   : > { %v10689_v2 = vld [vmem:[#allocation3 + $0x13a] sm:$0xff]  ;;  %v2349_v0 = vmul.f32 %v13983_v39, %v2316_v24 }
 0x362   : > { %v1764_v12 = vadd.f32 %v14217_v62, %v1727_v59  ;;  %v2090_v62 = vadd.f32 %v2058_v15, %v1961_v32  ;;  %v2252_v59 = vmul.f32 %v8393_v57, %v2219_v46  ;;  %v10685_v32 = vld [vmem:[#allocation3 + $0x168] sm:$0xff]  ;;  %14314 = vst [vmem:[#allocation21_spill] sm:$0xff] %v10689_v2  ;;  %v10692_v46 = vld [vmem:[#allocation3 + $0x15a] sm:$0xff] }
 0x363   : > { %14312 = vst [vmem:[#allocation63_spill] sm:$0xff] %v10685_v32  ;;  %v2212_v28 = vld [vmem:[#allocation3 + $0xfb] sm:$0xff]  ;;  %v10749_v56 = vpop.xlane.xlu1 %4669 }
 0x364   : > { %v1801_v34 = vmul.f32 %v14219_v6, %v1764_v12  ;;  %v2187_v6 = vadd.f32 %v2155_v60, %v2090_v62  ;;  %v14311_v12 = vld [vmem:[#allocation68_spill] sm:$0xff]  ;;  %14315 = vst [vmem:[#allocation35_spill] sm:$0xff] %v10692_v46  ;;  %v10694_v62 = vld [vmem:[#allocation3 + $0x13b] sm:$0xff] }
 0x365   : > { %v3796_v30 = vmul.f32 %v14311_v12, %v10671_v7  ;;  %14316 = vst [vmem:[#allocation38_spill] sm:$0xff] %v10694_v62  ;;  %v10696_v60 = vld [vmem:[#allocation3 + $0x13c] sm:$0xff] }
 0x366   : > { %1895 = vst.msk [vmem:[#allocation3 + $0x1a2] sm:$0xff] %vm875_vm1, %v1801_v34  ;;  %v4344_v34 = vld [vmem:[%s7806_s29 + $0x80] sm:$0xff]  ;;  %v2284_v15 = vadd.f32 %v2252_v59, %v2187_v6  ;;  %v2447_v6 = vmul.f32 %v10685_v32, %v8499_v43  ;;  %v10727_v32 = vmul.f32 %v13983_v39, %v2309_v33  ;;  %v14322_v33 = vld [vmem:[#allocation33_spill] sm:$0xff] }
 0x367   : > { %14317 = vst [vmem:[#allocation62_spill] sm:$0xff] %v10696_v60  ;;  %v3828_v3 = vadd.f32 %v3796_v30, %v3731_v53  ;;  %7292 = vrcp.f32 %v4344_v34  ;;  %v14319_v59 = vld [vmem:[#allocation79_spill] sm:$0xff]  ;;  %v10709_v30 = vmul.f32 %v10692_v46, %v14243_v17  ;;  %v4088_v53 = vmul.f32 %v9009_v52, %v10689_v2  ;;  %v1922_v46 = vld [vmem:[#allocation3 + $0x108] sm:$0xff]  ;;  %v4664_v52 = vpop.xlane.xlu0 %4663 }
 0x368   : > { %v2381_v7 = vadd.f32 %v2349_v0, %v2284_v15  ;;  %v10703_v24 = vsub.f32 %v14319_v59, %v4749_v8  ;;  %v4185_v34 = vmul.f32 %v9024_v20, %v10694_v62  ;;  %v2544_v0 = vmul.f32 %v10698_v10, %v8508_v16  ;;  %v4349_v59 = vld [vmem:[%s7806_s29 + $0xa8] sm:$0xff]  ;;  %14324 = vst [vmem:[#allocation89_spill] sm:$0xff] %v10749_v56 }
 0x369   : > { %v3926_v55 = vadd.f32 %v3894_v37, %v3828_v3  ;;  %v10719_v8 = vmul.f32 %v10431_v44, %v10696_v60  ;;  %v2148_v37 = vmul.f32 %v14243_v17, %v2115_v19  ;;  %v10724_v3 = vmul.f32 %v8393_v57, %v2212_v28  ;;  %v10739_v19 = vld [vmem:[#allocation3 + $0x16a] sm:$0xff] }
 0x36a   : > { %14320 = vst [vmem:[#allocation57_spill] sm:$0xff] %v10703_v24  ;;  %v2479_v15 = vadd.f32 %v2447_v6, %v2381_v7  ;;  %v2439_v7 = vmul.f32 %v10565_v47, %v8499_v43  ;;  %v10733_v6 = vmul.f32 %v10589_v11, %v8508_v16  ;;  %v10737_v44 = vmul.f32 %v10601_v26, %v14110_v1  ;;  %v14323_v60 = vld [vmem:[#allocation105_spill] sm:$0xff] }
 0x36b   : > { %14321 = vst [vmem:[#allocation97_spill] sm:$0xff] %v10739_v19  ;;  %v4023_v10 = vadd.f32 %v3991_v4, %v3926_v55  ;;  %v1953_v20 = vmul.f32 %v14322_v33, %v14283_v45  ;;  %v2050_v49 = vmul.f32 %v14323_v60, %v14284_v5  ;;  %v10747_v62 = vmul.f32 %v14296_v22, %v10565_v47  ;;  %v2019_v47 = vld [vmem:[#allocation3 + $0x109] sm:$0xff] }
 0x36c   : > { %v2576_v28 = vadd.f32 %v2544_v0, %v2479_v15  ;;  %v4813_v13 = vmul.f32 %v10703_v24, %v10703_v24  ;;  %7294 = vrcp.f32 %v4349_v59  ;;  %v2920_v4 = vmul.f32 %v14247_v50, %v14322_v33 }
 0x36d   : > { %v7293_v2 = vpop.eup %7292  ;;  %v1955_v55 = vmul.f32 %v14283_v45, %v1922_v46  ;;  %v4750_v15 = vmul.f32 %v4664_v52, %v14188_v18  ;;  %v2082_v0 = vadd.f32 %v2050_v49, %v1953_v20  ;;  %v2641_v22 = vmul.f32 %v10739_v19, %v14110_v1 }
 0x36e   : > { %v2952_v56 = vadd.f32 %v2920_v4, %v10638_v48  ;;  %v3017_v59 = vmul.f32 %v14249_v58, %v14323_v60  ;;  %v1954_v33 = vmul.f32 %v10475_v42, %v14283_v45  ;;  %v2051_v46 = vmul.f32 %v10503_v35, %v14284_v5  ;;  %4506 = vperm.xlu0 %7174, %v7293_v2   ;;  %v2116_v42 = vld [vmem:[#allocation3 + $0x10a] sm:$0xff] }
 0x36f   : > { %v4120_v52 = vadd.f32 %v4088_v53, %v4023_v10  ;;  %v2179_v49 = vadd.f32 %v2147_v29, %v2082_v0  ;;  %v2244_v20 = vmul.f32 %v10539_v61, %v8393_v57  ;;  %v10770_v24 = vadd.f32 %v2641_v22, %v2576_v28  ;;  %v10781_v22 = vld [vmem:[#allocation3 + $0x158] sm:$0xff] }
 0x370   : > { %v3049_v19 = vadd.f32 %v3017_v59, %v2952_v56  ;;  %v3114_v48 = vmul.f32 %v14252_v25, %v10535_v51  ;;  %v2083_v4 = vadd.f32 %v2051_v46, %v1954_v33  ;;  %v2052_v60 = vmul.f32 %v14284_v5, %v2019_v47  ;;  %v10783_v56 = vld [vmem:[#allocation3 + $0x159] sm:$0xff]  ;;  %v3381_v46 = vld [vmem:[#allocation3 + $0x168] sm:$0xff] }
 0x371   : > { %v10776_v58 = vsub.f32 %v14325_v27, %v4750_v15  ;;  %v4851_v35 = vsel %vm875_vm1, %v4813_v13, 0.0  ;;  %v2276_v29 = vadd.f32 %v2244_v20, %v2179_v49  ;;  %v2341_v10 = vmul.f32 %v10553_v41, %v13983_v39  ;;  %v4350_v13 = vld [vmem:[%s7806_s29 + $0xb0] sm:$0xff]  ;;  %v10795_v20 = vpop.xlane.xlu1 %4684 }
 0x372   : > { %v7295_v2 = vpop.eup %7294  ;;  %v3146_v51 = vadd.f32 %v3114_v48, %v3049_v19  ;;  %v3211_v53 = vmul.f32 %v14253_v31, %v10539_v61  ;;  %v3503_v28 = vmul.f32 %v14301_v9, %v10589_v11  ;;  %v2180_v15 = vadd.f32 %v2148_v37, %v2083_v4  ;;  %v10793_v49 = vld [vmem:[#allocation3 + $0x110] sm:$0xff]  ;;  %14327 = vst [vmem:[#allocation78_spill] sm:$0xff] %v10795_v20 }
 0x373   : > { %14326 = vst [vmem:[#allocation98_spill] sm:$0xff] %v10776_v58  ;;  %v4217_v0 = vadd.f32 %v4185_v34, %v4120_v52  ;;  %v2373_v47 = vadd.f32 %v2341_v10, %v2276_v29  ;;  %v3600_v59 = vmul.f32 %v14303_v23, %v10601_v26  ;;  %v2149_v33 = vmul.f32 %v14243_v17, %v2116_v42  ;;  %v10803_v37 = vld [vmem:[#allocation3 + $0x111] sm:$0xff]  ;;  %v3478_v42 = vld [vmem:[#allocation3 + $0x169] sm:$0xff] }
 0x374   : > { %v3243_v19 = vadd.f32 %v3211_v53, %v3146_v51  ;;  %v3308_v61 = vmul.f32 %v14294_v38, %v10553_v41  ;;  %v1962_v11 = vmul.f32 %v10781_v22, %v14283_v45  ;;  %v2059_v34 = vmul.f32 %v10783_v56, %v14284_v5  ;;  %v10966_v20 = vld [vmem:[#allocation3 + $0x154] sm:$0xff] }
 0x375   : > { %v4814_v26 = vmul.f32 %v10776_v58, %v10776_v58  ;;  %v2471_v52 = vadd.f32 %v2439_v7, %v2373_v47  ;;  %v2277_v48 = vadd.f32 %v10724_v3, %v2180_v15  ;;  %v2084_v4 = vadd.f32 %v2052_v60, %v1955_v55  ;;  %v2213_v7 = vld [vmem:[#allocation3 + $0x10b] sm:$0xff] }
 0x376   : > { %4852 = vadd.xlane.f32.xlu1 %v4851_v35  ;;  %v4517_v35 = vpop.permute.xlu2 %4516  ;;  %7296 = vrcp.f32 %v4350_v13  ;;  %v2730_v41 = vmul.f32 %v10611_v54, %v8559_v40  ;;  %v3340_v29 = vadd.f32 %v3308_v61, %v3243_v19  ;;  %v1963_v10 = vmul.f32 %v3381_v46, %v14283_v45  ;;  %4531 = vperm.xlu0 %7174, %v7295_v2   ;;  %v10820_v46 = vld [vmem:[#allocation3 + $0x112] sm:$0xff] }
 0x377   : > { %v4314_v51 = vadd.f32 %v10719_v8, %v4217_v0  ;;  %v2568_v53 = vadd.f32 %v10733_v6, %v2471_v52  ;;  %v2374_v27 = vadd.f32 %v10727_v32, %v2277_v48  ;;  %v2440_v3 = vmul.f32 %v10793_v49, %v8499_v43  ;;  %v10826_v61 = vld [vmem:[#allocation3 + $0x113] sm:$0xff] }
 0x378   : > { %v3438_v55 = vadd.f32 %v10747_v62, %v3340_v29  ;;  %v2537_v60 = vmul.f32 %v10803_v37, %v8508_v16  ;;  %v2091_v15 = vadd.f32 %v2059_v34, %v1962_v11  ;;  %v2060_v13 = vmul.f32 %v3478_v42, %v14284_v5  ;;  %v4410_v42 = vld [vmem:[#allocation2 + $0x90] sm:$0xff] }
 0x379   : > { %v4602_v47 = vmul.f32 %v4517_v35, %v4314_v51  ;;  %v4854_v8 = vsel %vm875_vm1, %v4814_v26, 0.0  ;;  %v2665_v6 = vadd.f32 %v10737_v44, %v2568_v53  ;;  %v2472_v32 = vadd.f32 %v2440_v3, %v2374_v27  ;;  %v10830_v26 = vld [vmem:[#allocation3 + $0x114] sm:$0xff]  ;;  %v10832_v44 = vpop.xlane.xlu1 %4687 }
 0x37a   : > { %v3535_v2 = vadd.f32 %v3503_v28, %v3438_v55  ;;  %v2246_v0 = vmul.f32 %v8393_v57, %v2213_v7  ;;  %v2188_v62 = vadd.f32 %v10709_v30, %v2091_v15  ;;  %v2092_v19 = vadd.f32 %v2060_v13, %v1963_v10  ;;  %v2408_v10 = vld [vmem:[#allocation3 + $0x120] sm:$0xff]  ;;  %v10848_v7 = vpop.xlane.xlu0 %4672 }
 0x37b   : > { %v2762_v11 = vadd.f32 %v2730_v41, %v2665_v6  ;;  %v2827_v34 = vmul.f32 %v10620_v14, %v14244_v21  ;;  %v2181_v52 = vadd.f32 %v2149_v33, %v2084_v4  ;;  %v3697_v28 = vmul.f32 %v14305_v36, %v10611_v54  ;;  %v2310_v4 = vld [vmem:[#allocation3 + $0x10c] sm:$0xff]  ;;  %v2505_v6 = vld [vmem:[#allocation3 + $0x121] sm:$0xff] }
 0x37c   : > { %v7297_v48 = vpop.eup %7296  ;;  %v3632_v27 = vadd.f32 %v3600_v59, %v3535_v2  ;;  %v2569_v35 = vadd.f32 %v2537_v60, %v2472_v32  ;;  %v2634_v30 = vmul.f32 %v10820_v46, %v14110_v1  ;;  %v10838_v29 = vadd.f32 %v4602_v47, %v4410_v42  ;;  %v2602_v42 = vld [vmem:[#allocation3 + $0x122] sm:$0xff] }
 0x37d   : > { %v10840_v41 = vadd.f32 %v2827_v34, %v2762_v11  ;;  %v3794_v33 = vmul.f32 %v14311_v12, %v10620_v14  ;;  %v2731_v59 = vmul.f32 %v10826_v61, %v8559_v40  ;;  %v2278_v3 = vadd.f32 %v2246_v0, %v2181_v52  ;;  %v10860_v34 = vld [vmem:[#allocation3 + $0x15b] sm:$0xff]  ;;  %v3575_v52 = vld [vmem:[#allocation3 + $0x16a] sm:$0xff] }
 0x37e   : > { %4855 = vadd.xlane.f32.xlu1 %v4854_v8  ;;  %14328 = vst [vmem:[#allocation73_spill] sm:$0xff] %v10838_v29  ;;  %v3729_v51 = vadd.f32 %v3697_v28, %v3632_v27  ;;  %v2666_v53 = vadd.f32 %v2634_v30, %v2569_v35  ;;  %4536 = vperm.xlu0 %7174, %v7297_v48   ;;  %v4704_v13 = vsel %vm875_vm1, %v10838_v29, 0.0  ;;  %v2699_v27 = vld [vmem:[#allocation3 + $0x123] sm:$0xff]  ;;  %v10934_v29 = vld [vmem:[#allocation3 + $0x153] sm:$0xff] }
 0x37f   : > { %v2828_v54 = vmul.f32 %v10830_v26, %v14244_v21  ;;  %v2343_v15 = vmul.f32 %v13983_v39, %v2310_v4  ;;  %v2441_v14 = vmul.f32 %v8499_v43, %v2408_v10  ;;  %v2538_v11 = vmul.f32 %v8508_v16, %v2505_v6  ;;  %v10862_v35 = vld [vmem:[#allocation3 + $0x15c] sm:$0xff] }
 0x380   : > { %v10850_v55 = vadd.f32 %v3794_v33, %v3729_v51  ;;  %v2763_v60 = vadd.f32 %v2731_v59, %v2666_v53  ;;  %v2253_v30 = vmul.f32 %v10860_v34, %v8393_v57  ;;  %v2157_v33 = vmul.f32 %v3575_v52, %v14243_v17 }
 0x381   : > { %v2375_v8 = vadd.f32 %v2343_v15, %v2278_v3  ;;  %v2635_v10 = vmul.f32 %v14110_v1, %v2602_v42  ;;  %v2732_v51 = vmul.f32 %v8559_v40, %v2699_v27  ;;  %v2350_v59 = vmul.f32 %v10862_v35, %v13983_v39  ;;  %v2796_v15 = vld [vmem:[#allocation3 + $0x124] sm:$0xff] }
 0x382   : > { %v10856_v47 = vadd.f32 %v2828_v54, %v2763_v60  ;;  %v10867_v4 = vpop.xlane.xlu0 %4675  ;;  %v2285_v53 = vadd.f32 %v2253_v30, %v2188_v62  ;;  %v10873_v3 = vadd.f32 %v2157_v33, %v2092_v19  ;;  %v2923_v60 = vmul.f32 %v14247_v50, %v10793_v49  ;;  %v2893_v62 = vld [vmem:[#allocation3 + $0x138] sm:$0xff] }
 0x383   : > { %v2473_v2 = vadd.f32 %v2441_v14, %v2375_v8  ;;  %14329 = vst [vmem:[#allocation34_spill] sm:$0xff] %v10867_v4  ;;  %v2990_v19 = vld [vmem:[#allocation3 + $0x139] sm:$0xff]  ;;  %v2926_v27 = vmul.f32 %v14247_v50, %v2893_v62 }
 0x384   : > { %14330 = vst [vmem:[#allocation16_spill] sm:$0xff] %v10873_v3  ;;  %v10877_v14 = vadd.f32 %v2350_v59, %v2285_v53  ;;  %v2955_v6 = vadd.f32 %v2923_v60, %v10636_v63  ;;  %v3087_v30 = vld [vmem:[#allocation3 + $0x13a] sm:$0xff] }
 0x385   : > { %v2570_v28 = vadd.f32 %v2538_v11, %v2473_v2  ;;  %v2829_v2 = vmul.f32 %v14244_v21, %v2796_v15  ;;  %v14333_v53 = vld [vmem:[#allocation54_spill] sm:$0xff]  ;;  %v3120_v60 = vmul.f32 %v14252_v25, %v3087_v30 }
 0x386   : > { %4705 = vadd.xlane.f32.xlu1 %v4704_v13  ;;  %14331 = vst [vmem:[#allocation36_spill] sm:$0xff] %v10877_v14  ;;  %v3184_v15 = vld [vmem:[#allocation3 + $0x13b] sm:$0xff]  ;;  %v10932_v14 = vld [vmem:[#allocation3 + $0x152] sm:$0xff] }
 0x387   : > { %v2667_v54 = vadd.f32 %v2635_v10, %v2570_v28  ;;  %v3217_v62 = vmul.f32 %v14253_v31, %v3184_v15 }
 0x389   : > { %v2764_v13 = vadd.f32 %v2732_v51, %v2667_v54  ;;  %v3117_v51 = vmul.f32 %v14252_v25, %v10820_v46 }
 0x38b   : > { %v2861_v49 = vadd.f32 %v2829_v2, %v2764_v13  ;;  %v3214_v2 = vmul.f32 %v14253_v31, %v10826_v61 }
 0x38d   : > { %v2958_v10 = vadd.f32 %v2926_v27, %v2861_v49  ;;  %v14334_v49 = vld [vmem:[#allocation82_spill] sm:$0xff] }
 0x38f   : > { %v4844_v32 = vpop.xlane.xlu1 %4843 }
 0x390   : > { %v4938_v0 = vmul.f32 %v4844_v32, %v14188_v18 }
 0x392   : > { %v4970_v48 = vadd.f32 1e-05, %v4938_v0  ;;  %v14332_v0 = vld [vmem:[#allocation55_spill] sm:$0xff] }
 0x393   : > { %v3020_v11 = vmul.f32 %v14332_v0, %v10803_v37  ;;  %v3023_v63 = vmul.f32 %v14332_v0, %v2990_v19  ;;  %v2924_v37 = vmul.f32 %v14333_v53, %v14247_v50  ;;  %v5424_v19 = vld [vmem:[%s8718_s23] sm:$0x1]  ;;  %v3021_v27 = vmul.f32 %v14334_v49, %v14332_v0 }
 0x394   : > { %7298 = vrsqrt.f32 %v4970_v48  ;;  %vm5008_vm11 = vweird.f32 %v4970_v48 }
 0x395   : > { %v3052_v28 = vadd.f32 %v3020_v11, %v2955_v6  ;;  %v3055_v54 = vadd.f32 %v3023_v63, %v2958_v10  ;;  %v3281_v11 = vld [vmem:[#allocation3 + $0x13c] sm:$0xff]  ;;  %v10907_v10 = vld [vmem:[#allocation3 + $0x150] sm:$0xff]  ;;  %v14336_v63 = vld [vmem:[#allocation100_spill] sm:$0xff] }
 0x397   : > { %v3149_v13 = vadd.f32 %v3117_v51, %v3052_v28  ;;  %v3152_v46 = vadd.f32 %v3120_v60, %v3055_v54  ;;  %v5498_v28 = vld [vmem:[%s622_s18] sm:$0x1]  ;;  %v4748_v51 = vmul.f32 %v14336_v63, %v14188_v18  ;;  %v5425_v54 = vadd.f32 1.0, %v5424_v19  ;;  %v14338_v19 = vld [vmem:[#allocation61_spill] sm:$0xff]  ;;  %s6882_s18 = scalar_lea.hbm %s13545_s17, %s7108_s30 }
 0x398   : > { %v3311_v60 = vmul.f32 %v14294_v38, %v10830_v26  ;;  %v3412_v26 = vmul.f32 %v10907_v10, %v14338_v19  ;;  %v14339_v63 = vld [vmem:[#allocation103_spill] sm:$0xff]  ;;  %s6885_s22 = sshll.u32 %s6882_s18, 4  ;;  %s6886_s22 = int_to_ptr.hbm [resolvable:$true] %s6885_s22 }
 0x399   : > { %v3246_v30 = vadd.f32 %v3214_v2, %v3149_v13  ;;  %v3249_v61 = vadd.f32 %v3217_v62, %v3152_v46  ;;  %v10915_v13 = vld [vmem:[#allocation3 + $0x151] sm:$0xff]  ;;  %v5499_v2 = vadd.f32 1.0, %v5498_v28  ;;  %v5536_v28 = vld [vmem:[%s13541_s13 + $0x8] sm:$0xff]  ;;  %s7576_s23 = sshra.s32 %s6886_s22, 4  ;;  %s7577_s23 = int_to_ptr.hbm [resolvable:$true] %s7576_s23 }
 0x39a   : > { %v7299_v8 = vpop.eup %7298  ;;  %v5537_v46 = vld [vmem:[%s13541_s13 + $0x10] sm:$0xff]  ;;  %s7578_s28 = scalar_lea.hbm %s7577_s23, 256  ;;  %p7583_p0 = scmp.lt.s32.totalorder %s7577_s23, %s13545_s17 }
 0x39b   : > { %v5003_v32 = vmul.f32 %v7299_v8, %v4970_v48  ;;  %vm5009_vm10 = vweird.f32 %v7299_v8  ;;  %v7182_v48 = vld [vmem:[%s13538_s10] ss:$0 sm:$0xff]  ;;  %v10973_v3 = vperm.slane %v5499_v2, 0  ;;  %v14351_v2 = vld [vmem:[#allocation113_spill] sm:$0xff]  ;;  %p7579_p11 = scmp.ne.s32.totalorder %s7577_s23, %s7578_s28  ;;  %p7584_p1 = scmp.lt.s32.totalorder %s7582_s21, %s7578_s28 }
 0x39c   : > { %vm5010_vm12 = vmor %vm5008_vm11, %vm5009_vm10 }
 0x39d   : > { %v5004_v52 = vmul.f32 %v7299_v8, %v5003_v32  ;;  %v2956_v32 = vadd.f32 %v2924_v37, %v10840_v41  ;;  %v14335_v41 = vld [vmem:[#allocation114_spill] sm:$0xff]  ;;  %14348 = vst [vmem:[#allocation112_spill] sm:$0xff] %v10973_v3  ;;  %p7580_p12 = pnand %p7579_p11, %p7761_p5  ;;  %p7585_p2 = por %p7584_p1, %p7583_p0 }
 0x39e   : > { %v10883_v42 = vpop.xlane.xlu0 %4678 }
 0x39f   : > { %v5005_v33 = vmul.f32 0.5, %v5004_v52  ;;  %p7581_p13 = pneg %p7580_p12 }
 0x3a1   : > { %v5006_v59 = vsub.f32 1.5, %v5005_v33  ;;  %p7586_p3 = pnand %p7585_p2, %p7581_p13 }
 0x3a3   : > { %v5007_v6 = vmul.f32 %v7299_v8, %v5006_v59  ;;  %v3053_v59 = vadd.f32 %v3021_v27, %v2956_v32  ;;  %v14337_v32 = vld [vmem:[#allocation26_spill] sm:$0xff]  ;;  %v4758_v27 = vmul.f32 %v10832_v44, %v14188_v18  ;;  %v3509_v44 = vmul.f32 %v10915_v13, %v14301_v9 }
 0x3a4   : > { %v3118_v62 = vmul.f32 %v14337_v32, %v14252_v25  ;;  %v10971_v32 = vld [vmem:[#allocation3 + $0x16b] sm:$0xff] }
 0x3a5   : > { %v5011_v52 = vsel %vm5010_vm12, %v7299_v8, %v5007_v6  ;;  %v3314_v8 = vmul.f32 %v14294_v38, %v3281_v11  ;;  %v5538_v6 = vld [vmem:[%s13541_s13 + $0x18] sm:$0xff] }
 0x3a6   : > { %v5322_v33 = vmul.f32 %v5011_v52, %v14335_v41  ;;  %v4682_v37 = vpop.xlane.xlu0 %4681  ;;  %5651 = vmatpush.msra.mxu1 %v5538_v6  ;;  %v3343_v52 = vadd.f32 %v3311_v60, %v3246_v30  ;;  %7115 = vmatpush.msrb.mxu3 %v5538_v6  ;;  %v3150_v30 = vadd.f32 %v3118_v62, %v3053_v59  ;;  %v7183_v59 = vld [vmem:[%s13539_s11] ss:$0 sm:$0xff] }
 0x3a7   : > { %v4756_v15 = vmul.f32 %v4682_v37, %v14188_v18  ;;  %v3346_v11 = vadd.f32 %v3314_v8, %v3249_v61  ;;  %v14341_v61 = vld [vmem:[#allocation92_spill] sm:$0xff] }
 0x3a8   : > { %v5357_v41 = vmul.f32 %v7182_v48, %v5322_v33  ;;  %v10940_v8 = vsub.f32 %v14341_v61, %v4748_v51  ;;  %5652 = vmatpush.msra.mxu1 %v5537_v46  ;;  %v10944_v48 = vperm.slane %v5425_v54, 0  ;;  %v14344_v33 = vld [vmem:[#allocation53_spill] sm:$0xff]  ;;  %v5535_v51 = vld [vmem:[%s13541_s13] sm:$0xff]  ;;  %7116 = vmatpush.msrb.mxu3 %v5537_v46  ;;  %v14345_v54 = vld [vmem:[#allocation84_spill] sm:$0xff] }
 0x3a9   : > { %v10930_v37 = vsub.f32 %v14339_v63, %v4756_v15  ;;  %v3444_v60 = vadd.f32 %v3412_v26, %v3346_v11  ;;  %v4751_v15 = vmul.f32 %v14344_v33, %v14188_v18  ;;  %v7526_v63 = vld [vmem:[#allocation3 + $0x128] sm:$0xff]  ;;  %v3215_v62 = vmul.f32 %v14345_v54, %v14253_v31  ;;  %v14346_v61 = vld [vmem:[#allocation19_spill] sm:$0xff] }
 0x3aa   : > { %14342 = vst [vmem:[#allocation66_spill] sm:$0xff] %v10940_v8  ;;  %v3409_v58 = vmul.f32 %v7526_v63, %v14338_v19  ;;  %5653 = vmatpush.msra.mxu1 %v5536_v28  ;;  %v3606_v26 = vmul.f32 %v10932_v14, %v14303_v23  ;;  %v3703_v63 = vmul.f32 %v10934_v29, %v14305_v36 }
 0x3ab   : > { %14340 = vst [vmem:[#allocation77_spill] sm:$0xff] %v10930_v37  ;;  %v4820_v6 = vmul.f32 %v10930_v37, %v10930_v37  ;;  %v3541_v11 = vadd.f32 %v3509_v44, %v3444_v60  ;;  %v10964_v37 = vsub.f32 %v14346_v61, %v4758_v27  ;;  %v5392_v46 = vadd.f32 %v7183_v59, %v5357_v41  ;;  %v14349_v41 = vld [vmem:[#allocation83_spill] sm:$0xff] }
 0x3ac   : > { %14343 = vst [vmem:[#allocation14_spill] sm:$0xff] %v10944_v48  ;;  %v3441_v33 = vadd.f32 %v3409_v58, %v3343_v52  ;;  %7117 = vmatpush.msrb.mxu3 %v5536_v28  ;;  %v4812_v54 = vmul.f32 %v10940_v8, %v10940_v8  ;;  %v3247_v60 = vadd.f32 %v3215_v62, %v3150_v30  ;;  %v7527_v58 = vld [vmem:[#allocation3 + $0x129] sm:$0xff] }
 0x3ad   : > { %14347 = vst [vmem:[#allocation70_spill] sm:$0xff] %v10964_v37  ;;  %v4872_v4 = vsel %vm875_vm1, %v4820_v6, 0.0  ;;  %5654 = vmatpush.msra.mxu1 %v5535_v51  ;;  %v3638_v44 = vadd.f32 %v3606_v26, %v3541_v11  ;;  %v3506_v52 = vmul.f32 %v7527_v58, %v14301_v9  ;;  %v5429_v27 = vmul.f32 %v10944_v48, %v5392_v46  ;;  %v14350_v6 = vld [vmem:[#allocation49_spill] sm:$0xff]  ;;  %v14353_v26 = vld [vmem:[#allocation52_spill] sm:$0xff] }
 0x3ae   : > { %4873 = vadd.xlane.f32.xlu1 %v4872_v4  ;;  %7118 = vmatpush.msrb.mxu3 %v5535_v51  ;;  %v3312_v28 = vmul.f32 %v14349_v41, %v14294_v38  ;;  %v3410_v59 = vmul.f32 %v14350_v6, %v14338_v19  ;;  %v3800_v4 = vmul.f32 %v10966_v20, %v14311_v12  ;;  %v10983_v62 = vld [vmem:[#allocation3 + $0x16c] sm:$0xff]  ;;  %v4848_v6 = vsel %vm875_vm1, %v4812_v54, 0.0 }
 0x3af   : > { %v3735_v30 = vadd.f32 %v3703_v63, %v3638_v44  ;;  %v10986_v11 = vsub.f32 %v14351_v2, %v4751_v15  ;;  %v5466_v58 = vadd.f32 %v14353_v26, %v5429_v27  ;;  %v4822_v51 = vmul.f32 %v10964_v37, %v10964_v37  ;;  %4849 = vadd.xlane.f32.xlu0 %v4848_v6  ;;  %v7528_v2 = vld [vmem:[#allocation3 + $0x12a] sm:$0xff] }
 0x3b0   : > { %v2738_v46 = vmul.f32 %v10971_v32, %v8559_v40  ;;  %v3538_v61 = vadd.f32 %v3506_v52, %v3441_v33  ;;  %v3344_v63 = vadd.f32 %v3312_v28, %v3247_v60  ;;  %v2835_v27 = vmul.f32 %v10983_v62, %v14244_v21  ;;  %v14355_v28 = vld [vmem:[#allocation15_spill] sm:$0xff]  ;;  %v14359_v6 = vld [vmem:[#allocation21_spill] sm:$0xff] }
 0x3b1   : > { %14352 = vst [vmem:[#allocation27_spill] sm:$0xff] %v10986_v11  ;;  %v10994_v44 = vadd.f32 %v3800_v4, %v3735_v30  ;;  %v5503_v48 = vmul.f32 %v10973_v3, %v5466_v58  ;;  %v3603_v37 = vmul.f32 %v7528_v2, %v14303_v23  ;;  %v4878_v33 = vsel %vm875_vm1, %v4822_v51, 0.0  ;;  %v11011_v4 = vld [vmem:[#allocation3 + $0x128] sm:$0xff]  ;;  %v3862_v58 = vld [vmem:[#allocation3 + $0x140] sm:$0xff] }
 0x3b2   : > { %v2770_v15 = vadd.f32 %v2738_v46, %v10770_v24  ;;  %v3442_v26 = vadd.f32 %v3410_v59, %v3344_v63  ;;  %v4753_v52 = vmul.f32 %v10848_v7, %v14188_v18  ;;  %v4815_v24 = vmul.f32 %v10986_v11, %v10986_v11  ;;  %14356 = vst [vmem:[#allocation20_spill] sm:$0xff] %v11011_v4  ;;  %v7529_v59 = vld [vmem:[#allocation3 + $0x12b] sm:$0xff] }
 0x3b3   : > { %7037 = vmatmul.msk.f32.vlgmr.msra.gmra.mxu1 %vm875_vm1, %v5503_v48  ;;  %v3635_v60 = vadd.f32 %v3603_v37, %v3538_v61  ;;  %v3507_v30 = vmul.f32 %v14355_v28, %v14301_v9  ;;  %v3700_v48 = vmul.f32 %v7529_v59, %v14305_v36  ;;  %v2925_v37 = vmul.f32 %v14247_v50, %v11011_v4  ;;  %v14357_v51 = vld [vmem:[#allocation24_spill] sm:$0xff] }
 0x3b4   : > { %v11003_v54 = vadd.f32 %v2835_v27, %v2770_v15  ;;  %v11017_v7 = vsub.f32 %v14357_v51, %v4753_v52  ;;  %v4857_v46 = vsel %vm875_vm1, %v4815_v24, 0.0  ;;  %v3604_v63 = vmul.f32 %v14359_v6, %v14303_v23  ;;  %v11022_v15 = vld [vmem:[#allocation3 + $0x129] sm:$0xff] }
 0x3b5   : > { %v3539_v2 = vadd.f32 %v3507_v30, %v3442_v26  ;;  %v3732_v61 = vadd.f32 %v3700_v48, %v3635_v60  ;;  %14360 = vst [vmem:[#allocation72_spill] sm:$0xff] %v11022_v15  ;;  %v2957_v27 = vadd.f32 %v2925_v37, %v10856_v47  ;;  %v7530_v28 = vld [vmem:[#allocation3 + $0x12c] sm:$0xff]  ;;  %v14362_v60 = vld [vmem:[#allocation38_spill] sm:$0xff]  ;;  %v3022_v24 = vmul.f32 %v14332_v0, %v11022_v15  ;;  %v11031_v48 = vld [vmem:[#allocation3 + $0x141] sm:$0xff] }
 0x3b6   : > { %14354 = vst [vmem:[#allocation17_spill] sm:$0xff] %v11003_v54  ;;  %4879 = vadd.xlane.f32.xlu1 %v4878_v33  ;;  %v14361_v33 = vld [vmem:[#allocation69_spill] sm:$0xff]  ;;  %v3797_v30 = vmul.f32 %v7530_v28, %v14311_v12  ;;  %v3701_v52 = vmul.f32 %v14362_v60, %v14305_v36  ;;  %v4817_v47 = vmul.f32 %v11017_v7, %v11017_v7  ;;  %v11039_v28 = vld [vmem:[#allocation3 + $0x140] sm:$0xff] }
 0x3b7   : > { %14358 = vst [vmem:[#allocation42_spill] sm:$0xff] %v11017_v7  ;;  %4858 = vadd.xlane.f32.xlu0 %v4857_v46  ;;  %v3895_v26 = vmul.f32 %v14361_v33, %v3862_v58  ;;  %v3636_v59 = vadd.f32 %v3604_v63, %v3539_v2  ;;  %v4755_v46 = vmul.f32 %v10883_v42, %v14188_v18  ;;  %v11037_v37 = vld [vmem:[#allocation3 + $0x12a] sm:$0xff]  ;;  %v14365_v60 = vld [vmem:[#allocation71_spill] sm:$0xff]  ;;  %v14369_v7 = vld [vmem:[#allocation62_spill] sm:$0xff] }
 0x3b8   : > { %v3829_v6 = vadd.f32 %v3797_v30, %v3732_v61  ;;  %14363 = vst [vmem:[#allocation25_spill] sm:$0xff] %v11037_v37  ;;  %v3054_v51 = vadd.f32 %v3022_v24, %v2957_v27  ;;  %v3992_v54 = vmul.f32 %v14365_v60, %v11031_v48  ;;  %v3119_v11 = vmul.f32 %v14252_v25, %v11037_v37  ;;  %v11045_v61 = vld [vmem:[#allocation3 + $0x141] sm:$0xff]  ;;  %v14367_v42 = vld [vmem:[#allocation93_spill] sm:$0xff] }
 0x3b9   : > { %14364 = vst [vmem:[#allocation108_spill] sm:$0xff] %v11039_v28  ;;  %v3733_v63 = vadd.f32 %v3701_v52, %v3636_v59  ;;  %v11047_v30 = vld [vmem:[#allocation3 + $0x142] sm:$0xff]  ;;  %v11050_v3 = vsub.f32 %v14367_v42, %v4755_v46  ;;  %v3798_v27 = vmul.f32 %v14369_v7, %v14311_v12  ;;  %v4863_v24 = vsel %vm875_vm1, %v4817_v47, 0.0 }
 0x3ba   : > { %v3927_v2 = vadd.f32 %v3895_v26, %v3829_v6  ;;  %14366 = vst [vmem:[#allocation37_spill] sm:$0xff] %v11045_v61  ;;  %v11055_v26 = vld [vmem:[#allocation3 + $0x12b] sm:$0xff]  ;;  %v1960_v59 = vmul.f32 %v11039_v28, %v14283_v45  ;;  %v3151_v52 = vadd.f32 %v3119_v11, %v3054_v51  ;;  %v11059_v6 = vld [vmem:[#allocation3 + $0x142] sm:$0xff]  ;;  %v2057_v46 = vmul.f32 %v11045_v61, %v14284_v5  ;;  %v11073_v51 = vpop.xlane.xlu0 %4690 }
 0x3bb   : > { %14368 = vst [vmem:[#allocation104_spill] sm:$0xff] %v11050_v3  ;;  %v3830_v37 = vadd.f32 %v3798_v27, %v3733_v63  ;;  %v14372_v42 = vld [vmem:[#allocation48_spill] sm:$0xff]  ;;  %v3216_v7 = vmul.f32 %v14253_v31, %v11055_v26  ;;  %v3896_v11 = vmul.f32 %v14361_v33, %v10907_v10  ;;  %v2154_v27 = vmul.f32 %v11059_v6, %v14243_v17  ;;  %v14376_v45 = vld [vmem:[#allocation23_spill] sm:$0xff] }
 0x3bc   : > { %14370 = vst [vmem:[#allocation74_spill] sm:$0xff] %v11055_v26  ;;  %v4024_v8 = vadd.f32 %v3992_v54, %v3927_v2  ;;  %v4089_v15 = vmul.f32 %v14372_v42, %v11047_v30  ;;  %v11067_v47 = vld [vmem:[#allocation3 + $0x143] sm:$0xff]  ;;  %v4819_v54 = vmul.f32 %v11050_v3, %v11050_v3  ;;  %v11077_v2 = vld [vmem:[#allocation3 + $0x12c] sm:$0xff]  ;;  %v2089_v63 = vadd.f32 %v2057_v46, %v1960_v59 }
 0x3bd   : > { %14371 = vst [vmem:[#allocation44_spill] sm:$0xff] %v11059_v6  ;;  %v11069_v4 = vld [vmem:[#allocation3 + $0x143] sm:$0xff]  ;;  %v3928_v26 = vadd.f32 %v3896_v11, %v3830_v37  ;;  %v2251_v10 = vmul.f32 %v11067_v47, %v8393_v57  ;;  %v3313_v3 = vmul.f32 %v14294_v38, %v11077_v2  ;;  %v3411_v59 = vmul.f32 %v3862_v58, %v14338_v19  ;;  %v14377_v6 = vld [vmem:[#allocation13_spill] sm:$0xff] }
 0x3be   : > { %14373 = vst [vmem:[#allocation76_spill] sm:$0xff] %v11067_v47  ;;  %v11081_v61 = vld [vmem:[#allocation3 + $0x144] sm:$0xff]  ;;  %v4121_v28 = vadd.f32 %v4089_v15, %v4024_v8  ;;  %v2186_v5 = vadd.f32 %v2154_v27, %v2089_v63  ;;  %v3993_v46 = vmul.f32 %v14365_v60, %v10915_v13  ;;  %v2446_v58 = vmul.f32 %v10781_v22, %v8499_v43  ;;  %v4522_v22 = vpop.permute.xlu2 %4521 }
 0x3bf   : > { %4864 = vadd.xlane.f32.xlu0 %v4863_v24  ;;  %14374 = vst [vmem:[#allocation87_spill] sm:$0xff] %v11073_v51  ;;  %v3248_v24 = vadd.f32 %v3216_v7, %v3151_v52  ;;  %v4186_v51 = vmul.f32 %v14376_v45, %v11069_v4  ;;  %v4869_v52 = vsel %vm875_vm1, %v4819_v54, 0.0  ;;  %v2348_v8 = vmul.f32 %v11081_v61, %v13983_v39  ;;  %v11095_v15 = vld [vmem:[#allocation3 + $0x144] sm:$0xff] }
 0x3c0   : > { %14375 = vst [vmem:[#allocation110_spill] sm:$0xff] %v11077_v2  ;;  %v2283_v7 = vadd.f32 %v2251_v10, %v2186_v5  ;;  %v4409_v11 = vld [vmem:[#allocation2 + $0x88] sm:$0xff]  ;;  %v4025_v27 = vadd.f32 %v3993_v46, %v3928_v26  ;;  %v11105_v5 = vld [vmem:[%s13540_s12 + $0x18] ss:$0 sm:$0xff]  ;;  %v2543_v26 = vmul.f32 %v10783_v56, %v8508_v16  ;;  %v14379_v46 = vld [vmem:[#allocation35_spill] sm:$0xff]  ;;  %v4187_v56 = vmul.f32 %v14376_v45, %v10934_v29 }
 0x3c1   : > { %v3345_v37 = vadd.f32 %v3313_v3, %v3248_v24  ;;  %v4218_v63 = vadd.f32 %v4186_v51, %v4121_v28  ;;  %v11100_v2 = vadd.f32 %v14377_v6, %v4409_v11  ;;  %v4283_v54 = vmul.f32 %v11105_v5, %v11095_v15  ;;  %v14380_v11 = vld [vmem:[#allocation18_spill] sm:$0xff] }
 0x3c2   : > { %v2380_v47 = vadd.f32 %v2348_v8, %v2283_v7  ;;  %v4090_v3 = vmul.f32 %v14372_v42, %v10932_v14  ;;  %v3508_v6 = vmul.f32 %v11031_v48, %v14301_v9  ;;  %v2737_v14 = vmul.f32 %v10860_v34, %v8559_v40 }
 0x3c3   : > { %14378 = vst [vmem:[#allocation106_spill] sm:$0xff] %v11100_v2  ;;  %v3443_v13 = vadd.f32 %v3411_v59, %v3345_v37  ;;  %v4315_v51 = vadd.f32 %v4283_v54, %v4218_v63  ;;  %v4701_v48 = vsel %vm875_vm1, %v11100_v2, 0.0  ;;  %v2834_v34 = vmul.f32 %v10862_v35, %v14244_v21 }
 0x3c4   : > { %v2478_v28 = vadd.f32 %v2446_v58, %v2380_v47  ;;  %v4122_v24 = vadd.f32 %v4090_v3, %v4025_v27  ;;  %v3605_v27 = vmul.f32 %v11047_v30, %v14303_v23  ;;  %v11129_v58 = vld [vmem:[#allocation3 + $0x170] sm:$0xff]  ;;  %v4411_v3 = vld [vmem:[#allocation2 + $0x98] sm:$0xff]  ;;  %v4284_v30 = vmul.f32 %v11105_v5, %v10966_v20 }
 0x3c5   : > { %v4694_v10 = vpop.xlane.xlu0 %4693  ;;  %v3540_v8 = vadd.f32 %v3508_v6, %v3443_v13  ;;  %v4603_v47 = vmul.f32 %v4522_v22, %v4315_v51  ;;  %v3672_v22 = vld [vmem:[#allocation3 + $0x16b] sm:$0xff] }
 0x3c6   : > { %v2575_v59 = vadd.f32 %v2543_v26, %v2478_v28  ;;  %v4760_v7 = vmul.f32 %v4694_v10, %v14188_v18  ;;  %v4219_v13 = vadd.f32 %v4187_v56, %v4122_v24  ;;  %v11135_v26 = vld [vmem:[#allocation3 + $0x171] sm:$0xff]  ;;  %v2931_v24 = vmul.f32 %v11129_v58, %v14247_v50  ;;  %v4527_v10 = vpop.permute.xlu1 %4526 }
 0x3c7   : > { %4870 = vadd.xlane.f32.xlu0 %v4869_v52  ;;  %v2640_v52 = vmul.f32 %v14379_v46, %v14110_v1  ;;  %v3637_v28 = vadd.f32 %v3605_v27, %v3540_v8  ;;  %v11137_v6 = vadd.f32 %v4603_v47, %v4411_v3  ;;  %v3702_v46 = vmul.f32 %v11069_v4, %v14305_v36  ;;  %v3769_v27 = vld [vmem:[#allocation3 + $0x16c] sm:$0xff]  ;;  %v14383_v3 = vld [vmem:[#allocation90_spill] sm:$0xff] }
 0x3c8   : > { %v11125_v63 = vsub.f32 %v14380_v11, %v4760_v7  ;;  %v4316_v7 = vadd.f32 %v4284_v30, %v4219_v13  ;;  %v3028_v20 = vmul.f32 %v11135_v26, %v14332_v0  ;;  %v2254_v47 = vmul.f32 %v3672_v22, %v8393_v57 }
 0x3c9   : > { %v2672_v37 = vadd.f32 %v2640_v52, %v2575_v59  ;;  %14382 = vst [vmem:[#allocation45_spill] sm:$0xff] %v11137_v6  ;;  %v3892_v59 = vmul.f32 %v14361_v33, %v14333_v53  ;;  %v11148_v52 = vld [vmem:[#allocation3 + $0x172] sm:$0xff]  ;;  %v4707_v13 = vsel %vm875_vm1, %v11137_v6, 0.0  ;;  %v3989_v22 = vmul.f32 %v14365_v60, %v14334_v49 }
 0x3ca   : > { %14381 = vst [vmem:[#allocation107_spill] sm:$0xff] %v11125_v63  ;;  %v4824_v29 = vmul.f32 %v11125_v63, %v11125_v63  ;;  %v11155_v53 = vld [vmem:[#allocation3 + $0x173] sm:$0xff]  ;;  %v4604_v4 = vmul.f32 %v4527_v10, %v4316_v7 }
 0x3cb   : > { %v2769_v54 = vadd.f32 %v2737_v14, %v2672_v37  ;;  %v3734_v37 = vadd.f32 %v3702_v46, %v3637_v28  ;;  %v11168_v28 = vld [vmem:[#allocation3 + $0x174] sm:$0xff] }
 0x3cc   : > { %v4884_v35 = vsel %vm875_vm1, %v4824_v29, 0.0  ;;  %v11176_v49 = vld [vmem:[#allocation3 + $0x158] sm:$0xff] }
 0x3cd   : > { %v2866_v51 = vadd.f32 %v2834_v34, %v2769_v54  ;;  %4885 = vadd.xlane.f32.xlu1 %v4884_v35  ;;  %v4697_v8 = vpop.xlane.xlu0 %4696  ;;  %v3125_v34 = vmul.f32 %v11148_v52, %v14252_v25  ;;  %v2351_v35 = vmul.f32 %v3769_v27, %v13983_v39  ;;  %v14389_v27 = vld [vmem:[#allocation26_spill] sm:$0xff] }
 0x3ce   : > { %v4761_v56 = vmul.f32 %v4697_v8, %v14188_v18 }
 0x3cf   : > { %4702 = vadd.xlane.f32.xlu0 %v4701_v48  ;;  %v2963_v14 = vadd.f32 %v2931_v24, %v2866_v51  ;;  %v3924_v48 = vadd.f32 %v3892_v59, %v10850_v55  ;;  %v3799_v55 = vmul.f32 %v11095_v15, %v14311_v12  ;;  %v3222_v51 = vmul.f32 %v11155_v53, %v14253_v31  ;;  %v14385_v24 = vld [vmem:[#allocation16_spill] sm:$0xff]  ;;  %v4412_v59 = vld [vmem:[#allocation2 + $0xa0] sm:$0xff] }
 0x3d0   : > { %v11162_v29 = vsub.f32 %v14383_v3, %v4761_v56  ;;  %v2286_v10 = vadd.f32 %v2254_v47, %v14385_v24  ;;  %v11180_v15 = vadd.f32 %v4604_v4, %v4412_v59  ;;  %v3319_v56 = vmul.f32 %v11168_v28, %v14294_v38  ;;  %v11203_v59 = vld [vmem:[#allocation3 + $0x18b] sm:$0xff]  ;;  %v14395_v3 = vld [vmem:[#allocation63_spill] sm:$0xff] }
 0x3d1   : > { %v3060_v54 = vadd.f32 %v3028_v20, %v2963_v14  ;;  %v4021_v7 = vadd.f32 %v3989_v22, %v3924_v48  ;;  %v3831_v8 = vadd.f32 %v3799_v55, %v3734_v37  ;;  %v11178_v14 = vld [vmem:[#allocation3 + $0x188] sm:$0xff]  ;;  %v3897_v48 = vmul.f32 %v14361_v33, %v11176_v49  ;;  %v11195_v55 = vld [vmem:[#allocation3 + $0x159] sm:$0xff]  ;;  %14392 = vst [vmem:[#allocation75_spill] sm:$0xff] %v11203_v59 }
 0x3d2   : > { %14384 = vst [vmem:[#allocation81_spill] sm:$0xff] %v11162_v29  ;;  %v4825_v46 = vmul.f32 %v11162_v29, %v11162_v29  ;;  %v3417_v4 = vmul.f32 %v11178_v14, %v14338_v19  ;;  %v11225_v29 = vld [vmem:[#allocation3 + $0x15b] sm:$0xff] }
 0x3d3   : > { %v3157_v30 = vadd.f32 %v3125_v34, %v3060_v54  ;;  %14386 = vst [vmem:[#allocation22_spill] sm:$0xff] %v11178_v14  ;;  %v4086_v54 = vmul.f32 %v14372_v42, %v14389_v27  ;;  %v11189_v34 = vld [vmem:[#allocation3 + $0x189] sm:$0xff]  ;;  %v3929_v24 = vadd.f32 %v3897_v48, %v3831_v8 }
 0x3d4   : > { %14387 = vst [vmem:[#allocation94_spill] sm:$0xff] %v11180_v15  ;;  %v4887_v47 = vsel %vm875_vm1, %v4825_v46, 0.0  ;;  %v14393_v46 = vld [vmem:[#allocation84_spill] sm:$0xff] }
 0x3d5   : > { %v3254_v20 = vadd.f32 %v3222_v51, %v3157_v30  ;;  %14390 = vst [vmem:[#allocation85_spill] sm:$0xff] %v11189_v34  ;;  %4888 = vadd.xlane.f32.xlu1 %v4887_v47  ;;  %v4118_v22 = vadd.f32 %v4086_v54, %v4021_v7  ;;  %v11197_v30 = vld [vmem:[#allocation3 + $0x18a] sm:$0xff]  ;;  %v4710_v51 = vsel %vm875_vm1, %v11180_v15, 0.0  ;;  %v3994_v7 = vmul.f32 %v14365_v60, %v11195_v55  ;;  %v4408_v15 = vld [vmem:[#allocation2 + $0x80] sm:$0xff] }
 0x3d6   : > { %14391 = vst [vmem:[#allocation88_spill] sm:$0xff] %v11197_v30  ;;  %v3611_v27 = vmul.f32 %v11197_v30, %v14303_v23  ;;  %v11213_v8 = vld [vmem:[#allocation3 + $0x18c] sm:$0xff] }
 0x3d7   : > { %4708 = vadd.xlane.f32.xlu0 %v4707_v13  ;;  %v11184_v13 = vadd.f32 %v2351_v35, %v2286_v10  ;;  %v3351_v37 = vadd.f32 %v3319_v56, %v3254_v20  ;;  %v3514_v35 = vmul.f32 %v11189_v34, %v14301_v9  ;;  %v4183_v20 = vmul.f32 %v14376_v45, %v14393_v46  ;;  %v11209_v56 = vld [vmem:[#allocation3 + $0x15a] sm:$0xff]  ;;  %v14422_v14 = vld [vmem:[#allocation108_spill] sm:$0xff] }
 0x3d8   : > { %14394 = vst [vmem:[#allocation12_spill] sm:$0xff] %v11213_v8  ;;  %v4026_v48 = vadd.f32 %v3994_v7, %v3929_v24  ;;  %v4280_v46 = vmul.f32 %v11105_v5, %v14349_v41  ;;  %v3805_v11 = vmul.f32 %v11213_v8, %v14311_v12 }
 0x3d9   : > { %14388 = vst [vmem:[#allocation95_spill] sm:$0xff] %v11184_v13  ;;  %v3449_v10 = vadd.f32 %v3417_v4, %v3351_v37  ;;  %v4215_v54 = vadd.f32 %v4183_v20, %v4118_v22  ;;  %v3708_v4 = vmul.f32 %v11203_v59, %v14305_v36  ;;  %v11236_v13 = vld [vmem:[#allocation3 + $0x15c] sm:$0xff] }
 0x3db   : > { %v3546_v47 = vadd.f32 %v3514_v35, %v3449_v10  ;;  %v3898_v10 = vmul.f32 %v14361_v33, %v14395_v3  ;;  %v4312_v22 = vadd.f32 %v4280_v46, %v4215_v54  ;;  %v4188_v3 = vmul.f32 %v14376_v45, %v11225_v29 }
 0x3dd   : > { %v3643_v37 = vadd.f32 %v3611_v27, %v3546_v47  ;;  %v3930_v20 = vadd.f32 %v3898_v10, %v10994_v44  ;;  %v14397_v27 = vld [vmem:[#allocation99_spill] sm:$0xff]  ;;  %v4285_v10 = vmul.f32 %v11105_v5, %v11236_v13 }
 0x3de   : > { %v4747_v41 = vmul.f32 %v14397_v27, %v14188_v18 }
 0x3df   : > { %4711 = vadd.xlane.f32.xlu0 %v4710_v51  ;;  %v4091_v51 = vmul.f32 %v14372_v42, %v11209_v56  ;;  %v3740_v35 = vadd.f32 %v3708_v4, %v3643_v37  ;;  %v14398_v37 = vld [vmem:[#allocation80_spill] sm:$0xff] }
 0x3e0   : > { %v4507_v47 = vpop.permute.xlu0 %4506  ;;  %v3995_v4 = vmul.f32 %v14365_v60, %v14398_v37  ;;  %v4189_v37 = vmul.f32 %v14376_v45, %v10971_v32  ;;  %v2409_v45 = vld [vmem:[#allocation3 + $0x128] sm:$0xff] }
 0x3e1   : > { %v4123_v24 = vadd.f32 %v4091_v51, %v4026_v48  ;;  %v11228_v7 = vadd.f32 %v3805_v11, %v3740_v35  ;;  %v4600_v63 = vmul.f32 %v4507_v47, %v4312_v22  ;;  %v14400_v11 = vld [vmem:[#allocation101_spill] sm:$0xff]  ;;  %v4353_v35 = vld [vmem:[%s7806_s29 + $0xc8] sm:$0xff] }
 0x3e2   : > { %v4027_v44 = vadd.f32 %v3995_v4, %v3930_v20  ;;  %v11241_v51 = vsub.f32 %v14400_v11, %v4747_v41  ;;  %v14401_v22 = vld [vmem:[#allocation97_spill] sm:$0xff]  ;;  %7300 = vrcp.f32 %v4353_v35  ;;  %v4356_v4 = vld [vmem:[%s7806_s29 + $0xe0] sm:$0xff] }
 0x3e3   : > { %14396 = vst [vmem:[#allocation11_spill] sm:$0xff] %v11228_v7  ;;  %v11238_v54 = vadd.f32 %v4600_v63, %v4408_v15  ;;  %v4220_v48 = vadd.f32 %v4188_v3, %v4123_v24  ;;  %v4092_v47 = vmul.f32 %v14372_v42, %v14401_v22  ;;  %v14402_v20 = vld [vmem:[#allocation89_spill] sm:$0xff]  ;;  %7302 = vrcp.f32 %v4356_v4  ;;  %v14421_v42 = vld [vmem:[#allocation110_spill] sm:$0xff] }
 0x3e4   : > { %v4752_v27 = vmul.f32 %v14402_v20, %v14188_v18  ;;  %v4811_v3 = vmul.f32 %v11241_v51, %v11241_v51  ;;  %v14403_v22 = vld [vmem:[#allocation109_spill] sm:$0xff]  ;;  %v14406_v20 = vld [vmem:[#allocation111_spill] sm:$0xff] }
 0x3e5   : > { %14399 = vst [vmem:[#allocation58_spill] sm:$0xff] %v11238_v54  ;;  %v4698_v46 = vsel %vm875_vm1, %v11238_v54, 0.0  ;;  %v4317_v63 = vadd.f32 %v4285_v10, %v4220_v48  ;;  %v4124_v15 = vadd.f32 %v4092_v47, %v4027_v44  ;;  %v4286_v44 = vmul.f32 %v11105_v5, %v10983_v62  ;;  %v14405_v47 = vld [vmem:[#allocation34_spill] sm:$0xff] }
 0x3e6   : > { %4699 = vadd.xlane.f32.xlu2 %v4698_v46  ;;  %v11260_v46 = vsub.f32 %v14403_v22, %v4752_v27  ;;  %v4845_v48 = vsel %vm875_vm1, %v4811_v3, 0.0  ;;  %v14408_v62 = vld [vmem:[#allocation78_spill] sm:$0xff] }
 0x3e7   : > { %v4221_v11 = vadd.f32 %v4189_v37, %v4124_v15  ;;  %v4757_v5 = vmul.f32 %v14408_v62, %v14188_v18  ;;  %v4351_v62 = vld [vmem:[%s7806_s29 + $0xb8] sm:$0xff] }
 0x3e8   : > { %v4532_v24 = vpop.permute.xlu0 %4531  ;;  %v7301_v7 = vpop.eup %7300  ;;  %14404 = vst [vmem:[#allocation46_spill] sm:$0xff] %v11260_v46  ;;  %v4816_v15 = vmul.f32 %v11260_v46, %v11260_v46  ;;  %7304 = vrcp.f32 %v4351_v62  ;;  %v4355_v22 = vld [vmem:[%s7806_s29 + $0xd8] sm:$0xff]  ;;  %v14416_v62 = vld [vmem:[#allocation20_spill] sm:$0xff] }
 0x3e9   : > { %v11252_v41 = vmul.f32 %v4532_v24, %v4317_v63  ;;  %v4318_v10 = vadd.f32 %v4286_v44, %v4221_v11  ;;  %v4754_v63 = vmul.f32 %v14405_v47, %v14188_v18  ;;  %v7303_v24 = vpop.eup %7302  ;;  %v14409_v11 = vld [vmem:[#allocation86_spill] sm:$0xff] }
 0x3ea   : > { %v4860_v3 = vsel %vm875_vm1, %v4816_v15, 0.0  ;;  %v11280_v37 = vsub.f32 %v14409_v11, %v4757_v5  ;;  %v2214_v46 = vld [vmem:[#allocation3 + $0x113] sm:$0xff] }
 0x3eb   : > { %v11272_v27 = vsub.f32 %v14406_v20, %v4754_v63 }
 0x3ec   : > { %14410 = vst [vmem:[#allocation67_spill] sm:$0xff] %v11280_v37 }
 0x3ed   : > { %14407 = vst [vmem:[#allocation65_spill] sm:$0xff] %v11272_v27 }
 0x3ee   : > { %4551 = vperm.xlu1 %7173, %v7301_v7   ;;  %4846 = vadd.xlane.f32.xlu2 %v4845_v48  ;;  %v4818_v7 = vmul.f32 %v11272_v27, %v11272_v27  ;;  %v14411_v48 = vld [vmem:[#allocation87_spill] sm:$0xff]  ;;  %v7305_v5 = vpop.eup %7304  ;;  %v14417_v27 = vld [vmem:[#allocation72_spill] sm:$0xff] }
 0x3ef   : > { %v4759_v44 = vmul.f32 %v14411_v48, %v14188_v18  ;;  %v1923_v48 = vld [vmem:[#allocation3 + $0x110] sm:$0xff] }
 0x3f0   : > { %v4537_v35 = vpop.permute.xlu0 %4536  ;;  %v4866_v4 = vsel %vm875_vm1, %v4818_v7, 0.0 }
 0x3f1   : > { %v11267_v32 = vmul.f32 %v4537_v35, %v4318_v10  ;;  %v4821_v10 = vmul.f32 %v11280_v37, %v11280_v37  ;;  %v14412_v35 = vld [vmem:[#allocation39_spill] sm:$0xff] }
 0x3f2   : > { %v11288_v47 = vsub.f32 %v14412_v35, %v4759_v44  ;;  %v2020_v44 = vld [vmem:[#allocation3 + $0x111] sm:$0xff] }
 0x3f3   : > { %v4875_v63 = vsel %vm875_vm1, %v4821_v10, 0.0  ;;  %v14414_v10 = vld [vmem:[#allocation28_spill] sm:$0xff]  ;;  %v14415_v35 = vld [vmem:[#allocation29_spill] sm:$0xff] }
 0x3f4   : > { %14413 = vst [vmem:[#allocation96_spill] sm:$0xff] %v11288_v47  ;;  %v4823_v15 = vmul.f32 %v11288_v47, %v11288_v47  ;;  %v2053_v11 = vmul.f32 %v14415_v35, %v2020_v44  ;;  %v1958_v37 = vmul.f32 %v14416_v62, %v14414_v10  ;;  %v2247_v44 = vmul.f32 %v8393_v57, %v2214_v46 }
 0x3f6   : > { %4566 = vperm.xlu1 %7173, %v7303_v24   ;;  %4861 = vadd.xlane.f32.xlu2 %v4860_v3  ;;  %v4881_v24 = vsel %vm875_vm1, %v4823_v15, 0.0 }
 0x3fe   : > { %4867 = vadd.xlane.f32.xlu2 %v4866_v4  ;;  %v4352_v4 = vld [vmem:[%s7806_s29 + $0xc0] sm:$0xff] }
 0x3ff   : > { %7306 = vrcp.f32 %v4352_v4  ;;  %v2055_v4 = vmul.f32 %v14417_v27, %v14415_v35  ;;  %v2442_v27 = vmul.f32 %v8499_v43, %v2409_v45  ;;  %v2603_v45 = vld [vmem:[#allocation3 + $0x12a] sm:$0xff] }
 0x400   : > { %7308 = vrcp.f32 %v4355_v22 }
 0x401   : > { %v2087_v8 = vadd.f32 %v2055_v4, %v1958_v37  ;;  %v2506_v4 = vld [vmem:[#allocation3 + $0x129] sm:$0xff] }
 0x405   : > { %v7307_v20 = vpop.eup %7306 }
 0x406   : > { %4876 = vadd.xlane.f32.xlu2 %v4875_v63  ;;  %v1956_v63 = vmul.f32 %v14414_v10, %v1923_v48  ;;  %v7309_v59 = vpop.eup %7308 }
 0x408   : > { %v2085_v47 = vadd.f32 %v2053_v11, %v1956_v63  ;;  %v14419_v11 = vld [vmem:[#allocation25_spill] sm:$0xff] }
 0x409   : > { %v2152_v22 = vmul.f32 %v14419_v11, %v14243_v17  ;;  %v2311_v63 = vld [vmem:[#allocation3 + $0x114] sm:$0xff]  ;;  %v2346_v11 = vmul.f32 %v14421_v42, %v13983_v39  ;;  %v2700_v42 = vld [vmem:[#allocation3 + $0x12b] sm:$0xff] }
 0x40b   : > { %v2184_v34 = vadd.f32 %v2152_v22, %v2087_v8  ;;  %v2539_v8 = vmul.f32 %v8508_v16, %v2506_v4 }
 0x40e   : > { %4882 = vadd.xlane.f32.xlu2 %v4881_v24  ;;  %v2117_v24 = vld [vmem:[#allocation3 + $0x112] sm:$0xff] }
 0x422   : > { %v11294_v3 = vpop.xlane.xlu0 %4849 }
 0x426   : > { %4541 = vperm.xlu2 %7175, %v7305_v5   ;;  %v2150_v5 = vmul.f32 %v14243_v17, %v2117_v24 }
 0x428   : > { %v2182_v48 = vadd.f32 %v2150_v5, %v2085_v47  ;;  %v14420_v47 = vld [vmem:[#allocation74_spill] sm:$0xff] }
 0x429   : > { %v2249_v37 = vmul.f32 %v14420_v47, %v8393_v57  ;;  %v6590_v47 = vld [vmem:[%s13543_s15 + $0x30] sm:$0xff] }
 0x42a   : > { %v11297_v7 = vpop.xlane.xlu0 %4858  ;;  %v2279_v62 = vadd.f32 %v2247_v44, %v2182_v48  ;;  %v2444_v48 = vmul.f32 %v8499_v43, %v14422_v14 }
 0x42b   : > { %v2281_v46 = vadd.f32 %v2249_v37, %v2184_v34  ;;  %v14424_v37 = vld [vmem:[#allocation37_spill] sm:$0xff] }
 0x42d   : > { %v2378_v44 = vadd.f32 %v2346_v11, %v2281_v46 }
 0x42e   : > { %4546 = vperm.xlu2 %7175, %v7307_v20   ;;  %v2344_v20 = vmul.f32 %v13983_v39, %v2311_v63 }
 0x42f   : > { %v2476_v34 = vadd.f32 %v2444_v48, %v2378_v44 }
 0x430   : > { %v2376_v24 = vadd.f32 %v2344_v20, %v2279_v62  ;;  %v2636_v20 = vmul.f32 %v14110_v1, %v2603_v45  ;;  %v5656_v46 = vpop.f32.mrf.mxu1  ;;  %v14426_v45 = vld [vmem:[#allocation44_spill] sm:$0xff] }
 0x432   : > { %v11302_v15 = vpop.xlane.xlu0 %4864  ;;  %v2474_v5 = vadd.f32 %v2442_v27, %v2376_v24  ;;  %v7184_v27 = vld [vmem:[%s13542_s14] ss:$0 sm:$0xff]  ;;  %v2541_v24 = vmul.f32 %v8508_v16, %v14424_v37 }
 0x433   : > { %v11345_v44 = vadd.f32 %v7184_v27, %v5656_v46 }
 0x434   : > { %v2571_v63 = vadd.f32 %v2539_v8, %v2474_v5  ;;  %v2573_v48 = vadd.f32 %v2541_v24, %v2476_v34  ;;  %v2733_v8 = vmul.f32 %v8559_v40, %v2700_v42  ;;  %v2927_v42 = vmul.f32 %v14247_v50, %v14422_v14 }
 0x435   : > { %14425 = vst [vmem:[#allocation54_spill] sm:$0xff] %v11345_v44  ;;  %v11358_v27 = vmul.f32 0.70710677, %v11345_v44 }
 0x436   : > { %4561 = vperm.xlu2 %7175, %v7309_v59   ;;  %v2668_v5 = vadd.f32 %v2636_v20, %v2571_v63  ;;  %v1924_v20 = vld [vmem:[#allocation3 + $0x120] sm:$0xff] }
 0x437   : > { %v11366_v14 = vand.u32 2147483647, %v11358_v27  ;;  %vm5816_vm3 = vcmp.ge.f32.partialorder %v11358_v27, 0.0 }
 0x438   : > { %v2765_v63 = vadd.f32 %v2733_v8, %v2668_v5 }
 0x43a   : > { %v11311_v30 = vpop.xlane.xlu0 %4870 }
 0x43b   : > { %14418 = vst [vmem:[#allocation33_spill] sm:$0xff] %v11311_v30 }
 0x442   : > { %v4703_v30 = vpop.xlane.xlu0 %4702 }
 0x443   : > { %v4763_v59 = vmul.f32 %v4703_v30, %v14188_v18  ;;  %v6591_v30 = vld [vmem:[%s13543_s15 + $0x38] sm:$0xff] }
 0x444   : > { %6701 = vmatpush.msra.mxu2 %v6591_v30  ;;  %7119 = vmatpush.msra.mxu3 %v6591_v30  ;;  %v2021_v30 = vld [vmem:[#allocation3 + $0x121] sm:$0xff] }
 0x445   : > { %v11326_v22 = vsub.f32 %v11100_v2, %v4763_v59  ;;  %v2638_v2 = vmul.f32 %v14110_v1, %v14426_v45  ;;  %v2054_v5 = vmul.f32 %v14415_v35, %v2021_v30  ;;  %v3024_v30 = vmul.f32 %v14332_v0, %v14424_v37  ;;  %v11383_v37 = vld [vmem:[#allocation3 + $0x138] sm:$0xff] }
 0x446   : > { %6702 = vmatpush.msra.mxu2 %v6590_v47  ;;  %7120 = vmatpush.msra.mxu3 %v6590_v47  ;;  %v14428_v47 = vld [vmem:[#allocation76_spill] sm:$0xff] }
 0x447   : > { %14423 = vst [vmem:[#allocation105_spill] sm:$0xff] %v11326_v22  ;;  %v4827_v62 = vmul.f32 %v11326_v22, %v11326_v22  ;;  %v2797_v22 = vld [vmem:[#allocation3 + $0x12c] sm:$0xff]  ;;  %v2735_v46 = vmul.f32 %v8559_v40, %v14428_v47 }
 0x448   : > { %v2830_v24 = vmul.f32 %v14244_v21, %v2797_v22  ;;  %v2118_v22 = vld [vmem:[#allocation3 + $0x122] sm:$0xff] }
 0x449   : > { %v4893_v4 = vsel %vm875_vm1, %v4827_v62, 0.0 }
 0x44a   : > { %4894 = vadd.xlane.f32.xlu1 %v4893_v4  ;;  %v4709_v11 = vpop.xlane.xlu0 %4708  ;;  %v2670_v4 = vadd.f32 %v2638_v2, %v2573_v48  ;;  %v2862_v48 = vadd.f32 %v2830_v24, %v2765_v63  ;;  %v2151_v63 = vmul.f32 %v14243_v17, %v2118_v22  ;;  %v4853_v24 = vpop.xlane.xlu1 %4852 }
 0x44b   : > { %v4765_v59 = vmul.f32 %v4709_v11, %v14188_v18  ;;  %v1957_v11 = vmul.f32 %v14414_v10, %v1924_v20  ;;  %v4940_v20 = vmul.f32 %v11294_v3, %v14188_v18  ;;  %v3121_v3 = vmul.f32 %v14252_v25, %v14426_v45 }
 0x44c   : > { %v2959_v8 = vadd.f32 %v2927_v42, %v2862_v48  ;;  %v3218_v45 = vmul.f32 %v14253_v31, %v14428_v47 }
 0x44d   : > { %v11350_v62 = vsub.f32 %v11137_v6, %v4765_v59  ;;  %v2767_v59 = vadd.f32 %v2735_v46, %v2670_v4  ;;  %v2215_v6 = vld [vmem:[#allocation3 + $0x123] sm:$0xff]  ;;  %v2086_v44 = vadd.f32 %v2054_v5, %v1957_v11  ;;  %v5912_v46 = vmul.f32 0.3275911, %v11366_v14 }
 0x44e   : > { %v2248_v4 = vmul.f32 %v8393_v57, %v2215_v6  ;;  %v3056_v42 = vadd.f32 %v3024_v30, %v2959_v8  ;;  %v11379_v11 = vadd.f32 1e-05, %v4940_v20  ;;  %v2312_v5 = vld [vmem:[#allocation3 + $0x124] sm:$0xff]  ;;  %v4941_v6 = vmul.f32 %v4853_v24, %v14188_v18  ;;  %v11396_v24 = vld [vmem:[#allocation3 + $0x139] sm:$0xff] }
 0x44f   : > { %14427 = vst [vmem:[#allocation82_spill] sm:$0xff] %v11350_v62  ;;  %v4829_v34 = vmul.f32 %v11350_v62, %v11350_v62  ;;  %v2832_v62 = vmul.f32 %v14244_v21, %v11081_v61  ;;  %v2183_v48 = vadd.f32 %v2151_v63, %v2086_v44  ;;  %v5944_v8 = vadd.f32 1.0, %v5912_v46 }
 0x450   : > { %v3153_v22 = vadd.f32 %v3121_v3, %v3056_v42  ;;  %v3026_v30 = vmul.f32 %v11195_v55, %v14332_v0  ;;  %v2443_v44 = vmul.f32 %v8499_v43, %v11383_v37  ;;  %7310 = vrsqrt.f32 %v11379_v11  ;;  %v4413_v42 = vld [vmem:[#allocation2 + $0xa8] sm:$0xff] }
 0x451   : > { %v4899_v2 = vsel %vm875_vm1, %v4829_v34, 0.0  ;;  %v2864_v34 = vadd.f32 %v2832_v62, %v2767_v59  ;;  %v2280_v59 = vadd.f32 %v2248_v4, %v2183_v48  ;;  %v11394_v63 = vadd.f32 1e-05, %v4941_v6 }
 0x452   : > { %4900 = vadd.xlane.f32.xlu1 %v4899_v2  ;;  %v2929_v2 = vmul.f32 %v11176_v49, %v14247_v50  ;;  %v2345_v49 = vmul.f32 %v13983_v39, %v2312_v5  ;;  %v3250_v4 = vadd.f32 %v3218_v45, %v3153_v22  ;;  %7312 = vrcp.f32 %v5944_v8  ;;  %v4856_v3 = vpop.xlane.xlu1 %4855  ;;  %v6589_v5 = vld [vmem:[%s13543_s15 + $0x28] sm:$0xff]  ;;  %v6587_v8 = vld [vmem:[%s13543_s15 + $0x18] sm:$0xff] }
 0x453   : > { %v3123_v46 = vmul.f32 %v11209_v56, %v14252_v25  ;;  %v11401_v48 = vadd.f32 %v11252_v41, %v4413_v42  ;;  %6703 = vmatpush.msra.mxu2 %v6589_v5  ;;  %v2540_v56 = vmul.f32 %v8508_v16, %v11396_v24  ;;  %7121 = vmatpush.msra.mxu3 %v6589_v5  ;;  %7314 = vrsqrt.f32 %v11394_v63  ;;  %v7532_v42 = vld [vmem:[#allocation3 + $0x158] sm:$0xff] }
 0x454   : > { %v2961_v62 = vadd.f32 %v2929_v2, %v2864_v34  ;;  %v2377_v34 = vadd.f32 %v2345_v49, %v2280_v59  ;;  %v3315_v59 = vmul.f32 %v14294_v38, %v11081_v61  ;;  %v11423_v49 = vld [vmem:[#allocation3 + $0x13a] sm:$0xff]  ;;  %v4942_v61 = vmul.f32 %v4856_v3, %v14188_v18 }
 0x455   : > { %14429 = vst [vmem:[#allocation114_spill] sm:$0xff] %v11401_v48  ;;  %v3317_v5 = vmul.f32 %v11236_v13, %v14294_v38  ;;  %v6585_v13 = vld [vmem:[%s13543_s15 + $0x8] sm:$0xff]  ;;  %v11472_v39 = vld [vmem:[#allocation3 + $0x13c] sm:$0xff]  ;;  %vm5028_vm14 = vweird.f32 %v11379_v11  ;;  %vm5038_vm15 = vweird.f32 %v11394_v63 }
 0x456   : > { %v3058_v20 = vadd.f32 %v3026_v30, %v2961_v62  ;;  %v2475_v2 = vadd.f32 %v2443_v44, %v2377_v34  ;;  %v6588_v62 = vld [vmem:[%s13543_s15 + $0x20] sm:$0xff]  ;;  %v11414_v41 = vpop.eup %7310  ;;  %v3347_v30 = vadd.f32 %v3315_v59, %v3250_v4  ;;  %v3220_v44 = vmul.f32 %v11225_v29, %v14253_v31  ;;  %v6586_v4 = vld [vmem:[%s13543_s15 + $0x10] sm:$0xff] }
 0x457   : > { %6704 = vmatpush.msra.mxu2 %v6588_v62  ;;  %7122 = vmatpush.msra.mxu3 %v6588_v62  ;;  %v5023_v29 = vmul.f32 %v11414_v41, %v11379_v11  ;;  %vm5029_vm13 = vweird.f32 %v11414_v41 }
 0x458   : > { %v3155_v6 = vadd.f32 %v3123_v46, %v3058_v20  ;;  %v2572_v45 = vadd.f32 %v2540_v56, %v2475_v2  ;;  %v4713_v20 = vsel %vm875_vm1, %v11401_v48, 0.0  ;;  %v11436_v46 = vld [vmem:[#allocation3 + $0x13b] sm:$0xff]  ;;  %v11438_v3 = vpop.eup %7312  ;;  %v11447_v56 = vadd.f32 1e-05, %v4942_v61  ;;  %vm11530_vm0 = vmor %vm5028_vm14, %vm5029_vm13 }
 0x459   : > { %v4700_v55 = vpop.xlane.xlu2 %4699  ;;  %14431 = vst [vmem:[#allocation61_spill] sm:$0xff] %v11436_v46  ;;  %6705 = vmatpush.msra.mxu2 %v6587_v8  ;;  %7123 = vmatpush.msra.mxu3 %v6587_v8  ;;  %v6584_v8 = vld [vmem:[%s13543_s15] sm:$0xff] }
 0x45a   : > { %v4762_v47 = vmul.f32 %v4700_v55, %v14188_v18  ;;  %v3413_v55 = vmul.f32 %v7532_v42, %v14338_v19  ;;  %v3252_v2 = vadd.f32 %v3220_v44, %v3155_v6  ;;  %v6296_v42 = vsub.f32 0.0, %v11366_v14  ;;  %v11452_v44 = vpop.eup %7314  ;;  %v7533_v61 = vld [vmem:[#allocation3 + $0x159] sm:$0xff] }
 0x45b   : > { %6706 = vmatpush.msra.mxu2 %v6586_v4  ;;  %v2734_v6 = vmul.f32 %v8559_v40, %v11436_v46  ;;  %7124 = vmatpush.msra.mxu3 %v6586_v4  ;;  %v11468_v40 = vpop.xlane.xlu1 %4705  ;;  %v5033_v4 = vmul.f32 %v11452_v44, %v11394_v63  ;;  %7316 = vrsqrt.f32 %v11447_v56  ;;  %vm5039_vm4 = vweird.f32 %v11452_v44 }
 0x45c   : > { %v11418_v22 = vsub.f32 %v11238_v54, %v4762_v47  ;;  %v2637_v47 = vmul.f32 %v14110_v1, %v11423_v49  ;;  %v3445_v59 = vadd.f32 %v3413_v55, %v3347_v30  ;;  %v6008_v30 = vmul.f32 1.0614054, %v11438_v3  ;;  %vm11562_vm7 = vmor %vm5038_vm15, %vm5039_vm4 }
 0x45d   : > { %v5024_v55 = vmul.f32 %v11414_v41, %v5023_v29  ;;  %6707 = vmatpush.msra.mxu2 %v6585_v13  ;;  %7125 = vmatpush.msra.mxu3 %v6585_v13  ;;  %v6328_v29 = vmul.f32 %v6296_v42, %v11366_v14  ;;  %v7535_v13 = vld [vmem:[#allocation3 + $0x15b] sm:$0xff]  ;;  %v2831_v42 = vmul.f32 %v14244_v21, %v11472_v39  ;;  %vm5048_vm10 = vweird.f32 %v11447_v56 }
 0x45e   : > { %14430 = vst [vmem:[#allocation100_spill] sm:$0xff] %v11418_v22  ;;  %v4826_v34 = vmul.f32 %v11418_v22, %v11418_v22  ;;  %v6040_v16 = vadd.f32 -1.4531521, %v6008_v30  ;;  %v3704_v30 = vmul.f32 %v7535_v13, %v14305_v36  ;;  %v3996_v63 = vmul.f32 %v14365_v60, %v11135_v26 }
 0x45f   : > { %4714 = vadd.xlane.f32.xlu2 %v4713_v20  ;;  %v2669_v20 = vadd.f32 %v2637_v47, %v2572_v45  ;;  %v3510_v45 = vmul.f32 %v7533_v61, %v14301_v9  ;;  %v3349_v47 = vadd.f32 %v3317_v5, %v3252_v2  ;;  %6708 = vmatpush.msra.mxu2 %v6584_v8  ;;  %v7536_v61 = vld [vmem:[#allocation3 + $0x15c] sm:$0xff] }
 0x460   : > { %v4890_v62 = vsel %vm875_vm1, %v4826_v34, 0.0  ;;  %v4414_v34 = vld [vmem:[#allocation2 + $0xb0] sm:$0xff]  ;;  %v6072_v5 = vmul.f32 %v11438_v3, %v6040_v16  ;;  %7126 = vmatpush.msra.mxu3 %v6584_v8  ;;  %v3801_v14 = vmul.f32 %v7536_v61, %v14311_v12  ;;  %v6360_v16 = vmul.f32 1.442695, %v6328_v29 }
 0x461   : > { %4891 = vadd.xlane.f32.xlu0 %v4890_v62  ;;  %v4847_v54 = vpop.xlane.xlu2 %4846  ;;  %v11466_v48 = vadd.f32 %v11267_v32, %v4414_v34  ;;  %v3542_v43 = vadd.f32 %v3510_v45, %v3445_v59  ;;  %v2766_v2 = vadd.f32 %v2734_v6, %v2669_v20  ;;  %v4943_v32 = vmul.f32 %v11297_v7, %v14188_v18 }
 0x462   : > { %v4939_v22 = vmul.f32 %v4847_v54, %v14188_v18  ;;  %v7534_v54 = vld [vmem:[#allocation3 + $0x15a] sm:$0xff]  ;;  %v5025_v59 = vmul.f32 0.5, %v5024_v55  ;;  %v6104_v6 = vadd.f32 1.4214138, %v6072_v5  ;;  %v5034_v34 = vmul.f32 %v11452_v44, %v5033_v4  ;;  %v7539_v4 = vld [vmem:[#allocation3 + $0x152] sm:$0xff] }
 0x463   : > { %v3607_v62 = vmul.f32 %v7534_v54, %v14303_v23  ;;  %14432 = vst [vmem:[#allocation53_spill] sm:$0xff] %v11466_v48  ;;  %v4716_v7 = vsel %vm875_vm1, %v11466_v48, 0.0  ;;  %v2863_v55 = vadd.f32 %v2831_v42, %v2766_v2  ;;  %v7537_v54 = vld [vmem:[#allocation3 + $0x150] sm:$0xff]  ;;  %v11492_v46 = vadd.f32 1e-05, %v4943_v32 }
 0x464   : > { %v11470_v1 = vadd.f32 1e-05, %v4939_v22  ;;  %v3415_v22 = vmul.f32 %v14338_v19, %v11129_v58  ;;  %v2928_v13 = vmul.f32 %v7537_v54, %v14247_v50  ;;  %v3512_v61 = vmul.f32 %v14301_v9, %v11135_v26  ;;  %v7540_v2 = vld [vmem:[#allocation3 + $0x153] sm:$0xff] }
 0x465   : > { %v3639_v45 = vadd.f32 %v3607_v62, %v3542_v43  ;;  %v11498_v43 = vpop.eup %7316  ;;  %v5026_v62 = vsub.f32 1.5, %v5025_v59  ;;  %v11501_v29 = vmul.f32 %v7539_v4, %v14252_v25  ;;  %v11504_v42 = vmul.f32 %v7540_v2, %v14253_v31  ;;  %v7541_v32 = vld [vmem:[#allocation3 + $0x154] sm:$0xff] }
 0x466   : > { %7318 = vrsqrt.f32 %v11470_v1  ;;  %v3447_v20 = vadd.f32 %v3415_v22, %v3349_v47  ;;  %v6136_v47 = vmul.f32 %v11438_v3, %v6104_v6  ;;  %v7538_v22 = vld [vmem:[#allocation3 + $0x151] sm:$0xff]  ;;  %v11509_v6 = vpop.xlane.xlu1 %4873  ;;  %v2960_v25 = vadd.f32 %v2928_v13, %v2863_v55 }
 0x467   : > { %v3025_v5 = vmul.f32 %v7538_v22, %v14332_v0  ;;  %v3609_v22 = vmul.f32 %v14303_v23, %v11148_v52  ;;  %v3736_v21 = vadd.f32 %v3704_v30, %v3639_v45  ;;  %v5035_v0 = vmul.f32 0.5, %v5034_v34 }
 0x468   : > { %v3544_v48 = vadd.f32 %v3512_v61, %v3447_v20  ;;  %v6168_v59 = vadd.f32 -0.28449672, %v6136_v47  ;;  %7320 = vpow2.f32 %v6360_v16  ;;  %v5043_v2 = vmul.f32 %v11498_v43, %v11447_v56 }
 0x469   : > { %v4862_v8 = vpop.xlane.xlu2 %4861  ;;  %4717 = vadd.xlane.f32.xlu0 %v4716_v7  ;;  %v11507_v7 = vmul.f32 %v7541_v32, %v14294_v38  ;;  %7322 = vrsqrt.f32 %v11492_v46  ;;  %v5027_v20 = vmul.f32 %v11414_v41, %v5026_v62  ;;  %v3706_v30 = vmul.f32 %v14305_v36, %v11155_v53 }
 0x46a   : > { %v4944_v32 = vmul.f32 %v4862_v8, %v14188_v18  ;;  %v6200_v38 = vmul.f32 %v11438_v3, %v6168_v59  ;;  %v3641_v34 = vadd.f32 %v3609_v22, %v3544_v48  ;;  %v3833_v55 = vadd.f32 %v3801_v14, %v3736_v21 }
 0x46b   : > { %v3899_v13 = vmul.f32 %v14361_v33, %v11129_v58  ;;  %v5036_v61 = vsub.f32 1.5, %v5035_v0  ;;  %v3057_v62 = vadd.f32 %v3025_v5, %v2960_v25  ;;  %v5044_v59 = vmul.f32 %v11498_v43, %v5043_v2  ;;  %v4354_v58 = vld [vmem:[%s7806_s29 + $0xd0] sm:$0xff] }
 0x46c   : > { %v7319_v54 = vpop.eup %7318  ;;  %v6232_v16 = vadd.f32 0.2548296, %v6200_v38  ;;  %v11534_v38 = vadd.f32 1e-05, %v4944_v32  ;;  %v5031_v11 = vsel %vm11530_vm0, %v11414_v41, %v5027_v20  ;;  %v4945_v25 = vmul.f32 %v11302_v15, %v14188_v18  ;;  %v14435_v41 = vld [vmem:[#allocation66_spill] sm:$0xff] }
 0x46d   : > { %v5013_v4 = vmul.f32 %v7319_v54, %v11470_v1  ;;  %vm5019_vm2 = vweird.f32 %v7319_v54  ;;  %7324 = vrcp.f32 %v4354_v58  ;;  %v5037_v22 = vmul.f32 %v11452_v44, %v5036_v61  ;;  %v14441_v61 = vld [vmem:[#allocation57_spill] sm:$0xff] }
 0x46e   : > { %v6264_v21 = vmul.f32 %v11438_v3, %v6232_v16  ;;  %v7321_v0 = vpop.eup %7320  ;;  %vm5018_vm5 = vweird.f32 %v11470_v1  ;;  %v5045_v31 = vmul.f32 0.5, %v5044_v59  ;;  %v11550_v2 = vpop.xlane.xlu1 %4879  ;;  %7326 = vrsqrt.f32 %v11534_v38 }
 0x46f   : > { %v5014_v45 = vmul.f32 %v7319_v54, %v5013_v4  ;;  %v11543_v14 = vpop.eup %7322  ;;  %v5324_v4 = vmul.f32 %v5031_v11, %v14435_v41  ;;  %vm5020_vm6 = vmor %vm5018_vm5, %vm5019_vm2  ;;  %v11555_v20 = vadd.f32 1e-05, %v4945_v25  ;;  %v3931_v58 = vadd.f32 %v3899_v13, %v3833_v55  ;;  %v14438_v55 = vld [vmem:[#allocation54_spill] sm:$0xff] }
 0x470   : > { %v6424_v5 = vmul.f32 %v7321_v0, %v6264_v21  ;;  %v5053_v32 = vmul.f32 %v11543_v14, %v11492_v46  ;;  %v5041_v27 = vsel %vm11562_vm7, %v11452_v44, %v5037_v22  ;;  %v3738_v0 = vadd.f32 %v3706_v30, %v3641_v34  ;;  %v4357_v34 = vld [vmem:[%s7806_s29 + $0xe8] sm:$0xff] }
 0x471   : > { %v5015_v8 = vmul.f32 0.5, %v5014_v45  ;;  %v11526_v47 = vpop.xlane.xlu2 %4867  ;;  %v13865_v45 = vmov -1.0   ;;  %v3154_v11 = vadd.f32 %v11501_v29, %v3057_v62  ;;  %v5752_v13 = vmul.f32 0.5, %v14438_v55  ;;  %v11593_v62 = vld [vmem:[%s13539_s11] ss:$0 sm:$0xff] }
 0x472   : > { %v6456_v15 = vsub.f32 1.0, %v6424_v5  ;;  %v5848_v16 = vsel %vm5816_vm3, 1.0, %v13865_v45  ;;  %v5046_v5 = vsub.f32 1.5, %v5045_v31  ;;  %v5054_v22 = vmul.f32 %v11543_v14, %v5053_v32  ;;  %v14440_v32 = vld [vmem:[#allocation48_spill] sm:$0xff] }
 0x473   : > { %v5016_v48 = vsub.f32 1.5, %v5015_v8  ;;  %v3803_v8 = vmul.f32 %v14311_v12, %v11168_v28  ;;  %v7325_v25 = vpop.eup %7324  ;;  %7328 = vrsqrt.f32 %v11555_v20  ;;  %v4028_v41 = vadd.f32 %v3996_v63, %v3931_v58 }
 0x474   : > { %v6488_v21 = vmul.f32 %v6456_v15, %v5848_v16  ;;  %v11588_v26 = vpop.eup %7326  ;;  %7330 = vrcp.f32 %v4357_v34  ;;  %v14439_v15 = vld [vmem:[#allocation22_spill] sm:$0xff]  ;;  %v4093_v16 = vmul.f32 %v14440_v32, %v11148_v52  ;;  %vm5049_vm9 = vweird.f32 %v11498_v43  ;;  %v14444_v34 = vld [vmem:[#allocation85_spill] sm:$0xff] }
 0x475   : > { %v5017_v3 = vmul.f32 %v7319_v54, %v5016_v48  ;;  %v11580_v48 = vld [vmem:[%s13538_s10] ss:$0 sm:$0xff]  ;;  %v3901_v31 = vmul.f32 %v14361_v33, %v14439_v15  ;;  %v5047_v58 = vmul.f32 %v11498_v43, %v5046_v5  ;;  %v5063_v63 = vmul.f32 %v11588_v26, %v11534_v38  ;;  %vm11630_vm11 = vmor %vm5048_vm10, %vm5049_vm9 }
 0x476   : > { %v6520_v30 = vadd.f32 1.0, %v6488_v21  ;;  %v14442_v21 = vld [vmem:[#allocation14_spill] sm:$0xff]  ;;  %v4946_v52 = vmul.f32 %v11526_v47, %v14188_v18  ;;  %v3998_v5 = vmul.f32 %v14365_v60, %v14444_v34  ;;  %v4358_v47 = vld [vmem:[%s7806_s29 + $0xf0] sm:$0xff]  ;;  %v14449_v34 = vld [vmem:[#allocation88_spill] sm:$0xff]  ;;  %vm5059_vm12 = vweird.f32 %v11543_v14 }
 0x477   : > { %v5021_v1 = vsel %vm5020_vm6, %v7319_v54, %v5017_v3  ;;  %v4095_v45 = vmul.f32 %v14440_v32, %v14449_v34  ;;  %7332 = vrcp.f32 %v4358_v47  ;;  %vm5058_vm13 = vweird.f32 %v11492_v46 }
 0x478   : > { %v5323_v59 = vmul.f32 %v5021_v1, %v11241_v51  ;;  %v5359_v51 = vmul.f32 %v11580_v48, %v5324_v4  ;;  %v6552_v29 = vmul.f32 %v6520_v30, %v5752_v13  ;;  %v3835_v4 = vadd.f32 %v3803_v8, %v3738_v0  ;;  %v11614_v13 = vld [vmem:[#allocation3 + $0x168] sm:$0xff]  ;;  %vm11677_vm14 = vmor %vm5058_vm13, %vm5059_vm12 }
 0x479   : > { %v11572_v54 = vpop.xlane.xlu2 %4876  ;;  %v3251_v1 = vadd.f32 %v11504_v42, %v3154_v11  ;;  %v5055_v0 = vmul.f32 0.5, %v5054_v22  ;;  %v11611_v42 = vpop.xlane.xlu1 %4885  ;;  %vm5069_vm15 = vweird.f32 %v11588_v26  ;;  %vm5068_vm0 = vweird.f32 %v11534_v38 }
 0x47a   : > { %v5358_v44 = vmul.f32 %v11580_v48, %v5323_v59  ;;  %v5325_v59 = vmul.f32 %v5041_v27, %v14441_v61  ;;  %7069 = vmatmul.msk.f32.vlgmr.msra.gmra.mxu2 %vm6596_vm8, %v6552_v29  ;;  %v5394_v8 = vadd.f32 %v11593_v62, %v5359_v51  ;;  %v14443_v27 = vld [vmem:[#allocation52_spill] sm:$0xff]  ;;  %v11618_v51 = vpop.eup %7328  ;;  %v3933_v30 = vadd.f32 %v3901_v31, %v3835_v4  ;;  %v14448_v4 = vld [vmem:[#allocation23_spill] sm:$0xff]  ;;  %vm11730_vm2 = vmor %vm5068_vm0, %vm5069_vm15 }
 0x47b   : > { %v3348_v29 = vadd.f32 %v11507_v7, %v3251_v1  ;;  %v4190_v31 = vmul.f32 %v14448_v4, %v11155_v53  ;;  %v5051_v7 = vsel %vm11630_vm11, %v11498_v43, %v5047_v58  ;;  %v5056_v1 = vsub.f32 1.5, %v5055_v0  ;;  %v11652_v43 = vld [vmem:[%s13540_s12 + $0x18] ss:$0 sm:$0xff] }
 0x47c   : > { %v5393_v3 = vadd.f32 %v11593_v62, %v5358_v44  ;;  %v3414_v44 = vmul.f32 %v11614_v13, %v14338_v19  ;;  %v5431_v61 = vmul.f32 %v14442_v21, %v5394_v8  ;;  %v5073_v53 = vmul.f32 %v11618_v51, %v11555_v20 }
 0x47d   : > { %4556 = vperm.xlu0 %7174, %v7325_v25   ;;  %v4125_v25 = vadd.f32 %v4093_v16, %v4028_v41  ;;  %v5360_v41 = vmul.f32 %v11580_v48, %v5325_v59  ;;  %v14447_v16 = vld [vmem:[#allocation112_spill] sm:$0xff]  ;;  %v5064_v59 = vmul.f32 %v11588_v26, %v5063_v63  ;;  %v4030_v8 = vadd.f32 %v3998_v5, %v3933_v30  ;;  %v14450_v63 = vld [vmem:[#allocation98_spill] sm:$0xff]  ;;  %v14451_v5 = vld [vmem:[#allocation33_spill] sm:$0xff] }
 0x47e   : > { %v5430_v55 = vmul.f32 %v14442_v21, %v5393_v3  ;;  %v7331_v3 = vpop.eup %7330  ;;  %v4287_v58 = vmul.f32 %v11652_v43, %v11168_v28  ;;  %v3446_v0 = vadd.f32 %v3414_v44, %v3348_v29  ;;  %v5057_v30 = vmul.f32 %v11543_v14, %v5056_v1  ;;  %v11666_v29 = vld [vmem:[#allocation3 + $0x169] sm:$0xff] }
 0x47f   : > { %v5395_v47 = vadd.f32 %v11593_v62, %v5360_v41  ;;  %v5065_v15 = vmul.f32 0.5, %v5064_v59  ;;  %v4764_v41 = vmul.f32 %v11468_v40, %v14188_v18  ;;  %v7333_v59 = vpop.eup %7332  ;;  %v2153_v38 = vmul.f32 %v11423_v49, %v14243_v17 }
 0x480   : > { %v5467_v11 = vadd.f32 %v14443_v27, %v5430_v55  ;;  %v11642_v55 = vadd.f32 1e-05, %v4946_v52  ;;  %v5326_v52 = vmul.f32 %v5051_v7, %v14450_v63  ;;  %v4127_v7 = vadd.f32 %v4095_v45, %v4030_v8 }
 0x481   : > { %v11623_v22 = vpop.xlane.xlu2 %4882  ;;  %v5432_v46 = vmul.f32 %v14442_v21, %v5395_v47  ;;  %v5061_v45 = vsel %vm11677_vm14, %v11543_v14, %v5057_v30  ;;  %v5066_v8 = vsub.f32 1.5, %v5065_v15  ;;  %v2056_v47 = vmul.f32 %v11396_v24, %v14415_v35  ;;  %v14456_v14 = vld [vmem:[#allocation73_spill] sm:$0xff] }
 0x482   : > { %v5504_v56 = vmul.f32 %v14447_v16, %v5467_v11  ;;  %v4222_v11 = vadd.f32 %v4190_v31, %v4125_v25  ;;  %v5468_v25 = vadd.f32 %v14443_v27, %v5431_v61  ;;  %7334 = vrsqrt.f32 %v11642_v55  ;;  %v11704_v15 = vld [vmem:[#allocation3 + $0x16a] sm:$0xff] }
 0x483   : > { %v3511_v31 = vmul.f32 %v11666_v29, %v14301_v9  ;;  %v5074_v61 = vmul.f32 %v11618_v51, %v5073_v53  ;;  %v5361_v34 = vmul.f32 %v11580_v48, %v5326_v52  ;;  %v4415_v52 = vld [vmem:[#allocation2 + $0xb8] sm:$0xff]  ;;  %v11702_v30 = vsub.f32 %v14456_v14, %v4764_v41  ;;  %v11745_v14 = vld [vmem:[#allocation3 + $0x16c] sm:$0xff] }
 0x484   : > { %7038 = vmatmul.msk.f32.gmra.mxu1 %vm875_vm1, %v5504_v56  ;;  %v14452_v56 = vld [vmem:[#allocation75_spill] sm:$0xff]  ;;  %v4319_v44 = vadd.f32 %v4287_v58, %v4222_v11  ;;  %v11681_v58 = vpop.xlane.xlu1 %4888  ;;  %v5505_v40 = vmul.f32 %v14447_v16, %v5468_v25  ;;  %v1959_v25 = vmul.f32 %v11383_v37, %v14414_v10  ;;  %v5469_v24 = vadd.f32 %v14443_v27, %v5432_v46 }
 0x485   : > { %4571 = vperm.xlu0 %7174, %v7331_v3   ;;  %v4947_v3 = vmul.f32 %v14451_v5, %v14188_v18  ;;  %v4192_v28 = vmul.f32 %v14448_v4, %v14452_v56  ;;  %v3543_v5 = vadd.f32 %v3511_v31, %v3446_v0  ;;  %v4948_v56 = vmul.f32 %v11509_v6, %v14188_v18  ;;  %v14458_v31 = vld [vmem:[#allocation27_spill] sm:$0xff] }
 0x486   : > { %14457 = vst [vmem:[#allocation49_spill] sm:$0xff] %v11702_v30  ;;  %v3608_v6 = vmul.f32 %v11704_v15, %v14303_v23  ;;  %v5396_v11 = vadd.f32 %v11593_v62, %v5361_v34  ;;  %v5067_v41 = vmul.f32 %v11588_v26, %v5066_v8  ;;  %v11723_v34 = vld [vmem:[#allocation3 + $0x16b] sm:$0xff]  ;;  %v4828_v8 = vmul.f32 %v11702_v30, %v11702_v30 }
 0x487   : > { %v11688_v53 = vadd.f32 1e-05, %v4947_v3  ;;  %v5075_v3 = vmul.f32 0.5, %v5074_v61  ;;  %v4224_v0 = vadd.f32 %v4192_v28, %v4127_v7  ;;  %v11716_v61 = vadd.f32 1e-05, %v4948_v56  ;;  %v14459_v7 = vld [vmem:[#allocation12_spill] sm:$0xff] }
 0x488   : > { %v3640_v28 = vadd.f32 %v3608_v6, %v3543_v5  ;;  %v5071_v6 = vsel %vm11730_vm2, %v11588_v26, %v5067_v41  ;;  %vm5079_vm3 = vweird.f32 %v11618_v51  ;;  %v4896_v41 = vsel %vm875_vm1, %v4828_v8, 0.0  ;;  %v2509_v30 = vld [vmem:[#allocation3 + $0x151] sm:$0xff] }
 0x489   : > { %v4542_v1 = vpop.permute.xlu2 %4541  ;;  %7336 = vrsqrt.f32 %v11688_v53  ;;  %v5076_v46 = vsub.f32 1.5, %v5075_v3  ;;  %vm5078_vm4 = vweird.f32 %v11555_v20  ;;  %vm5088_vm7 = vweird.f32 %v11642_v55 }
 0x48a   : > { %v4607_v63 = vmul.f32 %v4542_v1, %v4319_v44  ;;  %v11699_v44 = vpop.eup %7334  ;;  %v5327_v1 = vmul.f32 %v5061_v45, %v14458_v31  ;;  %v3705_v45 = vmul.f32 %v11723_v34, %v14305_v36  ;;  %7338 = vrsqrt.f32 %v11716_v61  ;;  %vm11761_vm5 = vmor %vm5078_vm4, %vm5079_vm3 }
 0x48b   : > { %v5077_v26 = vmul.f32 %v11618_v51, %v5076_v46  ;;  %vm5089_vm6 = vweird.f32 %v11699_v44  ;;  %vm5098_vm11 = vweird.f32 %v11688_v53  ;;  %vm5108_vm14 = vweird.f32 %v11716_v61 }
 0x48c   : > { %v11692_v9 = vadd.f32 %v4607_v63, %v4415_v52  ;;  %7039 = vmatmul.msk.f32.gmra.mxu1 %vm875_vm1, %v5505_v40  ;;  %v5083_v63 = vmul.f32 %v11699_v44, %v11642_v55  ;;  %v2088_v40 = vadd.f32 %v2056_v47, %v1959_v25  ;;  %v5362_v52 = vmul.f32 %v11580_v48, %v5327_v1  ;;  %v4552_v5 = vpop.permute.xlu1 %4551  ;;  %v14462_v1 = vld [vmem:[#allocation61_spill] sm:$0xff]  ;;  %vm11811_vm9 = vmor %vm5088_vm7, %vm5089_vm6 }
 0x48d   : > { %4576 = vperm.xlu0 %7174, %v7333_v59   ;;  %v4289_v59 = vmul.f32 %v11652_v43, %v14459_v7  ;;  %v5506_v25 = vmul.f32 %v14447_v16, %v5469_v24  ;;  %v5433_v47 = vmul.f32 %v14442_v21, %v5396_v11  ;;  %v3737_v31 = vadd.f32 %v3705_v45, %v3640_v28  ;;  %v2899_v28 = vld [vmem:[#allocation3 + $0x180] sm:$0xff] }
 0x48e   : > { %14455 = vst [vmem:[#allocation83_spill] sm:$0xff] %v11692_v9  ;;  %v4719_v37 = vsel %vm875_vm1, %v11692_v9, 0.0  ;;  %v5084_v7 = vmul.f32 %v11699_v44, %v5083_v63  ;;  %v3802_v24 = vmul.f32 %v11745_v14, %v14311_v12  ;;  %v2185_v49 = vadd.f32 %v2153_v38, %v2088_v40  ;;  %v14468_v38 = vld [vmem:[#allocation40_spill] sm:$0xff] }
 0x48f   : > { %4720 = vadd.xlane.f32.xlu2 %v4719_v37  ;;  %v4321_v3 = vadd.f32 %v4289_v59, %v4224_v0  ;;  %v2250_v37 = vmul.f32 %v14462_v1, %v8393_v57  ;;  %v11750_v0 = vpop.eup %7336  ;;  %v14463_v59 = vld [vmem:[#allocation46_spill] sm:$0xff]  ;;  %v4949_v45 = vmul.f32 %v11572_v54, %v14188_v18  ;;  %v5470_v56 = vadd.f32 %v14443_v27, %v5433_v47 }
 0x490   : > { %v5328_v63 = vmul.f32 %v5071_v6, %v14463_v59  ;;  %v3834_v40 = vadd.f32 %v3802_v24, %v3737_v31  ;;  %v5093_v8 = vmul.f32 %v11750_v0, %v11688_v53  ;;  %v5081_v54 = vsel %vm11761_vm5, %v11618_v51, %v5077_v26  ;;  %v2412_v31 = vld [vmem:[#allocation3 + $0x150] sm:$0xff]  ;;  %v11775_v1 = vpop.eup %7338 }
 0x491   : > { %v4609_v11 = vmul.f32 %v4552_v5, %v4321_v3  ;;  %v2282_v46 = vadd.f32 %v2250_v37, %v2185_v49  ;;  %v4417_v5 = vld [vmem:[#allocation2 + $0xc8] sm:$0xff]  ;;  %v5085_v3 = vmul.f32 0.5, %v5084_v7  ;;  %v3900_v20 = vmul.f32 %v14361_v33, %v2899_v28  ;;  %v2800_v33 = vld [vmem:[#allocation3 + $0x154] sm:$0xff] }
 0x492   : > { %v2996_v37 = vld [vmem:[#allocation3 + $0x181] sm:$0xff]  ;;  %v5363_v24 = vmul.f32 %v11580_v48, %v5328_v63  ;;  %v11778_v49 = vadd.f32 1e-05, %v4949_v45  ;;  %v5507_v7 = vmul.f32 %v14447_v16, %v5470_v56  ;;  %v4950_v59 = vmul.f32 %v11550_v2, %v14188_v18  ;;  %v14469_v63 = vld [vmem:[#allocation42_spill] sm:$0xff] }
 0x493   : > { %v11770_v47 = vadd.f32 %v4609_v11, %v4417_v5  ;;  %v3932_v51 = vadd.f32 %v3900_v20, %v3834_v40  ;;  %v5094_v11 = vmul.f32 %v11750_v0, %v5093_v8  ;;  %v2445_v5 = vmul.f32 %v14468_v38, %v2412_v31  ;;  %v2606_v20 = vld [vmem:[#allocation3 + $0x152] sm:$0xff] }
 0x494   : > { %7040 = vmatmul.msk.f32.gmra.mxu1 %vm875_vm1, %v5506_v25  ;;  %v5397_v25 = vadd.f32 %v11593_v62, %v5362_v52  ;;  %v14467_v52 = vld [vmem:[#allocation32_spill] sm:$0xff]  ;;  %v5329_v45 = vmul.f32 %v5081_v54, %v14469_v63  ;;  %v5103_v56 = vmul.f32 %v11775_v1, %v11716_v61  ;;  %v3997_v40 = vmul.f32 %v14365_v60, %v2996_v37  ;;  %v14470_v31 = vld [vmem:[#allocation41_spill] sm:$0xff] }
 0x495   : > { %14466 = vst [vmem:[#allocation15_spill] sm:$0xff] %v11770_v47  ;;  %v2347_v6 = vmul.f32 %v11472_v39, %v14467_v52  ;;  %v5086_v39 = vsub.f32 1.5, %v5085_v3  ;;  %7340 = vrsqrt.f32 %v11778_v49  ;;  %v4725_v2 = vsel %vm875_vm1, %v11770_v47, 0.0  ;;  %v2703_v60 = vld [vmem:[#allocation3 + $0x153] sm:$0xff] }
 0x496   : > { %v5398_v3 = vadd.f32 %v11593_v62, %v5363_v24  ;;  %v5095_v63 = vmul.f32 0.5, %v5094_v11  ;;  %v5104_v47 = vmul.f32 %v11775_v1, %v5103_v56  ;;  %vm5099_vm10 = vweird.f32 %v11750_v0  ;;  %v11897_v61 = vld [vmem:[#allocation3 + $0x172] sm:$0xff] }
 0x497   : > { %4897 = vadd.xlane.f32.xlu2 %v4896_v41  ;;  %v5434_v41 = vmul.f32 %v14442_v21, %v5397_v25  ;;  %v2379_v26 = vadd.f32 %v2347_v6, %v2282_v46  ;;  %v2932_v25 = vmul.f32 %v14247_v50, %v2899_v28  ;;  %v3093_v46 = vld [vmem:[#allocation3 + $0x182] sm:$0xff]  ;;  %v4029_v6 = vadd.f32 %v3997_v40, %v3932_v51  ;;  %vm11860_vm12 = vmor %vm5098_vm11, %vm5099_vm10 }
 0x498   : > { %v11798_v28 = vadd.f32 1e-05, %v4950_v59  ;;  %v5087_v9 = vmul.f32 %v11699_v44, %v5086_v39  ;;  %v4094_v24 = vmul.f32 %v14440_v32, %v3093_v46  ;;  %v14472_v51 = vld [vmem:[#allocation43_spill] sm:$0xff]  ;;  %v5435_v11 = vmul.f32 %v14442_v21, %v5398_v3  ;;  %v14477_v32 = vld [vmem:[#allocation50_spill] sm:$0xff] }
 0x499   : > { %v5471_v8 = vadd.f32 %v14443_v27, %v5434_v41  ;;  %v2477_v54 = vadd.f32 %v2445_v5, %v2379_v26  ;;  %v14471_v41 = vld [vmem:[#allocation17_spill] sm:$0xff]  ;;  %v2639_v40 = vmul.f32 %v14472_v51, %v2606_v20  ;;  %v5364_v26 = vmul.f32 %v11580_v48, %v5329_v45  ;;  %v14473_v59 = vld [vmem:[#allocation55_spill] sm:$0xff] }
 0x49a   : > { %v2964_v52 = vadd.f32 %v2932_v25, %v14471_v41  ;;  %v3029_v39 = vmul.f32 %v14473_v59, %v2996_v37  ;;  %v3190_v5 = vld [vmem:[#allocation3 + $0x183] sm:$0xff]  ;;  %v11817_v20 = vmul.f32 %v14477_v32, %v2800_v33  ;;  %v5096_v55 = vsub.f32 1.5, %v5095_v63 }
 0x49b   : > { %v14476_v25 = vld [vmem:[#allocation47_spill] sm:$0xff]  ;;  %v11819_v45 = vpop.eup %7340  ;;  %7342 = vrsqrt.f32 %v11798_v28  ;;  %v5091_v37 = vsel %vm11811_vm9, %v11699_v44, %v5087_v9  ;;  %v5105_v3 = vmul.f32 0.5, %v5104_v47  ;;  %v11832_v33 = vmul.f32 %v11666_v29, %v14473_v59  ;;  %v11839_v47 = vld [vmem:[#allocation3 + $0x170] sm:$0xff] }
 0x49c   : > { %7041 = vmatmul.msk.f32.gmra.mxu1 %vm875_vm1, %v5507_v7  ;;  %v2542_v7 = vmul.f32 %v14470_v31, %v2509_v30  ;;  %v5508_v30 = vmul.f32 %v14447_v16, %v5471_v8  ;;  %v2736_v41 = vmul.f32 %v14476_v25, %v2703_v60  ;;  %v4126_v8 = vadd.f32 %v4094_v24, %v4029_v6  ;;  %v11851_v59 = vld [vmem:[#allocation3 + $0x171] sm:$0xff] }
 0x49d   : > { %v3061_v57 = vadd.f32 %v3029_v39, %v2964_v52  ;;  %v11828_v60 = vmul.f32 %v11614_v13, %v14247_v50  ;;  %v4191_v63 = vmul.f32 %v14448_v4, %v3190_v5  ;;  %v5472_v9 = vadd.f32 %v14443_v27, %v5435_v11  ;;  %v14478_v52 = vld [vmem:[#allocation56_spill] sm:$0xff]  ;;  %v14479_v13 = vld [vmem:[#allocation59_spill] sm:$0xff] }
 0x49e   : > { %v2574_v56 = vadd.f32 %v2542_v7, %v2477_v54  ;;  %v3287_v54 = vld [vmem:[#allocation3 + $0x184] sm:$0xff]  ;;  %v4951_v7 = vmul.f32 %v11623_v22, %v14188_v18  ;;  %v5399_v44 = vadd.f32 %v11593_v62, %v5364_v26  ;;  %v3126_v6 = vmul.f32 %v14478_v52, %v3093_v46 }
 0x49f   : > { %4726 = vadd.xlane.f32.xlu2 %v4725_v2  ;;  %v3223_v24 = vmul.f32 %v14479_v13, %v3190_v5  ;;  %v5113_v29 = vmul.f32 %v11819_v45, %v11778_v49  ;;  %v5097_v2 = vmul.f32 %v11750_v0, %v5096_v55  ;;  %v4223_v22 = vadd.f32 %v4191_v63, %v4126_v8 }
 0x4a0   : > { %v2671_v4 = vadd.f32 %v2639_v40, %v2574_v56  ;;  %v5106_v11 = vsub.f32 1.5, %v5105_v3  ;;  %v3158_v17 = vadd.f32 %v3126_v6, %v3061_v57  ;;  %v4288_v26 = vmul.f32 %v11652_v43, %v3287_v54  ;;  %v14483_v43 = vld [vmem:[#allocation60_spill] sm:$0xff]  ;;  %v4547_v6 = vpop.permute.xlu2 %4546 }
 0x4a1   : > { %v2448_v46 = vmul.f32 %v14468_v38, %v11839_v47  ;;  %v11853_v5 = vpop.eup %7342  ;;  %v5509_v55 = vmul.f32 %v14447_v16, %v5472_v9  ;;  %v5436_v8 = vmul.f32 %v14442_v21, %v5399_v44  ;;  %v3320_v56 = vmul.f32 %v14483_v43, %v3287_v54 }
 0x4a2   : > { %v3255_v57 = vadd.f32 %v3223_v24, %v3158_v17  ;;  %v5114_v63 = vmul.f32 %v11819_v45, %v5113_v29  ;;  %v5101_v53 = vsel %vm11860_vm12, %v11750_v0, %v5097_v2  ;;  %v2768_v9 = vadd.f32 %v2736_v41, %v2671_v4  ;;  %v14484_v24 = vld [vmem:[#allocation36_spill] sm:$0xff] }
 0x4a3   : > { %v2545_v44 = vmul.f32 %v14470_v31, %v11851_v59  ;;  %v5107_v17 = vmul.f32 %v11775_v1, %v5106_v11  ;;  %vm5109_vm13 = vweird.f32 %v11775_v1  ;;  %v5123_v54 = vmul.f32 %v11853_v5, %v11798_v28  ;;  %v14485_v41 = vld [vmem:[#allocation104_spill] sm:$0xff] }
 0x4a4   : > { %7042 = vmatmul.msk.f32.gmra.mxu1 %vm875_vm1, %v5508_v30  ;;  %v14480_v30 = vld [vmem:[#allocation65_spill] sm:$0xff]  ;;  %v4952_v0 = vmul.f32 %v11611_v42, %v14188_v18  ;;  %v5473_v4 = vadd.f32 %v14443_v27, %v5436_v8  ;;  %v5331_v29 = vmul.f32 %v5101_v53, %v14485_v41  ;;  %v5115_v2 = vmul.f32 0.5, %v5114_v63  ;;  %vm11886_vm15 = vmor %vm5108_vm14, %vm5109_vm13  ;;  %v4416_v42 = vld [vmem:[#allocation2 + $0xc0] sm:$0xff] }
 0x4a5   : > { %v5330_v39 = vmul.f32 %v5091_v37, %v14480_v30  ;;  %v11856_v37 = vadd.f32 1e-05, %v4951_v7  ;;  %v4320_v7 = vadd.f32 %v4288_v26, %v4223_v22  ;;  %v2480_v30 = vadd.f32 %v2448_v46, %v14484_v24  ;;  %v4359_v22 = vld [vmem:[%s7806_s29 + $0xf8] sm:$0xff]  ;;  %v11909_v63 = vld [vmem:[#allocation3 + $0x181] sm:$0xff]  ;;  %v14491_v41 = vld [vmem:[#allocation77_spill] sm:$0xff]  ;;  %s6871_s29 = scalar_lea.sflag [#allocation5], %s598_s20 }
 0x4a6   : > { %v11890_v46 = vadd.f32 %v3320_v56, %v3255_v57  ;;  %v11895_v8 = vmul.f32 %v11704_v15, %v14478_v52  ;;  %v5111_v40 = vsel %vm11886_vm15, %v11775_v1, %v5107_v17  ;;  %v11905_v57 = vmul.f32 %v11723_v34, %v14479_v13  ;;  %v11907_v56 = vld [vmem:[#allocation3 + $0x180] sm:$0xff] }
 0x4a7   : > { %v5365_v3 = vmul.f32 %v11580_v48, %v5330_v39  ;;  %7344 = vrsqrt.f32 %v11856_v37  ;;  %v4608_v39 = vmul.f32 %v4547_v6, %v4320_v7  ;;  %v2577_v15 = vadd.f32 %v2545_v44, %v2480_v30 }
 0x4a8   : > { %7346 = vrcp.f32 %v4359_v22  ;;  %v11913_v6 = vadd.f32 1e-05, %v4952_v0  ;;  %v5510_v7 = vmul.f32 %v14447_v16, %v5473_v4  ;;  %v5366_v34 = vmul.f32 %v11580_v48, %v5331_v29  ;;  %v11945_v22 = vld [vmem:[#allocation3 + $0x183] sm:$0xff] }
 0x4a9   : > { %v5400_v11 = vadd.f32 %v11593_v62, %v5365_v3  ;;  %v5124_v3 = vmul.f32 %v11853_v5, %v5123_v54  ;;  %v11915_v53 = vadd.f32 %v4608_v39, %v4416_v42  ;;  %v5116_v17 = vsub.f32 1.5, %v5115_v2  ;;  %v14489_v39 = vld [vmem:[#allocation64_spill] sm:$0xff]  ;;  %v11951_v42 = vld [vmem:[#allocation3 + $0x174] sm:$0xff] }
 0x4aa   : > { %v11924_v54 = vmul.f32 %v11745_v14, %v14483_v43  ;;  %v2642_v44 = vmul.f32 %v14472_v51, %v11897_v61  ;;  %v11934_v0 = vmul.f32 %v14338_v19, %v11907_v56  ;;  %v11938_v4 = vmul.f32 %v14489_v39, %v11909_v63 }
 0x4ab   : > { %14488 = vst [vmem:[#allocation21_spill] sm:$0xff] %v11915_v53  ;;  %v5437_v1 = vmul.f32 %v14442_v21, %v5400_v11  ;;  %v5332_v29 = vmul.f32 %v5111_v40, %v14491_v41  ;;  %v5125_v2 = vmul.f32 0.5, %v5124_v3  ;;  %v11947_v11 = vld [vmem:[#allocation3 + $0x184] sm:$0xff]  ;;  %7348 = vrsqrt.f32 %v11913_v6 }
 0x4ac   : > { %7043 = vmatmul.msk.f32.gmra.mxu1 %vm875_vm1, %v5509_v55  ;;  %v2865_v55 = vadd.f32 %v11817_v20, %v2768_v9  ;;  %v11911_v20 = vld [vmem:[#allocation3 + $0x182] sm:$0xff]  ;;  %v11919_v9 = vld [vmem:[#allocation3 + $0x173] sm:$0xff]  ;;  %v4722_v40 = vsel %vm875_vm1, %v11915_v53, 0.0  ;;  %v5117_v41 = vmul.f32 %v11819_v45, %v5116_v17  ;;  %vm5119_vm0 = vweird.f32 %v11819_v45 }
 0x4ad   : > { %v11928_v24 = vpop.eup %7344  ;;  %v11942_v14 = vmul.f32 %v14303_v23, %v11911_v20  ;;  %v2739_v26 = vmul.f32 %v14476_v25, %v11919_v9  ;;  %v5474_v3 = vadd.f32 %v14443_v27, %v5437_v1  ;;  %v11971_v1 = vmul.f32 %v14311_v12, %v11947_v11  ;;  %v11975_v53 = vld [vmem:[#allocation3 + $0x188] sm:$0xff] }
 0x4ae   : > { %v2962_v30 = vadd.f32 %v11828_v60, %v2865_v55  ;;  %v2674_v60 = vadd.f32 %v2642_v44, %v2577_v15  ;;  %v7347_v55 = vpop.eup %7346  ;;  %v5133_v15 = vmul.f32 %v11928_v24, %v11856_v37  ;;  %v5401_v44 = vadd.f32 %v11593_v62, %v5366_v34  ;;  %v11980_v34 = vld [vmem:[#allocation3 + $0x18a] sm:$0xff] }
 0x4af   : > { %14490 = vst [vmem:[#allocation38_spill] sm:$0xff] %v11942_v14  ;;  %v2836_v17 = vmul.f32 %v14477_v32, %v11951_v42  ;;  %vm5118_vm2 = vweird.f32 %v11778_v49  ;;  %v5511_v49 = vmul.f32 %v14447_v16, %v5474_v3  ;;  %v2449_v12 = vmul.f32 %v11907_v56, %v14468_v38 }
 0x4b0   : > { %v3059_v14 = vadd.f32 %v11832_v33, %v2962_v30  ;;  %14493 = vst [vmem:[#allocation13_spill] sm:$0xff] %v11971_v1  ;;  %v1964_v33 = vmul.f32 %v11839_v47, %v14414_v10  ;;  %v2061_v30 = vmul.f32 %v11851_v59, %v14415_v35  ;;  %v5367_v1 = vmul.f32 %v11580_v48, %v5332_v29  ;;  %vm11991_vm3 = vmor %vm5118_vm2, %vm5119_vm0  ;;  %v11999_v47 = vpop.permute.xlu1 %4566 }
 0x4b1   : > { %v5126_v10 = vsub.f32 1.5, %v5125_v2  ;;  %14497 = vst [vmem:[#allocation16_spill] sm:$0xff] %v11999_v47  ;;  %v5121_v35 = vsel %vm11991_vm3, %v11819_v45, %v5117_v41  ;;  %v5134_v59 = vmul.f32 %v11928_v24, %v5133_v15  ;;  %v2933_v29 = vmul.f32 %v14247_v50, %v11975_v53  ;;  %v12021_v15 = vld [vmem:[#allocation3 + $0x18c] sm:$0xff] }
 0x4b2   : > { %v3156_v3 = vadd.f32 %v11895_v8, %v3059_v14  ;;  %v3127_v47 = vmul.f32 %v14478_v52, %v11980_v34  ;;  %14499 = vst [vmem:[#allocation26_spill] sm:$0xff] %v12021_v15  ;;  %v2093_v50 = vadd.f32 %v2061_v30, %v1964_v33  ;;  %v3385_v14 = vld [vmem:[#allocation3 + $0x198] sm:$0xff]  ;;  %v5402_v56 = vadd.f32 %v11593_v62, %v5367_v1 }
 0x4b3   : > { %vm5129_vm4 = vweird.f32 %v11853_v5  ;;  %v5135_v33 = vmul.f32 0.5, %v5134_v59  ;;  %vm5128_vm5 = vweird.f32 %v11798_v28  ;;  %v3418_v1 = vmul.f32 %v14338_v19, %v3385_v14 }
 0x4b4   : > { %7044 = vmatmul.msk.f32.gmra.mxu1 %vm875_vm1, %v5510_v7  ;;  %v4953_v7 = vmul.f32 %v11681_v58, %v14188_v18  ;;  %v11967_v58 = vmul.f32 %v14305_v36, %v11945_v22  ;;  %v3253_v30 = vadd.f32 %v11905_v57, %v3156_v3  ;;  %vm12043_vm6 = vmor %vm5128_vm5, %vm5129_vm4  ;;  %v3482_v57 = vld [vmem:[#allocation3 + $0x199] sm:$0xff]  ;;  %v5439_v3 = vmul.f32 %v14442_v21, %v5402_v56 }
 0x4b5   : > { %v2643_v28 = vmul.f32 %v11911_v20, %v14472_v51  ;;  %v2740_v20 = vmul.f32 %v11945_v22, %v14476_v25  ;;  %vm5139_vm7 = vweird.f32 %v11928_v24  ;;  %vm5138_vm9 = vweird.f32 %v11856_v37 }
 0x4b6   : > { %14492 = vst [vmem:[#allocation62_spill] sm:$0xff] %v11967_v58  ;;  %v11987_v58 = vadd.f32 1e-05, %v4953_v7  ;;  %v12007_v7 = vpop.eup %7348  ;;  %vm12082_vm10 = vmor %vm5138_vm9, %vm5139_vm7  ;;  %vm5148_vm12 = vweird.f32 %v11913_v6 }
 0x4b7   : > { %4581 = vperm.xlu2 %7175, %v7347_v55   ;;  %4723 = vadd.xlane.f32.xlu0 %v4722_v40  ;;  %v2771_v55 = vadd.f32 %v2739_v26, %v2674_v60  ;;  %v11978_v40 = vld [vmem:[#allocation3 + $0x189] sm:$0xff]  ;;  %v5438_v60 = vmul.f32 %v14442_v21, %v5401_v44  ;;  %v14498_v44 = vld [vmem:[#allocation55_spill] sm:$0xff]  ;;  %vm5149_vm11 = vweird.f32 %v12007_v7 }
 0x4b8   : > { %14494 = vst [vmem:[#allocation35_spill] sm:$0xff] %v11978_v40  ;;  %v11997_v26 = vld [vmem:[#allocation3 + $0x18b] sm:$0xff]  ;;  %v3030_v2 = vmul.f32 %v14498_v44, %v11978_v40  ;;  %7350 = vrsqrt.f32 %v11987_v58  ;;  %v14501_v44 = vld [vmem:[#allocation67_spill] sm:$0xff]  ;;  %vm12122_vm13 = vmor %vm5148_vm12, %vm5149_vm11  ;;  %vm5158_vm15 = vweird.f32 %v11987_v58 }
 0x4b9   : > { %v2868_v45 = vadd.f32 %v2836_v17, %v2771_v55  ;;  %v12019_v41 = vmul.f32 %v14479_v13, %v11997_v26  ;;  %v5333_v40 = vmul.f32 %v5121_v35, %v14501_v44  ;;  %v5475_v52 = vadd.f32 %v14443_v27, %v5438_v60  ;;  %v14502_v35 = vld [vmem:[#allocation95_spill] sm:$0xff] }
 0x4ba   : > { %v5127_v17 = vmul.f32 %v11853_v5, %v5126_v10  ;;  %v5143_v55 = vmul.f32 %v12007_v7, %v11913_v6  ;;  %v2481_v44 = vadd.f32 %v2449_v12, %v14502_v35  ;;  %v2546_v60 = vmul.f32 %v11909_v63, %v14470_v31 }
 0x4bb   : > { %v5368_v59 = vmul.f32 %v11580_v48, %v5333_v40  ;;  %v5136_v63 = vsub.f32 1.5, %v5135_v33  ;;  %v3450_v13 = vadd.f32 %v3418_v1, %v11890_v46  ;;  %v14506_v33 = vld [vmem:[#allocation32_spill] sm:$0xff]  ;;  %v2450_v1 = vmul.f32 %v11975_v53, %v14468_v38  ;;  %v12092_v53 = vld [vmem:[#allocation3 + $0x198] sm:$0xff] }
 0x4bc   : > { %7045 = vmatmul.msk.f32.gmra.mxu1 %vm875_vm1, %v5511_v49  ;;  %v14500_v49 = vld [vmem:[#allocation30_spill] sm:$0xff]  ;;  %v5131_v12 = vsel %vm12043_vm6, %v11853_v5, %v5127_v17  ;;  %v2578_v56 = vadd.f32 %v2546_v60, %v2481_v44  ;;  %v3515_v5 = vmul.f32 %v14489_v39, %v3482_v57 }
 0x4bd   : > { %v2158_v8 = vmul.f32 %v11897_v61, %v14500_v49  ;;  %v2965_v61 = vadd.f32 %v2933_v29, %v2868_v45  ;;  %v12036_v49 = vmul.f32 %v14483_v43, %v12021_v15  ;;  %v5512_v29 = vmul.f32 %v14447_v16, %v5475_v52  ;;  %v4895_v45 = vpop.xlane.xlu1 %4894  ;;  %v3579_v17 = vld [vmem:[#allocation3 + $0x19a] sm:$0xff] }
 0x4be   : > { %v12058_v35 = vpop.eup %7350  ;;  %v3350_v52 = vadd.f32 %v11924_v54, %v3253_v30  ;;  %v5476_v54 = vadd.f32 %v14443_v27, %v5439_v3  ;;  %v5137_v46 = vmul.f32 %v11928_v24, %v5136_v63  ;;  %v3547_v60 = vadd.f32 %v3515_v5, %v3450_v13 }
 0x4bf   : > { %v2190_v10 = vadd.f32 %v2158_v8, %v2093_v50  ;;  %v5144_v50 = vmul.f32 %v12007_v7, %v5143_v55  ;;  %v14505_v8 = vld [vmem:[#allocation31_spill] sm:$0xff]  ;;  %v3062_v40 = vadd.f32 %v3030_v2, %v2965_v61  ;;  %v5403_v2 = vadd.f32 %v11593_v62, %v5368_v59 }
 0x4c0   : > { %v2255_v14 = vmul.f32 %v11919_v9, %v14505_v8  ;;  %v2352_v9 = vmul.f32 %v11951_v42, %v14506_v33  ;;  %v14507_v8 = vld [vmem:[#allocation70_spill] sm:$0xff]  ;;  %v5153_v22 = vmul.f32 %v12058_v35, %v11987_v58  ;;  %v3612_v61 = vmul.f32 %v14303_v23, %v3579_v17  ;;  %v14510_v17 = vld [vmem:[#allocation51_spill] sm:$0xff]  ;;  %v14512_v33 = vld [vmem:[#allocation96_spill] sm:$0xff] }
 0x4c1   : > { %v5334_v15 = vmul.f32 %v5131_v12, %v14507_v8  ;;  %v5145_v30 = vmul.f32 0.5, %v5144_v50  ;;  %v3448_v42 = vadd.f32 %v11934_v0, %v3350_v52  ;;  %v3159_v44 = vadd.f32 %v3127_v47, %v3062_v40  ;;  %v12086_v50 = vpop.permute.xlu2 %4561 }
 0x4c2   : > { %v2287_v55 = vadd.f32 %v2255_v14, %v2190_v10  ;;  %v3676_v10 = vld [vmem:[#allocation3 + $0x19b] sm:$0xff]  ;;  %v2675_v57 = vadd.f32 %v2643_v28, %v2578_v56  ;;  %v5513_v0 = vmul.f32 %v14447_v16, %v5476_v54  ;;  %v5440_v38 = vmul.f32 %v14442_v21, %v5403_v2 }
 0x4c3   : > { %v5369_v3 = vmul.f32 %v11580_v48, %v5334_v15  ;;  %v5146_v47 = vsub.f32 1.5, %v5145_v30  ;;  %v5154_v37 = vmul.f32 %v12058_v35, %v5153_v22  ;;  %v5141_v15 = vsel %vm12082_vm10, %v11928_v24, %v5137_v46  ;;  %v14511_v24 = vld [vmem:[#allocation35_spill] sm:$0xff]  ;;  %v14513_v30 = vld [vmem:[#allocation38_spill] sm:$0xff] }
 0x4c4   : > { %7046 = vmatmul.msk.f32.gmra.mxu1 %vm875_vm1, %v5512_v29  ;;  %v4955_v29 = vmul.f32 %v4895_v45, %v14188_v18  ;;  %v2384_v59 = vadd.f32 %v2352_v9, %v2287_v55  ;;  %v2772_v28 = vadd.f32 %v2740_v20, %v2675_v57  ;;  %v4712_v45 = vpop.xlane.xlu0 %4711  ;;  %v3709_v14 = vmul.f32 %v14305_v36, %v3676_v10  ;;  %v12115_v46 = vld [vmem:[#allocation3 + $0x199] sm:$0xff]  ;;  %v14516_v10 = vld [vmem:[#allocation68_spill] sm:$0xff] }
 0x4c5   : > { %v3545_v52 = vadd.f32 %v11938_v4, %v3448_v42  ;;  %v2837_v40 = vmul.f32 %v11947_v11, %v14477_v32  ;;  %v3644_v13 = vadd.f32 %v3612_v61, %v3547_v60  ;;  %v3256_v5 = vadd.f32 %v12019_v41, %v3159_v44  ;;  %v3773_v41 = vld [vmem:[#allocation3 + $0x19c] sm:$0xff] }
 0x4c6   : > { %v12088_v63 = vadd.f32 1e-05, %v4955_v29  ;;  %v2482_v56 = vadd.f32 %v2450_v1, %v2384_v59  ;;  %v2934_v55 = vmul.f32 %v12092_v53, %v14510_v17  ;;  %v2547_v20 = vmul.f32 %v14511_v24, %v14470_v31  ;;  %v14524_v60 = vld [vmem:[#allocation59_spill] sm:$0xff] }
 0x4c7   : > { %v5335_v9 = vmul.f32 %v5141_v15, %v14512_v33  ;;  %v5477_v8 = vadd.f32 %v14443_v27, %v5440_v38  ;;  %v5404_v4 = vadd.f32 %v11593_v62, %v5369_v3  ;;  %v5147_v11 = vmul.f32 %v12007_v7, %v5146_v47 }
 0x4c8   : > { %7352 = vrsqrt.f32 %v12088_v63  ;;  %v5155_v29 = vmul.f32 0.5, %v5154_v37  ;;  %v2869_v54 = vadd.f32 %v2837_v40, %v2772_v28  ;;  %v3741_v2 = vadd.f32 %v3709_v14, %v3644_v13  ;;  %v14518_v28 = vld [vmem:[#allocation62_spill] sm:$0xff]  ;;  %v3870_v13 = vld [vmem:[#allocation3 + $0x1a0] sm:$0xff] }
 0x4c9   : > { %v3642_v22 = vadd.f32 %v14513_v30, %v3545_v52  ;;  %v2579_v31 = vadd.f32 %v2547_v20, %v2482_v56  ;;  %v2644_v61 = vmul.f32 %v11980_v34, %v14472_v51  ;;  %v4766_v42 = vmul.f32 %v4712_v45, %v14188_v18  ;;  %v14519_v40 = vld [vmem:[#allocation94_spill] sm:$0xff]  ;;  %v3871_v56 = vld [vmem:[#allocation3 + $0x1b0] sm:$0xff] }
 0x4ca   : > { %v3353_v44 = vadd.f32 %v12036_v49, %v3256_v5  ;;  %v2966_v1 = vadd.f32 %v2934_v55, %v2869_v54  ;;  %v3806_v57 = vmul.f32 %v14516_v10, %v3773_v41  ;;  %v5370_v59 = vmul.f32 %v11580_v48, %v5335_v9  ;;  %v14520_v5 = vld [vmem:[#allocation114_spill] sm:$0xff]  ;;  %v14521_v9 = vld [vmem:[#allocation107_spill] sm:$0xff] }
 0x4cb   : > { %v5514_v12 = vmul.f32 %v14447_v16, %v5477_v8  ;;  %v5441_v51 = vmul.f32 %v14442_v21, %v5404_v4  ;;  %v5151_v6 = vsel %vm12122_vm13, %v12007_v7, %v5147_v11  ;;  %v5156_v34 = vsub.f32 1.5, %v5155_v29  ;;  %v12149_v20 = vld [vmem:[#allocation3 + $0x19a] sm:$0xff] }
 0x4cc   : > { %7047 = vmatmul.msk.f32.gmra.mxu1 %vm875_vm1, %v5513_v0  ;;  %v14517_v0 = vld [vmem:[#allocation55_spill] sm:$0xff]  ;;  %v3838_v37 = vadd.f32 %v3806_v57, %v3741_v2  ;;  %v3739_v45 = vadd.f32 %v14518_v28, %v3642_v22  ;;  %v2676_v14 = vadd.f32 %v2644_v61, %v2579_v31  ;;  %v2741_v52 = vmul.f32 %v11997_v26, %v14476_v25  ;;  %v14522_v2 = vld [vmem:[#allocation69_spill] sm:$0xff]  ;;  %v14523_v61 = vld [vmem:[#allocation56_spill] sm:$0xff] }
 0x4cd   : > { %v3031_v38 = vmul.f32 %v12115_v46, %v14517_v0  ;;  %v12143_v7 = vsub.f32 %v14519_v40, %v4766_v42  ;;  %v5336_v8 = vmul.f32 %v5151_v6, %v14521_v9  ;;  %vm5159_vm14 = vweird.f32 %v12058_v35  ;;  %v12155_v26 = vld [vmem:[#allocation3 + $0x19b] sm:$0xff] }
 0x4ce   : > { %v12136_v47 = vpop.eup %7352  ;;  %v5478_v4 = vadd.f32 %v14443_v27, %v5441_v51  ;;  %v5405_v25 = vadd.f32 %v11593_v62, %v5370_v59  ;;  %v5157_v11 = vmul.f32 %v12058_v35, %v5156_v34  ;;  %v3904_v30 = vmul.f32 %v14522_v2, %v3871_v56  ;;  %vm12178_vm0 = vmor %vm5158_vm15, %vm5159_vm14  ;;  %v14527_v51 = vld [vmem:[#allocation13_spill] sm:$0xff] }
 0x4cf   : > { %v3063_v33 = vadd.f32 %v3031_v38, %v2966_v1  ;;  %v5173_v29 = vmul.f32 %v12136_v47, %v12088_v63  ;;  %v3902_v22 = vmul.f32 %v14522_v2, %v12092_v53  ;;  %v3419_v31 = vmul.f32 %v3870_v13, %v14338_v19 }
 0x4d0   : > { %v3128_v42 = vmul.f32 %v12149_v20, %v14523_v61  ;;  %v3225_v57 = vmul.f32 %v12155_v26, %v14524_v60  ;;  %v5371_v59 = vmul.f32 %v11580_v48, %v5336_v8  ;;  %v5442_v58 = vmul.f32 %v14442_v21, %v5405_v25  ;;  %v14528_v8 = vld [vmem:[#allocation71_spill] sm:$0xff] }
 0x4d1   : > { %v3836_v6 = vadd.f32 %v14527_v51, %v3739_v45  ;;  %v5161_v34 = vsel %vm12178_vm0, %v12058_v35, %v5157_v11  ;;  %v5174_v48 = vmul.f32 %v12136_v47, %v5173_v29  ;;  %v3903_v28 = vmul.f32 %v14522_v2, %v3870_v13  ;;  %v14529_v29 = vld [vmem:[#allocation81_spill] sm:$0xff] }
 0x4d2   : > { %v4715_v3 = vpop.xlane.xlu2 %4714  ;;  %v3160_v38 = vadd.f32 %v3128_v42, %v3063_v33  ;;  %v3451_v45 = vadd.f32 %v3419_v31, %v3353_v44  ;;  %v12197_v9 = vadd.f32 %v2741_v52, %v2676_v14  ;;  %v5337_v33 = vmul.f32 %v5161_v34, %v14529_v29  ;;  %v3387_v42 = vld [vmem:[#allocation3 + $0x1b0] sm:$0xff]  ;;  %v12225_v34 = vld [vmem:[%s13538_s10] ss:$0 sm:$0xff] }
 0x4d3   : > { %v4767_v49 = vmul.f32 %v4715_v3, %v14188_v18  ;;  %v3967_v3 = vld [vmem:[#allocation3 + $0x1a1] sm:$0xff]  ;;  %v3934_v25 = vadd.f32 %v3902_v22, %v3836_v6  ;;  %v5406_v13 = vadd.f32 %v11593_v62, %v5371_v59  ;;  %v5175_v44 = vmul.f32 0.5, %v5174_v48  ;;  %v14530_v14 = vld [vmem:[#allocation53_spill] sm:$0xff] }
 0x4d4   : > { %7048 = vmatmul.msk.f32.gmra.mxu1 %vm875_vm1, %v5514_v12  ;;  %v4892_v15 = vpop.xlane.xlu0 %4891  ;;  %v5515_v12 = vmul.f32 %v14447_v16, %v5478_v4  ;;  %v4000_v35 = vmul.f32 %v14528_v8, %v3967_v3  ;;  %v3257_v11 = vadd.f32 %v3225_v57, %v3160_v38  ;;  %v14531_v57 = vld [vmem:[#allocation11_spill] sm:$0xff]  ;;  %v3999_v62 = vmul.f32 %v14528_v8, %v12115_v46 }
 0x4d5   : > { %v12146_v55 = vsub.f32 %v14520_v5, %v4767_v49  ;;  %v4954_v24 = vmul.f32 %v4892_v15, %v14188_v18  ;;  %v4830_v49 = vmul.f32 %v12143_v7, %v12143_v7  ;;  %v12191_v15 = vadd.f32 %v3904_v30, %v3838_v37  ;;  %v4064_v37 = vld [vmem:[#allocation3 + $0x1a2] sm:$0xff] }
 0x4d6   : > { %v3516_v30 = vmul.f32 %v3967_v3, %v14489_v39  ;;  %v3935_v53 = vadd.f32 %v3903_v28, %v14531_v57  ;;  %v3420_v6 = vmul.f32 %v14338_v19, %v3387_v42  ;;  %v5372_v48 = vmul.f32 %v12225_v34, %v5337_v33  ;;  %v3968_v42 = vld [vmem:[#allocation3 + $0x1b1] sm:$0xff] }
 0x4d7   : > { %v12160_v41 = vadd.f32 1e-05, %v4954_v24  ;;  %v4831_v54 = vmul.f32 %v12146_v55, %v12146_v55  ;;  %v12195_v24 = vld [vmem:[#allocation3 + $0x19c] sm:$0xff]  ;;  %v4902_v31 = vsel %vm875_vm1, %v4830_v49, 0.0  ;;  %v5443_v28 = vmul.f32 %v14442_v21, %v5406_v13 }
 0x4d8   : > { %v3322_v22 = vmul.f32 %v12195_v24, %v14483_v43  ;;  %v3548_v59 = vadd.f32 %v3516_v30, %v3451_v45  ;;  %v4161_v49 = vld [vmem:[#allocation3 + $0x1a3] sm:$0xff]  ;;  %v4031_v30 = vadd.f32 %v3999_v62, %v3934_v25  ;;  %v12245_v25 = vld [vmem:[%s13539_s11] ss:$0 sm:$0xff]  ;;  %vm5179_vm3 = vweird.f32 %v12136_v47 }
 0x4d9   : > { %7354 = vrsqrt.f32 %v12160_v41  ;;  %v4905_v1 = vsel %vm875_vm1, %v4831_v54, 0.0  ;;  %v5479_v54 = vadd.f32 %v14443_v27, %v5442_v58  ;;  %v3613_v58 = vmul.f32 %v4064_v37, %v14303_v23  ;;  %v14532_v45 = vld [vmem:[#allocation48_spill] sm:$0xff] }
 0x4da   : > { %4906 = vadd.xlane.f32.xlu0 %v4905_v1  ;;  %v3354_v51 = vadd.f32 %v3322_v22, %v3257_v11  ;;  %v5176_v11 = vsub.f32 1.5, %v5175_v44  ;;  %v4096_v33 = vmul.f32 %v14532_v45, %v12149_v20  ;;  %v5407_v20 = vadd.f32 %v12245_v25, %v5372_v48  ;;  %v4258_v62 = vld [vmem:[#allocation3 + $0x1a4] sm:$0xff] }
 0x4db   : > { %v5516_v46 = vmul.f32 %v14447_v16, %v5479_v54  ;;  %v3645_v57 = vadd.f32 %v3613_v58, %v3548_v59  ;;  %v14533_v54 = vld [vmem:[#allocation23_spill] sm:$0xff]  ;;  %vm5168_vm4 = vweird.f32 %v12160_v41  ;;  %vm5178_vm5 = vweird.f32 %v12088_v63 }
 0x4dc   : > { %7049 = vmatmul.msk.f32.gmra.mxu1 %vm875_vm1, %v5515_v12  ;;  %v4718_v56 = vpop.xlane.xlu0 %4717  ;;  %v4193_v13 = vmul.f32 %v14533_v54, %v12155_v26  ;;  %v4001_v26 = vmul.f32 %v14528_v8, %v3968_v42  ;;  %v5177_v59 = vmul.f32 %v12136_v47, %v5176_v11  ;;  %v4128_v58 = vadd.f32 %v4096_v33, %v4031_v30  ;;  %vm12259_vm7 = vmor %vm5178_vm5, %vm5179_vm3  ;;  %v3678_v42 = vld [vmem:[#allocation3 + $0x1b3] sm:$0xff] }
 0x4dd   : > { %v4768_v4 = vmul.f32 %v4718_v56, %v14188_v18  ;;  %v3484_v56 = vld [vmem:[#allocation3 + $0x1b1] sm:$0xff]  ;;  %v5444_v30 = vmul.f32 %v14442_v21, %v5407_v20  ;;  %v3807_v63 = vmul.f32 %v4258_v62, %v14516_v10  ;;  %v12285_v20 = vld [vmem:[#allocation3 + $0x1b9] sm:$0xff] }
 0x4de   : > { %v3517_v44 = vmul.f32 %v14489_v39, %v3484_v56  ;;  %v4225_v48 = vadd.f32 %v4193_v13, %v4128_v58  ;;  %v5181_v33 = vsel %vm12259_vm7, %v12136_v47, %v5177_v59  ;;  %v2902_v47 = vld [vmem:[#allocation3 + $0x1a0] sm:$0xff]  ;;  %v14537_v59 = vld [vmem:[#allocation105_spill] sm:$0xff] }
 0x4df   : > { %v12205_v1 = vpop.eup %7354  ;;  %v12208_v52 = vsub.f32 %v14530_v14, %v4768_v4  ;;  %v4097_v4 = vmul.f32 %v14532_v45, %v4064_v37  ;;  %v3452_v37 = vadd.f32 %v3420_v6, %v3354_v51  ;;  %v5339_v58 = vmul.f32 %v5181_v33, %v14537_v59  ;;  %v4418_v33 = vld [vmem:[#allocation2 + $0xd0] sm:$0xff] }
 0x4e0   : > { %v5163_v12 = vmul.f32 %v12205_v1, %v12160_v41  ;;  %4903 = vadd.xlane.f32.xlu2 %v4902_v31  ;;  %v4032_v31 = vadd.f32 %v4000_v35, %v3935_v53  ;;  %vm5169_vm2 = vweird.f32 %v12205_v1  ;;  %v5480_v35 = vadd.f32 %v14443_v27, %v5443_v28  ;;  %v3581_v53 = vld [vmem:[#allocation3 + $0x1b2] sm:$0xff] }
 0x4e1   : > { %v4832_v3 = vmul.f32 %v12208_v52, %v12208_v52  ;;  %vm5170_vm6 = vmor %vm5168_vm4, %vm5169_vm2  ;;  %v12256_v28 = vld [vmem:[#allocation3 + $0x1b8] sm:$0xff]  ;;  %v3549_v56 = vadd.f32 %v3517_v44, %v3452_v37  ;;  %v3614_v11 = vmul.f32 %v14303_v23, %v3581_v53 }
 0x4e2   : > { %v5164_v38 = vmul.f32 %v12205_v1, %v5163_v12  ;;  %v3710_v12 = vmul.f32 %v4161_v49, %v14305_v36  ;;  %v4129_v51 = vadd.f32 %v4097_v4, %v4032_v31  ;;  %v5517_v41 = vmul.f32 %v14447_v16, %v5480_v35  ;;  %v12278_v37 = vld [vmem:[%s13540_s12 + $0x18] ss:$0 sm:$0xff] }
 0x4e3   : > { %v4908_v29 = vsel %vm875_vm1, %v4832_v3, 0.0  ;;  %v4033_v31 = vadd.f32 %v4001_v26, %v12191_v15  ;;  %v4290_v15 = vmul.f32 %v12278_v37, %v12195_v24  ;;  %v3905_v44 = vmul.f32 %v14522_v2, %v12256_v28  ;;  %v14538_v24 = vld [vmem:[#allocation26_spill] sm:$0xff] }
 0x4e4   : > { %v5165_v22 = vmul.f32 0.5, %v5164_v38  ;;  %7050 = vmatmul.msk.f32.gmra.mxu1 %vm875_vm1, %v5516_v46  ;;  %4909 = vadd.xlane.f32.xlu0 %v4908_v29  ;;  %v3742_v38 = vadd.f32 %v3710_v12, %v3645_v57  ;;  %v4065_v46 = vld [vmem:[#allocation3 + $0x1b2] sm:$0xff]  ;;  %v14536_v57 = vld [vmem:[#allocation100_spill] sm:$0xff]  ;;  %v3646_v53 = vadd.f32 %v3614_v11, %v3549_v56  ;;  %v3711_v26 = vmul.f32 %v14305_v36, %v3678_v42 }
 0x4e5   : > { %v4098_v12 = vmul.f32 %v14532_v45, %v4065_v46  ;;  %v5481_v46 = vadd.f32 %v14443_v27, %v5444_v30  ;;  %v3775_v29 = vld [vmem:[#allocation3 + $0x1b4] sm:$0xff]  ;;  %v2935_v56 = vmul.f32 %v14510_v17, %v2902_v47 }
 0x4e6   : > { %v5166_v3 = vsub.f32 1.5, %v5165_v22  ;;  %v4194_v22 = vmul.f32 %v14533_v54, %v4161_v49  ;;  %v3839_v49 = vadd.f32 %v3807_v63, %v3742_v38  ;;  %v2838_v38 = vmul.f32 %v14538_v24, %v14477_v32 }
 0x4e7   : > { %v4130_v11 = vadd.f32 %v4098_v12, %v4033_v31  ;;  %v3743_v32 = vadd.f32 %v3711_v26, %v3646_v53  ;;  %v5518_v17 = vmul.f32 %v14447_v16, %v5481_v46  ;;  %v3873_v12 = vld [vmem:[#allocation3 + $0x1c8] sm:$0xff] }
 0x4e8   : > { %v5167_v6 = vmul.f32 %v12205_v1, %v5166_v3  ;;  %v4226_v3 = vadd.f32 %v4194_v22, %v4129_v51  ;;  %v4291_v51 = vmul.f32 %v12278_v37, %v4258_v62  ;;  %v3937_v22 = vadd.f32 %v3905_v44, %v3839_v49  ;;  %v2999_v49 = vld [vmem:[#allocation3 + $0x1a1] sm:$0xff]  ;;  %v4259_v44 = vld [vmem:[#allocation3 + $0x1b4] sm:$0xff] }
 0x4e9   : > { %v2870_v62 = vadd.f32 %v2838_v38, %v12197_v9  ;;  %v3906_v46 = vmul.f32 %v14522_v2, %v3873_v12  ;;  %v4292_v24 = vmul.f32 %v12278_v37, %v4259_v44  ;;  %v14541_v12 = vld [vmem:[#allocation16_spill] sm:$0xff] }
 0x4ea   : > { %v5171_v4 = vsel %vm5170_vm6, %v12205_v1, %v5167_v6  ;;  %v4162_v1 = vld [vmem:[#allocation3 + $0x1b3] sm:$0xff]  ;;  %v4322_v6 = vadd.f32 %v4290_v15, %v4225_v48  ;;  %v4002_v48 = vmul.f32 %v14528_v8, %v12285_v20  ;;  %v4323_v30 = vadd.f32 %v4291_v51, %v4226_v3  ;;  %v4901_v15 = vpop.xlane.xlu1 %4900  ;;  %v3970_v51 = vld [vmem:[#allocation3 + $0x1c9] sm:$0xff] }
 0x4eb   : > { %v5338_v13 = vmul.f32 %v5171_v4, %v14536_v57  ;;  %v4195_v4 = vmul.f32 %v14533_v54, %v4162_v1  ;;  %v12298_v57 = vld [vmem:[#allocation3 + $0x1ba] sm:$0xff]  ;;  %v5374_v1 = vmul.f32 %v12225_v34, %v5339_v58  ;;  %v2967_v47 = vadd.f32 %v2935_v56, %v2870_v62 }
 0x4ec   : > { %7051 = vmatmul.msk.f32.gmra.mxu1 %vm875_vm1, %v5517_v41  ;;  %v4611_v3 = vmul.f32 %v12086_v50, %v4323_v30  ;;  %v4034_v53 = vadd.f32 %v4002_v48, %v3937_v22  ;;  %v4099_v26 = vmul.f32 %v14532_v45, %v12298_v57  ;;  %v4957_v59 = vmul.f32 %v4901_v15, %v14188_v18  ;;  %v12314_v58 = vld [vmem:[#allocation3 + $0x1bb] sm:$0xff]  ;;  %v4067_v15 = vld [vmem:[#allocation3 + $0x1ca] sm:$0xff] }
 0x4ed   : > { %v5373_v35 = vmul.f32 %v12225_v34, %v5338_v13  ;;  %v3808_v13 = vmul.f32 %v14516_v10, %v3775_v29  ;;  %v3032_v29 = vmul.f32 %v14517_v0, %v2999_v49  ;;  %v4227_v50 = vadd.f32 %v4195_v4, %v4130_v11  ;;  %v4419_v56 = vld [vmem:[#allocation2 + $0xd8] sm:$0xff] }
 0x4ee   : > { %v12321_v22 = vadd.f32 %v4611_v3, %v4419_v56  ;;  %v4131_v48 = vadd.f32 %v4099_v26, %v4034_v53  ;;  %v4196_v30 = vmul.f32 %v14533_v54, %v12314_v58  ;;  %v4003_v4 = vmul.f32 %v14528_v8, %v3970_v51  ;;  %v12329_v62 = vld [vmem:[#allocation3 + $0x1bc] sm:$0xff] }
 0x4ef   : > { %v4557_v41 = vpop.permute.xlu0 %4556  ;;  %v5408_v63 = vadd.f32 %v12245_v25, %v5373_v35  ;;  %v4293_v3 = vmul.f32 %v12278_v37, %v12329_v62  ;;  %v4100_v53 = vmul.f32 %v14532_v45, %v4067_v15  ;;  %v7185_v26 = vld [vmem:[%s13544_s16] ss:$0 sm:$0xff]  ;;  %v3421_v15 = vmul.f32 %v12256_v28, %v14338_v19 }
 0x4f0   : > { %v4610_v42 = vmul.f32 %v4557_v41, %v4322_v6  ;;  %v3840_v6 = vadd.f32 %v3808_v13, %v3743_v32  ;;  %v5409_v41 = vadd.f32 %v12245_v25, %v5374_v1  ;;  %14540 = vst [vmem:[#allocation63_spill] sm:$0xff] %v12321_v22  ;;  %v3193_v32 = vld [vmem:[#allocation3 + $0x1a3] sm:$0xff]  ;;  %v4324_v13 = vadd.f32 %v4292_v24, %v4227_v50 }
 0x4f1   : > { %v5445_v31 = vmul.f32 %v14442_v21, %v5408_v63  ;;  %v3096_v63 = vld [vmem:[#allocation3 + $0x1a2] sm:$0xff]  ;;  %v4228_v44 = vadd.f32 %v4196_v30, %v4131_v48  ;;  %v12356_v30 = vld [vmem:[%s13542_s14] ss:$0 sm:$0xff] }
 0x4f2   : > { %v12303_v35 = vadd.f32 %v4610_v42, %v4418_v33  ;;  %v3064_v42 = vadd.f32 %v3032_v29, %v2967_v47  ;;  %v12325_v33 = vadd.f32 1e-05, %v4957_v59  ;;  %v3938_v0 = vadd.f32 %v3906_v46, %v3840_v6  ;;  %v3290_v6 = vld [vmem:[#allocation3 + $0x1a4] sm:$0xff] }
 0x4f3   : > { %v5482_v38 = vadd.f32 %v14443_v27, %v5445_v31  ;;  %v3129_v11 = vmul.f32 %v14523_v61, %v3096_v63  ;;  %v4612_v49 = vmul.f32 %v14541_v12, %v4324_v13  ;;  %v4731_v47 = vsel %vm875_vm1, %v12321_v22, 0.0  ;;  %v4420_v46 = vld [vmem:[#allocation2 + $0xe0] sm:$0xff]  ;;  %v4261_v13 = vld [vmem:[#allocation3 + $0x1cc] sm:$0xff] }
 0x4f4   : > { %14539 = vst [vmem:[#allocation84_spill] sm:$0xff] %v12303_v35  ;;  %7052 = vmatmul.msk.f32.gmra.mxu1 %vm875_vm1, %v5518_v17  ;;  %v4728_v9 = vsel %vm875_vm1, %v12303_v35, 0.0  ;;  %v5446_v17 = vmul.f32 %v14442_v21, %v5409_v41  ;;  %v3226_v61 = vmul.f32 %v14524_v60, %v3193_v32  ;;  %7356 = vrsqrt.f32 %v12325_v33  ;;  %v4164_v60 = vld [vmem:[#allocation3 + $0x1cb] sm:$0xff] }
 0x4f5   : > { %4729 = vadd.xlane.f32.xlu1 %v4728_v9  ;;  %v5519_v1 = vmul.f32 %v14447_v16, %v5482_v38  ;;  %v3161_v31 = vadd.f32 %v3129_v11, %v3064_v42  ;;  %v4035_v9 = vadd.f32 %v4003_v4, %v3938_v0  ;;  %v12347_v24 = vadd.f32 %v4612_v49, %v4420_v46 }
 0x4f6   : > { %v5483_v59 = vadd.f32 %v14443_v27, %v5446_v17  ;;  %v4325_v51 = vadd.f32 %v4293_v3, %v4228_v44  ;;  %v3323_v56 = vmul.f32 %v14483_v43, %v3290_v6  ;;  %v4197_v48 = vmul.f32 %v14533_v54, %v4164_v60  ;;  %v14543_v17 = vld [vmem:[#allocation102_spill] sm:$0xff] }
 0x4f7   : > { %v4572_v29 = vpop.permute.xlu0 %4571  ;;  %v3258_v50 = vadd.f32 %v3226_v61, %v3161_v31  ;;  %14542 = vst [vmem:[#allocation99_spill] sm:$0xff] %v12347_v24  ;;  %v4132_v41 = vadd.f32 %v4100_v53, %v4035_v9  ;;  %v4734_v44 = vsel %vm875_vm1, %v12347_v24, 0.0  ;;  %v4294_v28 = vmul.f32 %v12278_v37, %v4261_v13  ;;  %v4421_v53 = vld [vmem:[#allocation2 + $0xe8] sm:$0xff] }
 0x4f8   : > { %v5520_v11 = vmul.f32 %v14447_v16, %v5483_v59  ;;  %v4613_v12 = vmul.f32 %v4572_v29, %v4325_v51  ;;  %v3518_v6 = vmul.f32 %v12285_v20, %v14489_v39  ;;  %v3615_v39 = vmul.f32 %v12298_v57, %v14303_v23 }
 0x4f9   : > { %v3355_v43 = vadd.f32 %v3323_v56, %v3258_v50  ;;  %v4229_v19 = vadd.f32 %v4197_v48, %v4132_v41  ;;  %v3712_v23 = vmul.f32 %v12314_v58, %v14305_v36  ;;  %vm5198_vm10 = vweird.f32 %v12325_v33 }
 0x4fa   : > { %v12362_v32 = vpop.eup %7356  ;;  %v12389_v46 = vadd.f32 %v4613_v12, %v4421_v53 }
 0x4fb   : > { %v5193_v3 = vmul.f32 %v12362_v32, %v12325_v33  ;;  %v3453_v59 = vadd.f32 %v3421_v15, %v3355_v43  ;;  %v4326_v41 = vadd.f32 %v4294_v28, %v4229_v19  ;;  %vm5199_vm9 = vweird.f32 %v12362_v32 }
 0x4fc   : > { %7053 = vmatmul.msk.f32.gmra.mxu1 %vm875_vm1, %v5519_v1  ;;  %14545 = vst [vmem:[#allocation80_spill] sm:$0xff] %v12389_v46  ;;  %v4737_v13 = vsel %vm875_vm1, %v12389_v46, 0.0  ;;  %vm12442_vm11 = vmor %vm5198_vm10, %vm5199_vm9 }
 0x4fd   : > { %4732 = vadd.xlane.f32.xlu1 %v4731_v47  ;;  %v6710_v38 = vpop.f32.mrf.mxu2  ;;  %v14544_v47 = vld [vmem:[#allocation83_spill] sm:$0xff]  ;;  %v5194_v51 = vmul.f32 %v12362_v32, %v5193_v3 }
 0x4fe   : > { %v6711_v42 = vadd.f32 %v7185_v26, %v6710_v38 }
 0x4ff   : > { %v4577_v60 = vpop.permute.xlu0 %4576  ;;  %v5195_v43 = vmul.f32 0.5, %v5194_v51  ;;  %v14546_v51 = vld [vmem:[#allocation15_spill] sm:$0xff] }
 0x500   : > { %v6806_v31 = vadd.f32 %v6711_v42, %v14543_v17  ;;  %v4614_v20 = vmul.f32 %v4577_v60, %v4326_v41  ;;  %v4422_v17 = vld [vmem:[#allocation2 + $0xf0] sm:$0xff] }
 0x501   : > { %v5659_v63 = vpop.f32.mrf.mxu1  ;;  %v5196_v3 = vsub.f32 1.5, %v5195_v43  ;;  %v3874_v60 = vld [vmem:[#allocation3 + $0x1d0] sm:$0xff] }
 0x502   : > { %v12359_v0 = vadd.f32 %v12356_v30, %v5659_v63  ;;  %v4721_v4 = vpop.xlane.xlu2 %4720  ;;  %6838 = vst.msk [vmem:[%s12379_s26] sm:$0xff] %vm875_vm1, %v6806_v31  ;;  %v12412_v57 = vadd.f32 %v4614_v20, %v4422_v17  ;;  %v3971_v20 = vld [vmem:[#allocation3 + $0x1d1] sm:$0xff] }
 0x503   : > { %v4769_v1 = vmul.f32 %v4721_v4, %v14188_v18  ;;  %v3550_v4 = vadd.f32 %v3518_v6, %v3453_v59  ;;  %v3809_v6 = vmul.f32 %v12329_v62, %v14516_v10 }
 0x504   : > { %v12369_v49 = vmul.f32 0.70710677, %v12359_v0  ;;  %7054 = vmatmul.msk.f32.gmra.mxu1 %vm875_vm1, %v5520_v11  ;;  %v4740_v58 = vsel %vm875_vm1, %v12412_v57, 0.0 }
 0x505   : > { %v12375_v61 = vsub.f32 %v14544_v47, %v4769_v1  ;;  %4735 = vadd.xlane.f32.xlu1 %v4734_v44  ;;  %v3647_v31 = vadd.f32 %v3615_v39, %v3550_v4 }
 0x506   : > { %v5881_v9 = vand.u32 2147483647, %v12369_v49  ;;  %vm5817_vm15 = vcmp.ge.f32.partialorder %v12369_v49, 0.0 }
 0x507   : > { %v4833_v26 = vmul.f32 %v12375_v61, %v12375_v61  ;;  %v3744_v59 = vadd.f32 %v3712_v23, %v3647_v31 }
 0x508   : > { %v5913_v29 = vmul.f32 0.3275911, %v5881_v9 }
 0x509   : > { %v5662_v50 = vpop.f32.mrf.mxu1  ;;  %v4911_v38 = vsel %vm875_vm1, %v4833_v26, 0.0 }
 0x50a   : > { %v5945_v63 = vadd.f32 1.0, %v5913_v29  ;;  %v12394_v56 = vadd.f32 %v12356_v30, %v5662_v50  ;;  %v4898_v42 = vpop.xlane.xlu2 %4897  ;;  %4912 = vadd.xlane.f32.xlu0 %v4911_v38  ;;  %v6297_v38 = vsub.f32 0.0, %v5881_v9 }
 0x50b   : > { %v4956_v48 = vmul.f32 %v4898_v42, %v14188_v18  ;;  %v3841_v42 = vadd.f32 %v3809_v6, %v3744_v59 }
 0x50c   : > { %v12400_v11 = vmul.f32 0.70710677, %v12394_v56  ;;  %7358 = vrcp.f32 %v5945_v63  ;;  %v5197_v63 = vmul.f32 %v12362_v32, %v5196_v3  ;;  %v6329_v17 = vmul.f32 %v6297_v38, %v5881_v9 }
 0x50d   : > { %v12404_v1 = vadd.f32 1e-05, %v4956_v48  ;;  %4738 = vadd.xlane.f32.xlu1 %v4737_v13  ;;  %v3907_v48 = vmul.f32 %v14522_v2, %v3874_v60 }
 0x50e   : > { %v12407_v15 = vand.u32 2147483647, %v12400_v11  ;;  %v5201_v2 = vsel %vm12442_vm11, %v12362_v32, %v5197_v63  ;;  %v14549_v32 = vld [vmem:[#allocation82_spill] sm:$0xff]  ;;  %v6362_v38 = vmul.f32 1.442695, %v6329_v17  ;;  %vm5818_vm0 = vcmp.ge.f32.partialorder %v12400_v11, 0.0 }
 0x50f   : > { %7360 = vrsqrt.f32 %v12404_v1  ;;  %v5341_v60 = vmul.f32 %v5201_v2, %v14549_v32  ;;  %v4068_v63 = vld [vmem:[#allocation3 + $0x1d2] sm:$0xff]  ;;  %vm5188_vm13 = vweird.f32 %v12404_v1  ;;  %v5754_v11 = vmul.f32 0.5, %v12394_v56 }
 0x510   : > { %v5914_v12 = vmul.f32 0.3275911, %v12407_v15  ;;  %v4101_v17 = vmul.f32 %v14532_v45, %v4068_v63  ;;  %v4262_v63 = vld [vmem:[#allocation3 + $0x1d4] sm:$0xff] }
 0x511   : > { %v5665_v44 = vpop.f32.mrf.mxu1 }
 0x512   : > { %v5946_v19 = vadd.f32 1.0, %v5914_v12  ;;  %v12416_v28 = vadd.f32 %v12356_v30, %v5665_v44  ;;  %v4727_v53 = vpop.xlane.xlu2 %4726  ;;  %v12421_v29 = vpop.eup %7358 }
 0x513   : > { %v4771_v26 = vmul.f32 %v4727_v53, %v14188_v18  ;;  %v6009_v4 = vmul.f32 1.0614054, %v12421_v29  ;;  %v4004_v53 = vmul.f32 %v14528_v8, %v3971_v20 }
 0x514   : > { %v12424_v36 = vmul.f32 0.70710677, %v12416_v28  ;;  %7362 = vrcp.f32 %v5946_v19  ;;  %v3939_v19 = vadd.f32 %v3907_v48, %v3841_v42  ;;  %v6298_v42 = vsub.f32 0.0, %v12407_v15 }
 0x515   : > { %v7361_v50 = vpop.eup %7360  ;;  %v12429_v41 = vsub.f32 %v14546_v51, %v4771_v26  ;;  %4741 = vadd.xlane.f32.xlu1 %v4740_v58  ;;  %v6041_v12 = vadd.f32 -1.4531521, %v6009_v4 }
 0x516   : > { %v5183_v10 = vmul.f32 %v7361_v50, %v12404_v1  ;;  %v12435_v62 = vand.u32 2147483647, %v12424_v36  ;;  %vm5189_vm12 = vweird.f32 %v7361_v50  ;;  %v4036_v43 = vadd.f32 %v4004_v53, %v3939_v19 }
 0x517   : > { %v4835_v13 = vmul.f32 %v12429_v41, %v12429_v41  ;;  %v6073_v26 = vmul.f32 %v12421_v29, %v6041_v12  ;;  %vm5190_vm14 = vmor %vm5188_vm13, %vm5189_vm12  ;;  %v4165_v12 = vld [vmem:[#allocation3 + $0x1d3] sm:$0xff]  ;;  %vm5819_vm2 = vcmp.ge.f32.partialorder %v12424_v36, 0.0  ;;  %v5755_v36 = vmul.f32 0.5, %v12416_v28 }
 0x518   : > { %v5184_v39 = vmul.f32 %v7361_v50, %v5183_v10  ;;  %v5915_v31 = vmul.f32 0.3275911, %v12435_v62  ;;  %v4133_v53 = vadd.f32 %v4101_v17, %v4036_v43  ;;  %v4198_v45 = vmul.f32 %v14533_v54, %v4165_v12 }
 0x519   : > { %v5668_v23 = vpop.f32.mrf.mxu1  ;;  %v4917_v58 = vsel %vm875_vm1, %v4835_v13, 0.0  ;;  %v6105_v10 = vadd.f32 1.4214138, %v6073_v26  ;;  %v5376_v26 = vmul.f32 %v12225_v34, %v5341_v60  ;;  %v4295_v54 = vmul.f32 %v12278_v37, %v4262_v63 }
 0x51a   : > { %v5185_v44 = vmul.f32 0.5, %v5184_v39  ;;  %v12451_v33 = vadd.f32 %v12356_v30, %v5668_v23  ;;  %v5947_v3 = vadd.f32 1.0, %v5915_v31  ;;  %v12455_v59 = vpop.eup %7362  ;;  %v14550_v31 = vld [vmem:[#allocation49_spill] sm:$0xff]  ;;  %v4582_v63 = vpop.permute.xlu2 %4581 }
 0x51b   : > { %v6137_v4 = vmul.f32 %v12421_v29, %v6105_v10  ;;  %v6010_v39 = vmul.f32 1.0614054, %v12455_v59 }
 0x51c   : > { %v5186_v9 = vsub.f32 1.5, %v5185_v44  ;;  %v12458_v6 = vmul.f32 0.70710677, %v12451_v33  ;;  %7364 = vrcp.f32 %v5947_v3  ;;  %v6330_v3 = vmul.f32 %v6298_v42, %v12407_v15 }
 0x51d   : > { %4918 = vadd.xlane.f32.xlu1 %v4917_v58  ;;  %v6169_v1 = vadd.f32 -0.28449672, %v6137_v4  ;;  %v6042_v44 = vadd.f32 -1.4531521, %v6010_v39  ;;  %7366 = vpow2.f32 %v6362_v38  ;;  %v5411_v15 = vadd.f32 %v12245_v25, %v5376_v26 }
 0x51e   : > { %v5187_v8 = vmul.f32 %v7361_v50, %v5186_v9  ;;  %v12465_v48 = vand.u32 2147483647, %v12458_v6  ;;  %vm5820_vm3 = vcmp.ge.f32.partialorder %v12458_v6, 0.0 }
 0x51f   : > { %v6074_v19 = vmul.f32 %v12455_v59, %v6042_v44 }
 0x520   : > { %v5191_v20 = vsel %vm5190_vm14, %v7361_v50, %v5187_v8  ;;  %v5916_v13 = vmul.f32 0.3275911, %v12465_v48  ;;  %v6201_v50 = vmul.f32 %v12421_v29, %v6169_v1  ;;  %v6364_v8 = vmul.f32 1.442695, %v6330_v3 }
 0x521   : > { %v5340_v23 = vmul.f32 %v5191_v20, %v14550_v31  ;;  %v5671_v2 = vpop.f32.mrf.mxu1  ;;  %v6106_v38 = vadd.f32 1.4214138, %v6074_v19  ;;  %v4230_v20 = vadd.f32 %v4198_v45, %v4133_v53  ;;  %v5448_v1 = vmul.f32 %v14442_v21, %v5411_v15 }
 0x522   : > { %v5948_v9 = vadd.f32 1.0, %v5916_v13  ;;  %v12478_v32 = vpop.eup %7364  ;;  %v6233_v60 = vadd.f32 0.2548296, %v6201_v50  ;;  %v12487_v13 = vadd.f32 %v12356_v30, %v5671_v2  ;;  %v14551_v50 = vmov -1.0  }
 0x523   : > { %v5375_v58 = vmul.f32 %v12225_v34, %v5340_v23  ;;  %v6138_v4 = vmul.f32 %v12455_v59, %v6106_v38  ;;  %v7367_v39 = vpop.eup %7366  ;;  %v6011_v43 = vmul.f32 1.0614054, %v12478_v32  ;;  %v5849_v19 = vsel %vm5817_vm15, 1.0, %v14551_v50 }
 0x524   : > { %7368 = vrcp.f32 %v5948_v9  ;;  %v6265_v42 = vmul.f32 %v12421_v29, %v6233_v60  ;;  %v6299_v29 = vsub.f32 0.0, %v12435_v62  ;;  %v4327_v53 = vadd.f32 %v4295_v54, %v4230_v20 }
 0x525   : > { %v5410_v10 = vadd.f32 %v12245_v25, %v5375_v58  ;;  %v6170_v23 = vadd.f32 -0.28449672, %v6138_v4  ;;  %7370 = vpow2.f32 %v6364_v8  ;;  %v6043_v44 = vadd.f32 -1.4531521, %v6011_v43 }
 0x526   : > { %v6425_v31 = vmul.f32 %v7367_v39, %v6265_v42  ;;  %v5753_v58 = vmul.f32 0.5, %v12359_v0  ;;  %v12504_v45 = vmul.f32 0.70710677, %v12487_v13  ;;  %v6331_v0 = vmul.f32 %v6299_v29, %v12435_v62 }
 0x527   : > { %v5447_v34 = vmul.f32 %v14442_v21, %v5410_v10  ;;  %v6202_v9 = vmul.f32 %v12455_v59, %v6170_v23  ;;  %v14552_v10 = vld [vmem:[#allocation21_spill] sm:$0xff]  ;;  %v6075_v15 = vmul.f32 %v12478_v32, %v6043_v44  ;;  %v6300_v49 = vsub.f32 0.0, %v12465_v48 }
 0x528   : > { %v6457_v3 = vsub.f32 1.0, %v6425_v31  ;;  %v5485_v39 = vadd.f32 %v14443_v27, %v5448_v1  ;;  %v4615_v43 = vmul.f32 %v4582_v63, %v4327_v53  ;;  %vm5821_vm4 = vcmp.ge.f32.partialorder %v12504_v45, 0.0 }
 0x529   : > { %v5674_v17 = vpop.f32.mrf.mxu1  ;;  %v5484_v25 = vadd.f32 %v14443_v27, %v5447_v34  ;;  %v6234_v8 = vadd.f32 0.2548296, %v6202_v9  ;;  %v6107_v62 = vadd.f32 1.4214138, %v6075_v15  ;;  %v6332_v1 = vmul.f32 %v6300_v49, %v12465_v48 }
 0x52a   : > { %v4724_v12 = vpop.xlane.xlu0 %4723  ;;  %v12494_v37 = vpop.eup %7368  ;;  %v6489_v38 = vmul.f32 %v6457_v3, %v5849_v19  ;;  %v12523_v31 = vadd.f32 %v12356_v30, %v5674_v17  ;;  %v4423_v3 = vld [vmem:[#allocation2 + $0xf8] sm:$0xff]  ;;  %v5522_v9 = vmul.f32 %v14447_v16, %v5485_v39 }
 0x52b   : > { %v4770_v2 = vmul.f32 %v4724_v12, %v14188_v18  ;;  %v5521_v26 = vmul.f32 %v14447_v16, %v5484_v25  ;;  %v6012_v34 = vmul.f32 1.0614054, %v12494_v37  ;;  %v6266_v20 = vmul.f32 %v12455_v59, %v6234_v8  ;;  %v7371_v54 = vpop.eup %7370 }
 0x52c   : > { %v6521_v42 = vadd.f32 1.0, %v6489_v38  ;;  %v12520_v25 = vand.u32 2147483647, %v12504_v45  ;;  %v6139_v59 = vmul.f32 %v12478_v32, %v6107_v62  ;;  %v12534_v53 = vadd.f32 %v4615_v43, %v4423_v3 }
 0x52d   : > { %v12507_v60 = vsub.f32 %v14552_v10, %v4770_v2  ;;  %7055 = vmatmul.msk.f32.gmra.mxu1 %vm875_vm1, %v5521_v26  ;;  %v6426_v44 = vmul.f32 %v7371_v54, %v6266_v20  ;;  %v6044_v2 = vadd.f32 -1.4531521, %v6012_v34  ;;  %v6366_v26 = vmul.f32 1.442695, %v6331_v0 }
 0x52e   : > { %v6553_v23 = vmul.f32 %v6521_v42, %v5753_v58  ;;  %v5850_v58 = vsel %vm5818_vm0, 1.0, %v14551_v50  ;;  %v12537_v63 = vmul.f32 0.70710677, %v12523_v31  ;;  %v5917_v38 = vmul.f32 0.3275911, %v12520_v25 }
 0x52f   : > { %v4834_v4 = vmul.f32 %v12507_v60, %v12507_v60  ;;  %v6458_v17 = vsub.f32 1.0, %v6426_v44  ;;  %v6076_v19 = vmul.f32 %v12494_v37, %v6044_v2  ;;  %v6171_v15 = vadd.f32 -0.28449672, %v6139_v59 }
 0x530   : > { %7070 = vmatmul.msk.f32.gmra.mxu2 %vm6596_vm8, %v6553_v23  ;;  %7372 = vpow2.f32 %v6366_v26  ;;  %v6368_v49 = vmul.f32 1.442695, %v6332_v1  ;;  %v5886_v39 = vand.u32 2147483647, %v12537_v63  ;;  %v4743_v54 = vsel %vm875_vm1, %v12534_v53, 0.0 }
 0x531   : > { %v5677_v29 = vpop.f32.mrf.mxu1  ;;  %v4914_v12 = vsel %vm875_vm1, %v4834_v4, 0.0  ;;  %v6490_v8 = vmul.f32 %v6458_v17, %v5850_v58  ;;  %v6108_v0 = vadd.f32 1.4214138, %v6076_v19  ;;  %v6203_v42 = vmul.f32 %v12478_v32, %v6171_v15 }
 0x532   : > { %4915 = vadd.xlane.f32.xlu0 %v4914_v12  ;;  %v12540_v48 = vadd.f32 %v12356_v30, %v5677_v29  ;;  %v5949_v43 = vadd.f32 1.0, %v5917_v38  ;;  %7374 = vpow2.f32 %v6368_v49  ;;  %v5918_v26 = vmul.f32 0.3275911, %v5886_v39 }
 0x533   : > { %v6522_v34 = vadd.f32 1.0, %v6490_v8  ;;  %v6140_v4 = vmul.f32 %v12494_v37, %v6108_v0  ;;  %v6235_v29 = vadd.f32 0.2548296, %v6203_v42  ;;  %v5851_v58 = vsel %vm5819_vm2, 1.0, %v14551_v50 }
 0x534   : > { %v12549_v20 = vmul.f32 0.70710677, %v12540_v48  ;;  %7376 = vrcp.f32 %v5949_v43  ;;  %v5950_v38 = vadd.f32 1.0, %v5918_v26  ;;  %v6301_v49 = vsub.f32 0.0, %v12520_v25 }
 0x535   : > { %7056 = vmatmul.msk.f32.gmra.mxu1 %vm875_vm1, %v5522_v9  ;;  %v6554_v62 = vmul.f32 %v6522_v34, %v5754_v11  ;;  %v6172_v12 = vadd.f32 -0.28449672, %v6140_v4  ;;  %v6267_v56 = vmul.f32 %v12478_v32, %v6235_v29  ;;  %vm5822_vm5 = vcmp.ge.f32.partialorder %v12537_v63, 0.0 }
 0x536   : > { %v7373_v2 = vpop.eup %7372  ;;  %v5887_v1 = vand.u32 2147483647, %v12549_v20  ;;  %7378 = vrcp.f32 %v5950_v38  ;;  %v12585_v38 = vmul.f32 0.5, %v12487_v13  ;;  %vm5823_vm6 = vcmp.ge.f32.partialorder %v12549_v20, 0.0 }
 0x537   : > { %v6204_v44 = vmul.f32 %v12494_v37, %v6172_v12  ;;  %v6427_v59 = vmul.f32 %v7373_v2, %v6267_v56  ;;  %v6302_v12 = vsub.f32 0.0, %v5886_v39  ;;  %v5756_v2 = vmul.f32 0.5, %v12451_v33 }
 0x538   : > { %7071 = vmatmul.msk.f32.gmra.mxu2 %vm6596_vm8, %v6554_v62  ;;  %v7375_v19 = vpop.eup %7374  ;;  %v5919_v8 = vmul.f32 0.3275911, %v5887_v1  ;;  %v6333_v62 = vmul.f32 %v6301_v49, %v12520_v25  ;;  %v12588_v33 = vsel %vm5821_vm4, 1.0, %v14551_v50  ;;  %v12625_v63 = vsel %vm5823_vm6, 1.0, %v14551_v50 }
 0x539   : > { %v5680_v23 = vpop.f32.mrf.mxu1  ;;  %v6236_v3 = vadd.f32 0.2548296, %v6204_v44  ;;  %v6459_v9 = vsub.f32 1.0, %v6427_v59 }
 0x53a   : > { %4744 = vadd.xlane.f32.xlu0 %v4743_v54  ;;  %v12562_v11 = vpop.eup %7376  ;;  %v5951_v4 = vadd.f32 1.0, %v5919_v8  ;;  %v12567_v54 = vadd.f32 %v12356_v30, %v5680_v23  ;;  %v6370_v59 = vmul.f32 1.442695, %v6333_v62 }
 0x53b   : > { %v6268_v17 = vmul.f32 %v12494_v37, %v6236_v3  ;;  %v6491_v32 = vmul.f32 %v6459_v9, %v5851_v58  ;;  %v5852_v37 = vsel %vm5820_vm3, 1.0, %v14551_v50  ;;  %v6013_v29 = vmul.f32 1.0614054, %v12562_v11 }
 0x53c   : > { %7380 = vrcp.f32 %v5951_v4  ;;  %v12573_v28 = vmul.f32 0.70710677, %v12567_v54  ;;  %v12576_v23 = vpop.eup %7378  ;;  %v6334_v3 = vmul.f32 %v6302_v12, %v5886_v39  ;;  %v12594_v39 = vmul.f32 0.5, %v12523_v31 }
 0x53d   : > { %v6428_v0 = vmul.f32 %v7375_v19, %v6268_v17  ;;  %v6523_v34 = vadd.f32 1.0, %v6491_v32  ;;  %v6045_v44 = vadd.f32 -1.4531521, %v6013_v29  ;;  %v6303_v19 = vsub.f32 0.0, %v5887_v1 }
 0x53e   : > { %v5888_v58 = vand.u32 2147483647, %v12573_v28  ;;  %v6014_v45 = vmul.f32 1.0614054, %v12576_v23  ;;  %7382 = vpow2.f32 %v6370_v59  ;;  %v6372_v49 = vmul.f32 1.442695, %v6334_v3 }
 0x53f   : > { %v6460_v42 = vsub.f32 1.0, %v6428_v0  ;;  %v6555_v43 = vmul.f32 %v6523_v34, %v5755_v36  ;;  %v6077_v25 = vmul.f32 %v12562_v11, %v6045_v44  ;;  %v12614_v12 = vsel %vm5822_vm5, 1.0, %v14551_v50 }
 0x540   : > { %v6046_v34 = vadd.f32 -1.4531521, %v6014_v45  ;;  %vm5824_vm7 = vcmp.ge.f32.partialorder %v12573_v28, 0.0 }
 0x541   : > { %v5683_v15 = vpop.f32.mrf.mxu1  ;;  %v6492_v6 = vmul.f32 %v6460_v42, %v5852_v37  ;;  %7072 = vmatmul.msk.f32.gmra.mxu2 %vm6596_vm8, %v6555_v43  ;;  %v6109_v32 = vadd.f32 1.4214138, %v6077_v25  ;;  %v6335_v42 = vmul.f32 %v6303_v19, %v5887_v1  ;;  %v6304_v37 = vsub.f32 0.0, %v5888_v58 }
 0x542   : > { %v12581_v9 = vadd.f32 %v12356_v30, %v5683_v15  ;;  %v12591_v0 = vpop.eup %7380  ;;  %v6078_v62 = vmul.f32 %v12576_v23, %v6046_v34  ;;  %v5920_v1 = vmul.f32 0.3275911, %v5888_v58 }
 0x543   : > { %v6524_v56 = vadd.f32 1.0, %v6492_v6  ;;  %v6141_v36 = vmul.f32 %v12562_v11, %v6109_v32  ;;  %v6015_v29 = vmul.f32 1.0614054, %v12591_v0  ;;  %v6336_v19 = vmul.f32 %v6304_v37, %v5888_v58 }
 0x544   : > { %v12599_v13 = vmul.f32 0.70710677, %v12581_v9  ;;  %v6110_v59 = vadd.f32 1.4214138, %v6078_v62  ;;  %v7383_v3 = vpop.eup %7382 }
 0x545   : > { %v6556_v17 = vmul.f32 %v6524_v56, %v5756_v2  ;;  %v6173_v43 = vadd.f32 -0.28449672, %v6141_v36  ;;  %v12617_v56 = vmul.f32 0.5, %v12540_v48  ;;  %v6047_v25 = vadd.f32 -1.4531521, %v6015_v29 }
 0x546   : > { %v5889_v44 = vand.u32 2147483647, %v12599_v13  ;;  %v6142_v45 = vmul.f32 %v12576_v23, %v6110_v59  ;;  %vm5825_vm9 = vcmp.ge.f32.partialorder %v12599_v13, 0.0 }
 0x547   : > { %v6205_v2 = vmul.f32 %v12562_v11, %v6173_v43  ;;  %v6079_v58 = vmul.f32 %v12591_v0, %v6047_v25  ;;  %v12651_v25 = vsel %vm5824_vm7, 1.0, %v14551_v50 }
 0x548   : > { %v6305_v20 = vsub.f32 0.0, %v5889_v44  ;;  %v5921_v62 = vmul.f32 0.3275911, %v5889_v44 }
 0x549   : > { %v5686_v26 = vpop.f32.mrf.mxu1  ;;  %7073 = vmatmul.msk.f32.gmra.mxu2 %vm6596_vm8, %v6556_v17  ;;  %v6374_v17 = vmul.f32 1.442695, %v6335_v42  ;;  %v6237_v32 = vadd.f32 0.2548296, %v6205_v2  ;;  %v6174_v42 = vadd.f32 -0.28449672, %v6142_v45 }
 0x54a   : > { %v12607_v31 = vadd.f32 %v12356_v30, %v5686_v26  ;;  %v6111_v45 = vadd.f32 1.4214138, %v6079_v58 }
 0x54b   : > { %v6269_v34 = vmul.f32 %v12562_v11, %v6237_v32  ;;  %v6337_v32 = vmul.f32 %v6305_v20, %v5889_v44 }
 0x54d   : > { %v4907_v8 = vpop.xlane.xlu0 %4906 }
 0x54e   : > { %v4959_v15 = vmul.f32 %v4907_v8, %v14188_v18  ;;  %v12629_v8 = vmul.f32 0.70710677, %v12607_v31 }
 0x550   : > { %v12604_v4 = vadd.f32 1e-05, %v4959_v15  ;;  %v12633_v15 = vmul.f32 0.5, %v12567_v54  ;;  %v5890_v2 = vand.u32 2147483647, %v12629_v8  ;;  %vm5826_vm10 = vcmp.ge.f32.partialorder %v12629_v8, 0.0 }
 0x551   : > { %v5689_v6 = vpop.f32.mrf.mxu1 }
 0x552   : > { %7384 = vrsqrt.f32 %v12604_v4  ;;  %v12643_v29 = vadd.f32 %v12356_v30, %v5689_v6  ;;  %v6206_v6 = vmul.f32 %v12576_v23, %v6174_v42  ;;  %v5922_v20 = vmul.f32 0.3275911, %v5890_v2 }
 0x553   : > { %v4904_v26 = vpop.xlane.xlu2 %4903  ;;  %7386 = vpow2.f32 %v6372_v49  ;;  %v5952_v49 = vadd.f32 1.0, %v5920_v1  ;;  %v6376_v1 = vmul.f32 1.442695, %v6336_v19  ;;  %vm5218_vm11 = vweird.f32 %v12604_v4 }
 0x554   : > { %v4958_v48 = vmul.f32 %v4904_v26, %v14188_v18  ;;  %v6429_v26 = vmul.f32 %v7383_v3, %v6269_v34  ;;  %v12659_v3 = vmul.f32 0.5, %v12581_v9  ;;  %v5953_v34 = vadd.f32 1.0, %v5921_v62 }
 0x555   : > { %v6238_v28 = vadd.f32 0.2548296, %v6206_v6  ;;  %v6143_v9 = vmul.f32 %v12591_v0, %v6111_v45  ;;  %v6378_v62 = vmul.f32 1.442695, %v6337_v32 }
 0x556   : > { %v12636_v36 = vadd.f32 1e-05, %v4958_v48  ;;  %v6461_v19 = vsub.f32 1.0, %v6429_v26 }
 0x557   : > { %v4910_v43 = vpop.xlane.xlu0 %4909  ;;  %v6175_v47 = vadd.f32 -0.28449672, %v6143_v9 }
 0x558   : > { %v12640_v37 = vpop.eup %7384  ;;  %7388 = vrsqrt.f32 %v12636_v36  ;;  %v4960_v54 = vmul.f32 %v4910_v43, %v14188_v18  ;;  %v12662_v43 = vmul.f32 0.70710677, %v12643_v29  ;;  %v6493_v42 = vmul.f32 %v6461_v19, %v12588_v33 }
 0x559   : > { %7390 = vpow2.f32 %v6374_v17  ;;  %v5692_v11 = vpop.f32.mrf.mxu1  ;;  %v7387_v59 = vpop.eup %7386  ;;  %v5213_v17 = vmul.f32 %v12640_v37, %v12604_v4  ;;  %v12679_v33 = vsel %vm5825_vm9, 1.0, %v14551_v50  ;;  %vm5208_vm13 = vweird.f32 %v12636_v36 }
 0x55a   : > { %7392 = vrcp.f32 %v5952_v49  ;;  %v12654_v48 = vadd.f32 1e-05, %v4960_v54  ;;  %v6306_v49 = vsub.f32 0.0, %v5890_v2  ;;  %v6270_v54 = vmul.f32 %v12576_v23, %v6238_v28 }
 0x55b   : > { %7394 = vpow2.f32 %v6376_v1  ;;  %v5214_v26 = vmul.f32 %v12640_v37, %v5213_v17  ;;  %v6525_v1 = vadd.f32 1.0, %v6493_v42  ;;  %v5891_v23 = vand.u32 2147483647, %v12662_v43 }
 0x55c   : > { %7396 = vrsqrt.f32 %v12654_v48  ;;  %v6430_v19 = vmul.f32 %v7387_v59, %v6270_v54  ;;  %v6338_v45 = vmul.f32 %v6306_v49, %v5890_v2  ;;  %v5954_v42 = vadd.f32 1.0, %v5922_v20 }
 0x55d   : > { %7398 = vrcp.f32 %v5953_v34  ;;  %v6557_v32 = vmul.f32 %v6525_v1, %v12585_v38  ;;  %v12686_v10 = vadd.f32 %v12356_v30, %v5692_v11  ;;  %v12691_v34 = vmul.f32 0.5, %v12607_v31 }
 0x55e   : > { %v12666_v44 = vpop.eup %7388  ;;  %v6462_v51 = vsub.f32 1.0, %v6430_v19  ;;  %7400 = vpow2.f32 %v6378_v62  ;;  %v5215_v59 = vmul.f32 0.5, %v5214_v26  ;;  %v12699_v49 = vsel %vm5826_vm10, 1.0, %v14551_v50 }
 0x55f   : > { %v12671_v58 = vpop.eup %7390  ;;  %v5203_v13 = vmul.f32 %v12666_v44, %v12636_v36  ;;  %7074 = vmatmul.msk.f32.gmra.mxu2 %vm6596_vm8, %v6557_v32  ;;  %v5923_v11 = vmul.f32 0.3275911, %v5891_v23  ;;  %v6380_v9 = vmul.f32 1.442695, %v6338_v45  ;;  %v6307_v31 = vsub.f32 0.0, %v5891_v23 }
 0x560   : > { %v12676_v6 = vpop.eup %7392  ;;  %v6494_v20 = vmul.f32 %v6462_v51, %v12614_v12  ;;  %v6207_v26 = vmul.f32 %v12591_v0, %v6175_v47  ;;  %7402 = vrcp.f32 %v5954_v42  ;;  %vm5209_vm12 = vweird.f32 %v12666_v44 }
 0x561   : > { %v5204_v17 = vmul.f32 %v12666_v44, %v5203_v13  ;;  %v5695_v28 = vpop.f32.mrf.mxu1  ;;  %v12688_v14 = vpop.eup %7394  ;;  %v6016_v54 = vmul.f32 1.0614054, %v12676_v6  ;;  %v12709_v13 = vmul.f32 0.70710677, %v12686_v10  ;;  %v5216_v19 = vsub.f32 1.5, %v5215_v59  ;;  %vm12721_vm15 = vmor %vm5208_vm13, %vm5209_vm12 }
 0x562   : > { %v12694_v38 = vpop.eup %7396  ;;  %v6526_v8 = vadd.f32 1.0, %v6494_v20  ;;  %v6239_v45 = vadd.f32 0.2548296, %v6207_v26  ;;  %v5955_v32 = vadd.f32 1.0, %v5923_v11  ;;  %7404 = vpow2.f32 %v6380_v9 }
 0x563   : > { %v5205_v2 = vmul.f32 0.5, %v5204_v17  ;;  %v12705_v1 = vpop.eup %7398  ;;  %v5223_v12 = vmul.f32 %v12694_v38, %v12654_v48  ;;  %v6048_v17 = vadd.f32 -1.4531521, %v6016_v54  ;;  %vm5827_vm14 = vcmp.ge.f32.partialorder %v12662_v43, 0.0 }
 0x564   : > { %v6558_v47 = vmul.f32 %v6526_v8, %v12594_v39  ;;  %v6339_v20 = vmul.f32 %v6307_v31, %v5891_v23  ;;  %v6271_v11 = vmul.f32 %v12591_v0, %v6239_v45  ;;  %v5892_v36 = vand.u32 2147483647, %v12709_v13 }
 0x565   : > { %v5206_v62 = vsub.f32 1.5, %v5205_v2  ;;  %v12716_v2 = vpop.eup %7400  ;;  %v6080_v54 = vmul.f32 %v12676_v6, %v6048_v17  ;;  %v5217_v9 = vmul.f32 %v12640_v37, %v5216_v19  ;;  %vm5219_vm0 = vweird.f32 %v12640_v37 }
 0x566   : > { %v5224_v0 = vmul.f32 %v12694_v38, %v5223_v12  ;;  %v6431_v31 = vmul.f32 %v12671_v58, %v6271_v11  ;;  %v12739_v26 = vpop.eup %7402  ;;  %v12747_v8 = vsel %vm5827_vm14, 1.0, %v14551_v50  ;;  %7406 = vrcp.f32 %v5955_v32  ;;  %vm12754_vm2 = vmor %vm5218_vm11, %vm5219_vm0 }
 0x567   : > { %v5207_v51 = vmul.f32 %v12666_v44, %v5206_v62  ;;  %7075 = vmatmul.msk.f32.gmra.mxu2 %vm6596_vm8, %v6558_v47  ;;  %v6112_v19 = vadd.f32 1.4214138, %v6080_v54  ;;  %v5696_v47 = vadd.f32 %v12356_v30, %v5695_v28  ;;  %v6017_v12 = vmul.f32 1.0614054, %v12705_v1 }
 0x568   : > { %v4730_v42 = vpop.xlane.xlu1 %4729  ;;  %v6463_v45 = vsub.f32 1.0, %v6431_v31  ;;  %v5924_v17 = vmul.f32 0.3275911, %v5892_v36  ;;  %v5225_v28 = vmul.f32 0.5, %v5224_v0  ;;  %v12769_v11 = vmul.f32 0.5, %v12686_v10 }
 0x569   : > { %v12726_v62 = vpop.f32.mrf.mxu1  ;;  %v5211_v39 = vsel %vm12721_vm15, %v12666_v44, %v5207_v51  ;;  %v4772_v23 = vmul.f32 %v4730_v42, %v14188_v18  ;;  %v12742_v44 = vmul.f32 0.5, %v12643_v29  ;;  %v6382_v29 = vmul.f32 1.442695, %v6339_v20  ;;  %v12762_v42 = vpop.eup %7404 }
 0x56a   : > { %v5342_v51 = vmul.f32 %v5211_v39, %v12143_v7  ;;  %v6144_v43 = vmul.f32 %v12676_v6, %v6112_v19  ;;  %v5221_v7 = vsel %vm12754_vm2, %v12640_v37, %v5217_v9  ;;  %v6495_v4 = vmul.f32 %v6463_v45, %v12625_v63 }
 0x56b   : > { %v12760_v32 = vsub.f32 %v12303_v35, %v4772_v23  ;;  %v6049_v59 = vadd.f32 -1.4531521, %v6017_v12  ;;  %vm5828_vm3 = vcmp.ge.f32.partialorder %v12709_v13, 0.0  ;;  %v6308_v20 = vsub.f32 0.0, %v5892_v36  ;;  %v12775_v23 = vld [vmem:[%s13538_s10] ss:$0 sm:$0xff] }
 0x56c   : > { %v6176_v39 = vadd.f32 -0.28449672, %v6144_v43  ;;  %v5377_v31 = vmul.f32 %v12775_v23, %v5342_v51  ;;  %vm5228_vm4 = vweird.f32 %v12654_v48  ;;  %v6527_v37 = vadd.f32 1.0, %v6495_v4  ;;  %v12782_v9 = vpop.eup %7406 }
 0x56d   : > { %v12779_v63 = vmul.f32 0.70710677, %v5696_v47  ;;  %v6081_v10 = vmul.f32 %v12705_v1, %v6049_v59  ;;  %v5343_v0 = vmul.f32 %v5221_v7, %v12146_v55  ;;  %v5956_v19 = vadd.f32 1.0, %v5924_v17 }
 0x56e   : > { %v6208_v45 = vmul.f32 %v12676_v6, %v6176_v39  ;;  %v4836_v12 = vmul.f32 %v12760_v32, %v12760_v32  ;;  %7408 = vpow2.f32 %v6382_v29  ;;  %v5226_v51 = vsub.f32 1.5, %v5225_v28 }
 0x56f   : > { %v6559_v43 = vmul.f32 %v6527_v37, %v12617_v56  ;;  %v6113_v4 = vadd.f32 1.4214138, %v6081_v10  ;;  %v6340_v35 = vmul.f32 %v6308_v20, %v5892_v36  ;;  %v12794_v55 = vsel %vm5828_vm3, 1.0, %v14551_v50  ;;  %v12802_v56 = vld [vmem:[%s13539_s11] ss:$0 sm:$0xff] }
 0x570   : > { %v4733_v54 = vpop.xlane.xlu1 %4732  ;;  %v6240_v5 = vadd.f32 0.2548296, %v6208_v45  ;;  %v4920_v59 = vsel %vm875_vm1, %v4836_v12, 0.0  ;;  %v5893_v17 = vand.u32 2147483647, %v12779_v63  ;;  %v5412_v36 = vadd.f32 %v12802_v56, %v5377_v31 }
 0x571   : > { %v5701_v58 = vpop.f32.mrf.mxu1  ;;  %v4773_v40 = vmul.f32 %v4733_v54, %v14188_v18  ;;  %7076 = vmatmul.msk.f32.gmra.mxu2 %vm6596_vm8, %v6559_v43  ;;  %v6145_v29 = vmul.f32 %v12705_v1, %v6113_v4  ;;  %4921 = vadd.xlane.f32.xlu2 %v4920_v59  ;;  %v5378_v7 = vmul.f32 %v12775_v23, %v5343_v0  ;;  %vm5229_vm5 = vweird.f32 %v12694_v38 }
 0x572   : > { %7410 = vrcp.f32 %v5956_v19  ;;  %v6272_v13 = vmul.f32 %v12676_v6, %v6240_v5  ;;  %v5227_v28 = vmul.f32 %v12694_v38, %v5226_v51  ;;  %v5449_v54 = vmul.f32 %v14442_v21, %v5412_v36  ;;  %vm12830_vm6 = vmor %vm5228_vm4, %vm5229_vm5 }
 0x573   : > { %v6177_v20 = vadd.f32 -0.28449672, %v6145_v29  ;;  %v12810_v39 = vsub.f32 %v12321_v22, %v4773_v40  ;;  %v6384_v37 = vmul.f32 1.442695, %v6340_v35  ;;  %v12816_v31 = vadd.f32 %v12356_v30, %v12726_v62 }
 0x574   : > { %v6432_v10 = vmul.f32 %v12688_v14, %v6272_v13  ;;  %v6018_v0 = vmul.f32 1.0614054, %v12739_v26  ;;  %v12819_v45 = vpop.eup %7408  ;;  %v5925_v5 = vmul.f32 0.3275911, %v5893_v17  ;;  %v12823_v40 = vadd.f32 %v12356_v30, %v5701_v58 }
 0x575   : > { %v6209_v6 = vmul.f32 %v12705_v1, %v6177_v20  ;;  %v5486_v12 = vadd.f32 %v14443_v27, %v5449_v54  ;;  %v12834_v35 = vmul.f32 0.5, %v5696_v47  ;;  %v6309_v62 = vsub.f32 0.0, %v5893_v17 }
 0x576   : > { %v6464_v51 = vsub.f32 1.0, %v6432_v10  ;;  %v6050_v43 = vadd.f32 -1.4531521, %v6018_v0  ;;  %v5231_v30 = vsel %vm12830_vm6, %v12694_v38, %v5227_v28  ;;  %v4837_v59 = vmul.f32 %v12810_v39, %v12810_v39 }
 0x577   : > { %v6241_v58 = vadd.f32 0.2548296, %v6209_v6  ;;  %v5523_v4 = vmul.f32 %v14447_v16, %v5486_v12  ;;  %7412 = vpow2.f32 %v6384_v37  ;;  %v12846_v47 = vmul.f32 0.70710677, %v12816_v31 }
 0x578   : > { %v4736_v19 = vpop.xlane.xlu1 %4735  ;;  %v12842_v48 = vpop.eup %7410  ;;  %v6496_v29 = vmul.f32 %v6464_v51, %v12651_v25  ;;  %v6082_v36 = vmul.f32 %v12739_v26, %v6050_v43  ;;  %v5957_v20 = vadd.f32 1.0, %v5925_v5  ;;  %v12851_v28 = vmul.f32 0.70710677, %v12823_v40 }
 0x579   : > { %v5704_v13 = vpop.f32.mrf.mxu1  ;;  %v6273_v38 = vmul.f32 %v12705_v1, %v6241_v58  ;;  %7057 = vmatmul.msk.f32.gmra.mxu1 %vm875_vm1, %v5523_v4  ;;  %v4923_v54 = vsel %vm875_vm1, %v4837_v59, 0.0  ;;  %v5344_v37 = vmul.f32 %v5231_v30, %v12208_v52  ;;  %v4774_v6 = vmul.f32 %v4736_v19, %v14188_v18  ;;  %v12861_v1 = vld [vmem:[%s13542_s14] ss:$0 sm:$0xff] }
 0x57a   : > { %v6528_v25 = vadd.f32 1.0, %v6496_v29  ;;  %v6114_v0 = vadd.f32 1.4214138, %v6082_v36  ;;  %4924 = vadd.xlane.f32.xlu1 %v4923_v54  ;;  %v6341_v12 = vmul.f32 %v6309_v62, %v5893_v17  ;;  %v12864_v14 = vadd.f32 %v12861_v1, %v5704_v13 }
 0x57b   : > { %v6433_v5 = vmul.f32 %v12716_v2, %v6273_v38  ;;  %v5894_v43 = vand.u32 2147483647, %v12846_v47  ;;  %v5413_v17 = vadd.f32 %v12802_v56, %v5378_v7  ;;  %7414 = vrcp.f32 %v5957_v20 }
 0x57c   : > { %v6560_v52 = vmul.f32 %v6528_v25, %v12633_v15  ;;  %v6146_v19 = vmul.f32 %v12739_v26, %v6114_v0  ;;  %v12872_v30 = vand.u32 2147483647, %v12851_v28  ;;  %v12880_v15 = vsub.f32 %v12347_v24, %v4774_v6 }
 0x57d   : > { %v4913_v10 = vpop.xlane.xlu0 %4912  ;;  %v6465_v2 = vsub.f32 1.0, %v6433_v5  ;;  %v12876_v4 = vpop.eup %7412  ;;  %v5450_v29 = vmul.f32 %v14442_v21, %v5413_v17  ;;  %v6019_v7 = vmul.f32 1.0614054, %v12782_v9  ;;  %v5379_v36 = vmul.f32 %v12775_v23, %v5344_v37 }
 0x57e   : > { %v4961_v51 = vmul.f32 %v4913_v10, %v14188_v18  ;;  %7077 = vmatmul.msk.f32.gmra.mxu2 %vm6596_vm8, %v6560_v52  ;;  %v6178_v59 = vadd.f32 -0.28449672, %v6146_v19  ;;  %14559 = vst [vmem:[#allocation97_spill] sm:$0xff] %v12880_v15  ;;  %v12887_v20 = vmul.f32 0.70710677, %v12864_v14  ;;  %v4838_v19 = vmul.f32 %v12880_v15, %v12880_v15 }
 0x57f   : > { %v6497_v13 = vmul.f32 %v6465_v2, %v12679_v33  ;;  %v5926_v38 = vmul.f32 0.3275911, %v5894_v43  ;;  %v5487_v10 = vadd.f32 %v14443_v27, %v5450_v29  ;;  %v6051_v25 = vadd.f32 -1.4531521, %v6019_v7 }
 0x580   : > { %v4739_v62 = vpop.xlane.xlu1 %4738  ;;  %v12874_v58 = vadd.f32 1e-05, %v4961_v51  ;;  %v6210_v54 = vmul.f32 %v12739_v26, %v6178_v59  ;;  %v12892_v0 = vmul.f32 1.442695, %v6341_v12  ;;  %v5927_v5 = vmul.f32 0.3275911, %v12872_v30 }
 0x581   : > { %v6529_v6 = vadd.f32 1.0, %v6497_v13  ;;  %v4775_v37 = vmul.f32 %v4739_v62, %v14188_v18  ;;  %v5524_v33 = vmul.f32 %v14447_v16, %v5487_v10  ;;  %v6083_v52 = vmul.f32 %v12782_v9, %v6051_v25  ;;  %v5707_v17 = vpop.f32.mrf.mxu1  ;;  %v12900_v2 = vpop.eup %7414 }
 0x582   : > { %7416 = vrsqrt.f32 %v12874_v58  ;;  %v6242_v51 = vadd.f32 0.2548296, %v6210_v54  ;;  %v6310_v59 = vsub.f32 0.0, %v5894_v43  ;;  %v12904_v29 = vand.u32 2147483647, %v12887_v20 }
 0x583   : > { %v6561_v12 = vmul.f32 %v6529_v6, %v12659_v3  ;;  %v12907_v7 = vsub.f32 %v12389_v46, %v4775_v37  ;;  %v5958_v62 = vadd.f32 1.0, %v5926_v38  ;;  %7058 = vmatmul.msk.f32.gmra.mxu1 %vm875_vm1, %v5524_v33  ;;  %v6115_v54 = vadd.f32 1.4214138, %v6083_v52 }
 0x584   : > { %v6274_v13 = vmul.f32 %v12739_v26, %v6242_v51  ;;  %v4926_v10 = vsel %vm875_vm1, %v4838_v19, 0.0  ;;  %v12913_v22 = vadd.f32 %v12861_v1, %v5707_v17  ;;  %v5414_v3 = vadd.f32 %v12802_v56, %v5379_v36 }
 0x585   : > { %14560 = vst [vmem:[#allocation89_spill] sm:$0xff] %v12907_v7  ;;  %4927 = vadd.xlane.f32.xlu0 %v4926_v10  ;;  %v6020_v6 = vmul.f32 1.0614054, %v12842_v48  ;;  %v4839_v38 = vmul.f32 %v12907_v7, %v12907_v7  ;;  %v5959_v26 = vadd.f32 1.0, %v5927_v5  ;;  %v6147_v33 = vmul.f32 %v12782_v9, %v6115_v54 }
 0x586   : > { %7078 = vmatmul.msk.f32.gmra.mxu2 %vm6596_vm8, %v6561_v12  ;;  %v6434_v37 = vmul.f32 %v12762_v42, %v6274_v13  ;;  %v6342_v52 = vmul.f32 %v6310_v59, %v5894_v43  ;;  %v5928_v19 = vmul.f32 0.3275911, %v12904_v29  ;;  %v5451_v17 = vmul.f32 %v14442_v21, %v5414_v3 }
 0x587   : > { %v6052_v36 = vadd.f32 -1.4531521, %v6020_v6  ;;  %v6179_v15 = vadd.f32 -0.28449672, %v6147_v33  ;;  %v4929_v7 = vsel %vm875_vm1, %v4839_v38, 0.0  ;;  %7418 = vrcp.f32 %v5958_v62 }
 0x588   : > { %v4742_v25 = vpop.xlane.xlu1 %4741  ;;  %v7417_v24 = vpop.eup %7416  ;;  %v6466_v10 = vsub.f32 1.0, %v6434_v37  ;;  %v12927_v5 = vmul.f32 0.70710677, %v12913_v22  ;;  %v5488_v42 = vadd.f32 %v14443_v27, %v5451_v17  ;;  %4930 = vadd.xlane.f32.xlu2 %v4929_v7  ;;  %7420 = vrcp.f32 %v5959_v26 }
 0x589   : > { %v5233_v51 = vmul.f32 %v7417_v24, %v12874_v58  ;;  %v6084_v12 = vmul.f32 %v12842_v48, %v6052_v36  ;;  %v6211_v13 = vmul.f32 %v12782_v9, %v6179_v15  ;;  %v5960_v54 = vadd.f32 1.0, %v5928_v19 }
 0x58a   : > { %v6498_v43 = vmul.f32 %v6466_v10, %v12699_v49  ;;  %vm5239_vm7 = vweird.f32 %v7417_v24  ;;  %v5525_v3 = vmul.f32 %v14447_v16, %v5488_v42  ;;  %vm5829_vm9 = vcmp.ge.f32.partialorder %v12779_v63, 0.0 }
 0x58b   : > { %v5234_v46 = vmul.f32 %v7417_v24, %v5233_v51  ;;  %v6116_v6 = vadd.f32 1.4214138, %v6084_v12  ;;  %v6243_v37 = vadd.f32 0.2548296, %v6211_v13  ;;  %v4776_v51 = vmul.f32 %v4742_v25, %v14188_v18 }
 0x58c   : > { %v6530_v62 = vadd.f32 1.0, %v6498_v43  ;;  %vm5238_vm10 = vweird.f32 %v12874_v58  ;;  %v12938_v7 = vand.u32 2147483647, %v12927_v5  ;;  %7059 = vmatmul.msk.f32.gmra.mxu1 %vm875_vm1, %v5525_v3  ;;  %v6021_v49 = vmul.f32 1.0614054, %v12900_v2 }
 0x58d   : > { %v5235_v59 = vmul.f32 0.5, %v5234_v46  ;;  %v6148_v46 = vmul.f32 %v12842_v48, %v6116_v6  ;;  %v6275_v19 = vmul.f32 %v12782_v9, %v6243_v37  ;;  %v12946_v25 = vsub.f32 %v12412_v57, %v4776_v51  ;;  %v12948_v17 = vpop.eup %7418  ;;  %vm5240_vm11 = vmor %vm5238_vm10, %vm5239_vm7 }
 0x58e   : > { %v6562_v26 = vmul.f32 %v6530_v62, %v12691_v34  ;;  %v6311_v58 = vsub.f32 0.0, %v12872_v30  ;;  %7422 = vrcp.f32 %v5960_v54  ;;  %v6053_v10 = vadd.f32 -1.4531521, %v6021_v49  ;;  %v12952_v42 = vpop.eup %7420 }
 0x58f   : > { %v5236_v38 = vsub.f32 1.5, %v5235_v59  ;;  %v6180_v36 = vadd.f32 -0.28449672, %v6148_v46  ;;  %v6435_v12 = vmul.f32 %v12819_v45, %v6275_v19  ;;  %v4840_v9 = vmul.f32 %v12946_v25, %v12946_v25 }
 0x590   : > { %v4919_v15 = vpop.xlane.xlu1 %4918  ;;  %7079 = vmatmul.msk.f32.gmra.mxu2 %vm6596_vm8, %v6562_v26  ;;  %v5929_v13 = vmul.f32 0.3275911, %v12938_v7  ;;  %v6085_v3 = vmul.f32 %v12900_v2, %v6053_v10  ;;  %v6023_v51 = vmul.f32 1.0614054, %v12952_v42  ;;  %v6388_v46 = vmul.f32 1.442695, %v6342_v52 }
 0x591   : > { %v5237_v33 = vmul.f32 %v7417_v24, %v5236_v38  ;;  %v4963_v43 = vmul.f32 %v4919_v15, %v14188_v18  ;;  %v6212_v54 = vmul.f32 %v12842_v48, %v6180_v36  ;;  %v6467_v6 = vsub.f32 1.0, %v6435_v12 }
 0x592   : > { %v4932_v62 = vsel %vm875_vm1, %v4840_v9, 0.0  ;;  %v6117_v37 = vadd.f32 1.4214138, %v6085_v3  ;;  %v6055_v19 = vadd.f32 -1.4531521, %v6023_v51  ;;  %vm5830_vm12 = vcmp.ge.f32.partialorder %v12846_v47, 0.0 }
 0x593   : > { %v5241_v34 = vsel %vm5240_vm11, %v7417_v24, %v5237_v33  ;;  %v12964_v38 = vadd.f32 1e-05, %v4963_v43  ;;  %v6022_v24 = vmul.f32 1.0614054, %v12948_v17  ;;  %v6244_v45 = vadd.f32 0.2548296, %v6212_v54  ;;  %4933 = vadd.xlane.f32.xlu1 %v4932_v62 }
 0x594   : > { %v5345_v59 = vmul.f32 %v5241_v34, %v12375_v61  ;;  %v6499_v61 = vmul.f32 %v6467_v6, %v12747_v8  ;;  %v12970_v15 = vpop.eup %7422  ;;  %v6149_v33 = vmul.f32 %v12900_v2, %v6117_v37  ;;  %v5961_v34 = vadd.f32 1.0, %v5929_v13 }
 0x595   : > { %7424 = vrsqrt.f32 %v12964_v38  ;;  %v6054_v49 = vadd.f32 -1.4531521, %v6022_v24  ;;  %v6276_v26 = vmul.f32 %v12842_v48, %v6244_v45  ;;  %v6343_v8 = vmul.f32 %v6311_v58, %v12872_v30 }
 0x596   : > { %7426 = vpow2.f32 %v12892_v0  ;;  %v5380_v36 = vmul.f32 %v12775_v23, %v5345_v59  ;;  %v6531_v10 = vadd.f32 1.0, %v6499_v61  ;;  %v6181_v9 = vadd.f32 -0.28449672, %v6149_v33 }
 0x597   : > { %v6086_v52 = vmul.f32 %v12948_v17, %v6054_v49  ;;  %v6436_v12 = vmul.f32 %v12876_v4, %v6276_v26  ;;  %v6087_v43 = vmul.f32 %v12952_v42, %v6055_v19  ;;  %v5861_v48 = vsel %vm5829_vm9, 1.0, %v14551_v50 }
 0x598   : > { %7428 = vpow2.f32 %v6388_v46  ;;  %v6563_v0 = vmul.f32 %v6531_v10, %v12742_v44  ;;  %v6312_v59 = vsub.f32 0.0, %v12904_v29  ;;  %v6213_v3 = vmul.f32 %v12900_v2, %v6181_v9 }
 0x599   : > { %v6118_v54 = vadd.f32 1.4214138, %v6086_v52  ;;  %v6468_v13 = vsub.f32 1.0, %v6436_v12  ;;  %v6119_v6 = vadd.f32 1.4214138, %v6087_v43  ;;  %7430 = vrcp.f32 %v5961_v34 }
 0x59a   : > { %7080 = vmatmul.msk.f32.gmra.mxu2 %vm6596_vm8, %v6563_v0  ;;  %v5415_v58 = vadd.f32 %v12802_v56, %v5380_v36  ;;  %v6024_v63 = vmul.f32 1.0614054, %v12970_v15  ;;  %v6390_v24 = vmul.f32 1.442695, %v6343_v8  ;;  %v6245_v45 = vadd.f32 0.2548296, %v6213_v3 }
 0x59b   : > { %v7425_v30 = vpop.eup %7424  ;;  %v6150_v4 = vmul.f32 %v12948_v17, %v6118_v54  ;;  %v6500_v44 = vmul.f32 %v6468_v13, %v12794_v55  ;;  %v6151_v46 = vmul.f32 %v12952_v42, %v6119_v6  ;;  %v6344_v26 = vmul.f32 %v6312_v59, %v12904_v29 }
 0x59c   : > { %v7427_v62 = vpop.eup %7426  ;;  %v5253_v37 = vmul.f32 %v7425_v30, %v12964_v38  ;;  %v5452_v61 = vmul.f32 %v14442_v21, %v5415_v58  ;;  %v6056_v49 = vadd.f32 -1.4531521, %v6024_v63  ;;  %v6277_v19 = vmul.f32 %v12900_v2, %v6245_v45 }
 0x59d   : > { %v6182_v51 = vadd.f32 -0.28449672, %v6150_v4  ;;  %v6532_v33 = vadd.f32 1.0, %v6500_v44  ;;  %v6183_v34 = vadd.f32 -0.28449672, %v6151_v46  ;;  %7432 = vpow2.f32 %v6390_v24 }
 0x59e   : > { %v5254_v36 = vmul.f32 %v7425_v30, %v5253_v37  ;;  %v7429_v10 = vpop.eup %7428  ;;  %v5489_v52 = vadd.f32 %v14443_v27, %v5452_v61  ;;  %v6088_v8 = vmul.f32 %v12970_v15, %v6056_v49  ;;  %v6437_v9 = vmul.f32 %v7427_v62, %v6277_v19 }
 0x59f   : > { %v6214_v55 = vmul.f32 %v12948_v17, %v6182_v51  ;;  %v6564_v12 = vmul.f32 %v6532_v33, %v12769_v11  ;;  %v13001_v0 = vpop.eup %7430  ;;  %v6215_v54 = vmul.f32 %v12952_v42, %v6183_v34  ;;  %v6392_v13 = vmul.f32 1.442695, %v6344_v26 }
 0x5a0   : > { %v5255_v43 = vmul.f32 0.5, %v5254_v36  ;;  %v5526_v2 = vmul.f32 %v14447_v16, %v5489_v52  ;;  %v6120_v59 = vadd.f32 1.4214138, %v6088_v8  ;;  %v6469_v3 = vsub.f32 1.0, %v6437_v9 }
 0x5a1   : > { %v6246_v29 = vadd.f32 0.2548296, %v6214_v55  ;;  %vm5259_vm13 = vweird.f32 %v7425_v30  ;;  %v6247_v11 = vadd.f32 0.2548296, %v6215_v54  ;;  %vm5258_vm14 = vweird.f32 %v12964_v38 }
 0x5a2   : > { %v5256_v6 = vsub.f32 1.5, %v5255_v43  ;;  %7081 = vmatmul.msk.f32.gmra.mxu2 %vm6596_vm8, %v6564_v12  ;;  %7060 = vmatmul.msk.f32.gmra.mxu1 %vm875_vm1, %v5526_v2  ;;  %v6152_v62 = vmul.f32 %v12970_v15, %v6120_v59  ;;  %v6501_v24 = vmul.f32 %v6469_v3, %v5861_v48  ;;  %v6025_v45 = vmul.f32 1.0614054, %v13001_v0  ;;  %vm5260_vm15 = vmor %vm5258_vm14, %vm5259_vm13 }
 0x5a3   : > { %v6278_v58 = vmul.f32 %v12948_v17, %v6246_v29  ;;  %v6279_v51 = vmul.f32 %v12952_v42, %v6247_v11  ;;  %v7433_v61 = vpop.eup %7432  ;;  %v6313_v49 = vsub.f32 0.0, %v12938_v7  ;;  %v5862_v42 = vsel %vm5830_vm12, 1.0, %v14551_v50 }
 0x5a4   : > { %v5257_v44 = vmul.f32 %v7425_v30, %v5256_v6  ;;  %v6184_v17 = vadd.f32 -0.28449672, %v6152_v62  ;;  %v6533_v26 = vadd.f32 1.0, %v6501_v24  ;;  %v6057_v19 = vadd.f32 -1.4531521, %v6025_v45 }
 0x5a5   : > { %v4916_v4 = vpop.xlane.xlu0 %4915  ;;  %v6438_v37 = vmul.f32 %v7429_v10, %v6278_v58  ;;  %v6439_v55 = vmul.f32 %v7433_v61, %v6279_v51  ;;  %vm5831_vm0 = vcmp.ge.f32.partialorder %v12851_v28, 0.0  ;;  %v6345_v8 = vmul.f32 %v6313_v49, %v12938_v7 }
 0x5a6   : > { %v4962_v63 = vmul.f32 %v4916_v4, %v14188_v18  ;;  %v5261_v33 = vsel %vm5260_vm15, %v7425_v30, %v5257_v44  ;;  %v6565_v10 = vmul.f32 %v6533_v26, %v12834_v35  ;;  %v6216_v34 = vmul.f32 %v12970_v15, %v6184_v17 }
 0x5a7   : > { %v5347_v48 = vmul.f32 %v5261_v33, %v12429_v41  ;;  %v6470_v36 = vsub.f32 1.0, %v6438_v37  ;;  %v6089_v41 = vmul.f32 %v13001_v0, %v6057_v19  ;;  %v6471_v12 = vsub.f32 1.0, %v6439_v55 }
 0x5a8   : > { %v13013_v46 = vadd.f32 1e-05, %v4962_v63  ;;  %v6248_v9 = vadd.f32 0.2548296, %v6216_v34  ;;  %v5766_v3 = vmul.f32 0.5, %v12816_v31  ;;  %v5863_v7 = vsel %vm5831_vm0, 1.0, %v14551_v50 }
 0x5a9   : > { %v5382_v30 = vmul.f32 %v12775_v23, %v5347_v48  ;;  %v6502_v52 = vmul.f32 %v6470_v36, %v5862_v42  ;;  %v6121_v54 = vadd.f32 1.4214138, %v6089_v41  ;;  %v6394_v58 = vmul.f32 1.442695, %v6345_v8  ;;  %v13063_v42 = vld [vmem:[%s13544_s16] ss:$0 sm:$0xff] }
 0x5aa   : > { %7434 = vrsqrt.f32 %v13013_v46  ;;  %v5710_v38 = vpop.f32.mrf.mxu1  ;;  %7082 = vmatmul.msk.f32.gmra.mxu2 %vm6596_vm8, %v6565_v10  ;;  %v6280_v2 = vmul.f32 %v12970_v15, %v6248_v9  ;;  %v6503_v11 = vmul.f32 %v6471_v12, %v5863_v7  ;;  %vm5832_vm2 = vcmp.ge.f32.partialorder %v12887_v20, 0.0  ;;  %v14561_v9 = vld [vmem:[#allocation101_spill] sm:$0xff] }
 0x5ab   : > { %7436 = vpow2.f32 %v6392_v13  ;;  %v13028_v43 = vadd.f32 %v12861_v1, %v5710_v38  ;;  %v6534_v35 = vadd.f32 1.0, %v6502_v52  ;;  %v5417_v59 = vadd.f32 %v12802_v56, %v5382_v30 }
 0x5ac   : > { %v6153_v44 = vmul.f32 %v13001_v0, %v6121_v54  ;;  %7438 = vpow2.f32 %v6394_v58  ;;  %v6535_v61 = vadd.f32 1.0, %v6503_v11  ;;  %v5767_v30 = vmul.f32 0.5, %v12823_v40 }
 0x5ad   : > { %v4745_v47 = vpop.xlane.xlu0 %4744  ;;  %v13043_v62 = vmul.f32 0.70710677, %v13028_v43  ;;  %v6566_v15 = vmul.f32 %v6534_v35, %v5766_v3  ;;  %v5454_v31 = vmul.f32 %v14442_v21, %v5417_v59  ;;  %v5864_v52 = vsel %vm5832_vm2, 1.0, %v14551_v50 }
 0x5ae   : > { %v4777_v29 = vmul.f32 %v4745_v47, %v14188_v18  ;;  %v6185_v37 = vadd.f32 -0.28449672, %v6153_v44  ;;  %vm5248_vm4 = vweird.f32 %v13013_v46  ;;  %v6567_v35 = vmul.f32 %v6535_v61, %v5767_v30 }
 0x5af   : > { %v5491_v51 = vadd.f32 %v14443_v27, %v5454_v31  ;;  %v13052_v26 = vand.u32 2147483647, %v13043_v62  ;;  %vm5833_vm6 = vcmp.ge.f32.partialorder %v12927_v5, 0.0  ;;  %v14562_v5 = vld [vmem:[#allocation92_spill] sm:$0xff]  ;;  %vm5834_vm7 = vcmp.ge.f32.partialorder %v13043_v62, 0.0 }
 0x5b0   : > { %v7435_v13 = vpop.eup %7434  ;;  %v13039_v6 = vsub.f32 %v12534_v53, %v4777_v29  ;;  %v6217_v19 = vmul.f32 %v13001_v0, %v6185_v37 }
 0x5b1   : > { %v7437_v4 = vpop.eup %7436  ;;  %v5243_v63 = vmul.f32 %v7435_v13, %v13013_v46  ;;  %v5528_v55 = vmul.f32 %v14447_v16, %v5491_v51  ;;  %vm5249_vm3 = vweird.f32 %v7435_v13  ;;  %v5930_v12 = vmul.f32 0.3275911, %v13052_v26 }
 0x5b2   : > { %v6440_v24 = vmul.f32 %v7437_v4, %v6280_v2  ;;  %v5713_v28 = vpop.f32.mrf.mxu1  ;;  %v4841_v17 = vmul.f32 %v13039_v6, %v13039_v6  ;;  %7083 = vmatmul.msk.f32.gmra.mxu2 %vm6596_vm8, %v6566_v15  ;;  %v6249_v41 = vadd.f32 0.2548296, %v6217_v19  ;;  %vm5250_vm5 = vmor %vm5248_vm4, %vm5249_vm3  ;;  %v7439_v54 = vpop.eup %7438  ;;  %v5865_v15 = vsel %vm5833_vm6, 1.0, %v14551_v50 }
 0x5b3   : > { %v5244_v45 = vmul.f32 %v7435_v13, %v5243_v63  ;;  %v13057_v48 = vadd.f32 %v12861_v1, %v5713_v28  ;;  %v6713_v36 = vpop.f32.mrf.mxu2  ;;  %7062 = vmatmul.msk.f32.vlgmr.msrb.gmra.mxu3 %vm875_vm1, %v5528_v55  ;;  %v5962_v46 = vadd.f32 1.0, %v5930_v12  ;;  %v5768_v63 = vmul.f32 0.5, %v12864_v14 }
 0x5b4   : > { %v6472_v33 = vsub.f32 1.0, %v6440_v24  ;;  %v6714_v10 = vadd.f32 %v13063_v42, %v6713_v36  ;;  %v4935_v34 = vsel %vm875_vm1, %v4841_v17, 0.0  ;;  %v6281_v40 = vmul.f32 %v13001_v0, %v6249_v41 }
 0x5b5   : > { %v5245_v49 = vmul.f32 0.5, %v5244_v45  ;;  %4936 = vadd.xlane.f32.xlu0 %v4935_v34  ;;  %v13077_v20 = vmul.f32 0.70710677, %v13057_v48  ;;  %7440 = vrcp.f32 %v5962_v46 }
 0x5b6   : > { %v6807_v47 = vadd.f32 %v6714_v10, %v14561_v9  ;;  %v6504_v29 = vmul.f32 %v6472_v33, %v5864_v52  ;;  %v6441_v3 = vmul.f32 %v7439_v54, %v6281_v40  ;;  %v6314_v33 = vsub.f32 0.0, %v13052_v26  ;;  %v14563_v10 = vld [vmem:[#allocation79_spill] sm:$0xff] }
 0x5b7   : > { %v5246_v38 = vsub.f32 1.5, %v5245_v49  ;;  %v5899_v58 = vand.u32 2147483647, %v13077_v20  ;;  %v5769_v49 = vmul.f32 0.5, %v12913_v22  ;;  %v14564_v54 = vld [vmem:[#allocation91_spill] sm:$0xff]  ;;  %vm5835_vm9 = vcmp.ge.f32.partialorder %v13077_v20, 0.0 }
 0x5b8   : > { %6839 = vst.msk [vmem:[%s12379_s26 + $0x8] sm:$0xff] %vm875_vm1, %v6807_v47  ;;  %v6536_v4 = vadd.f32 1.0, %v6504_v29  ;;  %v6473_v0 = vsub.f32 1.0, %v6441_v3  ;;  %v6346_v52 = vmul.f32 %v6314_v33, %v13052_v26 }
 0x5b9   : > { %v5247_v8 = vmul.f32 %v7435_v13, %v5246_v38  ;;  %v5931_v45 = vmul.f32 0.3275911, %v5899_v58  ;;  %v6315_v9 = vsub.f32 0.0, %v5899_v58 }
 0x5ba   : > { %7084 = vmatmul.msk.f32.gmra.mxu2 %vm6596_vm8, %v6567_v35  ;;  %v6568_v44 = vmul.f32 %v6536_v4, %v5768_v63  ;;  %v6505_v31 = vmul.f32 %v6473_v0, %v5865_v15  ;;  %v6396_v12 = vmul.f32 1.442695, %v6346_v52 }
 0x5bb   : > { %v5251_v2 = vsel %vm5250_vm5, %v7435_v13, %v5247_v8  ;;  %v6716_v11 = vpop.f32.mrf.mxu2  ;;  %v5963_v14 = vadd.f32 1.0, %v5931_v45  ;;  %v7441_v61 = vpop.eup %7440  ;;  %v6347_v26 = vmul.f32 %v6315_v9, %v5899_v58 }
 0x5bc   : > { %v5346_v59 = vmul.f32 %v5251_v2, %v12507_v60  ;;  %v6717_v13 = vadd.f32 %v13063_v42, %v6716_v11  ;;  %v6537_v51 = vadd.f32 1.0, %v6505_v31  ;;  %v6026_v38 = vmul.f32 1.0614054, %v7441_v61 }
 0x5bd   : > { %7442 = vrcp.f32 %v5963_v14  ;;  %v6398_v11 = vmul.f32 1.442695, %v6347_v26  ;;  %v5866_v31 = vsel %vm5834_vm7, 1.0, %v14551_v50  ;;  %v14567_v26 = vld [vmem:[#allocation24_spill] sm:$0xff] }
 0x5be   : > { %v5381_v7 = vmul.f32 %v12775_v23, %v5346_v59  ;;  %v6808_v24 = vadd.f32 %v6717_v13, %v14562_v5  ;;  %v6569_v19 = vmul.f32 %v6537_v51, %v5769_v49  ;;  %v6058_v30 = vadd.f32 -1.4531521, %v6026_v38 }
 0x5bf   : > { %7444 = vpow2.f32 %v6396_v12 }
 0x5c0   : > { %v5416_v60 = vadd.f32 %v12802_v56, %v5381_v7  ;;  %6840 = vst.msk [vmem:[%s12379_s26 + $0x10] sm:$0xff] %vm875_vm1, %v6808_v24  ;;  %v6090_v22 = vmul.f32 %v7441_v61, %v6058_v30  ;;  %7446 = vpow2.f32 %v6398_v11 }
 0x5c2   : > { %v5453_v28 = vmul.f32 %v14442_v21, %v5416_v60  ;;  %7085 = vmatmul.msk.f32.gmra.mxu2 %vm6596_vm8, %v6568_v44  ;;  %v6122_v8 = vadd.f32 1.4214138, %v6090_v22 }
 0x5c3   : > { %v7443_v41 = vpop.eup %7442 }
 0x5c4   : > { %v5490_v37 = vadd.f32 %v14443_v27, %v5453_v28  ;;  %v6719_v36 = vpop.f32.mrf.mxu2  ;;  %v6154_v29 = vmul.f32 %v7441_v61, %v6122_v8  ;;  %v6027_v40 = vmul.f32 1.0614054, %v7443_v41  ;;  %v5770_v28 = vmul.f32 0.5, %v13028_v43  ;;  %v14566_v8 = vld [vmem:[#allocation109_spill] sm:$0xff] }
 0x5c5   : > { %v6720_v55 = vadd.f32 %v13063_v42, %v6719_v36  ;;  %v7445_v60 = vpop.eup %7444 }
 0x5c6   : > { %v5527_v17 = vmul.f32 %v14447_v16, %v5490_v37  ;;  %v6186_v59 = vadd.f32 -0.28449672, %v6154_v29  ;;  %v6059_v3 = vadd.f32 -1.4531521, %v6027_v40  ;;  %v7447_v14 = vpop.eup %7446 }
 0x5c7   : > { %v6809_v34 = vadd.f32 %v6720_v55, %v14563_v10  ;;  %v14565_v55 = vld [vmem:[#allocation113_spill] sm:$0xff] }
 0x5c8   : > { %7061 = vmatmul.msk.f32.gmra.mxu1 %vm875_vm1, %v5527_v17  ;;  %v6218_v46 = vmul.f32 %v7441_v61, %v6186_v59  ;;  %v6091_v7 = vmul.f32 %v7443_v41, %v6059_v3 }
 0x5c9   : > { %6841 = vst.msk [vmem:[%s12379_s26 + $0x18] sm:$0xff] %vm875_vm1, %v6809_v34  ;;  %v5771_v34 = vmul.f32 0.5, %v13057_v48 }
 0x5ca   : > { %7086 = vmatmul.msk.f32.gmra.mxu2 %vm6596_vm8, %v6569_v19  ;;  %v6250_v4 = vadd.f32 0.2548296, %v6218_v46  ;;  %v6123_v0 = vadd.f32 1.4214138, %v6091_v7  ;;  %v5867_v19 = vsel %vm5835_vm9, 1.0, %v14551_v50 }
 0x5cc   : > { %v6722_v47 = vpop.f32.mrf.mxu2  ;;  %v6282_v13 = vmul.f32 %v7441_v61, %v6250_v4  ;;  %v6155_v63 = vmul.f32 %v7443_v41, %v6123_v0 }
 0x5cd   : > { %v6723_v35 = vadd.f32 %v13063_v42, %v6722_v47 }
 0x5ce   : > { %v6442_v15 = vmul.f32 %v7445_v60, %v6282_v13  ;;  %v6187_v5 = vadd.f32 -0.28449672, %v6155_v63 }
 0x5cf   : > { %v6810_v2 = vadd.f32 %v6723_v35, %v14564_v54 }
 0x5d0   : > { %v6474_v24 = vsub.f32 1.0, %v6442_v15  ;;  %v6219_v44 = vmul.f32 %v7443_v41, %v6187_v5 }
 0x5d1   : > { %6842 = vst.msk [vmem:[%s12379_s26 + $0x20] sm:$0xff] %vm875_vm1, %v6810_v2 }
 0x5d2   : > { %v6506_v58 = vmul.f32 %v6474_v24, %v5866_v31  ;;  %v6251_v45 = vadd.f32 0.2548296, %v6219_v44 }
 0x5d4   : > { %v6538_v37 = vadd.f32 1.0, %v6506_v58  ;;  %v6283_v51 = vmul.f32 %v7443_v41, %v6251_v45 }
 0x5d6   : > { %v6570_v17 = vmul.f32 %v6538_v37, %v5770_v28  ;;  %v6443_v61 = vmul.f32 %v7447_v14, %v6283_v51 }
 0x5d8   : > { %7087 = vmatmul.msk.f32.gmra.mxu2 %vm6596_vm8, %v6570_v17  ;;  %v6475_v33 = vsub.f32 1.0, %v6443_v61 }
 0x5da   : > { %v6507_v43 = vmul.f32 %v6475_v33, %v5867_v19 }
 0x5dc   : > { %v6539_v20 = vadd.f32 1.0, %v6507_v43 }
 0x5de   : > { %v6571_v52 = vmul.f32 %v6539_v20, %v5771_v34 }
 0x5e0   : > { %7088 = vmatmul.msk.f32.gmra.mxu2 %vm6596_vm8, %v6571_v52 }
 0x5e2   : > { %v6725_v62 = vpop.f32.mrf.mxu2 }
 0x5e3   : > { %v6726_v49 = vadd.f32 %v13063_v42, %v6725_v62 }
 0x5e4   : > { %v4922_v36 = vpop.xlane.xlu2 %4921 }
 0x5e5   : > { %v6811_v38 = vadd.f32 %v6726_v49, %v14565_v55  ;;  %v4964_v10 = vmul.f32 %v4922_v36, %v14188_v18  ;;  %v14568_v36 = vld [vmem:[#allocation111_spill] sm:$0xff] }
 0x5e7   : > { %6843 = vst.msk [vmem:[%s12379_s26 + $0x28] sm:$0xff] %vm875_vm1, %v6811_v38  ;;  %v4996_v30 = vadd.f32 1e-05, %v4964_v10 }
 0x5e9   : > { %7448 = vrsqrt.f32 %v4996_v30  ;;  %vm5268_vm11 = vweird.f32 %v4996_v30 }
 0x5ea   : > { %v6728_v22 = vpop.f32.mrf.mxu2 }
 0x5eb   : > { %v6729_v41 = vadd.f32 %v13063_v42, %v6728_v22 }
 0x5ed   : > { %v6812_v12 = vadd.f32 %v6729_v41, %v14566_v8  ;;  %v4925_v9 = vpop.xlane.xlu1 %4924 }
 0x5ee   : > { %v4965_v47 = vmul.f32 %v4925_v9, %v14188_v18 }
 0x5ef   : > { %v7449_v35 = vpop.eup %7448  ;;  %6844 = vst.msk [vmem:[%s12379_s26 + $0x30] sm:$0xff] %vm875_vm1, %v6812_v12 }
 0x5f0   : > { %v5263_v48 = vmul.f32 %v7449_v35, %v4996_v30  ;;  %v4997_v29 = vadd.f32 1e-05, %v4965_v47  ;;  %vm5269_vm10 = vweird.f32 %v7449_v35 }
 0x5f1   : > { %vm5270_vm12 = vmor %vm5268_vm11, %vm5269_vm10 }
 0x5f2   : > { %v5264_v40 = vmul.f32 %v7449_v35, %v5263_v48  ;;  %7450 = vrsqrt.f32 %v4997_v29  ;;  %vm5278_vm14 = vweird.f32 %v4997_v29 }
 0x5f4   : > { %v6731_v54 = vpop.f32.mrf.mxu2  ;;  %v5265_v2 = vmul.f32 0.5, %v5264_v40 }
 0x5f5   : > { %v6732_v59 = vadd.f32 %v13063_v42, %v6731_v54 }
 0x5f6   : > { %v5266_v3 = vsub.f32 1.5, %v5265_v2  ;;  %v5716_v7 = vpop.f32.mrf.mxu1 }
 0x5f7   : > { %v6813_v46 = vadd.f32 %v6732_v59, %v14567_v26  ;;  %v13135_v24 = vadd.f32 %v12861_v1, %v5716_v7 }
 0x5f8   : > { %v7451_v4 = vpop.eup %7450  ;;  %v5267_v0 = vmul.f32 %v7449_v35, %v5266_v3  ;;  %v4928_v11 = vpop.xlane.xlu0 %4927 }
 0x5f9   : > { %6845 = vst.msk [vmem:[%s12379_s26 + $0x38] sm:$0xff] %vm875_vm1, %v6813_v46  ;;  %v5273_v13 = vmul.f32 %v7451_v4, %v4997_v29  ;;  %v4966_v60 = vmul.f32 %v4928_v11, %v14188_v18  ;;  %vm5279_vm13 = vweird.f32 %v7451_v4  ;;  %v13140_v51 = vmul.f32 0.70710677, %v13135_v24 }
 0x5fa   : > { %v5271_v63 = vsel %vm5270_vm12, %v7449_v35, %v5267_v0  ;;  %vm5280_vm15 = vmor %vm5278_vm14, %vm5279_vm13 }
 0x5fb   : > { %v5348_v15 = vmul.f32 %v5271_v63, %v12760_v32  ;;  %v5274_v5 = vmul.f32 %v7451_v4, %v5273_v13  ;;  %v4998_v44 = vadd.f32 1e-05, %v4966_v60  ;;  %v4931_v31 = vpop.xlane.xlu2 %4930  ;;  %v13146_v38 = vand.u32 2147483647, %v13140_v51 }
 0x5fc   : > { %v4967_v45 = vmul.f32 %v4931_v31, %v14188_v18  ;;  %vm5836_vm11 = vcmp.ge.f32.partialorder %v13140_v51, 0.0 }
 0x5fd   : > { %v5275_v58 = vmul.f32 0.5, %v5274_v5  ;;  %7452 = vrsqrt.f32 %v4998_v44  ;;  %v5383_v28 = vmul.f32 %v12775_v23, %v5348_v15  ;;  %v5932_v12 = vmul.f32 0.3275911, %v13146_v38  ;;  %v14570_v5 = vld [vmem:[#allocation97_spill] sm:$0xff] }
 0x5fe   : > { %v4999_v14 = vadd.f32 1e-05, %v4967_v45  ;;  %vm5288_vm2 = vweird.f32 %v4998_v44  ;;  %v13187_v45 = vld [vmem:[%s13538_s10] ss:$0 sm:$0xff]  ;;  %v5868_v51 = vsel %vm5836_vm11, 1.0, %v14551_v50 }
 0x5ff   : > { %v5276_v37 = vsub.f32 1.5, %v5275_v58  ;;  %v5418_v33 = vadd.f32 %v12802_v56, %v5383_v28  ;;  %v5964_v46 = vadd.f32 1.0, %v5932_v12 }
 0x600   : > { %v5719_v61 = vpop.f32.mrf.mxu1  ;;  %7454 = vrsqrt.f32 %v4999_v14  ;;  %vm5298_vm5 = vweird.f32 %v4999_v14 }
 0x601   : > { %v6734_v32 = vpop.f32.mrf.mxu2  ;;  %v5277_v17 = vmul.f32 %v7451_v4, %v5276_v37  ;;  %v5455_v34 = vmul.f32 %v14442_v21, %v5418_v33  ;;  %v13153_v20 = vadd.f32 %v12861_v1, %v5719_v61 }
 0x602   : > { %v6735_v62 = vadd.f32 %v13063_v42, %v6734_v32 }
 0x603   : > { %v5281_v49 = vsel %vm5280_vm15, %v7451_v4, %v5277_v17  ;;  %v7453_v19 = vpop.eup %7452  ;;  %v5492_v41 = vadd.f32 %v14443_v27, %v5455_v34  ;;  %v13163_v40 = vmul.f32 0.70710677, %v13153_v20  ;;  %v14572_v34 = vld [vmem:[#allocation103_spill] sm:$0xff] }
 0x604   : > { %v6814_v55 = vadd.f32 %v6735_v62, %v14568_v36  ;;  %v5349_v43 = vmul.f32 %v5281_v49, %v12810_v39  ;;  %v5283_v10 = vmul.f32 %v7453_v19, %v4998_v44  ;;  %vm5289_vm0 = vweird.f32 %v7453_v19  ;;  %v14571_v49 = vld [vmem:[#allocation89_spill] sm:$0xff] }
 0x605   : > { %v5529_v2 = vmul.f32 %v14447_v16, %v5492_v41  ;;  %vm5290_vm3 = vmor %vm5288_vm2, %vm5289_vm0  ;;  %v13176_v13 = vand.u32 2147483647, %v13163_v40  ;;  %vm5837_vm12 = vcmp.ge.f32.partialorder %v13163_v40, 0.0 }
 0x606   : > { %6846 = vst.msk [vmem:[%s12379_s26 + $0x40] sm:$0xff] %vm875_vm1, %v6814_v55  ;;  %v4934_v30 = vpop.xlane.xlu1 %4933  ;;  %v5284_v52 = vmul.f32 %v7453_v19, %v5283_v10  ;;  %v7455_v8 = vpop.eup %7454  ;;  %v5384_v9 = vmul.f32 %v12775_v23, %v5349_v43  ;;  %v14569_v23 = vld [vmem:[#allocation93_spill] sm:$0xff]  ;;  %v13202_v55 = vld [vmem:[%s13539_s11] ss:$0 sm:$0xff] }
 0x607   : > { %v4968_v22 = vmul.f32 %v4934_v30, %v14188_v18  ;;  %v5293_v35 = vmul.f32 %v7455_v8, %v4999_v14  ;;  %7063 = vmatmul.msk.f32.gmra.mxu3 %vm875_vm1, %v5529_v2  ;;  %vm5299_vm4 = vweird.f32 %v7455_v8  ;;  %v5933_v37 = vmul.f32 0.3275911, %v13176_v13 }
 0x608   : > { %v5285_v47 = vmul.f32 0.5, %v5284_v52  ;;  %v5419_v11 = vadd.f32 %v12802_v56, %v5384_v9  ;;  %vm5300_vm6 = vmor %vm5298_vm5, %vm5299_vm4  ;;  %v6316_v9 = vsub.f32 0.0, %v13146_v38 }
 0x609   : > { %v6737_v39 = vpop.f32.mrf.mxu2  ;;  %v13159_v48 = vadd.f32 1e-05, %v4968_v22  ;;  %v5722_v54 = vpop.f32.mrf.mxu1  ;;  %v5294_v3 = vmul.f32 %v7455_v8, %v5293_v35  ;;  %v5965_v22 = vadd.f32 1.0, %v5933_v37 }
 0x60a   : > { %v6738_v29 = vadd.f32 %v13063_v42, %v6737_v39  ;;  %v5286_v59 = vsub.f32 1.5, %v5285_v47  ;;  %v13170_v0 = vadd.f32 %v12861_v1, %v5722_v54  ;;  %v5456_v15 = vmul.f32 %v14442_v21, %v5419_v11 }
 0x60b   : > { %7456 = vrsqrt.f32 %v13159_v48  ;;  %v5295_v4 = vmul.f32 0.5, %v5294_v3  ;;  %vm5308_vm9 = vweird.f32 %v13159_v48 }
 0x60c   : > { %v6815_v26 = vadd.f32 %v6738_v29, %v14569_v23  ;;  %v5287_v7 = vmul.f32 %v7453_v19, %v5286_v59  ;;  %7458 = vrcp.f32 %v5964_v46  ;;  %v13181_v1 = vmul.f32 0.70710677, %v13170_v0 }
 0x60d   : > { %v5296_v60 = vsub.f32 1.5, %v5295_v4  ;;  %v5493_v56 = vadd.f32 %v14443_v27, %v5456_v15  ;;  %7460 = vrcp.f32 %v5965_v22 }
 0x60e   : > { %6847 = vst.msk [vmem:[%s12379_s26 + $0x48] sm:$0xff] %vm875_vm1, %v6815_v26  ;;  %v5291_v63 = vsel %vm5290_vm3, %v7453_v19, %v5287_v7  ;;  %v13196_v36 = vand.u32 2147483647, %v13181_v1  ;;  %v6348_v26 = vmul.f32 %v6316_v9, %v13146_v38  ;;  %vm5838_vm13 = vcmp.ge.f32.partialorder %v13181_v1, 0.0 }
 0x60f   : > { %v5350_v44 = vmul.f32 %v5291_v63, %v14570_v5  ;;  %v5297_v58 = vmul.f32 %v7455_v8, %v5296_v60  ;;  %v5530_v61 = vmul.f32 %v14447_v16, %v5493_v56  ;;  %v14573_v5 = vld [vmem:[#allocation86_spill] sm:$0xff] }
 0x610   : > { %v5934_v39 = vmul.f32 0.3275911, %v13196_v36 }
 0x611   : > { %v7457_v31 = vpop.eup %7456  ;;  %v5385_v28 = vmul.f32 %v13187_v45, %v5350_v44  ;;  %v5301_v14 = vsel %vm5300_vm6, %v7455_v8, %v5297_v58  ;;  %7064 = vmatmul.msk.f32.gmra.mxu3 %vm875_vm1, %v5530_v61  ;;  %v6317_v58 = vsub.f32 0.0, %v13176_v13 }
 0x612   : > { %v5303_v32 = vmul.f32 %v7457_v31, %v13159_v48  ;;  %v5351_v33 = vmul.f32 %v5301_v14, %v14571_v49  ;;  %v13205_v10 = vpop.eup %7458  ;;  %vm5309_vm7 = vweird.f32 %v7457_v31  ;;  %v5966_v7 = vadd.f32 1.0, %v5934_v39 }
 0x613   : > { %v6740_v17 = vpop.f32.mrf.mxu2  ;;  %v5420_v43 = vadd.f32 %v13202_v55, %v5385_v28  ;;  %v6028_v54 = vmul.f32 1.0614054, %v13205_v10  ;;  %vm5310_vm10 = vmor %vm5308_vm9, %vm5309_vm7  ;;  %v13227_v15 = vpop.eup %7460 }
 0x614   : > { %v6741_v62 = vadd.f32 %v13063_v42, %v6740_v17  ;;  %v5304_v19 = vmul.f32 %v7457_v31, %v5303_v32  ;;  %v5386_v52 = vmul.f32 %v13187_v45, %v5351_v33  ;;  %7462 = vrcp.f32 %v5966_v7 }
 0x615   : > { %v5457_v8 = vmul.f32 %v14442_v21, %v5420_v43  ;;  %v6060_v23 = vadd.f32 -1.4531521, %v6028_v54  ;;  %v6029_v37 = vmul.f32 1.0614054, %v13227_v15 }
 0x616   : > { %v6816_v30 = vadd.f32 %v6741_v62, %v14572_v34  ;;  %v5305_v41 = vmul.f32 0.5, %v5304_v19  ;;  %v5421_v29 = vadd.f32 %v13202_v55, %v5386_v52  ;;  %v6349_v62 = vmul.f32 %v6317_v58, %v13176_v13  ;;  %v14574_v52 = vld [vmem:[#allocation19_spill] sm:$0xff] }
 0x617   : > { %v5494_v47 = vadd.f32 %v14443_v27, %v5457_v8  ;;  %v6092_v63 = vmul.f32 %v13205_v10, %v6060_v23  ;;  %v6061_v61 = vadd.f32 -1.4531521, %v6029_v37  ;;  %v6318_v8 = vsub.f32 0.0, %v13196_v36 }
 0x618   : > { %6848 = vst.msk [vmem:[%s12379_s26 + $0x50] sm:$0xff] %vm875_vm1, %v6816_v30  ;;  %v5306_v12 = vsub.f32 1.5, %v5305_v41  ;;  %v5458_v3 = vmul.f32 %v14442_v21, %v5421_v29  ;;  %v6402_v39 = vmul.f32 1.442695, %v6349_v62 }
 0x619   : > { %v5531_v2 = vmul.f32 %v14447_v16, %v5494_v47  ;;  %v6124_v38 = vadd.f32 1.4214138, %v6092_v63  ;;  %v6093_v30 = vmul.f32 %v13227_v15, %v6061_v61  ;;  %v14575_v63 = vld [vmem:[#allocation39_spill] sm:$0xff] }
 0x61a   : > { %v5307_v35 = vmul.f32 %v7457_v31, %v5306_v12  ;;  %v5495_v11 = vadd.f32 %v14443_v27, %v5458_v3  ;;  %v13242_v19 = vpop.eup %7462 }
 0x61b   : > { %7065 = vmatmul.msk.f32.gmra.mxu3 %vm875_vm1, %v5531_v2  ;;  %v6156_v56 = vmul.f32 %v13205_v10, %v6124_v38  ;;  %v6125_v9 = vadd.f32 1.4214138, %v6093_v30 }
 0x61c   : > { %v5311_v59 = vsel %vm5310_vm10, %v7457_v31, %v5307_v35  ;;  %v6400_v31 = vmul.f32 1.442695, %v6348_v26  ;;  %v6030_v35 = vmul.f32 1.0614054, %v13242_v19 }
 0x61d   : > { %v6743_v48 = vpop.f32.mrf.mxu2  ;;  %v5352_v46 = vmul.f32 %v5311_v59, %v12946_v25  ;;  %v5532_v25 = vmul.f32 %v14447_v16, %v5495_v11  ;;  %v6188_v32 = vadd.f32 -0.28449672, %v6156_v56  ;;  %v6157_v2 = vmul.f32 %v13227_v15, %v6125_v9 }
 0x61e   : > { %v6744_v4 = vadd.f32 %v13063_v42, %v6743_v48  ;;  %7464 = vpow2.f32 %v6400_v31  ;;  %v6062_v23 = vadd.f32 -1.4531521, %v6030_v35 }
 0x61f   : > { %v5387_v60 = vmul.f32 %v13187_v45, %v5352_v46  ;;  %v6220_v33 = vmul.f32 %v13205_v10, %v6188_v32  ;;  %v5725_v59 = vpop.f32.mrf.mxu1 }
 0x620   : > { %v6817_v44 = vadd.f32 %v6744_v4, %v14573_v5  ;;  %v6094_v7 = vmul.f32 %v13242_v19, %v6062_v23  ;;  %v13267_v4 = vld [vmem:[%s13542_s14] ss:$0 sm:$0xff] }
 0x621   : > { %v5422_v28 = vadd.f32 %v13202_v55, %v5387_v60  ;;  %v6252_v41 = vadd.f32 0.2548296, %v6220_v33 }
 0x622   : > { %6849 = vst.msk [vmem:[%s12379_s26 + $0x58] sm:$0xff] %vm875_vm1, %v6817_v44  ;;  %v6126_v44 = vadd.f32 1.4214138, %v6094_v7  ;;  %v5870_v7 = vsel %vm5838_vm13, 1.0, %v14551_v50 }
 0x623   : > { %v5459_v17 = vmul.f32 %v14442_v21, %v5422_v28  ;;  %7066 = vmatmul.msk.f32.gmra.mxu3 %vm875_vm1, %v5532_v25  ;;  %v6284_v47 = vmul.f32 %v13205_v10, %v6252_v41  ;;  %v6189_v10 = vadd.f32 -0.28449672, %v6157_v2  ;;  %v5772_v25 = vmul.f32 0.5, %v13135_v24 }
 0x624   : > { %v7465_v29 = vpop.eup %7464  ;;  %v6158_v56 = vmul.f32 %v13242_v19, %v6126_v44  ;;  %v5773_v2 = vmul.f32 0.5, %v13153_v20 }
 0x625   : > { %v6746_v14 = vpop.f32.mrf.mxu2  ;;  %v5496_v43 = vadd.f32 %v14443_v27, %v5459_v17  ;;  %v6444_v3 = vmul.f32 %v7465_v29, %v6284_v47  ;;  %v6221_v11 = vmul.f32 %v13227_v15, %v6189_v10 }
 0x626   : > { %v6747_v49 = vadd.f32 %v13063_v42, %v6746_v14  ;;  %v6190_v62 = vadd.f32 -0.28449672, %v6158_v56 }
 0x627   : > { %v5533_v12 = vmul.f32 %v14447_v16, %v5496_v43  ;;  %v6476_v46 = vsub.f32 1.0, %v6444_v3  ;;  %v6253_v31 = vadd.f32 0.2548296, %v6221_v11 }
 0x628   : > { %v4937_v34 = vpop.xlane.xlu0 %4936  ;;  %v6818_v22 = vadd.f32 %v6747_v49, %v14574_v52 }
 0x629   : > { %v4969_v13 = vmul.f32 %v4937_v34, %v14188_v18  ;;  %v6350_v18 = vmul.f32 %v6318_v8, %v13196_v36  ;;  %v13270_v36 = vadd.f32 %v13267_v4, %v5725_v59  ;;  %v6508_v5 = vmul.f32 %v6476_v46, %v5868_v51  ;;  %v14577_v51 = vld [vmem:[#allocation90_spill] sm:$0xff] }
 0x62a   : > { %6850 = vst.msk [vmem:[%s12379_s26 + $0x60] sm:$0xff] %vm875_vm1, %v6818_v22  ;;  %v6285_v32 = vmul.f32 %v13227_v15, %v6253_v31  ;;  %v6222_v34 = vmul.f32 %v13242_v19, %v6190_v62  ;;  %v5869_v15 = vsel %vm5837_vm12, 1.0, %v14551_v50  ;;  %v14576_v22 = vld [vmem:[#allocation18_spill] sm:$0xff] }
 0x62b   : > { %v13254_v54 = vadd.f32 1e-05, %v4969_v13  ;;  %7067 = vmatmul.msk.f32.gmra.mxu3 %vm875_vm1, %v5533_v12  ;;  %v6404_v38 = vmul.f32 1.442695, %v6350_v18  ;;  %v6540_v58 = vadd.f32 1.0, %v6508_v5 }
 0x62c   : > { %v13279_v37 = vmul.f32 0.70710677, %v13270_v36  ;;  %v6254_v12 = vadd.f32 0.2548296, %v6222_v34 }
 0x62d   : > { %v6749_v26 = vpop.f32.mrf.mxu2  ;;  %7466 = vrsqrt.f32 %v13254_v54  ;;  %v6572_v14 = vmul.f32 %v6540_v58, %v5772_v25  ;;  %vm5318_vm15 = vweird.f32 %v13254_v54 }
 0x62e   : > { %7468 = vpow2.f32 %v6402_v39  ;;  %v6750_v48 = vadd.f32 %v13063_v42, %v6749_v26  ;;  %v13289_v30 = vand.u32 2147483647, %v13279_v37  ;;  %v6286_v47 = vmul.f32 %v13242_v19, %v6254_v12 }
 0x62f   : > { %7470 = vpow2.f32 %v6404_v38  ;;  %7089 = vmatmul.msk.f32.gmra.mxu2 %vm6596_vm8, %v6572_v14  ;;  %vm5839_vm2 = vcmp.ge.f32.partialorder %v13279_v37, 0.0 }
 0x630   : > { %v6819_v60 = vadd.f32 %v6750_v48, %v14575_v63  ;;  %v5935_v3 = vmul.f32 0.3275911, %v13289_v30  ;;  %v5774_v63 = vmul.f32 0.5, %v13170_v0 }
 0x632   : > { %6851 = vst.msk [vmem:[%s12379_s26 + $0x68] sm:$0xff] %vm875_vm1, %v6819_v60  ;;  %v5967_v20 = vadd.f32 1.0, %v5935_v3 }
 0x633   : > { %v7467_v28 = vpop.eup %7466 }
 0x634   : > { %v7469_v17 = vpop.eup %7468  ;;  %v5313_v61 = vmul.f32 %v7467_v28, %v13254_v54  ;;  %vm5319_vm14 = vweird.f32 %v7467_v28  ;;  %7472 = vrcp.f32 %v5967_v20 }
 0x635   : > { %v6752_v24 = vpop.f32.mrf.mxu2  ;;  %v6445_v49 = vmul.f32 %v7469_v17, %v6285_v32  ;;  %v7471_v29 = vpop.eup %7470  ;;  %vm5320_vm0 = vmor %vm5318_vm15, %vm5319_vm14 }
 0x636   : > { %v6753_v33 = vadd.f32 %v13063_v42, %v6752_v24  ;;  %v5314_v43 = vmul.f32 %v7467_v28, %v5313_v61  ;;  %v5731_v52 = vpop.f32.mrf.mxu3  ;;  %v6446_v23 = vmul.f32 %v7471_v29, %v6286_v47 }
 0x637   : > { %v6477_v40 = vsub.f32 1.0, %v6445_v49  ;;  %v13293_v13 = vadd.f32 %v13267_v4, %v5731_v52 }
 0x638   : > { %v6820_v41 = vadd.f32 %v6753_v33, %v14576_v22  ;;  %v5315_v8 = vmul.f32 0.5, %v5314_v43  ;;  %v6478_v19 = vsub.f32 1.0, %v6446_v23 }
 0x639   : > { %v6509_v9 = vmul.f32 %v6477_v40, %v5869_v15  ;;  %v13299_v35 = vmul.f32 0.70710677, %v13293_v13 }
 0x63a   : > { %6852 = vst.msk [vmem:[%s12379_s26 + $0x70] sm:$0xff] %vm875_vm1, %v6820_v41  ;;  %v5316_v39 = vsub.f32 1.5, %v5315_v8  ;;  %v6510_v11 = vmul.f32 %v6478_v19, %v5870_v7  ;;  %v7473_v24 = vpop.eup %7472  ;;  %v14579_v41 = vld [vmem:[#allocation106_spill] sm:$0xff] }
 0x63b   : > { %v6541_v59 = vadd.f32 1.0, %v6509_v9  ;;  %v5905_v46 = vand.u32 2147483647, %v13299_v35  ;;  %v6031_v34 = vmul.f32 1.0614054, %v7473_v24  ;;  %vm5841_vm4 = vcmp.ge.f32.partialorder %v13299_v35, 0.0 }
 0x63c   : > { %v5317_v48 = vmul.f32 %v7467_v28, %v5316_v39  ;;  %v6542_v44 = vadd.f32 1.0, %v6510_v11  ;;  %v14581_v35 = vld [vmem:[#allocation45_spill] sm:$0xff] }
 0x63d   : > { %v6755_v18 = vpop.f32.mrf.mxu2  ;;  %v6573_v26 = vmul.f32 %v6541_v59, %v5773_v2  ;;  %v5937_v38 = vmul.f32 0.3275911, %v5905_v46  ;;  %v6063_v52 = vadd.f32 -1.4531521, %v6031_v34  ;;  %v6321_v12 = vsub.f32 0.0, %v5905_v46 }
 0x63e   : > { %v6756_v10 = vadd.f32 %v13063_v42, %v6755_v18  ;;  %v5321_v5 = vsel %vm5320_vm0, %v7467_v28, %v5317_v48  ;;  %v6574_v25 = vmul.f32 %v6542_v44, %v5774_v63  ;;  %v14578_v28 = vld [vmem:[#allocation58_spill] sm:$0xff] }
 0x63f   : > { %7090 = vmatmul.msk.f32.gmra.mxu2 %vm6596_vm8, %v6573_v26  ;;  %v5353_v54 = vmul.f32 %v5321_v5, %v13039_v6  ;;  %v5969_v32 = vadd.f32 1.0, %v5937_v38  ;;  %v6319_v6 = vsub.f32 0.0, %v13289_v30  ;;  %v6095_v39 = vmul.f32 %v7473_v24, %v6063_v52 }
 0x640   : > { %v6821_v1 = vadd.f32 %v6756_v10, %v14577_v51  ;;  %v6353_v23 = vmul.f32 %v6321_v12, %v5905_v46 }
 0x641   : > { %v5388_v62 = vmul.f32 %v13187_v45, %v5353_v54  ;;  %7474 = vrcp.f32 %v5969_v32  ;;  %v6351_v45 = vmul.f32 %v6319_v6, %v13289_v30  ;;  %v6127_v59 = vadd.f32 1.4214138, %v6095_v39 }
 0x642   : > { %6853 = vst.msk [vmem:[%s12379_s26 + $0x78] sm:$0xff] %vm875_vm1, %v6821_v1  ;;  %v6410_v7 = vmul.f32 1.442695, %v6353_v23 }
 0x643   : > { %v5423_v43 = vadd.f32 %v13202_v55, %v5388_v62  ;;  %v6159_v30 = vmul.f32 %v7473_v24, %v6127_v59 }
 0x645   : > { %v5728_v60 = vpop.f32.mrf.mxu1  ;;  %v6758_v56 = vpop.f32.mrf.mxu2  ;;  %v5460_v40 = vmul.f32 %v14442_v21, %v5423_v43  ;;  %v6406_v21 = vmul.f32 1.442695, %v6351_v45 }
 0x646   : > { %v13314_v31 = vadd.f32 %v13267_v4, %v5728_v60  ;;  %v6759_v0 = vadd.f32 %v13063_v42, %v6758_v56 }
 0x647   : > { %7091 = vmatmul.msk.f32.gmra.mxu2 %vm6596_vm8, %v6574_v25  ;;  %v7475_v22 = vpop.eup %7474  ;;  %v5497_v9 = vadd.f32 %v14443_v27, %v5460_v40  ;;  %v6191_v27 = vadd.f32 -0.28449672, %v6159_v30 }
 0x648   : > { %v13317_v58 = vmul.f32 0.70710677, %v13314_v31  ;;  %v6822_v14 = vadd.f32 %v6759_v0, %v14578_v28  ;;  %v6033_v3 = vmul.f32 1.0614054, %v7475_v22  ;;  %v5871_v28 = vsel %vm5839_vm2, 1.0, %v14551_v50 }
 0x649   : > { %v5534_v2 = vmul.f32 %v14447_v16, %v5497_v9  ;;  %v6223_v51 = vmul.f32 %v7473_v24, %v6191_v27  ;;  %v5873_v9 = vsel %vm5841_vm4, 1.0, %v14551_v50 }
 0x64a   : > { %v5904_v17 = vand.u32 2147483647, %v13317_v58  ;;  %6854 = vst.msk [vmem:[%s12379_s26 + $0x80] sm:$0xff] %vm875_vm1, %v6822_v14  ;;  %v6065_v26 = vadd.f32 -1.4531521, %v6033_v3  ;;  %vm5840_vm3 = vcmp.ge.f32.partialorder %v13317_v58, 0.0 }
 0x64b   : > { %7068 = vmatmul.msk.f32.gmra.mxu3 %vm875_vm1, %v5534_v2  ;;  %v6255_v63 = vadd.f32 0.2548296, %v6223_v51  ;;  %v5872_v45 = vsel %vm5840_vm3, 1.0, %v14551_v50  ;;  %v5777_v3 = vmul.f32 0.5, %v13293_v13 }
 0x64c   : > { %v5936_v61 = vmul.f32 0.3275911, %v5904_v17  ;;  %v6320_v29 = vsub.f32 0.0, %v5904_v17  ;;  %v6097_v19 = vmul.f32 %v7475_v22, %v6065_v26 }
 0x64d   : > { %v6761_v33 = vpop.f32.mrf.mxu2  ;;  %v6287_v5 = vmul.f32 %v7473_v24, %v6255_v63  ;;  %v5775_v24 = vmul.f32 0.5, %v13270_v36  ;;  %v14580_v36 = vld [vmem:[#allocation73_spill] sm:$0xff] }
 0x64e   : > { %v5968_v49 = vadd.f32 1.0, %v5936_v61  ;;  %v6762_v15 = vadd.f32 %v13063_v42, %v6761_v33  ;;  %v6352_v10 = vmul.f32 %v6320_v29, %v5904_v17  ;;  %v6129_v1 = vadd.f32 1.4214138, %v6097_v19 }
 0x650   : > { %7476 = vrcp.f32 %v5968_v49  ;;  %v6823_v8 = vadd.f32 %v6762_v15, %v14579_v41  ;;  %v6408_v11 = vmul.f32 1.442695, %v6352_v10  ;;  %v6161_v60 = vmul.f32 %v7475_v22, %v6129_v1 }
 0x651   : > { %7478 = vpow2.f32 %v6406_v21 }
 0x652   : > { %6855 = vst.msk [vmem:[%s12379_s26 + $0x88] sm:$0xff] %vm875_vm1, %v6823_v8  ;;  %7480 = vpow2.f32 %v6410_v7  ;;  %v6193_v44 = vadd.f32 -0.28449672, %v6161_v60  ;;  %v5776_v8 = vmul.f32 0.5, %v13314_v31 }
 0x653   : > { %7482 = vpow2.f32 %v6408_v11 }
 0x654   : > { %v6225_v56 = vmul.f32 %v7475_v22, %v6193_v44 }
 0x656   : > { %v7477_v47 = vpop.eup %7476  ;;  %v6257_v17 = vadd.f32 0.2548296, %v6225_v56 }
 0x657   : > { %v6032_v55 = vmul.f32 1.0614054, %v7477_v47  ;;  %v7479_v38 = vpop.eup %7478 }
 0x658   : > { %v6447_v54 = vmul.f32 %v7479_v38, %v6287_v5  ;;  %v7481_v14 = vpop.eup %7480  ;;  %v6289_v49 = vmul.f32 %v7475_v22, %v6257_v17 }
 0x659   : > { %v6064_v18 = vadd.f32 -1.4531521, %v6032_v55  ;;  %v7483_v6 = vpop.eup %7482 }
 0x65a   : > { %v6479_v32 = vsub.f32 1.0, %v6447_v54  ;;  %v6449_v43 = vmul.f32 %v7481_v14, %v6289_v49 }
 0x65b   : > { %v6096_v48 = vmul.f32 %v7477_v47, %v6064_v18  ;;  %v6764_v34 = vpop.f32.mrf.mxu2 }
 0x65c   : > { %v6511_v62 = vmul.f32 %v6479_v32, %v5871_v28  ;;  %v6765_v52 = vadd.f32 %v13063_v42, %v6764_v34  ;;  %v6481_v58 = vsub.f32 1.0, %v6449_v43 }
 0x65d   : > { %v6128_v20 = vadd.f32 1.4214138, %v6096_v48 }
 0x65e   : > { %v6543_v37 = vadd.f32 1.0, %v6511_v62  ;;  %v6824_v22 = vadd.f32 %v6765_v52, %v14580_v36 }
 0x65f   : > { %v6160_v16 = vmul.f32 %v7477_v47, %v6128_v20 }
 0x660   : > { %v6575_v40 = vmul.f32 %v6543_v37, %v5775_v24  ;;  %6856 = vst.msk [vmem:[%s12379_s26 + $0x90] sm:$0xff] %vm875_vm1, %v6824_v22 }
 0x661   : > { %v6192_v46 = vadd.f32 -0.28449672, %v6160_v16 }
 0x662   : > { %7092 = vmatmul.msk.f32.gmra.mxu2 %vm6596_vm8, %v6575_v40 }
 0x663   : > { %v6224_v25 = vmul.f32 %v7477_v47, %v6192_v46  ;;  %v6767_v29 = vpop.f32.mrf.mxu2 }
 0x664   : > { %v6768_v55 = vadd.f32 %v13063_v42, %v6767_v29 }
 0x665   : > { %v6256_v0 = vadd.f32 0.2548296, %v6224_v25 }
 0x666   : > { %v6825_v2 = vadd.f32 %v6768_v55, %v14581_v35  ;;  %v14582_v35 = vld [vmem:[#allocation94_spill] sm:$0xff] }
 0x667   : > { %v6288_v61 = vmul.f32 %v7477_v47, %v6256_v0  ;;  %v6513_v47 = vmul.f32 %v6481_v58, %v5873_v9 }
 0x668   : > { %6857 = vst.msk [vmem:[%s12379_s26 + $0x98] sm:$0xff] %vm875_vm1, %v6825_v2 }
 0x669   : > { %v6448_v33 = vmul.f32 %v7483_v6, %v6288_v61  ;;  %v6545_v59 = vadd.f32 1.0, %v6513_v47 }
 0x66b   : > { %v6480_v15 = vsub.f32 1.0, %v6448_v33  ;;  %v6577_v31 = vmul.f32 %v6545_v59, %v5777_v3 }
 0x66d   : > { %v6512_v41 = vmul.f32 %v6480_v15, %v5872_v45 }
 0x66f   : > { %v6544_v12 = vadd.f32 1.0, %v6512_v41 }
 0x671   : > { %v6576_v39 = vmul.f32 %v6544_v12, %v5776_v8  ;;  %v13398_v12 = vld [vmem:[%s13544_s16] ss:$0 sm:$0xff] }
 0x673   : > { %7093 = vmatmul.msk.f32.vlgmr.msra.gmra.mxu3 %vm6596_vm8, %v6576_v39 }
 0x67b   : > { %7094 = vmatmul.msk.f32.gmra.mxu3 %vm6596_vm8, %v6577_v31 }
 0x68a   : > { %v5734_v21 = vpop.f32.mrf.mxu3 }
 0x68b   : > { %v13359_v23 = vadd.f32 %v13267_v4, %v5734_v21 }
 0x68d   : > { %v13362_v18 = vmul.f32 0.70710677, %v13359_v23 }
 0x68f   : > { %v5906_v26 = vand.u32 2147483647, %v13362_v18  ;;  %vm5842_vm5 = vcmp.ge.f32.partialorder %v13362_v18, 0.0 }
 0x691   : > { %v5938_v48 = vmul.f32 0.3275911, %v5906_v26  ;;  %v6322_v44 = vsub.f32 0.0, %v5906_v26 }
 0x693   : > { %v5970_v20 = vadd.f32 1.0, %v5938_v48  ;;  %v6354_v17 = vmul.f32 %v6322_v44, %v5906_v26 }
 0x694   : > { %v5737_v42 = vpop.f32.mrf.mxu3 }
 0x695   : > { %v13365_v30 = vadd.f32 %v13267_v4, %v5737_v42  ;;  %7484 = vrcp.f32 %v5970_v20  ;;  %v6412_v37 = vmul.f32 1.442695, %v6354_v17 }
 0x697   : > { %v13369_v13 = vmul.f32 0.70710677, %v13365_v30 }
 0x699   : > { %v5907_v10 = vand.u32 2147483647, %v13369_v13  ;;  %vm5843_vm6 = vcmp.ge.f32.partialorder %v13369_v13, 0.0 }
 0x69b   : > { %v5939_v27 = vmul.f32 0.3275911, %v5907_v10  ;;  %v7485_v46 = vpop.eup %7484  ;;  %v6323_v38 = vsub.f32 0.0, %v5907_v10 }
 0x69c   : > { %v6034_v25 = vmul.f32 1.0614054, %v7485_v46 }
 0x69d   : > { %v5971_v51 = vadd.f32 1.0, %v5939_v27  ;;  %v6355_v14 = vmul.f32 %v6323_v38, %v5907_v10 }
 0x69e   : > { %v5740_v19 = vpop.f32.mrf.mxu3  ;;  %v6066_v32 = vadd.f32 -1.4531521, %v6034_v25 }
 0x69f   : > { %v13373_v7 = vadd.f32 %v13267_v4, %v5740_v19  ;;  %7486 = vrcp.f32 %v5971_v51  ;;  %v6414_v15 = vmul.f32 1.442695, %v6355_v14 }
 0x6a0   : > { %v6098_v49 = vmul.f32 %v7485_v46, %v6066_v32 }
 0x6a1   : > { %v13376_v1 = vmul.f32 0.70710677, %v13373_v7 }
 0x6a2   : > { %v6130_v43 = vadd.f32 1.4214138, %v6098_v49 }
 0x6a3   : > { %v5908_v11 = vand.u32 2147483647, %v13376_v1  ;;  %vm5844_vm7 = vcmp.ge.f32.partialorder %v13376_v1, 0.0 }
 0x6a4   : > { %v6162_v41 = vmul.f32 %v7485_v46, %v6130_v43 }
 0x6a5   : > { %v5940_v16 = vmul.f32 0.3275911, %v5908_v11  ;;  %v7487_v5 = vpop.eup %7486  ;;  %v6324_v33 = vsub.f32 0.0, %v5908_v11 }
 0x6a6   : > { %v5743_v63 = vpop.f32.mrf.mxu3  ;;  %v6035_v54 = vmul.f32 1.0614054, %v7487_v5  ;;  %v6194_v39 = vadd.f32 -0.28449672, %v6162_v41 }
 0x6a7   : > { %v5972_v60 = vadd.f32 1.0, %v5940_v16  ;;  %v13382_v61 = vadd.f32 %v13267_v4, %v5743_v63  ;;  %v6356_v22 = vmul.f32 %v6324_v33, %v5908_v11  ;;  %v5875_v33 = vsel %vm5843_vm6, 1.0, %v14551_v50 }
 0x6a8   : > { %v6067_v28 = vadd.f32 -1.4531521, %v6035_v54  ;;  %v6226_v3 = vmul.f32 %v7485_v46, %v6194_v39 }
 0x6a9   : > { %7488 = vrcp.f32 %v5972_v60  ;;  %v13389_v40 = vmul.f32 0.70710677, %v13382_v61  ;;  %v6416_v21 = vmul.f32 1.442695, %v6356_v22 }
 0x6aa   : > { %v6099_v6 = vmul.f32 %v7487_v5, %v6067_v28  ;;  %7490 = vpow2.f32 %v6412_v37  ;;  %v6258_v26 = vadd.f32 0.2548296, %v6226_v3  ;;  %v14583_v28 = vld [vmem:[#allocation114_spill] sm:$0xff] }
 0x6ab   : > { %7492 = vpow2.f32 %v6414_v15  ;;  %v13402_v29 = vand.u32 2147483647, %v13389_v40  ;;  %vm5845_vm9 = vcmp.ge.f32.partialorder %v13389_v40, 0.0 }
 0x6ac   : > { %v6131_v34 = vadd.f32 1.4214138, %v6099_v6  ;;  %v6290_v51 = vmul.f32 %v7485_v46, %v6258_v26  ;;  %7494 = vpow2.f32 %v6416_v21 }
 0x6ad   : > { %v5941_v48 = vmul.f32 0.3275911, %v13402_v29  ;;  %v6325_v39 = vsub.f32 0.0, %v13402_v29 }
 0x6ae   : > { %v5746_v0 = vpop.f32.mrf.mxu3  ;;  %v6163_v36 = vmul.f32 %v7487_v5, %v6131_v34 }
 0x6af   : > { %v13379_v56 = vpop.eup %7488  ;;  %v13385_v62 = vadd.f32 %v13267_v4, %v5746_v0  ;;  %v5973_v25 = vadd.f32 1.0, %v5941_v48  ;;  %v6357_v21 = vmul.f32 %v6325_v39, %v13402_v29  ;;  %v5780_v48 = vmul.f32 0.5, %v13373_v7  ;;  %v14585_v39 = vld [vmem:[#allocation83_spill] sm:$0xff] }
 0x6b0   : > { %v6036_v24 = vmul.f32 1.0614054, %v13379_v56  ;;  %v6195_v47 = vadd.f32 -0.28449672, %v6163_v36  ;;  %v7491_v19 = vpop.eup %7490  ;;  %v14584_v36 = vld [vmem:[#allocation53_spill] sm:$0xff] }
 0x6b1   : > { %v13392_v45 = vmul.f32 0.70710677, %v13385_v62  ;;  %v7493_v16 = vpop.eup %7492  ;;  %v6450_v44 = vmul.f32 %v7491_v19, %v6290_v51  ;;  %7496 = vrcp.f32 %v5973_v25 }
 0x6b2   : > { %v6068_v52 = vadd.f32 -1.4531521, %v6036_v24  ;;  %v6770_v58 = vpop.f32.mrf.mxu2  ;;  %v6227_v31 = vmul.f32 %v7487_v5, %v6195_v47  ;;  %v7495_v6 = vpop.eup %7494  ;;  %v5778_v24 = vmul.f32 0.5, %v13359_v23 }
 0x6b3   : > { %v6771_v9 = vadd.f32 %v13398_v12, %v6770_v58  ;;  %v13406_v59 = vand.u32 2147483647, %v13392_v45  ;;  %v6482_v17 = vsub.f32 1.0, %v6450_v44  ;;  %vm5846_vm10 = vcmp.ge.f32.partialorder %v13392_v45, 0.0 }
 0x6b4   : > { %v6100_v8 = vmul.f32 %v13379_v56, %v6068_v52  ;;  %v6259_v10 = vadd.f32 0.2548296, %v6227_v31 }
 0x6b5   : > { %v6826_v2 = vadd.f32 %v6771_v9, %v14582_v35  ;;  %v5942_v20 = vmul.f32 0.3275911, %v13406_v59  ;;  %v5876_v9 = vsel %vm5844_vm7, 1.0, %v14551_v50  ;;  %v6326_v1 = vsub.f32 0.0, %v13406_v59 }
 0x6b6   : > { %v6132_v55 = vadd.f32 1.4214138, %v6100_v8  ;;  %v6291_v11 = vmul.f32 %v7487_v5, %v6259_v10  ;;  %v5874_v5 = vsel %vm5842_vm5, 1.0, %v14551_v50  ;;  %v5779_v8 = vmul.f32 0.5, %v13365_v30 }
 0x6b7   : > { %6858 = vst.msk [vmem:[%s12379_s26 + $0xa0] sm:$0xff] %vm875_vm1, %v6826_v2  ;;  %v5974_v32 = vadd.f32 1.0, %v5942_v20  ;;  %v6514_v18 = vmul.f32 %v6482_v17, %v5874_v5  ;;  %v7497_v41 = vpop.eup %7496  ;;  %v6358_v30 = vmul.f32 %v6326_v1, %v13406_v59  ;;  %v6418_v20 = vmul.f32 1.442695, %v6357_v21  ;;  %v14586_v21 = vld [vmem:[#allocation21_spill] sm:$0xff] }
 0x6b8   : > { %v6164_v42 = vmul.f32 %v13379_v56, %v6132_v55  ;;  %v6451_v38 = vmul.f32 %v7493_v16, %v6291_v11  ;;  %v6037_v35 = vmul.f32 1.0614054, %v7497_v41 }
 0x6b9   : > { %7498 = vrcp.f32 %v5974_v32  ;;  %v6546_v13 = vadd.f32 1.0, %v6514_v18  ;;  %v6420_v16 = vmul.f32 1.442695, %v6358_v30 }
 0x6ba   : > { %v6196_v27 = vadd.f32 -0.28449672, %v6164_v42  ;;  %v6483_v46 = vsub.f32 1.0, %v6451_v38  ;;  %v6069_v3 = vadd.f32 -1.4531521, %v6037_v35  ;;  %7500 = vpow2.f32 %v6418_v20  ;;  %v14587_v20 = vld [vmem:[#allocation15_spill] sm:$0xff] }
 0x6bb   : > { %v6578_v15 = vmul.f32 %v6546_v13, %v5778_v24  ;;  %7502 = vpow2.f32 %v6420_v16  ;;  %v5877_v24 = vsel %vm5845_vm9, 1.0, %v14551_v50 }
 0x6bc   : > { %v6228_v63 = vmul.f32 %v13379_v56, %v6196_v27  ;;  %v6515_v37 = vmul.f32 %v6483_v46, %v5875_v33  ;;  %v6101_v26 = vmul.f32 %v7497_v41, %v6069_v3 }
 0x6bd   : > { %7095 = vmatmul.msk.f32.gmra.mxu3 %vm6596_vm8, %v6578_v15 }
 0x6be   : > { %v6260_v0 = vadd.f32 0.2548296, %v6228_v63  ;;  %v6133_v27 = vadd.f32 1.4214138, %v6101_v26 }
 0x6bf   : > { %v7499_v58 = vpop.eup %7498 }
 0x6c0   : > { %v6292_v49 = vmul.f32 %v13379_v56, %v6260_v0  ;;  %v6547_v56 = vadd.f32 1.0, %v6515_v37  ;;  %v6038_v2 = vmul.f32 1.0614054, %v7499_v58  ;;  %v7501_v5 = vpop.eup %7500  ;;  %v5878_v37 = vsel %vm5846_vm10, 1.0, %v14551_v50 }
 0x6c2   : > { %v6773_v60 = vpop.f32.mrf.mxu2  ;;  %v6452_v43 = vmul.f32 %v7495_v6, %v6292_v49  ;;  %v6579_v47 = vmul.f32 %v6547_v56, %v5779_v8  ;;  %v6070_v31 = vadd.f32 -1.4531521, %v6038_v2 }
 0x6c3   : > { %v6774_v54 = vadd.f32 %v13398_v12, %v6773_v60  ;;  %v6165_v60 = vmul.f32 %v7497_v41, %v6133_v27 }
 0x6c4   : > { %v6484_v23 = vsub.f32 1.0, %v6452_v43  ;;  %v6102_v10 = vmul.f32 %v7499_v58, %v6070_v31 }
 0x6c5   : > { %v6827_v14 = vadd.f32 %v6774_v54, %v14583_v28  ;;  %7096 = vmatmul.msk.f32.gmra.mxu3 %vm6596_vm8, %v6579_v47  ;;  %v6197_v38 = vadd.f32 -0.28449672, %v6165_v60 }
 0x6c6   : > { %v6516_v55 = vmul.f32 %v6484_v23, %v5876_v9  ;;  %v6134_v19 = vadd.f32 1.4214138, %v6102_v10  ;;  %v5782_v9 = vmul.f32 0.5, %v13385_v62 }
 0x6c7   : > { %6859 = vst.msk [vmem:[%s12379_s26 + $0xa8] sm:$0xff] %vm875_vm1, %v6827_v14  ;;  %v6229_v25 = vmul.f32 %v7497_v41, %v6197_v38  ;;  %v7503_v14 = vpop.eup %7502 }
 0x6c8   : > { %v6548_v42 = vadd.f32 1.0, %v6516_v55  ;;  %v6166_v29 = vmul.f32 %v7499_v58, %v6134_v19 }
 0x6c9   : > { %v6261_v32 = vadd.f32 0.2548296, %v6229_v25  ;;  %v14588_v25 = vld [vmem:[#allocation84_spill] sm:$0xff] }
 0x6ca   : > { %v6776_v34 = vpop.f32.mrf.mxu2  ;;  %v6580_v51 = vmul.f32 %v6548_v42, %v5780_v48  ;;  %v6198_v59 = vadd.f32 -0.28449672, %v6166_v29 }
 0x6cb   : > { %v6777_v52 = vadd.f32 %v13398_v12, %v6776_v34  ;;  %v6293_v46 = vmul.f32 %v7497_v41, %v6261_v32  ;;  %v5781_v34 = vmul.f32 0.5, %v13382_v61  ;;  %v14589_v32 = vld [vmem:[#allocation63_spill] sm:$0xff] }
 0x6cc   : > { %v6230_v54 = vmul.f32 %v7499_v58, %v6198_v59 }
 0x6cd   : > { %v6828_v22 = vadd.f32 %v6777_v52, %v14584_v36  ;;  %7097 = vmatmul.msk.f32.gmra.mxu3 %vm6596_vm8, %v6580_v51  ;;  %v6453_v49 = vmul.f32 %v7501_v5, %v6293_v46  ;;  %v14590_v46 = vld [vmem:[#allocation99_spill] sm:$0xff] }
 0x6ce   : > { %v5749_v11 = vpop.f32.mrf.mxu3  ;;  %v6262_v17 = vadd.f32 0.2548296, %v6230_v54 }
 0x6cf   : > { %6860 = vst.msk [vmem:[%s12379_s26 + $0xb0] sm:$0xff] %vm875_vm1, %v6828_v22  ;;  %v13439_v63 = vadd.f32 %v13267_v4, %v5749_v11  ;;  %v6485_v6 = vsub.f32 1.0, %v6453_v49  ;;  %v14591_v49 = vld [vmem:[#allocation80_spill] sm:$0xff] }
 0x6d0   : > { %v6294_v28 = vmul.f32 %v7499_v58, %v6262_v17 }
 0x6d1   : > { %v13442_v44 = vmul.f32 0.70710677, %v13439_v63  ;;  %v6517_v13 = vmul.f32 %v6485_v6, %v5877_v24  ;;  %v5783_v29 = vmul.f32 0.5, %v13439_v63 }
 0x6d2   : > { %v6454_v18 = vmul.f32 %v7503_v14, %v6294_v28 }
 0x6d3   : > { %v5911_v7 = vand.u32 2147483647, %v13442_v44  ;;  %v6549_v52 = vadd.f32 1.0, %v6517_v13  ;;  %vm5847_vm11 = vcmp.ge.f32.partialorder %v13442_v44, 0.0 }
 0x6d4   : > { %v6486_v33 = vsub.f32 1.0, %v6454_v18  ;;  %v5879_v16 = vsel %vm5847_vm11, 1.0, %v14551_v50 }
 0x6d5   : > { %v5943_v0 = vmul.f32 0.3275911, %v5911_v7  ;;  %v6327_v15 = vsub.f32 0.0, %v5911_v7  ;;  %v6581_v23 = vmul.f32 %v6549_v52, %v5781_v34 }
 0x6d6   : > { %v6518_v56 = vmul.f32 %v6486_v33, %v5878_v37 }
 0x6d7   : > { %v5975_v4 = vadd.f32 1.0, %v5943_v0  ;;  %v6359_v22 = vmul.f32 %v6327_v15, %v5911_v7  ;;  %7098 = vmatmul.msk.f32.gmra.mxu3 %vm6596_vm8, %v6581_v23 }
 0x6d8   : > { %v6550_v58 = vadd.f32 1.0, %v6518_v56 }
 0x6d9   : > { %7504 = vrcp.f32 %v5975_v4  ;;  %v6422_v55 = vmul.f32 1.442695, %v6359_v22 }
 0x6da   : > { %v6582_v1 = vmul.f32 %v6550_v58, %v5782_v9 }
 0x6db   : > { %7506 = vpow2.f32 %v6422_v55 }
 0x6df   : > { %v7505_v43 = vpop.eup %7504  ;;  %7099 = vmatmul.msk.f32.gmra.mxu3 %vm6596_vm8, %v6582_v1 }
 0x6e0   : > { %v6039_v40 = vmul.f32 1.0614054, %v7505_v43 }
 0x6e1   : > { %v7507_v48 = vpop.eup %7506 }
 0x6e2   : > { %v6071_v36 = vadd.f32 -1.4531521, %v6039_v40 }
 0x6e4   : > { %v6103_v8 = vmul.f32 %v7505_v43, %v6071_v36 }
 0x6e5   : > { %v6779_v41 = vpop.f32.mrf.mxu2 }
 0x6e6   : > { %v6780_v45 = vadd.f32 %v13398_v12, %v6779_v41  ;;  %v6135_v47 = vadd.f32 1.4214138, %v6103_v8 }
 0x6e8   : > { %v6829_v61 = vadd.f32 %v6780_v45, %v14585_v39  ;;  %v6167_v2 = vmul.f32 %v7505_v43, %v6135_v47 }
 0x6ea   : > { %6861 = vst.msk [vmem:[%s12379_s26 + $0xb8] sm:$0xff] %vm875_vm1, %v6829_v61  ;;  %v6199_v31 = vadd.f32 -0.28449672, %v6167_v2 }
 0x6ec   : > { %v6231_v30 = vmul.f32 %v7505_v43, %v6199_v31 }
 0x6ee   : > { %v6263_v62 = vadd.f32 0.2548296, %v6231_v30 }
 0x6f0   : > { %v6295_v26 = vmul.f32 %v7505_v43, %v6263_v62 }
 0x6f2   : > { %v6455_v19 = vmul.f32 %v7507_v48, %v6295_v26 }
 0x6f4   : > { %v6487_v11 = vsub.f32 1.0, %v6455_v19 }
 0x6f6   : > { %v6782_v35 = vpop.f32.mrf.mxu3  ;;  %v6519_v60 = vmul.f32 %v6487_v11, %v5879_v16 }
 0x6f7   : > { %v6783_v3 = vadd.f32 %v13398_v12, %v6782_v35 }
 0x6f8   : > { %v6551_v38 = vadd.f32 1.0, %v6519_v60 }
 0x6f9   : > { %v6830_v42 = vadd.f32 %v6783_v3, %v14586_v21 }
 0x6fa   : > { %v6583_v59 = vmul.f32 %v6551_v38, %v5783_v29 }
 0x6fb   : > { %6862 = vst.msk [vmem:[%s12379_s26 + $0xc0] sm:$0xff] %vm875_vm1, %v6830_v42 }
 0x6fc   : > { %7100 = vmatmul.msk.f32.gmra.mxu3 %vm6596_vm8, %v6583_v59 }
 0x6fe   : > { %v6785_v10 = vpop.f32.mrf.mxu3 }
 0x6ff   : > { %v6786_v27 = vadd.f32 %v13398_v12, %v6785_v10 }
 0x701   : > { %v6831_v51 = vadd.f32 %v6786_v27, %v14587_v20 }
 0x703   : > { %6863 = vst.msk [vmem:[%s12379_s26 + $0xc8] sm:$0xff] %vm875_vm1, %v6831_v51 }
 0x740   : > { %v6788_v7 = vpop.f32.mrf.mxu3 }
 0x741   : > { %v6789_v44 = vadd.f32 %v13398_v12, %v6788_v7 }
 0x743   : > { %v6832_v54 = vadd.f32 %v6789_v44, %v14588_v25 }
 0x745   : > { %6864 = vst.msk [vmem:[%s12379_s26 + $0xd0] sm:$0xff] %vm875_vm1, %v6832_v54 }
 0x748   : > { %v6791_v50 = vpop.f32.mrf.mxu3 }
 0x749   : > { %v6792_v0 = vadd.f32 %v13398_v12, %v6791_v50 }
 0x74b   : > { %v6833_v17 = vadd.f32 %v6792_v0, %v14589_v32 }
 0x74d   : > { %6865 = vst.msk [vmem:[%s12379_s26 + $0xd8] sm:$0xff] %vm875_vm1, %v6833_v17 }
 0x750   : > { %v6794_v63 = vpop.f32.mrf.mxu3 }
 0x751   : > { %v6795_v4 = vadd.f32 %v13398_v12, %v6794_v63 }
 0x753   : > { %v6834_v5 = vadd.f32 %v6795_v4, %v14590_v46 }
 0x755   : > { %6866 = vst.msk [vmem:[%s12379_s26 + $0xe0] sm:$0xff] %vm875_vm1, %v6834_v5 }
 0x75a   : > { %v6797_v28 = vpop.f32.mrf.mxu3 }
 0x75b   : > { %v6798_v14 = vadd.f32 %v13398_v12, %v6797_v28 }
 0x75d   : > { %v6835_v18 = vadd.f32 %v6798_v14, %v14591_v49 }
 0x75f   : > { %6867 = vst.msk [vmem:[%s12379_s26 + $0xe8] sm:$0xff] %vm875_vm1, %v6835_v18 }
 0x762   : > { %v6800_v6 = vpop.f32.mrf.mxu3 }
 0x763   : > { %v6801_v24 = vadd.f32 %v13398_v12, %v6800_v6 }
 0x765   : > { %v6836_v33 = vadd.f32 %v6801_v24, %v12412_v57 }
 0x767   : > { %6868 = vst.msk [vmem:[%s12379_s26 + $0xf0] sm:$0xff] %vm875_vm1, %v6836_v33 }
 0x77f   : > { %v6803_v13 = vpop.f32.mrf.mxu3 }
 0x780   : > { %v6804_v37 = vadd.f32 %v13398_v12, %v6803_v13 }
 0x782   : > { %v6837_v43 = vadd.f32 %v6804_v37, %v12534_v53 }
 0x784   : > { %6869 = vst.msk [vmem:[%s12379_s26 + $0xf8] sm:$0xff] %vm875_vm1, %v6837_v43 }
 0x785   : > { %7589 = shalt.err (!%p7586_p3)
}
 0x786   : > { %s7631_s20 = smov 128   ;;  %s7632_s26 = smov 8  }
 0x787   : > { %7127 = dma.vmem_to_hbm [thread:$0]  (%p7761_p5), %s6884_s19, 4096, %s6886_s22, %s6871_s29, %s7631_s20, %s7631_s20, %s7632_s26  }
 0x788 PF: > { %p7133_p4 = scmp.ge.s32.totalorder %s7624_s27, 2  ;;  %s6900_s30 = sand.u32 1, %s7612_s24  }
 0x789   : > { %s6901_s2 = scalar_lea.sflag [#allocation5], %s6900_s30 }
 0x78a   : > { %p7130_p7 = pnand %p7133_p4, %p7765_p6 }
 0x78c   : > { %p7131_p8 = pneg %p7130_p7 }
 0x78e   : > { %7607 = dma.done.wait (%p7131_p8), %s6901_s2, 4096  }
 0x78f   : > { %7609 = vsyncadd (%p7131_p8), %s6901_s2, 4294963200  ;;  %s14593_s27 = sld [smem:[#allocation8_spill]]  ;;  %s14596_s24 = smov %s7616_s25 }
 0x790   : > { %s14594_s23 = sld [smem:[#allocation7_spill]] }
 0x791   : > { %s14595_s26 = sld [smem:[#allocation9_spill]] }
 0x795   : > { %p27_p9 = scmp.ge.s32.totalorder %s14593_s27, 4  }
 0x796   : > { %s14597_s25 = smov %s14594_s23 }
 0x797   :  { %29 = sbr.rel (!%p27_p9) target bundleno = 8 (0x8), region = 142 }
 0x79c   :  { %6907 = vsyncpa [#allocation5], 1 }
 0x79d   :  { %6909 = vsyncpa [#allocation5 + $0x1], 1 }

</bundles_post_ra>
